<compile_context>
chip_gen: v7x
topology: tpu7x:2x2x1
jax: 0.10.0
libtpu: 0.0.40
codegen_flags: <defaults>
</compile_context>

<pallas_src>
import functools
import math

import jax
import jax.numpy as jnp
from jax.experimental import pallas as pl
from jax.experimental.pallas import tpu as pltpu

_NEG_INF = -1e9
# TODO(synk): verify LeakyReLU negative_slope against the reference
# KPConvSimpleBlock (common implementations use 0.2; nn.LeakyReLU default 0.01).
_LEAKY_SLOPE = 0.2


# ----------------------------------------------------------------------------
# Generation-aware budgets
# ----------------------------------------------------------------------------
@functools.lru_cache(maxsize=None)
def _budget():
    """Returns (vmem_limit_bytes, default_block_rows)."""
    vmem = None
    try:
        vmem = int(pltpu.get_tpu_info().vmem_capacity_bytes)
    except Exception:
        vmem = None
    if vmem is not None and vmem >= (100 << 20):   # v5e / v6e : 128 MiB VMEM
        return (96 << 20, 1024)
    # v7x (64 MiB per TensorCore) or unknown -> stay conservative.
    return (48 << 20, 512)


def _cparams(semantics):
    return pltpu.CompilerParams(dimension_semantics=semantics,
                                vmem_limit_bytes=_budget()[0])


def _row_tile(M, block_rows):
    if block_rows is None:
        block_rows = _budget()[1]
    return M if M <= block_rows else block_rows


# ----------------------------------------------------------------------------
# Kernel 1: fused KP pointwise linears + embedding matmul, row-tiled
#   emb = LeakyReLU-chain(feat) @ W_feat + pos @ W_pos
# ----------------------------------------------------------------------------
def _kp_embed_kernel(pos_ref, feat_ref, *rest, n_kp, slope):
    o_ref = rest[-1]
    wfeat_ref = rest[-2]
    wpos_ref = rest[-3]
    h = feat_ref[...]                                         # (tm, D) bf16
    for i in range(n_kp):
        w = rest[2 * i][...]
        b = rest[2 * i + 1][...]
        y = jnp.dot(h, w, preferred_element_type=jnp.float32) + b
        y = jnp.where(y > 0.0, y, slope * y)
        h = y.astype(jnp.bfloat16)
    emb = (jnp.dot(pos_ref[...], wpos_ref[...], preferred_element_type=jnp.float32)
           + jnp.dot(h, wfeat_ref[...], preferred_element_type=jnp.float32))
    o_ref[...] = emb.astype(o_ref.dtype)


def kp_embed(pos, feat, kp_layers, w_pos, w_feat, *, block_rows=None,
             out_dtype=jnp.bfloat16):
    """pos: (M,3) bf16, feat: (M,D) bf16 -> (M,F) bf16 embedding."""
    M, D = feat.shape
    F = w_feat.shape[1]
    tm = _row_tile(M, block_rows)

    args = [pos, feat]
    in_specs = [pl.BlockSpec((tm, 3), lambda i: (i, 0)),
                pl.BlockSpec((tm, D), lambda i: (i, 0))]
    for layer in kp_layers:
        kin, kout = layer["w"].shape
        args += [layer["w"], layer["b"]]
        in_specs += [pl.BlockSpec((kin, kout), lambda i: (0, 0)),
                     pl.BlockSpec((1, kout), lambda i: (0, 0))]
    args += [w_pos, w_feat]
    in_specs += [pl.BlockSpec((3, F), lambda i: (0, 0)),
                 pl.BlockSpec((w_feat.shape[0], F), lambda i: (0, 0))]

    return pl.pallas_call(
        functools.partial(_kp_embed_kernel, n_kp=len(kp_layers),
                          slope=_LEAKY_SLOPE),
        out_shape=jax.ShapeDtypeStruct((M, F), out_dtype),
        grid=(pl.cdiv(M, tm),),
        in_specs=in_specs,
        out_specs=pl.BlockSpec((tm, F), lambda i: (i, 0)),
        compiler_params=_cparams(("parallel",)),
    )(*args)


# ----------------------------------------------------------------------------
# Kernel 2: fused Q / KV projection (1 read of x, 2 lane-dense outputs)
# ----------------------------------------------------------------------------
def _qkv_kernel(x_ref, wq_ref, bq_ref, wkv_ref, bkv_ref, q_ref, kv_ref):
    x = x_ref[...]
    q = jnp.dot(x, wq_ref[...], preferred_element_type=jnp.float32) + bq_ref[...]
    kv = jnp.dot(x, wkv_ref[...], preferred_element_type=jnp.float32) + bkv_ref[...]
    q_ref[...] = q.astype(q_ref.dtype)
    kv_ref[...] = kv.astype(kv_ref.dtype)


def qkv_linear(x, wq, bq, wkv, bkv, *, block_rows=None):
    """x: (M,F) bf16 -> q: (M,F) bf16, kv: (M,2F) bf16 (scale folded in wq/bq)."""
    M, F = x.shape
    F2 = wkv.shape[1]
    tm = _row_tile(M, block_rows)
    return pl.pallas_call(
        _qkv_kernel,
        out_shape=(jax.ShapeDtypeStruct((M, F), jnp.bfloat16),
                   jax.ShapeDtypeStruct((M, F2), jnp.bfloat16)),
        grid=(pl.cdiv(M, tm),),
        in_specs=[
            pl.BlockSpec((tm, F), lambda i: (i, 0)),
            pl.BlockSpec((F, F), lambda i: (0, 0)),
            pl.BlockSpec((1, F), lambda i: (0, 0)),
            pl.BlockSpec((F, F2), lambda i: (0, 0)),
            pl.BlockSpec((1, F2), lambda i: (0, 0)),
        ],
        out_specs=(pl.BlockSpec((tm, F), lambda i: (i, 0)),
                   pl.BlockSpec((tm, F2), lambda i: (i, 0))),
        compiler_params=_cparams(("parallel",)),
    )(x, wq, bq, wkv, bkv)


# ----------------------------------------------------------------------------
# Kernel 3: masked multi-head attention, query-tiled grid = (B, N//tq)
#   cluster mask built in-kernel from int32 cell ids; deferred softmax
#   normalization; per-head results gathered in an f32 VMEM scratch and stored
#   with one lane-dense (tq, F) store.
# ----------------------------------------------------------------------------
def _attn_kernel(q_ref, kv_ref, cq_ref, ck_ref, o_ref, acc_ref, *, heads, dh):
    F = heads * dh
    eq = cq_ref[0] == ck_ref[0]                       # (tq,1)==(1,N) -> (tq,N) bool
    q = q_ref[0]                                      # (tq, F)  bf16 (pre-scaled)
    kv = kv_ref[0]                                    # (N, 2F)  bf16
    for h in range(heads):                            # static small loop
        qh = q[:, h * dh:(h + 1) * dh]
        kh = kv[:, h * dh:(h + 1) * dh]
        vh = kv[:, F + h * dh:F + (h + 1) * dh]
        s = jax.lax.dot_general(qh, kh, (((1,), (1,)), ((), ())),
                                preferred_element_type=jnp.float32)   # (tq, N)
        s = jnp.where(eq, s, _NEG_INF)
        s = s - jnp.max(s, axis=-1, keepdims=True)
        p = jnp.exp(s)                                # un-normalized, <= 1
        denom = jnp.sum(p, axis=-1, keepdims=True)    # (tq, 1)
        oh = jnp.dot(p.astype(jnp.bfloat16), vh,
                     preferred_element_type=jnp.float32)              # (tq, dh)
        acc_ref[:, h * dh:(h + 1) * dh] = oh * pl.reciprocal(denom, approx=True)
    o_ref[0] = acc_ref[...].astype(o_ref.dtype)


def multihead_attention(q, kv, cid_q, cid_k, heads, *, q_tile=256):
    """q: (B,N,F) bf16, kv: (B,N,2F) bf16, cid_q: (B,N,1) i32, cid_k: (B,1,N) i32."""
    B, N, F = q.shape
    assert F % heads == 0
    dh = F // heads
    tq = min(q_tile, N)
    if N % tq != 0:
        tq = N
    nq = N // tq
    # TODO(synk): for very large N (full-N K/V tile + (tq,N) scores no longer
    # comfortable in VMEM) switch the KV side to an online-softmax grid axis.
    return pl.pallas_call(
        functools.partial(_attn_kernel, heads=heads, dh=dh),
        out_shape=jax.ShapeDtypeStruct((B, N, F), jnp.bfloat16),
        grid=(B, nq),
        in_specs=[
            pl.BlockSpec((1, tq, F), lambda b, qi: (b, qi, 0)),
            pl.BlockSpec((1, N, 2 * F), lambda b, qi: (b, 0, 0)),
            pl.BlockSpec((1, tq, 1), lambda b, qi: (b, qi, 0)),
            pl.BlockSpec((1, 1, N), lambda b, qi: (b, 0, 0)),
        ],
        out_specs=pl.BlockSpec((1, tq, F), lambda b, qi: (b, qi, 0)),
        scratch_shapes=[pltpu.VMEM((tq, F), jnp.float32)],
        compiler_params=_cparams(("parallel", "parallel")),
    )(q, kv, cid_q, cid_k)


# ----------------------------------------------------------------------------
# Kernel 4: encoder-block tail, fully fused & row-tiled
#   LN2( h + FFN(h) )  with  h = LN1( res + attn @ Wo + bo )
#   -> one HBM read of attn/res, one HBM write of the block output; the LN1
#   output and the (tm, hidden) FFN intermediate stay in VMEM.
# ----------------------------------------------------------------------------
def _block_tail_kernel(attn_ref, res_ref, ow_ref, ob_ref, g1_ref, bt1_ref,
                       w1_ref, fb1_ref, w2_ref, fb2_ref, g2_ref, bt2_ref,
                       o_ref, *, eps):
    y = jnp.dot(attn_ref[...], ow_ref[...], preferred_element_type=jnp.float32)
    z = y + ob_ref[...] + res_ref[...].astype(jnp.float32)
    mu = jnp.mean(z, axis=-1, keepdims=True)
    var = jnp.mean(jnp.square(z - mu), axis=-1, keepdims=True)
    h = (z - mu) * jax.lax.rsqrt(var + eps) * g1_ref[...] + bt1_ref[...]   # f32

    t = jnp.dot(h.astype(jnp.bfloat16), w1_ref[...],
                preferred_element_type=jnp.float32) + fb1_ref[...]
    t = jnp.maximum(t, 0.0)
    y2 = jnp.dot(t.astype(jnp.bfloat16), w2_ref[...],
                 preferred_element_type=jnp.float32) + fb2_ref[...]
    z2 = y2 + h
    mu2 = jnp.mean(z2, axis=-1, keepdims=True)
    var2 = jnp.mean(jnp.square(z2 - mu2), axis=-1, keepdims=True)
    o_ref[...] = ((z2 - mu2) * jax.lax.rsqrt(var2 + eps) * g2_ref[...]
                  + bt2_ref[...]).astype(o_ref.dtype)


def block_tail(attn, res, blk, *, eps=1e-5, block_rows=None,
               out_dtype=jnp.bfloat16):
    M, F = attn.shape
    H = blk["ff1_w"].shape[1]
    tm = _row_tile(M, block_rows)
    return pl.pallas_call(
        functools.partial(_block_tail_kernel, eps=eps),
        out_shape=jax.ShapeDtypeStruct((M, F), out_dtype),
        grid=(pl.cdiv(M, tm),),
        in_specs=[
            pl.BlockSpec((tm, F), lambda i: (i, 0)),     # attn
            pl.BlockSpec((tm, F), lambda i: (i, 0)),     # residual (block input)
            pl.BlockSpec((F, F), lambda i: (0, 0)),      # Wo
            pl.BlockSpec((1, F), lambda i: (0, 0)),      # bo
            pl.BlockSpec((1, F), lambda i: (0, 0)),      # LN1 gamma
            pl.BlockSpec((1, F), lambda i: (0, 0)),      # LN1 beta
            pl.BlockSpec((F, H), lambda i: (0, 0)),      # W1
            pl.BlockSpec((1, H), lambda i: (0, 0)),      # b1
            pl.BlockSpec((H, F), lambda i: (0, 0)),      # W2
            pl.BlockSpec((1, F), lambda i: (0, 0)),      # b2
            pl.BlockSpec((1, F), lambda i: (0, 0)),      # LN2 gamma
            pl.BlockSpec((1, F), lambda i: (0, 0)),      # LN2 beta
        ],
        out_specs=pl.BlockSpec((tm, F), lambda i: (i, 0)),
        compiler_params=_cparams(("parallel",)),
    )(attn, res, blk["o_w"], blk["o_b"], blk["ln1_g"], blk["ln1_b"],
      blk["ff1_w"], blk["ff1_b"], blk["ff2_w"], blk["ff2_b"],
      blk["ln2_g"], blk["ln2_b"])


# ----------------------------------------------------------------------------
# Model glue
# ----------------------------------------------------------------------------
def encoder_block(x, cid_q, cid_k, blk, *, heads, block_rows, q_tile,
                  out_dtype=jnp.bfloat16):
    """Post-LN transformer EncoderBlock (eval mode, dropout = identity).
    3 pallas_calls per block: fused Q/KV, attention, fused O+LN1+FFN+LN2."""
    B, N, F = x.shape
    x2 = x.reshape(B * N, F)

    q, kv = qkv_linear(x2, blk["q_w"], blk["q_b"], blk["kv_w"], blk["kv_b"],
                       block_rows=block_rows)
    attn = multihead_attention(q.reshape(B, N, F), kv.reshape(B, N, 2 * F),
                               cid_q, cid_k, heads, q_tile=q_tile)
    out = block_tail(attn.reshape(B * N, F), x2, blk, block_rows=block_rows,
                     out_dtype=out_dtype)
    return out.reshape(B, N, F)


def pc_trs_forward(position, feature, params, *, heads, window_size,
                   block_rows=None, q_tile=256):
    B, N, _ = position.shape
    D = feature.shape[-1]
    M = B * N

    # ---- fused KPConv stand-in + embedding ----
    # TODO(synk): torch_points ball_query + kernel-point neighbor aggregation of
    # KPConvSimpleBlock has no clean Pallas equivalent; implemented as pointwise
    # linear + LeakyReLU (BatchNorm in eval with default stats is identity).
    pos2 = position.reshape(M, 3).astype(jnp.bfloat16)
    feat2 = feature.reshape(M, D).astype(jnp.bfloat16)
    emb = kp_embed(pos2, feat2, params["kp"], params["w_pos"], params["w_feat"],
                   block_rows=block_rows)                       # (M, F) bf16
    F = emb.shape[-1]
    emb = emb.reshape(B, N, F)

    # ---- per-point cluster ids (grid_sample replacement) ----
    # TODO(synk): exact torch_points3d grid_sample cluster ids not reproduced;
    # clusters are formed by quantizing coordinates to the cluster window.
    cell = jnp.floor(position / window_size).astype(jnp.int32)  # (B, N, 3)
    cell_id = (cell[..., 0] * 73856093 + cell[..., 1] * 19349663
               + cell[..., 2] * 83492791)                       # (B, N)
    cid_q = cell_id[:, :, None]                                 # (B, N, 1)
    cid_k = cell_id[:, None, :]                                 # (B, 1, N)

    # ---- encoder blocks ----
    n_blocks = len(params["enc"])
    for li, blk in enumerate(params["enc"]):
        emb = encoder_block(
            emb, cid_q, cid_k, blk, heads=heads, block_rows=block_rows,
            q_tile=q_tile,
            out_dtype=jnp.float32 if li == n_blocks - 1 else jnp.bfloat16)

    # pool_type=None -> identity (no AdaptiveAvg/MaxPool2d applied)
    return emb


# ----------------------------------------------------------------------------
# Deterministic parameter init (torch-like layout) + one-time packing
# ----------------------------------------------------------------------------
def init_params(key, feat_dim, kp_channels, kp_blocks, mlp_blocks,
                mlp_feature, mlp_hidden):
    keys = iter(jax.random.split(key, 4 + kp_blocks + 6 * mlp_blocks))

    def dense(k, fan_in, fan_out):
        w = jax.random.normal(k, (fan_in, fan_out), jnp.float32) / math.sqrt(fan_in)
        return {"w": w, "b": jnp.zeros((fan_out,), jnp.float32)}

    params = {}
    kp = []
    c_in = feat_dim
    for _ in range(kp_blocks):
        kp.append(dense(next(keys), c_in, kp_channels))
        c_in = kp_channels
    params["kp"] = kp

    # weightmatrix: nn.Parameter(torch.randn(1, C+3, mlp_feature)) -> (C+3, F)
    params["weightmatrix"] = jax.random.normal(
        next(keys), (kp_channels + 3, mlp_feature), jnp.float32)

    enc = []
    for _ in range(mlp_blocks):
        enc.append({
            "q": dense(next(keys), mlp_feature, mlp_feature),
            "k": dense(next(keys), mlp_feature, mlp_feature),
            "v": dense(next(keys), mlp_feature, mlp_feature),
            "o": dense(next(keys), mlp_feature, mlp_feature),
            "ff1": dense(next(keys), mlp_feature, mlp_hidden),
            "ff2": dense(next(keys), mlp_hidden, mlp_feature),
            "ln1_g": jnp.ones((mlp_feature,), jnp.float32),
            "ln1_b": jnp.zeros((mlp_feature,), jnp.float32),
            "ln2_g": jnp.ones((mlp_feature,), jnp.float32),
            "ln2_b": jnp.zeros((mlp_feature,), jnp.float32),
        })
    params["enc"] = enc
    return params


def pack_params(p, *, heads):
    """One-time packing (hoisted out of the per-call path):
       * weightmatrix split into W_pos (3,F) / W_feat (C,F)   (concat removed)
       * 1/sqrt(dh) attention scale folded into W_q / b_q     (no runtime mul)
       * K/V weights fused; matmul weights bf16; biases / LN params (1,N) f32."""
    def w16(w):
        return w.astype(jnp.bfloat16)

    def brow(b):
        return b.astype(jnp.float32).reshape(1, -1)

    out = {"kp": [{"w": w16(l["w"]), "b": brow(l["b"])} for l in p["kp"]]}
    wm = p["weightmatrix"]
    out["w_pos"] = w16(wm[:3])
    out["w_feat"] = w16(wm[3:])

    enc = []
    for blk in p["enc"]:
        F = blk["q"]["w"].shape[1]
        scale = 1.0 / math.sqrt(F // heads)
        enc.append({
            "q_w": w16(blk["q"]["w"] * scale),
            "q_b": brow(blk["q"]["b"] * scale),
            "kv_w": w16(jnp.concatenate([blk["k"]["w"], blk["v"]["w"]], axis=1)),
            "kv_b": brow(jnp.concatenate([blk["k"]["b"], blk["v"]["b"]], axis=0)),
            "o_w": w16(blk["o"]["w"]), "o_b": brow(blk["o"]["b"]),
            "ff1_w": w16(blk["ff1"]["w"]), "ff1_b": brow(blk["ff1"]["b"]),
            "ff2_w": w16(blk["ff2"]["w"]), "ff2_b": brow(blk["ff2"]["b"]),
            "ln1_g": brow(blk["ln1_g"]), "ln1_b": brow(blk["ln1_b"]),
            "ln2_g": brow(blk["ln2_g"]), "ln2_b": brow(blk["ln2_b"]),
        })
    out["enc"] = enc
    return out


# ----------------------------------------------------------------------------
if __name__ == "__main__":
    key = jax.random.PRNGKey(0)
    k_pos, k_feat, k_params = jax.random.split(key, 3)

    # small, module-consistent shapes (lane-dense feature dim = 128)
    B, N = 2, 128         # batch, number of points
    feat_dim = 4          # input feature dim D
    kp_channels = 8       # KP_conv_channels
    kp_blocks = 2         # KP_conv_blocks
    mlp_blocks = 2        # number of EncoderBlocks
    mlp_feature = 128     # n_features
    mlp_heads = 4
    mlp_hidden = 256
    cluster_window_size = 0.5

    position = jax.random.uniform(k_pos, (B, N, 3), jnp.float32)
    feature = jax.random.normal(k_feat, (B, N, feat_dim), jnp.float32)

    raw_params = init_params(k_params, feat_dim, kp_channels, kp_blocks,
                             mlp_blocks, mlp_feature, mlp_hidden)
    params = pack_params(raw_params, heads=mlp_heads)

    # block_rows=None -> generation-aware default (1024 on v5e/v6e, 512 on v7x).
    fwd = jax.jit(functools.partial(pc_trs_forward, heads=mlp_heads,
                                    window_size=cluster_window_size,
                                    block_rows=None, q_tile=256))
    out = jax.block_until_ready(fwd(position, feature, params))
    assert out.shape == (B, N, mlp_feature)
    assert out.dtype == jnp.float32
    assert bool(jnp.all(jnp.isfinite(out)))
    print("KERNEL_OK")
</pallas_src>

<mosaic_0001>
module attributes {stable_mosaic.version = 11 : i64} {
  func.func @_kp_embed_kernel(%arg0: i32, %arg1: memref<256x3xbf16, #tpu.memory_space<vmem>>, %arg2: memref<256x4xbf16, #tpu.memory_space<vmem>>, %arg3: memref<4x8xbf16, #tpu.memory_space<vmem>>, %arg4: memref<1x8xf32, #tpu.memory_space<vmem>>, %arg5: memref<8x8xbf16, #tpu.memory_space<vmem>>, %arg6: memref<1x8xf32, #tpu.memory_space<vmem>>, %arg7: memref<3x128xbf16, #tpu.memory_space<vmem>>, %arg8: memref<8x128xbf16, #tpu.memory_space<vmem>>, %arg9: memref<256x128xbf16, #tpu.memory_space<vmem>>) attributes {dimension_semantics = [#tpu.dimension_semantics<parallel>], iteration_bounds = array<i64: 1>, scalar_prefetch = 0 : i64, scratch_operands = 0 : i64, tpu.core_type = #tpu.core_type<tc>, window_params = [{transform_indices = @transform_0, window_bounds = array<i64: 256, 3>}, {transform_indices = @transform_1, window_bounds = array<i64: 256, 4>}, {pipeline_mode = #tpu.pipeline_mode<synchronous>, transform_indices = @transform_2, window_bounds = array<i64: 4, 8>}, {pipeline_mode = #tpu.pipeline_mode<synchronous>, transform_indices = @transform_3, window_bounds = array<i64: 1, 8>}, {pipeline_mode = #tpu.pipeline_mode<synchronous>, transform_indices = @transform_4, window_bounds = array<i64: 8, 8>}, {pipeline_mode = #tpu.pipeline_mode<synchronous>, transform_indices = @transform_5, window_bounds = array<i64: 1, 8>}, {pipeline_mode = #tpu.pipeline_mode<synchronous>, transform_indices = @transform_6, window_bounds = array<i64: 3, 128>}, {pipeline_mode = #tpu.pipeline_mode<synchronous>, transform_indices = @transform_7, window_bounds = array<i64: 8, 128>}, {transform_indices = @transform_8, window_bounds = array<i64: 256, 128>}]} {
    %c0 = arith.constant 0 : index
    %c0_0 = arith.constant 0 : index
    %0 = vector.load %arg2[%c0, %c0_0] : memref<256x4xbf16, #tpu.memory_space<vmem>>, vector<256x4xbf16>
    %c0_1 = arith.constant 0 : index
    %c0_2 = arith.constant 0 : index
    %1 = vector.load %arg3[%c0_1, %c0_2] : memref<4x8xbf16, #tpu.memory_space<vmem>>, vector<4x8xbf16>
    %c0_3 = arith.constant 0 : index
    %c0_4 = arith.constant 0 : index
    %2 = vector.load %arg4[%c0_3, %c0_4] : memref<1x8xf32, #tpu.memory_space<vmem>>, vector<1x8xf32>
    %cst = arith.constant dense<0.000000e+00> : vector<256x8xf32>
    %3 = tpu.matmul %0, %1, %cst {dimension_numbers = #tpu.dot_dimension_numbers<[1], [0], [0], [1], [0, 0, 1, 1], [], []>} : vector<256x4xbf16>, vector<4x8xbf16>, vector<256x8xf32> -> vector<256x8xf32>
    %4 = vector.broadcast %2 : vector<1x8xf32> to vector<256x8xf32>
    %5 = arith.addf %3, %4 : vector<256x8xf32>
    %cst_5 = arith.constant 0.000000e+00 : f32
    %6 = vector.broadcast %cst_5 : f32 to vector<256x8xf32>
    %7 = arith.cmpf ogt, %5, %6 : vector<256x8xf32>
    %cst_6 = arith.constant 2.000000e-01 : f32
    %8 = vector.broadcast %cst_6 : f32 to vector<256x8xf32>
    %9 = arith.mulf %8, %5 : vector<256x8xf32>
    %10 = arith.select %7, %5, %9 : vector<256x8xi1>, vector<256x8xf32>
    %11 = arith.truncf %10 : vector<256x8xf32> to vector<256x8xbf16>
    %c0_7 = arith.constant 0 : index
    %c0_8 = arith.constant 0 : index
    %12 = vector.load %arg5[%c0_7, %c0_8] : memref<8x8xbf16, #tpu.memory_space<vmem>>, vector<8x8xbf16>
    %c0_9 = arith.constant 0 : index
    %c0_10 = arith.constant 0 : index
    %13 = vector.load %arg6[%c0_9, %c0_10] : memref<1x8xf32, #tpu.memory_space<vmem>>, vector<1x8xf32>
    %cst_11 = arith.constant dense<0.000000e+00> : vector<256x8xf32>
    %14 = tpu.matmul %11, %12, %cst_11 {dimension_numbers = #tpu.dot_dimension_numbers<[1], [0], [0], [1], [0, 0, 1, 1], [], []>} : vector<256x8xbf16>, vector<8x8xbf16>, vector<256x8xf32> -> vector<256x8xf32>
    %15 = vector.broadcast %13 : vector<1x8xf32> to vector<256x8xf32>
    %16 = arith.addf %14, %15 : vector<256x8xf32>
    %cst_12 = arith.constant 0.000000e+00 : f32
    %17 = vector.broadcast %cst_12 : f32 to vector<256x8xf32>
    %18 = arith.cmpf ogt, %16, %17 : vector<256x8xf32>
    %cst_13 = arith.constant 2.000000e-01 : f32
    %19 = vector.broadcast %cst_13 : f32 to vector<256x8xf32>
    %20 = arith.mulf %19, %16 : vector<256x8xf32>
    %21 = arith.select %18, %16, %20 : vector<256x8xi1>, vector<256x8xf32>
    %22 = arith.truncf %21 : vector<256x8xf32> to vector<256x8xbf16>
    %c0_14 = arith.constant 0 : index
    %c0_15 = arith.constant 0 : index
    %23 = vector.load %arg1[%c0_14, %c0_15] : memref<256x3xbf16, #tpu.memory_space<vmem>>, vector<256x3xbf16>
    %c0_16 = arith.constant 0 : index
    %c0_17 = arith.constant 0 : index
    %24 = vector.load %arg7[%c0_16, %c0_17] : memref<3x128xbf16, #tpu.memory_space<vmem>>, vector<3x128xbf16>
    %cst_18 = arith.constant dense<0.000000e+00> : vector<256x128xf32>
    %25 = tpu.matmul %23, %24, %cst_18 {dimension_numbers = #tpu.dot_dimension_numbers<[1], [0], [0], [1], [0, 0, 1, 1], [], []>} : vector<256x3xbf16>, vector<3x128xbf16>, vector<256x128xf32> -> vector<256x128xf32>
    %c0_19 = arith.constant 0 : index
    %c0_20 = arith.constant 0 : index
    %26 = vector.load %arg8[%c0_19, %c0_20] : memref<8x128xbf16, #tpu.memory_space<vmem>>, vector<8x128xbf16>
    %cst_21 = arith.constant dense<0.000000e+00> : vector<256x128xf32>
    %27 = tpu.matmul %22, %26, %cst_21 {dimension_numbers = #tpu.dot_dimension_numbers<[1], [0], [0], [1], [0, 0, 1, 1], [], []>} : vector<256x8xbf16>, vector<8x128xbf16>, vector<256x128xf32> -> vector<256x128xf32>
    %28 = arith.addf %25, %27 : vector<256x128xf32>
    %29 = arith.truncf %28 : vector<256x128xf32> to vector<256x128xbf16>
    %c0_22 = arith.constant 0 : index
    %c0_23 = arith.constant 0 : index
    %30 = vector.load %arg9[%c0_22, %c0_23] : memref<256x128xbf16, #tpu.memory_space<vmem>>, vector<256x128xbf16>
    tpu.vector_store %arg9[%c0_22, %c0_23], %29 {strides = array<i32>} : memref<256x128xbf16, #tpu.memory_space<vmem>>, vector<256x128xbf16>,
    return
  }
  func.func @transform_0(%arg0: i32) -> (i32, i32) {
    %c0_i32 = arith.constant 0 : i32
    %c0_i32_0 = arith.constant 0 : i32
    return %arg0, %c0_i32 : i32, i32
  }
  func.func @transform_1(%arg0: i32) -> (i32, i32) {
    %c0_i32 = arith.constant 0 : i32
    %c0_i32_0 = arith.constant 0 : i32
    return %arg0, %c0_i32 : i32, i32
  }
  func.func @transform_2(%arg0: i32) -> (i32, i32) {
    %c0_i32 = arith.constant 0 : i32
    %c0_i32_0 = arith.constant 0 : i32
    %c0_i32_1 = arith.constant 0 : i32
    return %c0_i32, %c0_i32_0 : i32, i32
  }
  func.func @transform_3(%arg0: i32) -> (i32, i32) {
    %c0_i32 = arith.constant 0 : i32
    %c0_i32_0 = arith.constant 0 : i32
    %c0_i32_1 = arith.constant 0 : i32
    return %c0_i32, %c0_i32_0 : i32, i32
  }
  func.func @transform_4(%arg0: i32) -> (i32, i32) {
    %c0_i32 = arith.constant 0 : i32
    %c0_i32_0 = arith.constant 0 : i32
    %c0_i32_1 = arith.constant 0 : i32
    return %c0_i32, %c0_i32_0 : i32, i32
  }
  func.func @transform_5(%arg0: i32) -> (i32, i32) {
    %c0_i32 = arith.constant 0 : i32
    %c0_i32_0 = arith.constant 0 : i32
    %c0_i32_1 = arith.constant 0 : i32
    return %c0_i32, %c0_i32_0 : i32, i32
  }
  func.func @transform_6(%arg0: i32) -> (i32, i32) {
    %c0_i32 = arith.constant 0 : i32
    %c0_i32_0 = arith.constant 0 : i32
    %c0_i32_1 = arith.constant 0 : i32
    return %c0_i32, %c0_i32_0 : i32, i32
  }
  func.func @transform_7(%arg0: i32) -> (i32, i32) {
    %c0_i32 = arith.constant 0 : i32
    %c0_i32_0 = arith.constant 0 : i32
    %c0_i32_1 = arith.constant 0 : i32
    return %c0_i32, %c0_i32_0 : i32, i32
  }
  func.func @transform_8(%arg0: i32) -> (i32, i32) {
    %c0_i32 = arith.constant 0 : i32
    %c0_i32_0 = arith.constant 0 : i32
    return %arg0, %c0_i32 : i32, i32
  }
}

module attributes {stable_mosaic.version = 11 : i64} {
  func.func @_qkv_kernel(%arg0: i32, %arg1: memref<256x128xbf16, #tpu.memory_space<vmem>>, %arg2: memref<128x128xbf16, #tpu.memory_space<vmem>>, %arg3: memref<1x128xf32, #tpu.memory_space<vmem>>, %arg4: memref<128x256xbf16, #tpu.memory_space<vmem>>, %arg5: memref<1x256xf32, #tpu.memory_space<vmem>>, %arg6: memref<256x128xbf16, #tpu.memory_space<vmem>>, %arg7: memref<256x256xbf16, #tpu.memory_space<vmem>>) attributes {dimension_semantics = [#tpu.dimension_semantics<parallel>], iteration_bounds = array<i64: 1>, scalar_prefetch = 0 : i64, scratch_operands = 0 : i64, tpu.core_type = #tpu.core_type<tc>, window_params = [{transform_indices = @transform_0, window_bounds = array<i64: 256, 128>}, {pipeline_mode = #tpu.pipeline_mode<synchronous>, transform_indices = @transform_1, window_bounds = array<i64: 128, 128>}, {pipeline_mode = #tpu.pipeline_mode<synchronous>, transform_indices = @transform_2, window_bounds = array<i64: 1, 128>}, {pipeline_mode = #tpu.pipeline_mode<synchronous>, transform_indices = @transform_3, window_bounds = array<i64: 128, 256>}, {pipeline_mode = #tpu.pipeline_mode<synchronous>, transform_indices = @transform_4, window_bounds = array<i64: 1, 256>}, {transform_indices = @transform_5, window_bounds = array<i64: 256, 128>}, {transform_indices = @transform_6, window_bounds = array<i64: 256, 256>}]} {
    %c0 = arith.constant 0 : index
    %c0_0 = arith.constant 0 : index
    %0 = vector.load %arg1[%c0, %c0_0] : memref<256x128xbf16, #tpu.memory_space<vmem>>, vector<256x128xbf16>
    %c0_1 = arith.constant 0 : index
    %c0_2 = arith.constant 0 : index
    %1 = vector.load %arg2[%c0_1, %c0_2] : memref<128x128xbf16, #tpu.memory_space<vmem>>, vector<128x128xbf16>
    %cst = arith.constant dense<0.000000e+00> : vector<256x128xf32>
    %2 = tpu.matmul %0, %1, %cst {dimension_numbers = #tpu.dot_dimension_numbers<[1], [0], [0], [1], [0, 0, 1, 1], [], []>} : vector<256x128xbf16>, vector<128x128xbf16>, vector<256x128xf32> -> vector<256x128xf32>
    %c0_3 = arith.constant 0 : index
    %c0_4 = arith.constant 0 : index
    %3 = vector.load %arg3[%c0_3, %c0_4] : memref<1x128xf32, #tpu.memory_space<vmem>>, vector<1x128xf32>
    %4 = vector.broadcast %3 : vector<1x128xf32> to vector<256x128xf32>
    %5 = arith.addf %2, %4 : vector<256x128xf32>
    %c0_5 = arith.constant 0 : index
    %c0_6 = arith.constant 0 : index
    %6 = vector.load %arg4[%c0_5, %c0_6] : memref<128x256xbf16, #tpu.memory_space<vmem>>, vector<128x256xbf16>
    %cst_7 = arith.constant dense<0.000000e+00> : vector<256x256xf32>
    %7 = tpu.matmul %0, %6, %cst_7 {dimension_numbers = #tpu.dot_dimension_numbers<[1], [0], [0], [1], [0, 0, 1, 1], [], []>} : vector<256x128xbf16>, vector<128x256xbf16>, vector<256x256xf32> -> vector<256x256xf32>
    %c0_8 = arith.constant 0 : index
    %c0_9 = arith.constant 0 : index
    %8 = vector.load %arg5[%c0_8, %c0_9] : memref<1x256xf32, #tpu.memory_space<vmem>>, vector<1x256xf32>
    %9 = vector.broadcast %8 : vector<1x256xf32> to vector<256x256xf32>
    %10 = arith.addf %7, %9 : vector<256x256xf32>
    %11 = arith.truncf %5 : vector<256x128xf32> to vector<256x128xbf16>
    %c0_10 = arith.constant 0 : index
    %c0_11 = arith.constant 0 : index
    %12 = vector.load %arg6[%c0_10, %c0_11] : memref<256x128xbf16, #tpu.memory_space<vmem>>, vector<256x128xbf16>
    tpu.vector_store %arg6[%c0_10, %c0_11], %11 {strides = array<i32>} : memref<256x128xbf16, #tpu.memory_space<vmem>>, vector<256x128xbf16>,
    %13 = arith.truncf %10 : vector<256x256xf32> to vector<256x256xbf16>
    %c0_12 = arith.constant 0 : index
    %c0_13 = arith.constant 0 : index
    %14 = vector.load %arg7[%c0_12, %c0_13] : memref<256x256xbf16, #tpu.memory_space<vmem>>, vector<256x256xbf16>
    tpu.vector_store %arg7[%c0_12, %c0_13], %13 {strides = array<i32>} : memref<256x256xbf16, #tpu.memory_space<vmem>>, vector<256x256xbf16>,
    return
  }
  func.func @transform_0(%arg0: i32) -> (i32, i32) {
    %c0_i32 = arith.constant 0 : i32
    %c0_i32_0 = arith.constant 0 : i32
    return %arg0, %c0_i32 : i32, i32
  }
  func.func @transform_1(%arg0: i32) -> (i32, i32) {
    %c0_i32 = arith.constant 0 : i32
    %c0_i32_0 = arith.constant 0 : i32
    %c0_i32_1 = arith.constant 0 : i32
    return %c0_i32, %c0_i32_0 : i32, i32
  }
  func.func @transform_2(%arg0: i32) -> (i32, i32) {
    %c0_i32 = arith.constant 0 : i32
    %c0_i32_0 = arith.constant 0 : i32
    %c0_i32_1 = arith.constant 0 : i32
    return %c0_i32, %c0_i32_0 : i32, i32
  }
  func.func @transform_3(%arg0: i32) -> (i32, i32) {
    %c0_i32 = arith.constant 0 : i32
    %c0_i32_0 = arith.constant 0 : i32
    %c0_i32_1 = arith.constant 0 : i32
    return %c0_i32, %c0_i32_0 : i32, i32
  }
  func.func @transform_4(%arg0: i32) -> (i32, i32) {
    %c0_i32 = arith.constant 0 : i32
    %c0_i32_0 = arith.constant 0 : i32
    %c0_i32_1 = arith.constant 0 : i32
    return %c0_i32, %c0_i32_0 : i32, i32
  }
  func.func @transform_5(%arg0: i32) -> (i32, i32) {
    %c0_i32 = arith.constant 0 : i32
    %c0_i32_0 = arith.constant 0 : i32
    return %arg0, %c0_i32 : i32, i32
  }
  func.func @transform_6(%arg0: i32) -> (i32, i32) {
    %c0_i32 = arith.constant 0 : i32
    %c0_i32_0 = arith.constant 0 : i32
    return %arg0, %c0_i32 : i32, i32
  }
}

module attributes {stable_mosaic.version = 11 : i64} {
  func.func @_attn_kernel(%arg0: i32, %arg1: i32, %arg2: memref<1x128x128xbf16, #tpu.memory_space<vmem>>, %arg3: memref<1x128x256xbf16, #tpu.memory_space<vmem>>, %arg4: memref<1x128x1xi32, #tpu.memory_space<vmem>>, %arg5: memref<1x1x128xi32, #tpu.memory_space<vmem>>, %arg6: memref<1x128x128xbf16, #tpu.memory_space<vmem>>, %arg7: memref<128x128xf32, #tpu.memory_space<vmem>>) attributes {dimension_semantics = [#tpu.dimension_semantics<parallel>, #tpu.dimension_semantics<parallel>], iteration_bounds = array<i64: 2, 1>, scalar_prefetch = 0 : i64, scratch_operands = 1 : i64, tpu.core_type = #tpu.core_type<tc>, window_params = [{transform_indices = @transform_0, window_bounds = array<i64: 1, 128, 128>}, {transform_indices = @transform_1, window_bounds = array<i64: 1, 128, 256>}, {transform_indices = @transform_2, window_bounds = array<i64: 1, 128, 1>}, {transform_indices = @transform_3, window_bounds = array<i64: 1, 1, 128>}, {transform_indices = @transform_4, window_bounds = array<i64: 1, 128, 128>}]} {
    %c0 = arith.constant 0 : index
    %c0_0 = arith.constant 0 : index
    %c0_1 = arith.constant 0 : index
    %0 = vector.load %arg4[%c0, %c0_0, %c0_1] : memref<1x128x1xi32, #tpu.memory_space<vmem>>, vector<1x128x1xi32>
    %1 = vector.shape_cast %0 : vector<1x128x1xi32> to vector<128x1xi32>
    %c0_2 = arith.constant 0 : index
    %c0_3 = arith.constant 0 : index
    %c0_4 = arith.constant 0 : index
    %2 = vector.load %arg5[%c0_2, %c0_3, %c0_4] : memref<1x1x128xi32, #tpu.memory_space<vmem>>, vector<1x1x128xi32>
    %3 = vector.shape_cast %2 : vector<1x1x128xi32> to vector<1x128xi32>
    %4 = vector.broadcast %1 : vector<128x1xi32> to vector<128x128xi32>
    %5 = vector.broadcast %3 : vector<1x128xi32> to vector<128x128xi32>
    %6 = arith.cmpi eq, %4, %5 : vector<128x128xi32>
    %c0_5 = arith.constant 0 : index
    %c0_6 = arith.constant 0 : index
    %c0_7 = arith.constant 0 : index
    %7 = vector.load %arg2[%c0_5, %c0_6, %c0_7] : memref<1x128x128xbf16, #tpu.memory_space<vmem>>, vector<1x128x128xbf16>
    %8 = vector.shape_cast %7 : vector<1x128x128xbf16> to vector<128x128xbf16>
    %c0_8 = arith.constant 0 : index
    %c0_9 = arith.constant 0 : index
    %c0_10 = arith.constant 0 : index
    %9 = vector.load %arg3[%c0_8, %c0_9, %c0_10] : memref<1x128x256xbf16, #tpu.memory_space<vmem>>, vector<1x128x256xbf16>
    %10 = vector.shape_cast %9 : vector<1x128x256xbf16> to vector<128x256xbf16>
    %11 = vector.extract_strided_slice %8 {offsets = [0, 0], sizes = [128, 32], strides = [1, 1]} : vector<128x128xbf16> to vector<128x32xbf16>
    %12 = vector.extract_strided_slice %10 {offsets = [0, 0], sizes = [128, 32], strides = [1, 1]} : vector<128x256xbf16> to vector<128x32xbf16>
    %13 = vector.extract_strided_slice %10 {offsets = [0, 128], sizes = [128, 32], strides = [1, 1]} : vector<128x256xbf16> to vector<128x32xbf16>
    %cst = arith.constant dense<0.000000e+00> : vector<128x128xf32>
    %14 = tpu.matmul %11, %12, %cst {dimension_numbers = #tpu.dot_dimension_numbers<[1], [1], [0], [0], [0, 0, 1, 0], [], []>} : vector<128x32xbf16>, vector<128x32xbf16>, vector<128x128xf32> -> vector<128x128xf32>
    %cst_11 = arith.constant -1.000000e+09 : f32
    %15 = vector.broadcast %cst_11 : f32 to vector<128x128xf32>
    %16 = arith.select %6, %14, %15 : vector<128x128xi1>, vector<128x128xf32>
    %cst_12 = arith.constant dense<0xFF800000> : vector<128xf32>
    %17 = vector.multi_reduction <maximumf>, %16, %cst_12 [1] : vector<128x128xf32> to vector<128xf32>
    %18 = vector.shape_cast %17 : vector<128xf32> to vector<128x1xf32>
    %19 = vector.broadcast %18 : vector<128x1xf32> to vector<128x128xf32>
    %20 = arith.subf %16, %19 : vector<128x128xf32>
    %21 = math.exp %20 : vector<128x128xf32>
    %cst_13 = arith.constant dense<0.000000e+00> : vector<128xf32>
    %22 = vector.multi_reduction <add>, %21, %cst_13 [1] : vector<128x128xf32> to vector<128xf32>
    %23 = vector.shape_cast %22 : vector<128xf32> to vector<128x1xf32>
    %24 = arith.truncf %21 : vector<128x128xf32> to vector<128x128xbf16>
    %cst_14 = arith.constant dense<0.000000e+00> : vector<128x32xf32>
    %25 = tpu.matmul %24, %13, %cst_14 {dimension_numbers = #tpu.dot_dimension_numbers<[1], [0], [0], [1], [0, 0, 1, 1], [], []>} : vector<128x128xbf16>, vector<128x32xbf16>, vector<128x32xf32> -> vector<128x32xf32>
    %26 = tpu.reciprocal %23 {approx = true} : vector<128x1xf32> -> vector<128x1xf32>
    %27 = vector.broadcast %26 : vector<128x1xf32> to vector<128x32xf32>
    %28 = arith.mulf %25, %27 : vector<128x32xf32>
    %c0_15 = arith.constant 0 : index
    %c0_16 = arith.constant 0 : index
    %29 = vector.load %arg7[%c0_15, %c0_16] : memref<128x128xf32, #tpu.memory_space<vmem>>, vector<128x32xf32>
    tpu.vector_store %arg7[%c0_15, %c0_16], %28 {strides = array<i32>} : memref<128x128xf32, #tpu.memory_space<vmem>>, vector<128x32xf32>,
    %30 = vector.extract_strided_slice %8 {offsets = [0, 32], sizes = [128, 32], strides = [1, 1]} : vector<128x128xbf16> to vector<128x32xbf16>
    %31 = vector.extract_strided_slice %10 {offsets = [0, 32], sizes = [128, 32], strides = [1, 1]} : vector<128x256xbf16> to vector<128x32xbf16>
    %32 = vector.extract_strided_slice %10 {offsets = [0, 160], sizes = [128, 32], strides = [1, 1]} : vector<128x256xbf16> to vector<128x32xbf16>
    %cst_17 = arith.constant dense<0.000000e+00> : vector<128x128xf32>
    %33 = tpu.matmul %30, %31, %cst_17 {dimension_numbers = #tpu.dot_dimension_numbers<[1], [1], [0], [0], [0, 0, 1, 0], [], []>} : vector<128x32xbf16>, vector<128x32xbf16>, vector<128x128xf32> -> vector<128x128xf32>
    %cst_18 = arith.constant -1.000000e+09 : f32
    %34 = vector.broadcast %cst_18 : f32 to vector<128x128xf32>
    %35 = arith.select %6, %33, %34 : vector<128x128xi1>, vector<128x128xf32>
    %cst_19 = arith.constant dense<0xFF800000> : vector<128xf32>
    %36 = vector.multi_reduction <maximumf>, %35, %cst_19 [1] : vector<128x128xf32> to vector<128xf32>
    %37 = vector.shape_cast %36 : vector<128xf32> to vector<128x1xf32>
    %38 = vector.broadcast %37 : vector<128x1xf32> to vector<128x128xf32>
    %39 = arith.subf %35, %38 : vector<128x128xf32>
    %40 = math.exp %39 : vector<128x128xf32>
    %cst_20 = arith.constant dense<0.000000e+00> : vector<128xf32>
    %41 = vector.multi_reduction <add>, %40, %cst_20 [1] : vector<128x128xf32> to vector<128xf32>
    %42 = vector.shape_cast %41 : vector<128xf32> to vector<128x1xf32>
    %43 = arith.truncf %40 : vector<128x128xf32> to vector<128x128xbf16>
    %cst_21 = arith.constant dense<0.000000e+00> : vector<128x32xf32>
    %44 = tpu.matmul %43, %32, %cst_21 {dimension_numbers = #tpu.dot_dimension_numbers<[1], [0], [0], [1], [0, 0, 1, 1], [], []>} : vector<128x128xbf16>, vector<128x32xbf16>, vector<128x32xf32> -> vector<128x32xf32>
    %45 = tpu.reciprocal %42 {approx = true} : vector<128x1xf32> -> vector<128x1xf32>
    %46 = vector.broadcast %45 : vector<128x1xf32> to vector<128x32xf32>
    %47 = arith.mulf %44, %46 : vector<128x32xf32>
    %c0_22 = arith.constant 0 : index
    %c32 = arith.constant 32 : index
    %48 = vector.load %arg7[%c0_22, %c32] : memref<128x128xf32, #tpu.memory_space<vmem>>, vector<128x32xf32>
    tpu.vector_store %arg7[%c0_22, %c32], %47 {strides = array<i32>} : memref<128x128xf32, #tpu.memory_space<vmem>>, vector<128x32xf32>,
    %49 = vector.extract_strided_slice %8 {offsets = [0, 64], sizes = [128, 32], strides = [1, 1]} : vector<128x128xbf16> to vector<128x32xbf16>
    %50 = vector.extract_strided_slice %10 {offsets = [0, 64], sizes = [128, 32], strides = [1, 1]} : vector<128x256xbf16> to vector<128x32xbf16>
    %51 = vector.extract_strided_slice %10 {offsets = [0, 192], sizes = [128, 32], strides = [1, 1]} : vector<128x256xbf16> to vector<128x32xbf16>
    %cst_23 = arith.constant dense<0.000000e+00> : vector<128x128xf32>
    %52 = tpu.matmul %49, %50, %cst_23 {dimension_numbers = #tpu.dot_dimension_numbers<[1], [1], [0], [0], [0, 0, 1, 0], [], []>} : vector<128x32xbf16>, vector<128x32xbf16>, vector<128x128xf32> -> vector<128x128xf32>
    %cst_24 = arith.constant -1.000000e+09 : f32
    %53 = vector.broadcast %cst_24 : f32 to vector<128x128xf32>
    %54 = arith.select %6, %52, %53 : vector<128x128xi1>, vector<128x128xf32>
    %cst_25 = arith.constant dense<0xFF800000> : vector<128xf32>
    %55 = vector.multi_reduction <maximumf>, %54, %cst_25 [1] : vector<128x128xf32> to vector<128xf32>
    %56 = vector.shape_cast %55 : vector<128xf32> to vector<128x1xf32>
    %57 = vector.broadcast %56 : vector<128x1xf32> to vector<128x128xf32>
    %58 = arith.subf %54, %57 : vector<128x128xf32>
    %59 = math.exp %58 : vector<128x128xf32>
    %cst_26 = arith.constant dense<0.000000e+00> : vector<128xf32>
    %60 = vector.multi_reduction <add>, %59, %cst_26 [1] : vector<128x128xf32> to vector<128xf32>
    %61 = vector.shape_cast %60 : vector<128xf32> to vector<128x1xf32>
    %62 = arith.truncf %59 : vector<128x128xf32> to vector<128x128xbf16>
    %cst_27 = arith.constant dense<0.000000e+00> : vector<128x32xf32>
    %63 = tpu.matmul %62, %51, %cst_27 {dimension_numbers = #tpu.dot_dimension_numbers<[1], [0], [0], [1], [0, 0, 1, 1], [], []>} : vector<128x128xbf16>, vector<128x32xbf16>, vector<128x32xf32> -> vector<128x32xf32>
    %64 = tpu.reciprocal %61 {approx = true} : vector<128x1xf32> -> vector<128x1xf32>
    %65 = vector.broadcast %64 : vector<128x1xf32> to vector<128x32xf32>
    %66 = arith.mulf %63, %65 : vector<128x32xf32>
    %c0_28 = arith.constant 0 : index
    %c64 = arith.constant 64 : index
    %67 = vector.load %arg7[%c0_28, %c64] : memref<128x128xf32, #tpu.memory_space<vmem>>, vector<128x32xf32>
    tpu.vector_store %arg7[%c0_28, %c64], %66 {strides = array<i32>} : memref<128x128xf32, #tpu.memory_space<vmem>>, vector<128x32xf32>,
    %68 = vector.extract_strided_slice %8 {offsets = [0, 96], sizes = [128, 32], strides = [1, 1]} : vector<128x128xbf16> to vector<128x32xbf16>
    %69 = vector.extract_strided_slice %10 {offsets = [0, 96], sizes = [128, 32], strides = [1, 1]} : vector<128x256xbf16> to vector<128x32xbf16>
    %70 = vector.extract_strided_slice %10 {offsets = [0, 224], sizes = [128, 32], strides = [1, 1]} : vector<128x256xbf16> to vector<128x32xbf16>
    %cst_29 = arith.constant dense<0.000000e+00> : vector<128x128xf32>
    %71 = tpu.matmul %68, %69, %cst_29 {dimension_numbers = #tpu.dot_dimension_numbers<[1], [1], [0], [0], [0, 0, 1, 0], [], []>} : vector<128x32xbf16>, vector<128x32xbf16>, vector<128x128xf32> -> vector<128x128xf32>
    %cst_30 = arith.constant -1.000000e+09 : f32
    %72 = vector.broadcast %cst_30 : f32 to vector<128x128xf32>
    %73 = arith.select %6, %71, %72 : vector<128x128xi1>, vector<128x128xf32>
    %cst_31 = arith.constant dense<0xFF800000> : vector<128xf32>
    %74 = vector.multi_reduction <maximumf>, %73, %cst_31 [1] : vector<128x128xf32> to vector<128xf32>
    %75 = vector.shape_cast %74 : vector<128xf32> to vector<128x1xf32>
    %76 = vector.broadcast %75 : vector<128x1xf32> to vector<128x128xf32>
    %77 = arith.subf %73, %76 : vector<128x128xf32>
    %78 = math.exp %77 : vector<128x128xf32>
    %cst_32 = arith.constant dense<0.000000e+00> : vector<128xf32>
    %79 = vector.multi_reduction <add>, %78, %cst_32 [1] : vector<128x128xf32> to vector<128xf32>
    %80 = vector.shape_cast %79 : vector<128xf32> to vector<128x1xf32>
    %81 = arith.truncf %78 : vector<128x128xf32> to vector<128x128xbf16>
    %cst_33 = arith.constant dense<0.000000e+00> : vector<128x32xf32>
    %82 = tpu.matmul %81, %70, %cst_33 {dimension_numbers = #tpu.dot_dimension_numbers<[1], [0], [0], [1], [0, 0, 1, 1], [], []>} : vector<128x128xbf16>, vector<128x32xbf16>, vector<128x32xf32> -> vector<128x32xf32>
    %83 = tpu.reciprocal %80 {approx = true} : vector<128x1xf32> -> vector<128x1xf32>
    %84 = vector.broadcast %83 : vector<128x1xf32> to vector<128x32xf32>
    %85 = arith.mulf %82, %84 : vector<128x32xf32>
    %c0_34 = arith.constant 0 : index
    %c96 = arith.constant 96 : index
    %86 = vector.load %arg7[%c0_34, %c96] : memref<128x128xf32, #tpu.memory_space<vmem>>, vector<128x32xf32>
    tpu.vector_store %arg7[%c0_34, %c96], %85 {strides = array<i32>} : memref<128x128xf32, #tpu.memory_space<vmem>>, vector<128x32xf32>,
    %c0_35 = arith.constant 0 : index
    %c0_36 = arith.constant 0 : index
    %87 = vector.load %arg7[%c0_35, %c0_36] : memref<128x128xf32, #tpu.memory_space<vmem>>, vector<128x128xf32>
    %88 = arith.truncf %87 : vector<128x128xf32> to vector<128x128xbf16>
    %c0_37 = arith.constant 0 : index
    %c0_38 = arith.constant 0 : index
    %c0_39 = arith.constant 0 : index
    %89 = vector.load %arg6[%c0_37, %c0_38, %c0_39] : memref<1x128x128xbf16, #tpu.memory_space<vmem>>, vector<1x128x128xbf16>
    %90 = vector.shape_cast %89 : vector<1x128x128xbf16> to vector<128x128xbf16>
    %91 = vector.shape_cast %88 : vector<128x128xbf16> to vector<1x128x128xbf16>
    tpu.vector_store %arg6[%c0_37, %c0_38, %c0_39], %91 {strides = array<i32>} : memref<1x128x128xbf16, #tpu.memory_space<vmem>>, vector<1x128x128xbf16>,
    return
  }
  func.func @transform_0(%arg0: i32, %arg1: i32) -> (i32, i32, i32) {
    %c0_i32 = arith.constant 0 : i32
    %c0_i32_0 = arith.constant 0 : i32
    return %arg0, %arg1, %c0_i32 : i32, i32, i32
  }
  func.func @transform_1(%arg0: i32, %arg1: i32) -> (i32, i32, i32) {
    %c0_i32 = arith.constant 0 : i32
    %c0_i32_0 = arith.constant 0 : i32
    %c0_i32_1 = arith.constant 0 : i32
    return %arg0, %c0_i32, %c0_i32_0 : i32, i32, i32
  }
  func.func @transform_2(%arg0: i32, %arg1: i32) -> (i32, i32, i32) {
    %c0_i32 = arith.constant 0 : i32
    %c0_i32_0 = arith.constant 0 : i32
    return %arg0, %arg1, %c0_i32 : i32, i32, i32
  }
  func.func @transform_3(%arg0: i32, %arg1: i32) -> (i32, i32, i32) {
    %c0_i32 = arith.constant 0 : i32
    %c0_i32_0 = arith.constant 0 : i32
    %c0_i32_1 = arith.constant 0 : i32
    return %arg0, %c0_i32, %c0_i32_0 : i32, i32, i32
  }
  func.func @transform_4(%arg0: i32, %arg1: i32) -> (i32, i32, i32) {
    %c0_i32 = arith.constant 0 : i32
    %c0_i32_0 = arith.constant 0 : i32
    return %arg0, %arg1, %c0_i32 : i32, i32, i32
  }
}

module attributes {stable_mosaic.version = 11 : i64} {
  func.func @_block_tail_kernel(%arg0: i32, %arg1: memref<256x128xbf16, #tpu.memory_space<vmem>>, %arg2: memref<256x128xbf16, #tpu.memory_space<vmem>>, %arg3: memref<128x128xbf16, #tpu.memory_space<vmem>>, %arg4: memref<1x128xf32, #tpu.memory_space<vmem>>, %arg5: memref<1x128xf32, #tpu.memory_space<vmem>>, %arg6: memref<1x128xf32, #tpu.memory_space<vmem>>, %arg7: memref<128x256xbf16, #tpu.memory_space<vmem>>, %arg8: memref<1x256xf32, #tpu.memory_space<vmem>>, %arg9: memref<256x128xbf16, #tpu.memory_space<vmem>>, %arg10: memref<1x128xf32, #tpu.memory_space<vmem>>, %arg11: memref<1x128xf32, #tpu.memory_space<vmem>>, %arg12: memref<1x128xf32, #tpu.memory_space<vmem>>, %arg13: memref<256x128xbf16, #tpu.memory_space<vmem>>) attributes {dimension_semantics = [#tpu.dimension_semantics<parallel>], iteration_bounds = array<i64: 1>, scalar_prefetch = 0 : i64, scratch_operands = 0 : i64, tpu.core_type = #tpu.core_type<tc>, window_params = [{transform_indices = @transform_0, window_bounds = array<i64: 256, 128>}, {transform_indices = @transform_1, window_bounds = array<i64: 256, 128>}, {pipeline_mode = #tpu.pipeline_mode<synchronous>, transform_indices = @transform_2, window_bounds = array<i64: 128, 128>}, {pipeline_mode = #tpu.pipeline_mode<synchronous>, transform_indices = @transform_3, window_bounds = array<i64: 1, 128>}, {pipeline_mode = #tpu.pipeline_mode<synchronous>, transform_indices = @transform_4, window_bounds = array<i64: 1, 128>}, {pipeline_mode = #tpu.pipeline_mode<synchronous>, transform_indices = @transform_5, window_bounds = array<i64: 1, 128>}, {pipeline_mode = #tpu.pipeline_mode<synchronous>, transform_indices = @transform_6, window_bounds = array<i64: 128, 256>}, {pipeline_mode = #tpu.pipeline_mode<synchronous>, transform_indices = @transform_7, window_bounds = array<i64: 1, 256>}, {pipeline_mode = #tpu.pipeline_mode<synchronous>, transform_indices = @transform_8, window_bounds = array<i64: 256, 128>}, {pipeline_mode = #tpu.pipeline_mode<synchronous>, transform_indices = @transform_9, window_bounds = array<i64: 1, 128>}, {pipeline_mode = #tpu.pipeline_mode<synchronous>, transform_indices = @transform_10, window_bounds = array<i64: 1, 128>}, {pipeline_mode = #tpu.pipeline_mode<synchronous>, transform_indices = @transform_11, window_bounds = array<i64: 1, 128>}, {transform_indices = @transform_12, window_bounds = array<i64: 256, 128>}]} {
    %c0 = arith.constant 0 : index
    %c0_0 = arith.constant 0 : index
    %0 = vector.load %arg1[%c0, %c0_0] : memref<256x128xbf16, #tpu.memory_space<vmem>>, vector<256x128xbf16>
    %c0_1 = arith.constant 0 : index
    %c0_2 = arith.constant 0 : index
    %1 = vector.load %arg3[%c0_1, %c0_2] : memref<128x128xbf16, #tpu.memory_space<vmem>>, vector<128x128xbf16>
    %cst = arith.constant dense<0.000000e+00> : vector<256x128xf32>
    %2 = tpu.matmul %0, %1, %cst {dimension_numbers = #tpu.dot_dimension_numbers<[1], [0], [0], [1], [0, 0, 1, 1], [], []>} : vector<256x128xbf16>, vector<128x128xbf16>, vector<256x128xf32> -> vector<256x128xf32>
    %c0_3 = arith.constant 0 : index
    %c0_4 = arith.constant 0 : index
    %3 = vector.load %arg4[%c0_3, %c0_4] : memref<1x128xf32, #tpu.memory_space<vmem>>, vector<1x128xf32>
    %4 = vector.broadcast %3 : vector<1x128xf32> to vector<256x128xf32>
    %5 = arith.addf %2, %4 : vector<256x128xf32>
    %c0_5 = arith.constant 0 : index
    %c0_6 = arith.constant 0 : index
    %6 = vector.load %arg2[%c0_5, %c0_6] : memref<256x128xbf16, #tpu.memory_space<vmem>>, vector<256x128xbf16>
    %7 = arith.extf %6 : vector<256x128xbf16> to vector<256x128xf32>
    %8 = arith.addf %5, %7 : vector<256x128xf32>
    %cst_7 = arith.constant dense<0.000000e+00> : vector<256xf32>
    %9 = vector.multi_reduction <add>, %8, %cst_7 [1] : vector<256x128xf32> to vector<256xf32>
    %10 = vector.shape_cast %9 : vector<256xf32> to vector<256x1xf32>
    %cst_8 = arith.constant 1.280000e+02 : f32
    %11 = vector.broadcast %cst_8 : f32 to vector<256x1xf32>
    %12 = arith.divf %10, %11 : vector<256x1xf32>
    %13 = vector.broadcast %12 : vector<256x1xf32> to vector<256x128xf32>
    %14 = arith.subf %8, %13 : vector<256x128xf32>
    %15 = arith.mulf %14, %14 : vector<256x128xf32>
    %cst_9 = arith.constant dense<0.000000e+00> : vector<256xf32>
    %16 = vector.multi_reduction <add>, %15, %cst_9 [1] : vector<256x128xf32> to vector<256xf32>
    %17 = vector.shape_cast %16 : vector<256xf32> to vector<256x1xf32>
    %cst_10 = arith.constant 1.280000e+02 : f32
    %18 = vector.broadcast %cst_10 : f32 to vector<256x1xf32>
    %19 = arith.divf %17, %18 : vector<256x1xf32>
    %20 = vector.broadcast %12 : vector<256x1xf32> to vector<256x128xf32>
    %21 = arith.subf %8, %20 : vector<256x128xf32>
    %cst_11 = arith.constant 9.99999974E-6 : f32
    %22 = vector.broadcast %cst_11 : f32 to vector<256x1xf32>
    %23 = arith.addf %19, %22 : vector<256x1xf32>
    %24 = math.rsqrt %23 : vector<256x1xf32>
    %25 = vector.broadcast %24 : vector<256x1xf32> to vector<256x128xf32>
    %26 = arith.mulf %21, %25 : vector<256x128xf32>
    %c0_12 = arith.constant 0 : index
    %c0_13 = arith.constant 0 : index
    %27 = vector.load %arg5[%c0_12, %c0_13] : memref<1x128xf32, #tpu.memory_space<vmem>>, vector<1x128xf32>
    %28 = vector.broadcast %27 : vector<1x128xf32> to vector<256x128xf32>
    %29 = arith.mulf %26, %28 : vector<256x128xf32>
    %c0_14 = arith.constant 0 : index
    %c0_15 = arith.constant 0 : index
    %30 = vector.load %arg6[%c0_14, %c0_15] : memref<1x128xf32, #tpu.memory_space<vmem>>, vector<1x128xf32>
    %31 = vector.broadcast %30 : vector<1x128xf32> to vector<256x128xf32>
    %32 = arith.addf %29, %31 : vector<256x128xf32>
    %33 = arith.truncf %32 : vector<256x128xf32> to vector<256x128xbf16>
    %c0_16 = arith.constant 0 : index
    %c0_17 = arith.constant 0 : index
    %34 = vector.load %arg7[%c0_16, %c0_17] : memref<128x256xbf16, #tpu.memory_space<vmem>>, vector<128x256xbf16>
    %cst_18 = arith.constant dense<0.000000e+00> : vector<256x256xf32>
    %35 = tpu.matmul %33, %34, %cst_18 {dimension_numbers = #tpu.dot_dimension_numbers<[1], [0], [0], [1], [0, 0, 1, 1], [], []>} : vector<256x128xbf16>, vector<128x256xbf16>, vector<256x256xf32> -> vector<256x256xf32>
    %c0_19 = arith.constant 0 : index
    %c0_20 = arith.constant 0 : index
    %36 = vector.load %arg8[%c0_19, %c0_20] : memref<1x256xf32, #tpu.memory_space<vmem>>, vector<1x256xf32>
    %37 = vector.broadcast %36 : vector<1x256xf32> to vector<256x256xf32>
    %38 = arith.addf %35, %37 : vector<256x256xf32>
    %cst_21 = arith.constant 0.000000e+00 : f32
    %39 = vector.broadcast %cst_21 : f32 to vector<256x256xf32>
    %40 = arith.maximumf %38, %39 : vector<256x256xf32>
    %41 = arith.truncf %40 : vector<256x256xf32> to vector<256x256xbf16>
    %c0_22 = arith.constant 0 : index
    %c0_23 = arith.constant 0 : index
    %42 = vector.load %arg9[%c0_22, %c0_23] : memref<256x128xbf16, #tpu.memory_space<vmem>>, vector<256x128xbf16>
    %cst_24 = arith.constant dense<0.000000e+00> : vector<256x128xf32>
    %43 = tpu.matmul %41, %42, %cst_24 {dimension_numbers = #tpu.dot_dimension_numbers<[1], [0], [0], [1], [0, 0, 1, 1], [], []>} : vector<256x256xbf16>, vector<256x128xbf16>, vector<256x128xf32> -> vector<256x128xf32>
    %c0_25 = arith.constant 0 : index
    %c0_26 = arith.constant 0 : index
    %44 = vector.load %arg10[%c0_25, %c0_26] : memref<1x128xf32, #tpu.memory_space<vmem>>, vector<1x128xf32>
    %45 = vector.broadcast %44 : vector<1x128xf32> to vector<256x128xf32>
    %46 = arith.addf %43, %45 : vector<256x128xf32>
    %47 = arith.addf %46, %32 : vector<256x128xf32>
    %cst_27 = arith.constant dense<0.000000e+00> : vector<256xf32>
    %48 = vector.multi_reduction <add>, %47, %cst_27 [1] : vector<256x128xf32> to vector<256xf32>
    %49 = vector.shape_cast %48 : vector<256xf32> to vector<256x1xf32>
    %cst_28 = arith.constant 1.280000e+02 : f32
    %50 = vector.broadcast %cst_28 : f32 to vector<256x1xf32>
    %51 = arith.divf %49, %50 : vector<256x1xf32>
    %52 = vector.broadcast %51 : vector<256x1xf32> to vector<256x128xf32>
    %53 = arith.subf %47, %52 : vector<256x128xf32>
    %54 = arith.mulf %53, %53 : vector<256x128xf32>
    %cst_29 = arith.constant dense<0.000000e+00> : vector<256xf32>
    %55 = vector.multi_reduction <add>, %54, %cst_29 [1] : vector<256x128xf32> to vector<256xf32>
    %56 = vector.shape_cast %55 : vector<256xf32> to vector<256x1xf32>
    %cst_30 = arith.constant 1.280000e+02 : f32
    %57 = vector.broadcast %cst_30 : f32 to vector<256x1xf32>
    %58 = arith.divf %56, %57 : vector<256x1xf32>
    %59 = vector.broadcast %51 : vector<256x1xf32> to vector<256x128xf32>
    %60 = arith.subf %47, %59 : vector<256x128xf32>
    %cst_31 = arith.constant 9.99999974E-6 : f32
    %61 = vector.broadcast %cst_31 : f32 to vector<256x1xf32>
    %62 = arith.addf %58, %61 : vector<256x1xf32>
    %63 = math.rsqrt %62 : vector<256x1xf32>
    %64 = vector.broadcast %63 : vector<256x1xf32> to vector<256x128xf32>
    %65 = arith.mulf %60, %64 : vector<256x128xf32>
    %c0_32 = arith.constant 0 : index
    %c0_33 = arith.constant 0 : index
    %66 = vector.load %arg11[%c0_32, %c0_33] : memref<1x128xf32, #tpu.memory_space<vmem>>, vector<1x128xf32>
    %67 = vector.broadcast %66 : vector<1x128xf32> to vector<256x128xf32>
    %68 = arith.mulf %65, %67 : vector<256x128xf32>
    %c0_34 = arith.constant 0 : index
    %c0_35 = arith.constant 0 : index
    %69 = vector.load %arg12[%c0_34, %c0_35] : memref<1x128xf32, #tpu.memory_space<vmem>>, vector<1x128xf32>
    %70 = vector.broadcast %69 : vector<1x128xf32> to vector<256x128xf32>
    %71 = arith.addf %68, %70 : vector<256x128xf32>
    %72 = arith.truncf %71 : vector<256x128xf32> to vector<256x128xbf16>
    %c0_36 = arith.constant 0 : index
    %c0_37 = arith.constant 0 : index
    %73 = vector.load %arg13[%c0_36, %c0_37] : memref<256x128xbf16, #tpu.memory_space<vmem>>, vector<256x128xbf16>
    tpu.vector_store %arg13[%c0_36, %c0_37], %72 {strides = array<i32>} : memref<256x128xbf16, #tpu.memory_space<vmem>>, vector<256x128xbf16>,
    return
  }
  func.func @transform_0(%arg0: i32) -> (i32, i32) {
    %c0_i32 = arith.constant 0 : i32
    %c0_i32_0 = arith.constant 0 : i32
    return %arg0, %c0_i32 : i32, i32
  }
  func.func @transform_1(%arg0: i32) -> (i32, i32) {
    %c0_i32 = arith.constant 0 : i32
    %c0_i32_0 = arith.constant 0 : i32
    return %arg0, %c0_i32 : i32, i32
  }
  func.func @transform_2(%arg0: i32) -> (i32, i32) {
    %c0_i32 = arith.constant 0 : i32
    %c0_i32_0 = arith.constant 0 : i32
    %c0_i32_1 = arith.constant 0 : i32
    return %c0_i32, %c0_i32_0 : i32, i32
  }
  func.func @transform_3(%arg0: i32) -> (i32, i32) {
    %c0_i32 = arith.constant 0 : i32
    %c0_i32_0 = arith.constant 0 : i32
    %c0_i32_1 = arith.constant 0 : i32
    return %c0_i32, %c0_i32_0 : i32, i32
  }
  func.func @transform_4(%arg0: i32) -> (i32, i32) {
    %c0_i32 = arith.constant 0 : i32
    %c0_i32_0 = arith.constant 0 : i32
    %c0_i32_1 = arith.constant 0 : i32
    return %c0_i32, %c0_i32_0 : i32, i32
  }
  func.func @transform_5(%arg0: i32) -> (i32, i32) {
    %c0_i32 = arith.constant 0 : i32
    %c0_i32_0 = arith.constant 0 : i32
    %c0_i32_1 = arith.constant 0 : i32
    return %c0_i32, %c0_i32_0 : i32, i32
  }
  func.func @transform_6(%arg0: i32) -> (i32, i32) {
    %c0_i32 = arith.constant 0 : i32
    %c0_i32_0 = arith.constant 0 : i32
    %c0_i32_1 = arith.constant 0 : i32
    return %c0_i32, %c0_i32_0 : i32, i32
  }
  func.func @transform_7(%arg0: i32) -> (i32, i32) {
    %c0_i32 = arith.constant 0 : i32
    %c0_i32_0 = arith.constant 0 : i32
    %c0_i32_1 = arith.constant 0 : i32
    return %c0_i32, %c0_i32_0 : i32, i32
  }
  func.func @transform_8(%arg0: i32) -> (i32, i32) {
    %c0_i32 = arith.constant 0 : i32
    %c0_i32_0 = arith.constant 0 : i32
    %c0_i32_1 = arith.constant 0 : i32
    return %c0_i32, %c0_i32_0 : i32, i32
  }
  func.func @transform_9(%arg0: i32) -> (i32, i32) {
    %c0_i32 = arith.constant 0 : i32
    %c0_i32_0 = arith.constant 0 : i32
    %c0_i32_1 = arith.constant 0 : i32
    return %c0_i32, %c0_i32_0 : i32, i32
  }
  func.func @transform_10(%arg0: i32) -> (i32, i32) {
    %c0_i32 = arith.constant 0 : i32
    %c0_i32_0 = arith.constant 0 : i32
    %c0_i32_1 = arith.constant 0 : i32
    return %c0_i32, %c0_i32_0 : i32, i32
  }
  func.func @transform_11(%arg0: i32) -> (i32, i32) {
    %c0_i32 = arith.constant 0 : i32
    %c0_i32_0 = arith.constant 0 : i32
    %c0_i32_1 = arith.constant 0 : i32
    return %c0_i32, %c0_i32_0 : i32, i32
  }
  func.func @transform_12(%arg0: i32) -> (i32, i32) {
    %c0_i32 = arith.constant 0 : i32
    %c0_i32_0 = arith.constant 0 : i32
    return %arg0, %c0_i32 : i32, i32
  }
}

module attributes {stable_mosaic.version = 11 : i64} {
  func.func @_block_tail_kernel(%arg0: i32, %arg1: memref<256x128xbf16, #tpu.memory_space<vmem>>, %arg2: memref<256x128xbf16, #tpu.memory_space<vmem>>, %arg3: memref<128x128xbf16, #tpu.memory_space<vmem>>, %arg4: memref<1x128xf32, #tpu.memory_space<vmem>>, %arg5: memref<1x128xf32, #tpu.memory_space<vmem>>, %arg6: memref<1x128xf32, #tpu.memory_space<vmem>>, %arg7: memref<128x256xbf16, #tpu.memory_space<vmem>>, %arg8: memref<1x256xf32, #tpu.memory_space<vmem>>, %arg9: memref<256x128xbf16, #tpu.memory_space<vmem>>, %arg10: memref<1x128xf32, #tpu.memory_space<vmem>>, %arg11: memref<1x128xf32, #tpu.memory_space<vmem>>, %arg12: memref<1x128xf32, #tpu.memory_space<vmem>>, %arg13: memref<256x128xf32, #tpu.memory_space<vmem>>) attributes {dimension_semantics = [#tpu.dimension_semantics<parallel>], iteration_bounds = array<i64: 1>, scalar_prefetch = 0 : i64, scratch_operands = 0 : i64, tpu.core_type = #tpu.core_type<tc>, window_params = [{transform_indices = @transform_0, window_bounds = array<i64: 256, 128>}, {transform_indices = @transform_1, window_bounds = array<i64: 256, 128>}, {pipeline_mode = #tpu.pipeline_mode<synchronous>, transform_indices = @transform_2, window_bounds = array<i64: 128, 128>}, {pipeline_mode = #tpu.pipeline_mode<synchronous>, transform_indices = @transform_3, window_bounds = array<i64: 1, 128>}, {pipeline_mode = #tpu.pipeline_mode<synchronous>, transform_indices = @transform_4, window_bounds = array<i64: 1, 128>}, {pipeline_mode = #tpu.pipeline_mode<synchronous>, transform_indices = @transform_5, window_bounds = array<i64: 1, 128>}, {pipeline_mode = #tpu.pipeline_mode<synchronous>, transform_indices = @transform_6, window_bounds = array<i64: 128, 256>}, {pipeline_mode = #tpu.pipeline_mode<synchronous>, transform_indices = @transform_7, window_bounds = array<i64: 1, 256>}, {pipeline_mode = #tpu.pipeline_mode<synchronous>, transform_indices = @transform_8, window_bounds = array<i64: 256, 128>}, {pipeline_mode = #tpu.pipeline_mode<synchronous>, transform_indices = @transform_9, window_bounds = array<i64: 1, 128>}, {pipeline_mode = #tpu.pipeline_mode<synchronous>, transform_indices = @transform_10, window_bounds = array<i64: 1, 128>}, {pipeline_mode = #tpu.pipeline_mode<synchronous>, transform_indices = @transform_11, window_bounds = array<i64: 1, 128>}, {transform_indices = @transform_12, window_bounds = array<i64: 256, 128>}]} {
    %c0 = arith.constant 0 : index
    %c0_0 = arith.constant 0 : index
    %0 = vector.load %arg1[%c0, %c0_0] : memref<256x128xbf16, #tpu.memory_space<vmem>>, vector<256x128xbf16>
    %c0_1 = arith.constant 0 : index
    %c0_2 = arith.constant 0 : index
    %1 = vector.load %arg3[%c0_1, %c0_2] : memref<128x128xbf16, #tpu.memory_space<vmem>>, vector<128x128xbf16>
    %cst = arith.constant dense<0.000000e+00> : vector<256x128xf32>
    %2 = tpu.matmul %0, %1, %cst {dimension_numbers = #tpu.dot_dimension_numbers<[1], [0], [0], [1], [0, 0, 1, 1], [], []>} : vector<256x128xbf16>, vector<128x128xbf16>, vector<256x128xf32> -> vector<256x128xf32>
    %c0_3 = arith.constant 0 : index
    %c0_4 = arith.constant 0 : index
    %3 = vector.load %arg4[%c0_3, %c0_4] : memref<1x128xf32, #tpu.memory_space<vmem>>, vector<1x128xf32>
    %4 = vector.broadcast %3 : vector<1x128xf32> to vector<256x128xf32>
    %5 = arith.addf %2, %4 : vector<256x128xf32>
    %c0_5 = arith.constant 0 : index
    %c0_6 = arith.constant 0 : index
    %6 = vector.load %arg2[%c0_5, %c0_6] : memref<256x128xbf16, #tpu.memory_space<vmem>>, vector<256x128xbf16>
    %7 = arith.extf %6 : vector<256x128xbf16> to vector<256x128xf32>
    %8 = arith.addf %5, %7 : vector<256x128xf32>
    %cst_7 = arith.constant dense<0.000000e+00> : vector<256xf32>
    %9 = vector.multi_reduction <add>, %8, %cst_7 [1] : vector<256x128xf32> to vector<256xf32>
    %10 = vector.shape_cast %9 : vector<256xf32> to vector<256x1xf32>
    %cst_8 = arith.constant 1.280000e+02 : f32
    %11 = vector.broadcast %cst_8 : f32 to vector<256x1xf32>
    %12 = arith.divf %10, %11 : vector<256x1xf32>
    %13 = vector.broadcast %12 : vector<256x1xf32> to vector<256x128xf32>
    %14 = arith.subf %8, %13 : vector<256x128xf32>
    %15 = arith.mulf %14, %14 : vector<256x128xf32>
    %cst_9 = arith.constant dense<0.000000e+00> : vector<256xf32>
    %16 = vector.multi_reduction <add>, %15, %cst_9 [1] : vector<256x128xf32> to vector<256xf32>
    %17 = vector.shape_cast %16 : vector<256xf32> to vector<256x1xf32>
    %cst_10 = arith.constant 1.280000e+02 : f32
    %18 = vector.broadcast %cst_10 : f32 to vector<256x1xf32>
    %19 = arith.divf %17, %18 : vector<256x1xf32>
    %20 = vector.broadcast %12 : vector<256x1xf32> to vector<256x128xf32>
    %21 = arith.subf %8, %20 : vector<256x128xf32>
    %cst_11 = arith.constant 9.99999974E-6 : f32
    %22 = vector.broadcast %cst_11 : f32 to vector<256x1xf32>
    %23 = arith.addf %19, %22 : vector<256x1xf32>
    %24 = math.rsqrt %23 : vector<256x1xf32>
    %25 = vector.broadcast %24 : vector<256x1xf32> to vector<256x128xf32>
    %26 = arith.mulf %21, %25 : vector<256x128xf32>
    %c0_12 = arith.constant 0 : index
    %c0_13 = arith.constant 0 : index
    %27 = vector.load %arg5[%c0_12, %c0_13] : memref<1x128xf32, #tpu.memory_space<vmem>>, vector<1x128xf32>
    %28 = vector.broadcast %27 : vector<1x128xf32> to vector<256x128xf32>
    %29 = arith.mulf %26, %28 : vector<256x128xf32>
    %c0_14 = arith.constant 0 : index
    %c0_15 = arith.constant 0 : index
    %30 = vector.load %arg6[%c0_14, %c0_15] : memref<1x128xf32, #tpu.memory_space<vmem>>, vector<1x128xf32>
    %31 = vector.broadcast %30 : vector<1x128xf32> to vector<256x128xf32>
    %32 = arith.addf %29, %31 : vector<256x128xf32>
    %33 = arith.truncf %32 : vector<256x128xf32> to vector<256x128xbf16>
    %c0_16 = arith.constant 0 : index
    %c0_17 = arith.constant 0 : index
    %34 = vector.load %arg7[%c0_16, %c0_17] : memref<128x256xbf16, #tpu.memory_space<vmem>>, vector<128x256xbf16>
    %cst_18 = arith.constant dense<0.000000e+00> : vector<256x256xf32>
    %35 = tpu.matmul %33, %34, %cst_18 {dimension_numbers = #tpu.dot_dimension_numbers<[1], [0], [0], [1], [0, 0, 1, 1], [], []>} : vector<256x128xbf16>, vector<128x256xbf16>, vector<256x256xf32> -> vector<256x256xf32>
    %c0_19 = arith.constant 0 : index
    %c0_20 = arith.constant 0 : index
    %36 = vector.load %arg8[%c0_19, %c0_20] : memref<1x256xf32, #tpu.memory_space<vmem>>, vector<1x256xf32>
    %37 = vector.broadcast %36 : vector<1x256xf32> to vector<256x256xf32>
    %38 = arith.addf %35, %37 : vector<256x256xf32>
    %cst_21 = arith.constant 0.000000e+00 : f32
    %39 = vector.broadcast %cst_21 : f32 to vector<256x256xf32>
    %40 = arith.maximumf %38, %39 : vector<256x256xf32>
    %41 = arith.truncf %40 : vector<256x256xf32> to vector<256x256xbf16>
    %c0_22 = arith.constant 0 : index
    %c0_23 = arith.constant 0 : index
    %42 = vector.load %arg9[%c0_22, %c0_23] : memref<256x128xbf16, #tpu.memory_space<vmem>>, vector<256x128xbf16>
    %cst_24 = arith.constant dense<0.000000e+00> : vector<256x128xf32>
    %43 = tpu.matmul %41, %42, %cst_24 {dimension_numbers = #tpu.dot_dimension_numbers<[1], [0], [0], [1], [0, 0, 1, 1], [], []>} : vector<256x256xbf16>, vector<256x128xbf16>, vector<256x128xf32> -> vector<256x128xf32>
    %c0_25 = arith.constant 0 : index
    %c0_26 = arith.constant 0 : index
    %44 = vector.load %arg10[%c0_25, %c0_26] : memref<1x128xf32, #tpu.memory_space<vmem>>, vector<1x128xf32>
    %45 = vector.broadcast %44 : vector<1x128xf32> to vector<256x128xf32>
    %46 = arith.addf %43, %45 : vector<256x128xf32>
    %47 = arith.addf %46, %32 : vector<256x128xf32>
    %cst_27 = arith.constant dense<0.000000e+00> : vector<256xf32>
    %48 = vector.multi_reduction <add>, %47, %cst_27 [1] : vector<256x128xf32> to vector<256xf32>
    %49 = vector.shape_cast %48 : vector<256xf32> to vector<256x1xf32>
    %cst_28 = arith.constant 1.280000e+02 : f32
    %50 = vector.broadcast %cst_28 : f32 to vector<256x1xf32>
    %51 = arith.divf %49, %50 : vector<256x1xf32>
    %52 = vector.broadcast %51 : vector<256x1xf32> to vector<256x128xf32>
    %53 = arith.subf %47, %52 : vector<256x128xf32>
    %54 = arith.mulf %53, %53 : vector<256x128xf32>
    %cst_29 = arith.constant dense<0.000000e+00> : vector<256xf32>
    %55 = vector.multi_reduction <add>, %54, %cst_29 [1] : vector<256x128xf32> to vector<256xf32>
    %56 = vector.shape_cast %55 : vector<256xf32> to vector<256x1xf32>
    %cst_30 = arith.constant 1.280000e+02 : f32
    %57 = vector.broadcast %cst_30 : f32 to vector<256x1xf32>
    %58 = arith.divf %56, %57 : vector<256x1xf32>
    %59 = vector.broadcast %51 : vector<256x1xf32> to vector<256x128xf32>
    %60 = arith.subf %47, %59 : vector<256x128xf32>
    %cst_31 = arith.constant 9.99999974E-6 : f32
    %61 = vector.broadcast %cst_31 : f32 to vector<256x1xf32>
    %62 = arith.addf %58, %61 : vector<256x1xf32>
    %63 = math.rsqrt %62 : vector<256x1xf32>
    %64 = vector.broadcast %63 : vector<256x1xf32> to vector<256x128xf32>
    %65 = arith.mulf %60, %64 : vector<256x128xf32>
    %c0_32 = arith.constant 0 : index
    %c0_33 = arith.constant 0 : index
    %66 = vector.load %arg11[%c0_32, %c0_33] : memref<1x128xf32, #tpu.memory_space<vmem>>, vector<1x128xf32>
    %67 = vector.broadcast %66 : vector<1x128xf32> to vector<256x128xf32>
    %68 = arith.mulf %65, %67 : vector<256x128xf32>
    %c0_34 = arith.constant 0 : index
    %c0_35 = arith.constant 0 : index
    %69 = vector.load %arg12[%c0_34, %c0_35] : memref<1x128xf32, #tpu.memory_space<vmem>>, vector<1x128xf32>
    %70 = vector.broadcast %69 : vector<1x128xf32> to vector<256x128xf32>
    %71 = arith.addf %68, %70 : vector<256x128xf32>
    %c0_36 = arith.constant 0 : index
    %c0_37 = arith.constant 0 : index
    %72 = vector.load %arg13[%c0_36, %c0_37] : memref<256x128xf32, #tpu.memory_space<vmem>>, vector<256x128xf32>
    tpu.vector_store %arg13[%c0_36, %c0_37], %71 {strides = array<i32>} : memref<256x128xf32, #tpu.memory_space<vmem>>, vector<256x128xf32>,
    return
  }
  func.func @transform_0(%arg0: i32) -> (i32, i32) {
    %c0_i32 = arith.constant 0 : i32
    %c0_i32_0 = arith.constant 0 : i32
    return %arg0, %c0_i32 : i32, i32
  }
  func.func @transform_1(%arg0: i32) -> (i32, i32) {
    %c0_i32 = arith.constant 0 : i32
    %c0_i32_0 = arith.constant 0 : i32
    return %arg0, %c0_i32 : i32, i32
  }
  func.func @transform_2(%arg0: i32) -> (i32, i32) {
    %c0_i32 = arith.constant 0 : i32
    %c0_i32_0 = arith.constant 0 : i32
    %c0_i32_1 = arith.constant 0 : i32
    return %c0_i32, %c0_i32_0 : i32, i32
  }
  func.func @transform_3(%arg0: i32) -> (i32, i32) {
    %c0_i32 = arith.constant 0 : i32
    %c0_i32_0 = arith.constant 0 : i32
    %c0_i32_1 = arith.constant 0 : i32
    return %c0_i32, %c0_i32_0 : i32, i32
  }
  func.func @transform_4(%arg0: i32) -> (i32, i32) {
    %c0_i32 = arith.constant 0 : i32
    %c0_i32_0 = arith.constant 0 : i32
    %c0_i32_1 = arith.constant 0 : i32
    return %c0_i32, %c0_i32_0 : i32, i32
  }
  func.func @transform_5(%arg0: i32) -> (i32, i32) {
    %c0_i32 = arith.constant 0 : i32
    %c0_i32_0 = arith.constant 0 : i32
    %c0_i32_1 = arith.constant 0 : i32
    return %c0_i32, %c0_i32_0 : i32, i32
  }
  func.func @transform_6(%arg0: i32) -> (i32, i32) {
    %c0_i32 = arith.constant 0 : i32
    %c0_i32_0 = arith.constant 0 : i32
    %c0_i32_1 = arith.constant 0 : i32
    return %c0_i32, %c0_i32_0 : i32, i32
  }
  func.func @transform_7(%arg0: i32) -> (i32, i32) {
    %c0_i32 = arith.constant 0 : i32
    %c0_i32_0 = arith.constant 0 : i32
    %c0_i32_1 = arith.constant 0 : i32
    return %c0_i32, %c0_i32_0 : i32, i32
  }
  func.func @transform_8(%arg0: i32) -> (i32, i32) {
    %c0_i32 = arith.constant 0 : i32
    %c0_i32_0 = arith.constant 0 : i32
    %c0_i32_1 = arith.constant 0 : i32
    return %c0_i32, %c0_i32_0 : i32, i32
  }
  func.func @transform_9(%arg0: i32) -> (i32, i32) {
    %c0_i32 = arith.constant 0 : i32
    %c0_i32_0 = arith.constant 0 : i32
    %c0_i32_1 = arith.constant 0 : i32
    return %c0_i32, %c0_i32_0 : i32, i32
  }
  func.func @transform_10(%arg0: i32) -> (i32, i32) {
    %c0_i32 = arith.constant 0 : i32
    %c0_i32_0 = arith.constant 0 : i32
    %c0_i32_1 = arith.constant 0 : i32
    return %c0_i32, %c0_i32_0 : i32, i32
  }
  func.func @transform_11(%arg0: i32) -> (i32, i32) {
    %c0_i32 = arith.constant 0 : i32
    %c0_i32_0 = arith.constant 0 : i32
    %c0_i32_1 = arith.constant 0 : i32
    return %c0_i32, %c0_i32_0 : i32, i32
  }
  func.func @transform_12(%arg0: i32) -> (i32, i32) {
    %c0_i32 = arith.constant 0 : i32
    %c0_i32_0 = arith.constant 0 : i32
    return %arg0, %c0_i32 : i32, i32
  }
}

</mosaic_0001>

<bundles_post_ra>
// kernel: pc_trs_forward.8
= control target key start
LH: loop header
LB: loop body
LE: loop exit
PB: predicated region body
PF: predicated region fallthrough
CT: control target
= control target key end

     0   :  { %v1477_v1 = vmov 0   ;;  %v401_v41 = vlaneseq  ;;  %s1917_s1 = inlined_call_operand.vmem [shape: bf16[128,128], index: 1, kind: input, shape index: {}]   ;;  %s1918_s3 = inlined_call_operand.vmem [shape: bf16[128,256], index: 3, kind: input, shape index: {}]   ;;  %s1919_s0 = inlined_call_operand.vmem [shape: bf16[256,128], index: 0, kind: input, shape index: {}]   ;;  %s1920_s4 = inlined_call_operand.vmem [shape: f32[1,256], index: 4, kind: input, shape index: {}]   ;;  %s1921_s2 = inlined_call_operand.vmem [shape: f32[1,128], index: 2, kind: input, shape index: {}]   ;;  %s1922_s6 = inlined_call_operand.vmem [shape: bf16[256,256], index: 6, kind: output, shape index: {1}]   ;;  %s1923_s5 = inlined_call_operand.vmem [shape: bf16[256,128], index: 5, kind: output, shape index: {0}]  }
   0x1   :  { %v1429_v0 = vld [vmem:[%s1917_s1] sm:$0xff]   ;;  %563 = vmatprep.mubr.bf16.mxu1 %v1477_v1  ;;  %v1433_v4 = vld [vmem:[%s1917_s1 + $0x8] sm:$0xff]   ;;  %v1434_v5 = vld [vmem:[%s1918_s3 + $0x14] ss:$8 sps:$4 sm:$0xff]  }
   0x2   :  { %v1430_v2 = vld [vmem:[%s1918_s3 + $0x4] ss:$8 sps:$4 sm:$0xff]   ;;  %1364 = vmatprep.subr.bf16.mxu0 %v1429_v0  ;;  %v1432_v3 = vld [vmem:[%s1918_s3] ss:$8 sps:$4 sm:$0xff]   ;;  %v1436_v6 = vld [vmem:[%s1918_s3 + $0x10] ss:$8 sps:$4 sm:$0xff]  }
   0x3   :  { %1412 = vmatprep.subr.bf16.mxu1 %v1430_v2  ;;  %1365 = vmatpush3.bf16.msra.mxu0 %v1429_v0  ;;  %v1437_v7 = vld [vmem:[%s1917_s1 + $0x10] sm:$0xff]   ;;  %v1438_v8 = vld [vmem:[%s1918_s3 + $0x24] ss:$8 sps:$4 sm:$0xff]   ;;  %v1440_v9 = vld [vmem:[%s1918_s3 + $0x20] ss:$8 sps:$4 sm:$0xff]   ;;  %v402_v42 = vshrl.u32 %v401_v41, 7 }
   0x4   :  { %1420 = vmatpush1.bf16.msra.mxu1 %v1432_v3  ;;  %1366 = vmatprep.subr.bf16.mxu0 %v1433_v4  ;;  %v1441_v10 = vld [vmem:[%s1917_s1 + $0x18] sm:$0xff]   ;;  %v1445_v13 = vld [vmem:[%s1917_s1 + $0x20] sm:$0xff]   ;;  %v1449_v16 = vld [vmem:[%s1917_s1 + $0x28] sm:$0xff]  }
   0x5   :  { %1413 = vmatprep.subr.bf16.mxu1 %v1434_v5  ;;  %v1442_v11 = vld [vmem:[%s1918_s3 + $0x34] ss:$8 sps:$4 sm:$0xff]   ;;  %v1444_v12 = vld [vmem:[%s1918_s3 + $0x30] ss:$8 sps:$4 sm:$0xff]   ;;  %v1446_v14 = vld [vmem:[%s1918_s3 + $0x44] ss:$8 sps:$4 sm:$0xff]  }
   0x6   :  { %v1448_v15 = vld [vmem:[%s1918_s3 + $0x40] ss:$8 sps:$4 sm:$0xff]   ;;  %v1450_v17 = vld [vmem:[%s1918_s3 + $0x54] ss:$8 sps:$4 sm:$0xff]   ;;  %v1452_v18 = vld [vmem:[%s1918_s3 + $0x50] ss:$8 sps:$4 sm:$0xff]  }
   0x7   :  { %1367 = vmatpush3.bf16.msra.mxu0 %v1433_v4  ;;  %v1571_v19 = vld [vmem:[%s1919_s0] sm:$0xff]   ;;  %v1453_v20 = vld [vmem:[%s1917_s1 + $0x30] sm:$0xff]   ;;  %v1457_v23 = vld [vmem:[%s1917_s1 + $0x38] sm:$0xff]   ;;  %v403_v43 = vsub.s32 0, %v402_v42  ;;  %v407_v45 = vsub.s32 1, %v402_v42 }
   0x8   :  { %1421 = vmatpush1.bf16.msra.mxu1 %v1436_v6  ;;  %1368 = vmatprep.subr.bf16.mxu0 %v1437_v7  ;;  %v1454_v21 = vld [vmem:[%s1918_s3 + $0x64] ss:$8 sps:$4 sm:$0xff]   ;;  %v1456_v22 = vld [vmem:[%s1918_s3 + $0x60] ss:$8 sps:$4 sm:$0xff]   ;;  %v1458_v24 = vld [vmem:[%s1918_s3 + $0x74] ss:$8 sps:$4 sm:$0xff]  }
   0x9   :  { %1414 = vmatprep.subr.bf16.mxu1 %v1438_v8  ;;  %1380 = vmatprep.mubr.bf16.mxu0 %v1571_v19  ;;  %v1460_v25 = vld [vmem:[%s1918_s3 + $0x70] ss:$8 sps:$4 sm:$0xff]   ;;  %v1595_v26 = vld [vmem:[%s1919_s0 + $0x8] sm:$0xff]   ;;  %v1463_v27 = vld [vmem:[%s1919_s0 + $0x20] sm:$0xff]  }
   0xa   :  { %v1603_v28 = vld [vmem:[%s1919_s0 + $0x10] sm:$0xff]   ;;  %v1611_v29 = vld [vmem:[%s1919_s0 + $0x18] sm:$0xff]   ;;  %v1466_v30 = vld [vmem:[%s1919_s0 + $0x28] sm:$0xff]  }
   0xb   :  { %1369 = vmatpush3.bf16.msra.mxu0 %v1437_v7  ;;  %v1467_v31 = vld [vmem:[%s1919_s0 + $0x30] sm:$0xff]   ;;  %v1468_v32 = vld [vmem:[%s1919_s0 + $0x38] sm:$0xff]   ;;  %v1469_v33 = vld [vmem:[%s1919_s0 + $0x40] sm:$0xff]  }
   0xc   :  { %1422 = vmatpush1.bf16.msra.mxu1 %v1440_v9  ;;  %1370 = vmatprep.subr.bf16.mxu0 %v1441_v10  ;;  %v1470_v34 = vld [vmem:[%s1919_s0 + $0x48] sm:$0xff]   ;;  %v1471_v35 = vld [vmem:[%s1919_s0 + $0x50] sm:$0xff]   ;;  %v1472_v36 = vld [vmem:[%s1919_s0 + $0x58] sm:$0xff]  }
   0xd   :  { %1415 = vmatprep.subr.bf16.mxu1 %v1442_v11  ;;  %v1473_v37 = vld [vmem:[%s1919_s0 + $0x60] sm:$0xff]   ;;  %v1474_v38 = vld [vmem:[%s1919_s0 + $0x68] sm:$0xff]   ;;  %v1475_v39 = vld [vmem:[%s1919_s0 + $0x70] sm:$0xff]  }
   0xe   :  { %v1476_v40 = vld [vmem:[%s1919_s0 + $0x78] sm:$0xff]   ;;  %v399_v44 = vld [vmem:[%s1920_s4] sm:$0x3] }
   0xf   :  { %1371 = vmatpush3.bf16.msra.mxu0 %v1441_v10  ;;  %v1668_v46 = vrot.slane %v399_v44, %v403_v43  ;;  %v1670_v47 = vrot.slane %v399_v44, %v407_v45  ;;  %v1675_v49 = vld [vmem:[%s1921_s2] ss:$0 sm:$0xff] }
  0x10   :  { %1423 = vmatpush1.bf16.msra.mxu1 %v1444_v12  ;;  %1372 = vmatprep.subr.bf16.mxu0 %v1445_v13 }
  0x11   :  { %1416 = vmatprep.subr.bf16.mxu1 %v1446_v14 }
  0x13   :  { %1373 = vmatpush3.bf16.msra.mxu0 %v1445_v13 }
  0x14   :  { %1424 = vmatpush1.bf16.msra.mxu1 %v1448_v15  ;;  %1374 = vmatprep.subr.bf16.mxu0 %v1449_v16 }
  0x15   :  { %1417 = vmatprep.subr.bf16.mxu1 %v1450_v17 }
  0x17   :  { %1375 = vmatpush3.bf16.msra.mxu0 %v1449_v16 }
  0x18   :  { %1425 = vmatpush1.bf16.msra.mxu1 %v1452_v18  ;;  %1376 = vmatprep.subr.bf16.mxu0 %v1453_v20 }
  0x19   :  { %1418 = vmatprep.subr.bf16.mxu1 %v1454_v21 }
  0x1b   :  { %1377 = vmatpush3.bf16.msra.mxu0 %v1453_v20 }
  0x1c   :  { %1426 = vmatpush1.bf16.msra.mxu1 %v1456_v22  ;;  %1378 = vmatprep.subr.bf16.mxu0 %v1457_v23 }
  0x1d   :  { %1419 = vmatprep.subr.bf16.mxu1 %v1458_v24 }
  0x1f   :  { %1379 = vmatpush3.bf16.msra.mxu0 %v1457_v23 }
  0x20   :  { %1427 = vmatpush1.bf16.msra.mxu1 %v1460_v25  ;;  %491 = vmatprep.subr.bf16.mxu0 %v1430_v2 }
  0x22   :  { %1381 = vmatmul.mubr.bf16.vlgmr.msra.gmra.mrb[0].mxu0 %v1595_v26 }
  0x23   :  { %564 = vmatmul.mubr.bf16.vlgmr.msra.gmra.mrb[0].mxu1 %v1463_v27  ;;  %492 = vmatpush1.bf16.msra.mxu0 %v1432_v3 }
  0x24   :  { %1384 = vmatprep.mubr.bf16.mxu0 %v1603_v28  ;;  %573 = vmatprep.mubr.bf16.mxu1 %v1477_v1 }
  0x25   :  { %493 = vmatprep.subr.bf16.mxu0 %v1434_v5 }
  0x27   :  { %494 = vmatpush1.bf16.msra.mxu0 %v1436_v6 }
  0x28   :  { %495 = vmatprep.subr.bf16.mxu0 %v1438_v8 }
  0x2a   :  { %1385 = vmatmul.mubr.bf16.gmra.mrb[4].mxu0 %v1611_v29 }
  0x2b   :  { %574 = vmatmul.mubr.bf16.gmra.mrb[4].mxu1 %v1466_v30  ;;  %1388 = vmatprep.mubr.bf16.mxu0 %v1463_v27 }
  0x2c   :  { %583 = vmatprep.mubr.bf16.mxu1 %v1477_v1  ;;  %496 = vmatpush1.bf16.msra.mxu0 %v1440_v9 }
  0x2d   :  { %497 = vmatprep.subr.bf16.mxu0 %v1442_v11 }
  0x30   :  { %498 = vmatpush1.bf16.msra.mxu0 %v1444_v12 }
  0x31   :  { %499 = vmatprep.subr.bf16.mxu0 %v1446_v14 }
  0x32   :  { %1389 = vmatmul.mubr.bf16.gmra.mrb[8].mxu0 %v1466_v30 }
  0x33   :  { %584 = vmatmul.mubr.bf16.gmra.mrb[8].mxu1 %v1467_v31  ;;  %1392 = vmatprep.mubr.bf16.mxu0 %v1467_v31 }
  0x34   :  { %593 = vmatprep.mubr.bf16.mxu1 %v1477_v1  ;;  %500 = vmatpush1.bf16.msra.mxu0 %v1448_v15 }
  0x35   :  { %501 = vmatprep.subr.bf16.mxu0 %v1450_v17 }
  0x38   :  { %502 = vmatpush1.bf16.msra.mxu0 %v1452_v18 }
  0x39   :  { %503 = vmatprep.subr.bf16.mxu0 %v1454_v21 }
  0x3a   :  { %1393 = vmatmul.mubr.bf16.gmra.mrb[12].mxu0 %v1468_v32 }
  0x3b   :  { %594 = vmatmul.mubr.bf16.gmra.mrb[12].mxu1 %v1468_v32  ;;  %1396 = vmatprep.mubr.bf16.mxu0 %v1469_v33 }
  0x3c   :  { %603 = vmatprep.mubr.bf16.mxu1 %v1477_v1  ;;  %504 = vmatpush1.bf16.msra.mxu0 %v1456_v22 }
  0x3d   :  { %505 = vmatprep.subr.bf16.mxu0 %v1458_v24 }
  0x40   :  { %506 = vmatpush1.bf16.msra.mxu0 %v1460_v25 }
  0x42   :  { %1397 = vmatmul.mubr.bf16.gmra.mrb[16].mxu0 %v1470_v34 }
  0x43   :  { %604 = vmatmul.mubr.bf16.gmra.mrb[16].mxu1 %v1469_v33  ;;  %1400 = vmatprep.mubr.bf16.mxu0 %v1471_v35 }
  0x44   :  { %613 = vmatprep.mubr.bf16.mxu1 %v1477_v1 }
  0x4a   :  { %1401 = vmatmul.mubr.bf16.gmra.mrb[20].mxu0 %v1472_v36 }
  0x4b   :  { %614 = vmatmul.mubr.bf16.gmra.mrb[20].mxu1 %v1470_v34  ;;  %1404 = vmatprep.mubr.bf16.mxu0 %v1473_v37 }
  0x4c   :  { %623 = vmatprep.mubr.bf16.mxu1 %v1477_v1 }
  0x52   :  { %1405 = vmatmul.mubr.bf16.gmra.mrb[24].mxu0 %v1474_v38 }
  0x53   :  { %624 = vmatmul.mubr.bf16.gmra.mrb[24].mxu1 %v1471_v35  ;;  %1408 = vmatprep.mubr.bf16.mxu0 %v1475_v39 }
  0x54   :  { %633 = vmatprep.mubr.bf16.mxu1 %v1477_v1 }
  0x5a   :  { %1409 = vmatmul.mubr.bf16.gmra.mrb[28].mxu0 %v1476_v40 }
  0x5b   :  { %634 = vmatmul.mubr.bf16.gmra.mrb[28].mxu1 %v1472_v36  ;;  %523 = vmatprep.mubr.bf16.mxu0 %v1477_v1 }
  0x5c   :  { %643 = vmatprep.mubr.bf16.mxu1 %v1477_v1 }
  0x62   :  { %524 = vmatmul.mubr.bf16.vlgmr.msra.gmra.mrb[32].mxu0 %v1571_v19 }
  0x63   :  { %644 = vmatmul.mubr.bf16.gmra.mrb[32].mxu1 %v1473_v37  ;;  %533 = vmatprep.mubr.bf16.mxu0 %v1477_v1 }
  0x64   :  { %653 = vmatprep.mubr.bf16.mxu1 %v1477_v1 }
  0x6a   :  { %534 = vmatmul.mubr.bf16.gmra.mrb[36].mxu0 %v1595_v26 }
  0x6b   :  { %654 = vmatmul.mubr.bf16.gmra.mrb[36].mxu1 %v1474_v38  ;;  %543 = vmatprep.mubr.bf16.mxu0 %v1477_v1 }
  0x6c   :  { %663 = vmatprep.mubr.bf16.mxu1 %v1477_v1 }
  0x72   :  { %544 = vmatmul.mubr.bf16.gmra.mrb[40].mxu0 %v1603_v28 }
  0x73   :  { %664 = vmatmul.mubr.bf16.gmra.mrb[40].mxu1 %v1475_v39  ;;  %553 = vmatprep.mubr.bf16.mxu0 %v1477_v1 }
  0x74   :  { %673 = vmatprep.mubr.bf16.mxu1 %v1477_v1 }
  0x7a   :  { %554 = vmatmul.mubr.bf16.gmra.mrb[44].mxu0 %v1611_v29 }
  0x7b   :  { %674 = vmatmul.mubr.bf16.gmra.mrb[44].mxu1 %v1476_v40 }
  0xf5   :  { %v1382_v48 = vpop.f32.mrb[0].mxu0 }
  0xf6   :  { %v565_v50 = vpop.f32.mrb[0].mxu1  ;;  %v256_v51 = vpop.f32.mrb[1].mxu0  ;;  %v265_v55 = vadd.f32 %v1382_v48, %v1675_v49 }
  0xf7   :  { %v566_v52 = vadd.f32 %v565_v50, %v1668_v46  ;;  %v567_v53 = vpop.f32.mrb[1].mxu1  ;;  %v1383_v54 = vpop.f32.mrb[2].mxu0  ;;  %v257_v60 = vadd.f32 %v1675_v49, %v256_v51 }
  0xf8   :  { %v568_v56 = vadd.f32 %v567_v53, %v1670_v47  ;;  %v268_v57 = vadd.f32 %v1383_v54, %v1675_v49  ;;  %v569_v58 = vpop.f32.mrb[2].mxu1  ;;  %v259_v59 = vpop.f32.mrb[3].mxu0 }
  0xf9   :  { %v570_v61 = vadd.f32 %v569_v58, %v1668_v46  ;;  %v260_v62 = vadd.f32 %v1675_v49, %v259_v59  ;;  %v571_v63 = vpop.f32.mrb[3].mxu1 }
  0xfa   :  { %v1221_v0 = vpack.c.bf16 %v568_v56, %v566_v52  ;;  %v1253_v1 = vpack.c.bf16 %v268_v57, %v265_v55  ;;  %v572_v2 = vadd.f32 %v571_v63, %v1670_v47 }
  0xfb   :  { %v1248_v3 = vpack.c.bf16 %v260_v62, %v257_v60 }
  0xfc   :  { %1044 = vst [vmem:[%s1922_s6 + $0x40] sm:$0xff] %v1221_v0  ;;  %1325 = vst [vmem:[%s1923_s5 + $0x8] sm:$0xff] %v1253_v1   ;;  %v1222_v4 = vpack.c.bf16 %v572_v2, %v570_v61 }
  0xfd   :  { %1249 = vst [vmem:[%s1923_s5] sm:$0xff] %v1248_v3   ;;  %v1386_v5 = vpop.f32.mrb[4].mxu0 }
  0xfe   :  { %1045 = vst [vmem:[%s1922_s6 + $0x48] sm:$0xff] %v1222_v4  ;;  %v575_v6 = vpop.f32.mrb[4].mxu1  ;;  %v272_v7 = vpop.f32.mrb[5].mxu0  ;;  %v281_v11 = vadd.f32 %v1386_v5, %v1675_v49 }
  0xff   :  { %v576_v8 = vadd.f32 %v575_v6, %v1668_v46  ;;  %v577_v9 = vpop.f32.mrb[5].mxu1  ;;  %v1387_v10 = vpop.f32.mrb[6].mxu0  ;;  %v273_v16 = vadd.f32 %v1675_v49, %v272_v7 }
 0x100   :  { %v578_v12 = vadd.f32 %v577_v9, %v1670_v47  ;;  %v284_v13 = vadd.f32 %v1387_v10, %v1675_v49  ;;  %v579_v14 = vpop.f32.mrb[6].mxu1  ;;  %v275_v15 = vpop.f32.mrb[7].mxu0 }
 0x101   :  { %v580_v17 = vadd.f32 %v579_v14, %v1668_v46  ;;  %v276_v18 = vadd.f32 %v1675_v49, %v275_v15  ;;  %v581_v19 = vpop.f32.mrb[7].mxu1 }
 0x102   :  { %v1223_v20 = vpack.c.bf16 %v578_v12, %v576_v8  ;;  %v1263_v21 = vpack.c.bf16 %v284_v13, %v281_v11  ;;  %v582_v22 = vadd.f32 %v581_v19, %v1670_v47 }
 0x103   :  { %v1258_v23 = vpack.c.bf16 %v276_v18, %v273_v16 }
 0x104   :  { %1046 = vst [vmem:[%s1922_s6 + $0x50] sm:$0xff] %v1223_v20  ;;  %1327 = vst [vmem:[%s1923_s5 + $0x18] sm:$0xff] %v1263_v21   ;;  %v1224_v24 = vpack.c.bf16 %v582_v22, %v580_v17 }
 0x105   :  { %1326 = vst [vmem:[%s1923_s5 + $0x10] sm:$0xff] %v1258_v23   ;;  %v1390_v25 = vpop.f32.mrb[8].mxu0 }
 0x106   :  { %1047 = vst [vmem:[%s1922_s6 + $0x58] sm:$0xff] %v1224_v24  ;;  %v585_v26 = vpop.f32.mrb[8].mxu1  ;;  %v288_v27 = vpop.f32.mrb[9].mxu0  ;;  %v297_v31 = vadd.f32 %v1390_v25, %v1675_v49 }
 0x107   :  { %v586_v28 = vadd.f32 %v585_v26, %v1668_v46  ;;  %v587_v29 = vpop.f32.mrb[9].mxu1  ;;  %v1391_v30 = vpop.f32.mrb[10].mxu0  ;;  %v289_v36 = vadd.f32 %v1675_v49, %v288_v27 }
 0x108   :  { %v588_v32 = vadd.f32 %v587_v29, %v1670_v47  ;;  %v300_v33 = vadd.f32 %v1391_v30, %v1675_v49  ;;  %v589_v34 = vpop.f32.mrb[10].mxu1  ;;  %v291_v35 = vpop.f32.mrb[11].mxu0 }
 0x109   :  { %v590_v37 = vadd.f32 %v589_v34, %v1668_v46  ;;  %v292_v38 = vadd.f32 %v1675_v49, %v291_v35  ;;  %v591_v39 = vpop.f32.mrb[11].mxu1 }
 0x10a   :  { %v1225_v40 = vpack.c.bf16 %v588_v32, %v586_v28  ;;  %v1273_v41 = vpack.c.bf16 %v300_v33, %v297_v31  ;;  %v592_v42 = vadd.f32 %v591_v39, %v1670_v47 }
 0x10b   :  { %v1268_v43 = vpack.c.bf16 %v292_v38, %v289_v36 }
 0x10c   :  { %1048 = vst [vmem:[%s1922_s6 + $0x60] sm:$0xff] %v1225_v40  ;;  %1329 = vst [vmem:[%s1923_s5 + $0x28] sm:$0xff] %v1273_v41   ;;  %v1226_v44 = vpack.c.bf16 %v592_v42, %v590_v37 }
 0x10d   :  { %1328 = vst [vmem:[%s1923_s5 + $0x20] sm:$0xff] %v1268_v43   ;;  %v1394_v45 = vpop.f32.mrb[12].mxu0 }
 0x10e   :  { %1049 = vst [vmem:[%s1922_s6 + $0x68] sm:$0xff] %v1226_v44  ;;  %v595_v48 = vpop.f32.mrb[12].mxu1  ;;  %v304_v50 = vpop.f32.mrb[13].mxu0  ;;  %v313_v54 = vadd.f32 %v1394_v45, %v1675_v49 }
 0x10f   :  { %v596_v51 = vadd.f32 %v595_v48, %v1668_v46  ;;  %v597_v52 = vpop.f32.mrb[13].mxu1  ;;  %v1395_v53 = vpop.f32.mrb[14].mxu0  ;;  %v305_v59 = vadd.f32 %v1675_v49, %v304_v50 }
 0x110   :  { %v598_v55 = vadd.f32 %v597_v52, %v1670_v47  ;;  %v316_v56 = vadd.f32 %v1395_v53, %v1675_v49  ;;  %v599_v57 = vpop.f32.mrb[14].mxu1  ;;  %v307_v58 = vpop.f32.mrb[15].mxu0 }
 0x111   :  { %v600_v60 = vadd.f32 %v599_v57, %v1668_v46  ;;  %v308_v61 = vadd.f32 %v1675_v49, %v307_v58  ;;  %v601_v62 = vpop.f32.mrb[15].mxu1 }
 0x112   :  { %v1227_v63 = vpack.c.bf16 %v598_v55, %v596_v51  ;;  %v1283_v0 = vpack.c.bf16 %v316_v56, %v313_v54  ;;  %v602_v1 = vadd.f32 %v601_v62, %v1670_v47 }
 0x113   :  { %v1278_v2 = vpack.c.bf16 %v308_v61, %v305_v59 }
 0x114   :  { %1050 = vst [vmem:[%s1922_s6 + $0x70] sm:$0xff] %v1227_v63  ;;  %1331 = vst [vmem:[%s1923_s5 + $0x38] sm:$0xff] %v1283_v0   ;;  %v1228_v3 = vpack.c.bf16 %v602_v1, %v600_v60 }
 0x115   :  { %1330 = vst [vmem:[%s1923_s5 + $0x30] sm:$0xff] %v1278_v2   ;;  %v1398_v4 = vpop.f32.mrb[16].mxu0 }
 0x116   :  { %1051 = vst [vmem:[%s1922_s6 + $0x78] sm:$0xff] %v1228_v3  ;;  %v605_v5 = vpop.f32.mrb[16].mxu1  ;;  %v320_v6 = vpop.f32.mrb[17].mxu0  ;;  %v329_v10 = vadd.f32 %v1398_v4, %v1675_v49 }
 0x117   :  { %v606_v7 = vadd.f32 %v605_v5, %v1668_v46  ;;  %v607_v8 = vpop.f32.mrb[17].mxu1  ;;  %v1399_v9 = vpop.f32.mrb[18].mxu0  ;;  %v321_v15 = vadd.f32 %v1675_v49, %v320_v6 }
 0x118   :  { %v608_v11 = vadd.f32 %v607_v8, %v1670_v47  ;;  %v332_v12 = vadd.f32 %v1399_v9, %v1675_v49  ;;  %v609_v13 = vpop.f32.mrb[18].mxu1  ;;  %v323_v14 = vpop.f32.mrb[19].mxu0 }
 0x119   :  { %v610_v16 = vadd.f32 %v609_v13, %v1668_v46  ;;  %v324_v17 = vadd.f32 %v1675_v49, %v323_v14  ;;  %v611_v18 = vpop.f32.mrb[19].mxu1 }
 0x11a   :  { %v1229_v19 = vpack.c.bf16 %v608_v11, %v606_v7  ;;  %v1293_v20 = vpack.c.bf16 %v332_v12, %v329_v10  ;;  %v612_v21 = vadd.f32 %v611_v18, %v1670_v47 }
 0x11b   :  { %v1288_v22 = vpack.c.bf16 %v324_v17, %v321_v15 }
 0x11c   :  { %1052 = vst [vmem:[%s1922_s6 + $0x80] sm:$0xff] %v1229_v19  ;;  %1333 = vst [vmem:[%s1923_s5 + $0x48] sm:$0xff] %v1293_v20   ;;  %v1230_v23 = vpack.c.bf16 %v612_v21, %v610_v16 }
 0x11d   :  { %1332 = vst [vmem:[%s1923_s5 + $0x40] sm:$0xff] %v1288_v22   ;;  %v1402_v24 = vpop.f32.mrb[20].mxu0 }
 0x11e   :  { %1053 = vst [vmem:[%s1922_s6 + $0x88] sm:$0xff] %v1230_v23  ;;  %v615_v25 = vpop.f32.mrb[20].mxu1  ;;  %v336_v26 = vpop.f32.mrb[21].mxu0  ;;  %v345_v30 = vadd.f32 %v1402_v24, %v1675_v49 }
 0x11f   :  { %v616_v27 = vadd.f32 %v615_v25, %v1668_v46  ;;  %v617_v28 = vpop.f32.mrb[21].mxu1  ;;  %v1403_v29 = vpop.f32.mrb[22].mxu0  ;;  %v337_v35 = vadd.f32 %v1675_v49, %v336_v26 }
 0x120   :  { %v618_v31 = vadd.f32 %v617_v28, %v1670_v47  ;;  %v348_v32 = vadd.f32 %v1403_v29, %v1675_v49  ;;  %v619_v33 = vpop.f32.mrb[22].mxu1  ;;  %v339_v34 = vpop.f32.mrb[23].mxu0 }
 0x121   :  { %v620_v36 = vadd.f32 %v619_v33, %v1668_v46  ;;  %v340_v37 = vadd.f32 %v1675_v49, %v339_v34  ;;  %v621_v38 = vpop.f32.mrb[23].mxu1 }
 0x122   :  { %v1231_v39 = vpack.c.bf16 %v618_v31, %v616_v27  ;;  %v1303_v40 = vpack.c.bf16 %v348_v32, %v345_v30  ;;  %v622_v41 = vadd.f32 %v621_v38, %v1670_v47 }
 0x123   :  { %v1298_v42 = vpack.c.bf16 %v340_v37, %v337_v35 }
 0x124   :  { %1054 = vst [vmem:[%s1922_s6 + $0x90] sm:$0xff] %v1231_v39  ;;  %1335 = vst [vmem:[%s1923_s5 + $0x58] sm:$0xff] %v1303_v40   ;;  %v1232_v43 = vpack.c.bf16 %v622_v41, %v620_v36 }
 0x125   :  { %1334 = vst [vmem:[%s1923_s5 + $0x50] sm:$0xff] %v1298_v42   ;;  %v1406_v44 = vpop.f32.mrb[24].mxu0 }
 0x126   :  { %1055 = vst [vmem:[%s1922_s6 + $0x98] sm:$0xff] %v1232_v43  ;;  %v625_v45 = vpop.f32.mrb[24].mxu1  ;;  %v352_v48 = vpop.f32.mrb[25].mxu0  ;;  %v361_v53 = vadd.f32 %v1406_v44, %v1675_v49 }
 0x127   :  { %v626_v50 = vadd.f32 %v625_v45, %v1668_v46  ;;  %v627_v51 = vpop.f32.mrb[25].mxu1  ;;  %v1407_v52 = vpop.f32.mrb[26].mxu0  ;;  %v353_v58 = vadd.f32 %v1675_v49, %v352_v48 }
 0x128   :  { %v628_v54 = vadd.f32 %v627_v51, %v1670_v47  ;;  %v364_v55 = vadd.f32 %v1407_v52, %v1675_v49  ;;  %v629_v56 = vpop.f32.mrb[26].mxu1  ;;  %v355_v57 = vpop.f32.mrb[27].mxu0 }
 0x129   :  { %v630_v59 = vadd.f32 %v629_v56, %v1668_v46  ;;  %v356_v60 = vadd.f32 %v1675_v49, %v355_v57  ;;  %v631_v61 = vpop.f32.mrb[27].mxu1 }
 0x12a   :  { %v1233_v62 = vpack.c.bf16 %v628_v54, %v626_v50  ;;  %v1313_v63 = vpack.c.bf16 %v364_v55, %v361_v53  ;;  %v632_v0 = vadd.f32 %v631_v61, %v1670_v47 }
 0x12b   :  { %v1308_v1 = vpack.c.bf16 %v356_v60, %v353_v58 }
 0x12c   :  { %1056 = vst [vmem:[%s1922_s6 + $0xa0] sm:$0xff] %v1233_v62  ;;  %1337 = vst [vmem:[%s1923_s5 + $0x68] sm:$0xff] %v1313_v63   ;;  %v1234_v2 = vpack.c.bf16 %v632_v0, %v630_v59 }
 0x12d   :  { %1336 = vst [vmem:[%s1923_s5 + $0x60] sm:$0xff] %v1308_v1   ;;  %v1410_v3 = vpop.f32.mrb[28].mxu0 }
 0x12e   :  { %1057 = vst [vmem:[%s1922_s6 + $0xa8] sm:$0xff] %v1234_v2  ;;  %v635_v4 = vpop.f32.mrb[28].mxu1  ;;  %v368_v5 = vpop.f32.mrb[29].mxu0  ;;  %v377_v9 = vadd.f32 %v1410_v3, %v1675_v49 }
 0x12f   :  { %v636_v6 = vadd.f32 %v635_v4, %v1668_v46  ;;  %v637_v7 = vpop.f32.mrb[29].mxu1  ;;  %v1411_v8 = vpop.f32.mrb[30].mxu0  ;;  %v369_v14 = vadd.f32 %v1675_v49, %v368_v5 }
 0x130   :  { %v638_v10 = vadd.f32 %v637_v7, %v1670_v47  ;;  %v380_v11 = vadd.f32 %v1411_v8, %v1675_v49  ;;  %v639_v12 = vpop.f32.mrb[30].mxu1  ;;  %v371_v13 = vpop.f32.mrb[31].mxu0 }
 0x131   :  { %v640_v15 = vadd.f32 %v639_v12, %v1668_v46  ;;  %v372_v16 = vadd.f32 %v1675_v49, %v371_v13  ;;  %v641_v17 = vpop.f32.mrb[31].mxu1 }
 0x132   :  { %v1235_v18 = vpack.c.bf16 %v638_v10, %v636_v6  ;;  %v1323_v19 = vpack.c.bf16 %v380_v11, %v377_v9  ;;  %v642_v20 = vadd.f32 %v641_v17, %v1670_v47 }
 0x133   :  { %v1318_v21 = vpack.c.bf16 %v372_v16, %v369_v14 }
 0x134   :  { %1058 = vst [vmem:[%s1922_s6 + $0xb0] sm:$0xff] %v1235_v18  ;;  %1339 = vst [vmem:[%s1923_s5 + $0x78] sm:$0xff] %v1323_v19   ;;  %v1236_v22 = vpack.c.bf16 %v642_v20, %v640_v15 }
 0x135   :  { %1338 = vst [vmem:[%s1923_s5 + $0x70] sm:$0xff] %v1318_v21   ;;  %v525_v49 = vpop.f32.mrb[32].mxu0 }
 0x136   :  { %1059 = vst [vmem:[%s1922_s6 + $0xb8] sm:$0xff] %v1236_v22  ;;  %v526_v23 = vadd.f32 %v525_v49, %v1668_v46  ;;  %v645_v24 = vpop.f32.mrb[32].mxu1  ;;  %v527_v25 = vpop.f32.mrb[33].mxu0 }
 0x137   :  { %v646_v26 = vadd.f32 %v645_v24, %v1668_v46  ;;  %v528_v27 = vadd.f32 %v527_v25, %v1670_v47  ;;  %v647_v28 = vpop.f32.mrb[33].mxu1  ;;  %v529_v29 = vpop.f32.mrb[34].mxu0 }
 0x138   :  { %v648_v30 = vadd.f32 %v647_v28, %v1670_v47  ;;  %v530_v31 = vadd.f32 %v529_v29, %v1668_v46  ;;  %v649_v32 = vpop.f32.mrb[34].mxu1  ;;  %v531_v33 = vpop.f32.mrb[35].mxu0 }
 0x139   :  { %v1213_v34 = vpack.c.bf16 %v528_v27, %v526_v23  ;;  %v650_v35 = vadd.f32 %v649_v32, %v1668_v46  ;;  %v532_v36 = vadd.f32 %v531_v33, %v1670_v47  ;;  %v651_v37 = vpop.f32.mrb[35].mxu1 }
 0x13a   :  { %v1237_v38 = vpack.c.bf16 %v648_v30, %v646_v26  ;;  %v652_v39 = vadd.f32 %v651_v37, %v1670_v47 }
 0x13b   :  { %1036 = vst [vmem:[%s1922_s6] sm:$0xff] %v1213_v34  ;;  %v1214_v40 = vpack.c.bf16 %v532_v36, %v530_v31 }
 0x13c   :  { %1060 = vst [vmem:[%s1922_s6 + $0xc0] sm:$0xff] %v1237_v38  ;;  %v1238_v41 = vpack.c.bf16 %v652_v39, %v650_v35 }
 0x13d   :  { %1037 = vst [vmem:[%s1922_s6 + $0x8] sm:$0xff] %v1214_v40  ;;  %v535_v42 = vpop.f32.mrb[36].mxu0 }
 0x13e   :  { %1061 = vst [vmem:[%s1922_s6 + $0xc8] sm:$0xff] %v1238_v41  ;;  %v536_v43 = vadd.f32 %v535_v42, %v1668_v46  ;;  %v655_v44 = vpop.f32.mrb[36].mxu1  ;;  %v537_v45 = vpop.f32.mrb[37].mxu0 }
 0x13f   :  { %v656_v48 = vadd.f32 %v655_v44, %v1668_v46  ;;  %v538_v50 = vadd.f32 %v537_v45, %v1670_v47  ;;  %v657_v51 = vpop.f32.mrb[37].mxu1  ;;  %v539_v52 = vpop.f32.mrb[38].mxu0 }
 0x140   :  { %v658_v53 = vadd.f32 %v657_v51, %v1670_v47  ;;  %v540_v54 = vadd.f32 %v539_v52, %v1668_v46  ;;  %v659_v55 = vpop.f32.mrb[38].mxu1  ;;  %v541_v56 = vpop.f32.mrb[39].mxu0 }
 0x141   :  { %v1215_v57 = vpack.c.bf16 %v538_v50, %v536_v43  ;;  %v660_v58 = vadd.f32 %v659_v55, %v1668_v46  ;;  %v542_v59 = vadd.f32 %v541_v56, %v1670_v47  ;;  %v661_v60 = vpop.f32.mrb[39].mxu1 }
 0x142   :  { %v1239_v61 = vpack.c.bf16 %v658_v53, %v656_v48  ;;  %v662_v62 = vadd.f32 %v661_v60, %v1670_v47 }
 0x143   :  { %1038 = vst [vmem:[%s1922_s6 + $0x10] sm:$0xff] %v1215_v57  ;;  %v1216_v63 = vpack.c.bf16 %v542_v59, %v540_v54 }
 0x144   :  { %1062 = vst [vmem:[%s1922_s6 + $0xd0] sm:$0xff] %v1239_v61  ;;  %v1240_v0 = vpack.c.bf16 %v662_v62, %v660_v58 }
 0x145   :  { %1039 = vst [vmem:[%s1922_s6 + $0x18] sm:$0xff] %v1216_v63  ;;  %v545_v1 = vpop.f32.mrb[40].mxu0 }
 0x146   :  { %1063 = vst [vmem:[%s1922_s6 + $0xd8] sm:$0xff] %v1240_v0  ;;  %v546_v2 = vadd.f32 %v545_v1, %v1668_v46  ;;  %v665_v3 = vpop.f32.mrb[40].mxu1  ;;  %v547_v4 = vpop.f32.mrb[41].mxu0 }
 0x147   :  { %v666_v5 = vadd.f32 %v665_v3, %v1668_v46  ;;  %v548_v6 = vadd.f32 %v547_v4, %v1670_v47  ;;  %v667_v7 = vpop.f32.mrb[41].mxu1  ;;  %v549_v8 = vpop.f32.mrb[42].mxu0 }
 0x148   :  { %v668_v9 = vadd.f32 %v667_v7, %v1670_v47  ;;  %v550_v10 = vadd.f32 %v549_v8, %v1668_v46  ;;  %v669_v11 = vpop.f32.mrb[42].mxu1  ;;  %v551_v12 = vpop.f32.mrb[43].mxu0 }
 0x149   :  { %v1217_v13 = vpack.c.bf16 %v548_v6, %v546_v2  ;;  %v670_v14 = vadd.f32 %v669_v11, %v1668_v46  ;;  %v552_v15 = vadd.f32 %v551_v12, %v1670_v47  ;;  %v671_v16 = vpop.f32.mrb[43].mxu1 }
 0x14a   :  { %v1241_v17 = vpack.c.bf16 %v668_v9, %v666_v5  ;;  %v672_v18 = vadd.f32 %v671_v16, %v1670_v47 }
 0x14b   :  { %1040 = vst [vmem:[%s1922_s6 + $0x20] sm:$0xff] %v1217_v13  ;;  %v1218_v19 = vpack.c.bf16 %v552_v15, %v550_v10 }
 0x14c   :  { %1064 = vst [vmem:[%s1922_s6 + $0xe0] sm:$0xff] %v1241_v17  ;;  %v1242_v20 = vpack.c.bf16 %v672_v18, %v670_v14 }
 0x14d   :  { %1041 = vst [vmem:[%s1922_s6 + $0x28] sm:$0xff] %v1218_v19  ;;  %v555_v21 = vpop.f32.mrb[44].mxu0 }
 0x14e   :  { %1065 = vst [vmem:[%s1922_s6 + $0xe8] sm:$0xff] %v1242_v20  ;;  %v556_v22 = vadd.f32 %v555_v21, %v1668_v46  ;;  %v675_v49 = vpop.f32.mrb[44].mxu1  ;;  %v557_v23 = vpop.f32.mrb[45].mxu0 }
 0x14f   :  { %v676_v24 = vadd.f32 %v675_v49, %v1668_v46  ;;  %v558_v25 = vadd.f32 %v557_v23, %v1670_v47  ;;  %v677_v26 = vpop.f32.mrb[45].mxu1  ;;  %v559_v27 = vpop.f32.mrb[46].mxu0 }
 0x150   :  { %v678_v28 = vadd.f32 %v677_v26, %v1670_v47  ;;  %v560_v29 = vadd.f32 %v559_v27, %v1668_v46  ;;  %v679_v30 = vpop.f32.mrb[46].mxu1  ;;  %v561_v31 = vpop.f32.mrb[47].mxu0 }
 0x151   :  { %v1219_v32 = vpack.c.bf16 %v558_v25, %v556_v22  ;;  %v680_v33 = vadd.f32 %v679_v30, %v1668_v46  ;;  %v562_v34 = vadd.f32 %v561_v31, %v1670_v47  ;;  %v681_v35 = vpop.f32.mrb[47].mxu1 }
 0x152   :  { %v1243_v36 = vpack.c.bf16 %v678_v28, %v676_v24  ;;  %v682_v37 = vadd.f32 %v681_v35, %v1670_v47 }
 0x153   :  { %1042 = vst [vmem:[%s1922_s6 + $0x30] sm:$0xff] %v1219_v32  ;;  %v1220_v38 = vpack.c.bf16 %v562_v34, %v560_v29 }
 0x154   :  { %1066 = vst [vmem:[%s1922_s6 + $0xf0] sm:$0xff] %v1243_v36  ;;  %v1244_v39 = vpack.c.bf16 %v682_v37, %v680_v33 }
 0x155   :  { %1043 = vst [vmem:[%s1922_s6 + $0x38] sm:$0xff] %v1220_v38 }
 0x156   :  { %1067 = vst [vmem:[%s1922_s6 + $0xf8] sm:$0xff] %v1244_v39 }

// kernel: pc_trs_forward.7
= control target key start
LH: loop header
LB: loop body
LE: loop exit
PB: predicated region body
PF: predicated region fallthrough
CT: control target
= control target key end

     0   :  { %vm199_vm0 = vcmask 1041408   ;;  %vm150_vm1 = vcmask 31744   ;;  %vm533_vm2 = vcmask 1043456   ;;  %vm484_vm7 = vcmask 64512   ;;  %s2392_s2 = inlined_call_operand.vmem [shape: bf16[4,8], index: 2, kind: input, shape index: {}]   ;;  %s2393_s1 = inlined_call_operand.vmem [shape: bf16[256,4], index: 1, kind: input, shape index: {}]   ;;  %s2394_s4 = inlined_call_operand.vmem [shape: bf16[8,8], index: 4, kind: input, shape index: {}]   ;;  %s2395_s3 = inlined_call_operand.vmem [shape: f32[1,8], index: 3, kind: input, shape index: {}]   ;;  %s2396_s7 = inlined_call_operand.vmem [shape: bf16[8,128], index: 7, kind: input, shape index: {}]   ;;  %s2397_s6 = inlined_call_operand.vmem [shape: bf16[3,128], index: 6, kind: input, shape index: {}]   ;;  %s2398_s0 = inlined_call_operand.vmem [shape: bf16[256,3], index: 0, kind: input, shape index: {}]   ;;  %s2399_s5 = inlined_call_operand.vmem [shape: f32[1,8], index: 5, kind: input, shape index: {}]   ;;  %s2400_s8 = inlined_call_operand.vmem [shape: bf16[256,128], index: 8, kind: output, shape index: {}]  }
   0x1   :  { %v62_v0 = vld [vmem:[%s2392_s2] sm:$0x3]  ;;  %v2014_v3 = vld [vmem:[%s2393_s1 + $0x8] sm:$0xff]   ;;  %v2015_v4 = vld [vmem:[%s2393_s1 + $0x10] sm:$0xff]  }
   0x2   :  { %v2013_v1 = vld [vmem:[%s2393_s1] sm:$0xff]   ;;  %2009 = vmatprep.subr.msk.bf16.mxu1 %vm199_vm0, %v62_v0  ;;  %v201_v2 = vsel %vm199_vm0, %v62_v0, 0  ;;  %v2016_v5 = vld [vmem:[%s2393_s1 + $0x18] sm:$0xff]   ;;  %v2018_v8 = vld [vmem:[%s2393_s1 + $0x28] sm:$0xff]  }
   0x3   :  { %1842 = vmatpush3.bf16.msra.mxu1 %v201_v2  ;;  %1843 = vmatprep.mubr.msk.bf16.mxu1 %vm150_vm1, %v2013_v1  ;;  %v2017_v6 = vld [vmem:[%s2393_s1 + $0x20] sm:$0xff]   ;;  %v2019_v10 = vld [vmem:[%s2393_s1 + $0x30] sm:$0xff]   ;;  %v2020_v11 = vld [vmem:[%s2393_s1 + $0x38] sm:$0xff]  }
   0x4   :  { %v476_v7 = vld [vmem:[%s2394_s4] sm:$0xf]  ;;  %v2022_v13 = vld [vmem:[%s2393_s1 + $0x48] sm:$0xff]   ;;  %v2023_v14 = vld [vmem:[%s2393_s1 + $0x50] sm:$0xff]  }
   0x5   :  { %2010 = vmatprep.subr.msk.bf16.mxu1 %vm533_vm2, %v476_v7  ;;  %v535_v9 = vsel %vm533_vm2, %v476_v7, 0  ;;  %v2021_v12 = vld [vmem:[%s2393_s1 + $0x40] sm:$0xff]   ;;  %v2024_v15 = vld [vmem:[%s2393_s1 + $0x58] sm:$0xff]   ;;  %v2026_v17 = vld [vmem:[%s2393_s1 + $0x68] sm:$0xff]  }
   0x6   :  { %1844 = vmatmul.mubr.msk.bf16.vlgmr.msra.gmra.mrb[0].mxu1 %vm150_vm1, %v2014_v3  ;;  %v2025_v16 = vld [vmem:[%s2393_s1 + $0x60] sm:$0xff]   ;;  %v2027_v18 = vld [vmem:[%s2393_s1 + $0x70] sm:$0xff]   ;;  %v2028_v19 = vld [vmem:[%s2393_s1 + $0x78] sm:$0xff]  }
   0x7   :  { %1847 = vmatprep.mubr.msk.bf16.mxu1 %vm150_vm1, %v2015_v4  ;;  %1876 = vmatpush3.bf16.msra.mxu1 %v535_v9  ;;  %v2168_v20 = vld [vmem:[%s2395_s3] ss:$0 sm:$0xff] }
   0xe   :  { %1848 = vmatmul.mubr.msk.bf16.gmra.mrb[4].mxu1 %vm150_vm1, %v2016_v5 }
   0xf   :  { %1851 = vmatprep.mubr.msk.bf16.mxu1 %vm150_vm1, %v2017_v6 }
  0x16   :  { %1852 = vmatmul.mubr.msk.bf16.gmra.mrb[8].mxu1 %vm150_vm1, %v2018_v8 }
  0x17   :  { %1855 = vmatprep.mubr.msk.bf16.mxu1 %vm150_vm1, %v2019_v10 }
  0x1e   :  { %1856 = vmatmul.mubr.msk.bf16.gmra.mrb[12].mxu1 %vm150_vm1, %v2020_v11 }
  0x1f   :  { %1859 = vmatprep.mubr.msk.bf16.mxu1 %vm150_vm1, %v2021_v12 }
  0x26   :  { %1860 = vmatmul.mubr.msk.bf16.gmra.mrb[16].mxu1 %vm150_vm1, %v2022_v13 }
  0x27   :  { %1863 = vmatprep.mubr.msk.bf16.mxu1 %vm150_vm1, %v2023_v14 }
  0x2e   :  { %1864 = vmatmul.mubr.msk.bf16.gmra.mrb[20].mxu1 %vm150_vm1, %v2024_v15 }
  0x2f   :  { %1867 = vmatprep.mubr.msk.bf16.mxu1 %vm150_vm1, %v2025_v16 }
  0x36   :  { %1868 = vmatmul.mubr.msk.bf16.gmra.mrb[24].mxu1 %vm150_vm1, %v2026_v17 }
  0x37   :  { %1871 = vmatprep.mubr.msk.bf16.mxu1 %vm150_vm1, %v2027_v18 }
  0x3e   :  { %1872 = vmatmul.mubr.msk.bf16.gmra.mrb[28].mxu1 %vm150_vm1, %v2028_v19 }
  0xd9   :  { %v1845_v21 = vpop.f32.mrb[0].mxu1 }
  0xda   :  { %v246_v22 = vadd.f32 %v1845_v21, %v2168_v20  ;;  %v237_v23 = vpop.f32.mrb[1].mxu1 }
  0xdb   :  { %v238_v24 = vadd.f32 %v2168_v20, %v237_v23  ;;  %v1846_v25 = vpop.f32.mrb[2].mxu1 }
  0xdc   :  { %v398_v26 = vmul.f32 0.2, %v246_v22  ;;  %v249_v27 = vadd.f32 %v1846_v25, %v2168_v20  ;;  %v240_v28 = vpop.f32.mrb[3].mxu1  ;;  %vm366_vm3 = vcmp.gt.f32.partialorder %v246_v22, 0.0 }
  0xdd   :  { %v396_v29 = vmul.f32 0.2, %v238_v24  ;;  %v241_v30 = vadd.f32 %v2168_v20, %v240_v28  ;;  %vm364_vm4 = vcmp.gt.f32.partialorder %v238_v24, 0.0 }
  0xde   :  { %vm367_vm5 = vcmp.gt.f32.partialorder %v249_v27, 0.0  ;;  %v399_v31 = vmul.f32 0.2, %v249_v27  ;;  %v430_v33 = vsel %vm366_vm3, %v246_v22, %v398_v26 }
  0xdf   :  { %vm365_vm6 = vcmp.gt.f32.partialorder %v241_v30, 0.0  ;;  %v397_v32 = vmul.f32 0.2, %v241_v30  ;;  %v428_v35 = vsel %vm364_vm4, %v238_v24, %v396_v29 }
  0xe0   :  { %v431_v34 = vsel %vm367_vm5, %v249_v27, %v399_v31 }
  0xe1   :  { %v461_v36 = vpack.c.bf16 %v431_v34, %v430_v33  ;;  %v429_v37 = vsel %vm365_vm6, %v241_v30, %v397_v32  ;;  %v1849_v38 = vpop.f32.mrb[4].mxu1 }
  0xe2   :  { %v460_v39 = vpack.c.bf16 %v429_v37, %v428_v35  ;;  %v262_v40 = vadd.f32 %v1849_v38, %v2168_v20  ;;  %v253_v41 = vpop.f32.mrb[5].mxu1 }
  0xe3   :  { %v254_v42 = vadd.f32 %v2168_v20, %v253_v41  ;;  %v1850_v43 = vpop.f32.mrb[6].mxu1 }
  0xe4   :  { %v402_v44 = vmul.f32 0.2, %v262_v40  ;;  %v265_v45 = vadd.f32 %v1850_v43, %v2168_v20  ;;  %v256_v46 = vpop.f32.mrb[7].mxu1  ;;  %1877 = vmatprep.mubr.msk.bf16.mxu1 %vm484_vm7, %v460_v39  ;;  %vm370_vm8 = vcmp.gt.f32.partialorder %v262_v40, 0.0 }
  0xe5   :  { %v400_v47 = vmul.f32 0.2, %v254_v42  ;;  %v257_v48 = vadd.f32 %v2168_v20, %v256_v46  ;;  %1878 = vmatmul.mubr.msk.bf16.vlgmr.msra.gmra.mrb[32].mxu1 %vm484_vm7, %v461_v36  ;;  %vm368_vm9 = vcmp.gt.f32.partialorder %v254_v42, 0.0 }
  0xe6   :  { %vm371_vm10 = vcmp.gt.f32.partialorder %v265_v45, 0.0  ;;  %v403_v49 = vmul.f32 0.2, %v265_v45  ;;  %v434_v51 = vsel %vm370_vm8, %v262_v40, %v402_v44 }
  0xe7   :  { %vm369_vm11 = vcmp.gt.f32.partialorder %v257_v48, 0.0  ;;  %v401_v50 = vmul.f32 0.2, %v257_v48  ;;  %v432_v53 = vsel %vm368_vm9, %v254_v42, %v400_v47 }
  0xe8   :  { %v435_v52 = vsel %vm371_vm10, %v265_v45, %v403_v49 }
  0xe9   :  { %v463_v54 = vpack.c.bf16 %v435_v52, %v434_v51  ;;  %v433_v55 = vsel %vm369_vm11, %v257_v48, %v401_v50  ;;  %v1853_v56 = vpop.f32.mrb[8].mxu1 }
  0xea   :  { %v462_v57 = vpack.c.bf16 %v433_v55, %v432_v53  ;;  %v278_v58 = vadd.f32 %v1853_v56, %v2168_v20  ;;  %v269_v59 = vpop.f32.mrb[9].mxu1 }
  0xeb   :  { %v270_v60 = vadd.f32 %v2168_v20, %v269_v59  ;;  %v1854_v61 = vpop.f32.mrb[10].mxu1 }
  0xec   :  { %v406_v62 = vmul.f32 0.2, %v278_v58  ;;  %v281_v63 = vadd.f32 %v1854_v61, %v2168_v20  ;;  %v272_v0 = vpop.f32.mrb[11].mxu1  ;;  %1881 = vmatprep.mubr.msk.bf16.mxu1 %vm484_vm7, %v462_v57  ;;  %vm374_vm12 = vcmp.gt.f32.partialorder %v278_v58, 0.0 }
  0xed   :  { %v404_v1 = vmul.f32 0.2, %v270_v60  ;;  %v273_v2 = vadd.f32 %v2168_v20, %v272_v0  ;;  %1882 = vmatmul.mubr.msk.bf16.gmra.mrb[36].mxu1 %vm484_vm7, %v463_v54  ;;  %vm372_vm13 = vcmp.gt.f32.partialorder %v270_v60, 0.0 }
  0xee   :  { %vm375_vm14 = vcmp.gt.f32.partialorder %v281_v63, 0.0  ;;  %v407_v3 = vmul.f32 0.2, %v281_v63  ;;  %v438_v5 = vsel %vm374_vm12, %v278_v58, %v406_v62 }
  0xef   :  { %vm373_vm15 = vcmp.gt.f32.partialorder %v273_v2, 0.0  ;;  %v405_v4 = vmul.f32 0.2, %v273_v2  ;;  %v436_v7 = vsel %vm372_vm13, %v270_v60, %v404_v1 }
  0xf0   :  { %v439_v6 = vsel %vm375_vm14, %v281_v63, %v407_v3 }
  0xf1   :  { %v465_v8 = vpack.c.bf16 %v439_v6, %v438_v5  ;;  %v437_v9 = vsel %vm373_vm15, %v273_v2, %v405_v4  ;;  %v1857_v10 = vpop.f32.mrb[12].mxu1 }
  0xf2   :  { %v464_v11 = vpack.c.bf16 %v437_v9, %v436_v7  ;;  %v294_v12 = vadd.f32 %v1857_v10, %v2168_v20  ;;  %v285_v13 = vpop.f32.mrb[13].mxu1 }
  0xf3   :  { %v286_v14 = vadd.f32 %v2168_v20, %v285_v13  ;;  %v1858_v15 = vpop.f32.mrb[14].mxu1 }
  0xf4   :  { %v410_v16 = vmul.f32 0.2, %v294_v12  ;;  %v297_v17 = vadd.f32 %v1858_v15, %v2168_v20  ;;  %v288_v18 = vpop.f32.mrb[15].mxu1  ;;  %1885 = vmatprep.mubr.msk.bf16.mxu1 %vm484_vm7, %v464_v11  ;;  %vm378_vm1 = vcmp.gt.f32.partialorder %v294_v12, 0.0 }
  0xf5   :  { %v408_v19 = vmul.f32 0.2, %v286_v14  ;;  %v289_v21 = vadd.f32 %v2168_v20, %v288_v18  ;;  %1886 = vmatmul.mubr.msk.bf16.gmra.mrb[40].mxu1 %vm484_vm7, %v465_v8  ;;  %vm376_vm3 = vcmp.gt.f32.partialorder %v286_v14, 0.0 }
  0xf6   :  { %vm379_vm4 = vcmp.gt.f32.partialorder %v297_v17, 0.0  ;;  %v411_v22 = vmul.f32 0.2, %v297_v17  ;;  %v442_v24 = vsel %vm378_vm1, %v294_v12, %v410_v16 }
  0xf7   :  { %vm377_vm5 = vcmp.gt.f32.partialorder %v289_v21, 0.0  ;;  %v409_v23 = vmul.f32 0.2, %v289_v21  ;;  %v440_v26 = vsel %vm376_vm3, %v286_v14, %v408_v19 }
  0xf8   :  { %v443_v25 = vsel %vm379_vm4, %v297_v17, %v411_v22 }
  0xf9   :  { %v467_v27 = vpack.c.bf16 %v443_v25, %v442_v24  ;;  %v441_v28 = vsel %vm377_vm5, %v289_v21, %v409_v23  ;;  %v1861_v29 = vpop.f32.mrb[16].mxu1 }
  0xfa   :  { %v466_v30 = vpack.c.bf16 %v441_v28, %v440_v26  ;;  %v310_v31 = vadd.f32 %v1861_v29, %v2168_v20  ;;  %v301_v32 = vpop.f32.mrb[17].mxu1 }
  0xfb   :  { %v302_v33 = vadd.f32 %v2168_v20, %v301_v32  ;;  %v1862_v34 = vpop.f32.mrb[18].mxu1 }
  0xfc   :  { %v414_v35 = vmul.f32 0.2, %v310_v31  ;;  %v313_v36 = vadd.f32 %v1862_v34, %v2168_v20  ;;  %v304_v37 = vpop.f32.mrb[19].mxu1  ;;  %1889 = vmatprep.mubr.msk.bf16.mxu1 %vm484_vm7, %v466_v30  ;;  %vm382_vm6 = vcmp.gt.f32.partialorder %v310_v31, 0.0 }
  0xfd   :  { %v412_v38 = vmul.f32 0.2, %v302_v33  ;;  %v305_v39 = vadd.f32 %v2168_v20, %v304_v37  ;;  %1890 = vmatmul.mubr.msk.bf16.gmra.mrb[44].mxu1 %vm484_vm7, %v467_v27  ;;  %vm380_vm8 = vcmp.gt.f32.partialorder %v302_v33, 0.0 }
  0xfe   :  { %vm383_vm9 = vcmp.gt.f32.partialorder %v313_v36, 0.0  ;;  %v415_v40 = vmul.f32 0.2, %v313_v36  ;;  %v446_v42 = vsel %vm382_vm6, %v310_v31, %v414_v35 }
  0xff   :  { %vm381_vm10 = vcmp.gt.f32.partialorder %v305_v39, 0.0  ;;  %v413_v41 = vmul.f32 0.2, %v305_v39  ;;  %v444_v44 = vsel %vm380_vm8, %v302_v33, %v412_v38 }
 0x100   :  { %v447_v43 = vsel %vm383_vm9, %v313_v36, %v415_v40  ;;  %v2045_v40 = vmov 65535  }
 0x101   :  { %v469_v45 = vpack.c.bf16 %v447_v43, %v446_v42  ;;  %v445_v46 = vsel %vm381_vm10, %v305_v39, %v413_v41  ;;  %v1865_v47 = vpop.f32.mrb[20].mxu1  ;;  %vm1185_vm10 = vcmask 1040384   ;;  %v842_v43 = vld [vmem:[%s2397_s6] sm:$0x3] }
 0x102   :  { %v468_v48 = vpack.c.bf16 %v445_v46, %v444_v44  ;;  %v326_v49 = vadd.f32 %v1865_v47, %v2168_v20  ;;  %v317_v50 = vpop.f32.mrb[21].mxu1  ;;  %v1186_v41 = vsel %vm1185_vm10, 4294967295, %v2045_v40 }
 0x103   :  { %v318_v51 = vadd.f32 %v2168_v20, %v317_v50  ;;  %v1866_v52 = vpop.f32.mrb[22].mxu1  ;;  %v1187_v42 = vsel %vm199_vm0, %v1186_v41, 0 }
 0x104   :  { %v418_v53 = vmul.f32 0.2, %v326_v49  ;;  %v329_v54 = vadd.f32 %v1866_v52, %v2168_v20  ;;  %v320_v55 = vpop.f32.mrb[23].mxu1  ;;  %1893 = vmatprep.mubr.msk.bf16.mxu1 %vm484_vm7, %v468_v48  ;;  %vm386_vm11 = vcmp.gt.f32.partialorder %v326_v49, 0.0  ;;  %v1189_v44 = vand.u32 %v1187_v42, %v842_v43 }
 0x105   :  { %v416_v56 = vmul.f32 0.2, %v318_v51  ;;  %v321_v57 = vadd.f32 %v2168_v20, %v320_v55  ;;  %1894 = vmatmul.mubr.msk.bf16.gmra.mrb[48].mxu1 %vm484_vm7, %v469_v45  ;;  %vm384_vm12 = vcmp.gt.f32.partialorder %v318_v51, 0.0  ;;  %v2230_v45 = vld [vmem:[%s2399_s5] ss:$0 sm:$0xff] }
 0x106   :  { %vm387_vm13 = vcmp.gt.f32.partialorder %v329_v54, 0.0  ;;  %v419_v58 = vmul.f32 0.2, %v329_v54  ;;  %v450_v60 = vsel %vm386_vm11, %v326_v49, %v418_v53 }
 0x107   :  { %vm385_vm14 = vcmp.gt.f32.partialorder %v321_v57, 0.0  ;;  %v417_v59 = vmul.f32 0.2, %v321_v57  ;;  %v448_v62 = vsel %vm384_vm12, %v318_v51, %v416_v56 }
 0x108   :  { %v451_v61 = vsel %vm387_vm13, %v329_v54, %v419_v58 }
 0x109   :  { %v471_v63 = vpack.c.bf16 %v451_v61, %v450_v60  ;;  %v449_v0 = vsel %vm385_vm14, %v321_v57, %v417_v59  ;;  %v1869_v1 = vpop.f32.mrb[24].mxu1 }
 0x10a   :  { %v470_v2 = vpack.c.bf16 %v449_v0, %v448_v62  ;;  %v342_v3 = vadd.f32 %v1869_v1, %v2168_v20  ;;  %v333_v4 = vpop.f32.mrb[25].mxu1 }
 0x10b   :  { %v334_v5 = vadd.f32 %v2168_v20, %v333_v4  ;;  %v1870_v6 = vpop.f32.mrb[26].mxu1 }
 0x10c   :  { %v422_v7 = vmul.f32 0.2, %v342_v3  ;;  %v345_v8 = vadd.f32 %v1870_v6, %v2168_v20  ;;  %v336_v9 = vpop.f32.mrb[27].mxu1  ;;  %1897 = vmatprep.mubr.msk.bf16.mxu1 %vm484_vm7, %v470_v2  ;;  %vm390_vm15 = vcmp.gt.f32.partialorder %v342_v3, 0.0 }
 0x10d   :  { %v420_v10 = vmul.f32 0.2, %v334_v5  ;;  %v337_v11 = vadd.f32 %v2168_v20, %v336_v9  ;;  %1898 = vmatmul.mubr.msk.bf16.gmra.mrb[52].mxu1 %vm484_vm7, %v471_v63  ;;  %vm388_vm1 = vcmp.gt.f32.partialorder %v334_v5, 0.0 }
 0x10e   :  { %vm391_vm3 = vcmp.gt.f32.partialorder %v345_v8, 0.0  ;;  %v423_v12 = vmul.f32 0.2, %v345_v8  ;;  %v454_v14 = vsel %vm390_vm15, %v342_v3, %v422_v7 }
 0x10f   :  { %vm389_vm4 = vcmp.gt.f32.partialorder %v337_v11, 0.0  ;;  %v421_v13 = vmul.f32 0.2, %v337_v11  ;;  %v452_v16 = vsel %vm388_vm1, %v334_v5, %v420_v10 }
 0x110   :  { %v455_v15 = vsel %vm391_vm3, %v345_v8, %v423_v12 }
 0x111   :  { %v473_v17 = vpack.c.bf16 %v455_v15, %v454_v14  ;;  %v453_v18 = vsel %vm389_vm4, %v337_v11, %v421_v13  ;;  %v1873_v19 = vpop.f32.mrb[28].mxu1 }
 0x112   :  { %v472_v21 = vpack.c.bf16 %v453_v18, %v452_v16  ;;  %v358_v22 = vadd.f32 %v1873_v19, %v2168_v20  ;;  %v349_v23 = vpop.f32.mrb[29].mxu1 }
 0x113   :  { %v350_v24 = vadd.f32 %v2168_v20, %v349_v23  ;;  %v1874_v25 = vpop.f32.mrb[30].mxu1 }
 0x114   :  { %v426_v26 = vmul.f32 0.2, %v358_v22  ;;  %v361_v27 = vadd.f32 %v1874_v25, %v2168_v20  ;;  %v352_v28 = vpop.f32.mrb[31].mxu1  ;;  %1901 = vmatprep.mubr.msk.bf16.mxu1 %vm484_vm7, %v472_v21  ;;  %vm394_vm5 = vcmp.gt.f32.partialorder %v358_v22, 0.0 }
 0x115   :  { %v424_v29 = vmul.f32 0.2, %v350_v24  ;;  %v353_v30 = vadd.f32 %v2168_v20, %v352_v28  ;;  %1902 = vmatmul.mubr.msk.bf16.gmra.mrb[56].mxu1 %vm484_vm7, %v473_v17  ;;  %vm392_vm6 = vcmp.gt.f32.partialorder %v350_v24, 0.0  ;;  %v843_v20 = vld [vmem:[%s2396_s7] sm:$0xf] }
 0x116   :  { %vm395_vm8 = vcmp.gt.f32.partialorder %v361_v27, 0.0  ;;  %v427_v31 = vmul.f32 0.2, %v361_v27  ;;  %v458_v33 = vsel %vm394_vm5, %v358_v22, %v426_v26  ;;  %2011 = vmatprep.subr.msk.bf16.mxu0 %vm533_vm2, %v843_v20  ;;  %v893_v39 = vsel %vm533_vm2, %v843_v20, 0 }
 0x117   :  { %vm393_vm9 = vcmp.gt.f32.partialorder %v353_v30, 0.0  ;;  %v425_v32 = vmul.f32 0.2, %v353_v30  ;;  %v456_v35 = vsel %vm392_vm6, %v350_v24, %v424_v29  ;;  %1910 = vmatpush3.bf16.msra.mxu0 %v893_v39 }
 0x118   :  { %v459_v34 = vsel %vm395_vm8, %v361_v27, %v427_v31  ;;  %1943 = vmatprep.subr.bf16.mxu0 %v1189_v44 }
 0x119   :  { %v475_v36 = vpack.c.bf16 %v459_v34, %v458_v33  ;;  %v457_v37 = vsel %vm393_vm9, %v353_v30, %v425_v32 }
 0x11a   :  { %v474_v38 = vpack.c.bf16 %v457_v37, %v456_v35 }
 0x11c   :  { %1905 = vmatprep.mubr.msk.bf16.mxu1 %vm484_vm7, %v474_v38 }
 0x11d   :  { %1906 = vmatmul.mubr.msk.bf16.gmra.mrb[60].mxu1 %vm484_vm7, %v475_v36 }
 0x1b8   :  { %v1879_v46 = vpop.f32.mrb[32].mxu1 }
 0x1b9   :  { %v580_v47 = vadd.f32 %v1879_v46, %v2230_v45  ;;  %v571_v48 = vpop.f32.mrb[33].mxu1 }
 0x1ba   :  { %v572_v49 = vadd.f32 %v2230_v45, %v571_v48  ;;  %v1880_v50 = vpop.f32.mrb[34].mxu1 }
 0x1bb   :  { %v732_v51 = vmul.f32 0.2, %v580_v47  ;;  %v583_v52 = vadd.f32 %v1880_v50, %v2230_v45  ;;  %v574_v53 = vpop.f32.mrb[35].mxu1  ;;  %vm700_vm0 = vcmp.gt.f32.partialorder %v580_v47, 0.0 }
 0x1bc   :  { %v730_v54 = vmul.f32 0.2, %v572_v49  ;;  %v575_v55 = vadd.f32 %v2230_v45, %v574_v53  ;;  %vm698_vm11 = vcmp.gt.f32.partialorder %v572_v49, 0.0 }
 0x1bd   :  { %vm701_vm2 = vcmp.gt.f32.partialorder %v583_v52, 0.0  ;;  %v733_v56 = vmul.f32 0.2, %v583_v52  ;;  %v764_v58 = vsel %vm700_vm0, %v580_v47, %v732_v51 }
 0x1be   :  { %v731_v57 = vmul.f32 0.2, %v575_v55  ;;  %vm699_vm12 = vcmp.gt.f32.partialorder %v575_v55, 0.0  ;;  %v762_v62 = vsel %vm698_vm11, %v572_v49, %v730_v54 }
 0x1bf   :  { %v765_v59 = vsel %vm701_vm2, %v583_v52, %v733_v56 }
 0x1c0   :  { %v795_v60 = vpack.c.bf16 %v765_v59, %v764_v58  ;;  %v1883_v61 = vpop.f32.mrb[36].mxu1  ;;  %v763_v63 = vsel %vm699_vm12, %v575_v55, %v731_v57 }
 0x1c1   :  { %v596_v0 = vadd.f32 %v1883_v61, %v2230_v45  ;;  %v587_v1 = vpop.f32.mrb[37].mxu1  ;;  %v794_v2 = vpack.c.bf16 %v763_v63, %v762_v62 }
 0x1c2   :  { %v588_v3 = vadd.f32 %v2230_v45, %v587_v1  ;;  %v1884_v4 = vpop.f32.mrb[38].mxu1 }
 0x1c3   :  { %v736_v5 = vmul.f32 0.2, %v596_v0  ;;  %v599_v6 = vadd.f32 %v1884_v4, %v2230_v45  ;;  %v590_v7 = vpop.f32.mrb[39].mxu1  ;;  %1911 = vmatprep.mubr.msk.bf16.mxu0 %vm484_vm7, %v794_v2  ;;  %vm704_vm13 = vcmp.gt.f32.partialorder %v596_v0, 0.0 }
 0x1c4   :  { %v734_v8 = vmul.f32 0.2, %v588_v3  ;;  %v591_v9 = vadd.f32 %v2230_v45, %v590_v7  ;;  %1912 = vmatmul.mubr.msk.bf16.vlgmr.msra.gmra.mrb[0].mxu0 %vm484_vm7, %v795_v60  ;;  %vm702_vm14 = vcmp.gt.f32.partialorder %v588_v3, 0.0 }
 0x1c5   :  { %vm705_vm15 = vcmp.gt.f32.partialorder %v599_v6, 0.0  ;;  %v737_v10 = vmul.f32 0.2, %v599_v6  ;;  %1944 = vmatpush3.bf16.msra.mxu0 %v1189_v44  ;;  %v768_v12 = vsel %vm704_vm13, %v596_v0, %v736_v5 }
 0x1c6   :  { %vm703_vm1 = vcmp.gt.f32.partialorder %v591_v9, 0.0  ;;  %v735_v11 = vmul.f32 0.2, %v591_v9  ;;  %v766_v14 = vsel %vm702_vm14, %v588_v3, %v734_v8 }
 0x1c7   :  { %v769_v13 = vsel %vm705_vm15, %v599_v6, %v737_v10 }
 0x1c8   :  { %v797_v15 = vpack.c.bf16 %v769_v13, %v768_v12  ;;  %v767_v16 = vsel %vm703_vm1, %v591_v9, %v735_v11  ;;  %v1887_v17 = vpop.f32.mrb[40].mxu1 }
 0x1c9   :  { %v796_v18 = vpack.c.bf16 %v767_v16, %v766_v14  ;;  %v612_v19 = vadd.f32 %v1887_v17, %v2230_v45  ;;  %v603_v21 = vpop.f32.mrb[41].mxu1 }
 0x1ca   :  { %v604_v22 = vadd.f32 %v2230_v45, %v603_v21  ;;  %v1888_v23 = vpop.f32.mrb[42].mxu1 }
 0x1cb   :  { %v740_v24 = vmul.f32 0.2, %v612_v19  ;;  %v615_v25 = vadd.f32 %v1888_v23, %v2230_v45  ;;  %v606_v26 = vpop.f32.mrb[43].mxu1  ;;  %1915 = vmatprep.mubr.msk.bf16.mxu0 %vm484_vm7, %v796_v18  ;;  %vm708_vm3 = vcmp.gt.f32.partialorder %v612_v19, 0.0 }
 0x1cc   :  { %v738_v27 = vmul.f32 0.2, %v604_v22  ;;  %v607_v28 = vadd.f32 %v2230_v45, %v606_v26  ;;  %1916 = vmatmul.mubr.msk.bf16.gmra.mrb[4].mxu0 %vm484_vm7, %v797_v15  ;;  %vm706_vm4 = vcmp.gt.f32.partialorder %v604_v22, 0.0 }
 0x1cd   :  { %vm709_vm5 = vcmp.gt.f32.partialorder %v615_v25, 0.0  ;;  %v741_v29 = vmul.f32 0.2, %v615_v25  ;;  %v772_v31 = vsel %vm708_vm3, %v612_v19, %v740_v24 }
 0x1ce   :  { %vm707_vm6 = vcmp.gt.f32.partialorder %v607_v28, 0.0  ;;  %v739_v30 = vmul.f32 0.2, %v607_v28  ;;  %v770_v33 = vsel %vm706_vm4, %v604_v22, %v738_v27 }
 0x1cf   :  { %v773_v32 = vsel %vm709_vm5, %v615_v25, %v741_v29 }
 0x1d0   :  { %v799_v34 = vpack.c.bf16 %v773_v32, %v772_v31  ;;  %v771_v35 = vsel %vm707_vm6, %v607_v28, %v739_v30  ;;  %v1891_v36 = vpop.f32.mrb[44].mxu1 }
 0x1d1   :  { %v798_v37 = vpack.c.bf16 %v771_v35, %v770_v33  ;;  %v628_v38 = vadd.f32 %v1891_v36, %v2230_v45  ;;  %v619_v20 = vpop.f32.mrb[45].mxu1 }
 0x1d2   :  { %v620_v39 = vadd.f32 %v2230_v45, %v619_v20  ;;  %v1892_v40 = vpop.f32.mrb[46].mxu1 }
 0x1d3   :  { %v744_v41 = vmul.f32 0.2, %v628_v38  ;;  %v631_v42 = vadd.f32 %v1892_v40, %v2230_v45  ;;  %v622_v43 = vpop.f32.mrb[47].mxu1  ;;  %1919 = vmatprep.mubr.msk.bf16.mxu0 %vm484_vm7, %v798_v37  ;;  %vm712_vm8 = vcmp.gt.f32.partialorder %v628_v38, 0.0 }
 0x1d4   :  { %v742_v44 = vmul.f32 0.2, %v620_v39  ;;  %v623_v46 = vadd.f32 %v2230_v45, %v622_v43  ;;  %1920 = vmatmul.mubr.msk.bf16.gmra.mrb[8].mxu0 %vm484_vm7, %v799_v34  ;;  %vm710_vm9 = vcmp.gt.f32.partialorder %v620_v39, 0.0 }
 0x1d5   :  { %vm713_vm10 = vcmp.gt.f32.partialorder %v631_v42, 0.0  ;;  %v745_v47 = vmul.f32 0.2, %v631_v42  ;;  %v776_v49 = vsel %vm712_vm8, %v628_v38, %v744_v41 }
 0x1d6   :  { %vm711_vm0 = vcmp.gt.f32.partialorder %v623_v46, 0.0  ;;  %v743_v48 = vmul.f32 0.2, %v623_v46  ;;  %v774_v51 = vsel %vm710_vm9, %v620_v39, %v742_v44 }
 0x1d7   :  { %v777_v50 = vsel %vm713_vm10, %v631_v42, %v745_v47 }
 0x1d8   :  { %v801_v52 = vpack.c.bf16 %v777_v50, %v776_v49  ;;  %v775_v53 = vsel %vm711_vm0, %v623_v46, %v743_v48  ;;  %v1895_v54 = vpop.f32.mrb[48].mxu1 }
 0x1d9   :  { %v800_v55 = vpack.c.bf16 %v775_v53, %v774_v51  ;;  %v644_v56 = vadd.f32 %v1895_v54, %v2230_v45  ;;  %v635_v57 = vpop.f32.mrb[49].mxu1 }
 0x1da   :  { %v636_v58 = vadd.f32 %v2230_v45, %v635_v57  ;;  %v1896_v59 = vpop.f32.mrb[50].mxu1 }
 0x1db   :  { %v748_v60 = vmul.f32 0.2, %v644_v56  ;;  %v647_v61 = vadd.f32 %v1896_v59, %v2230_v45  ;;  %v638_v62 = vpop.f32.mrb[51].mxu1  ;;  %1923 = vmatprep.mubr.msk.bf16.mxu0 %vm484_vm7, %v800_v55  ;;  %vm716_vm2 = vcmp.gt.f32.partialorder %v644_v56, 0.0 }
 0x1dc   :  { %v746_v63 = vmul.f32 0.2, %v636_v58  ;;  %v639_v0 = vadd.f32 %v2230_v45, %v638_v62  ;;  %1924 = vmatmul.mubr.msk.bf16.gmra.mrb[12].mxu0 %vm484_vm7, %v801_v52  ;;  %vm714_vm11 = vcmp.gt.f32.partialorder %v636_v58, 0.0 }
 0x1dd   :  { %vm717_vm12 = vcmp.gt.f32.partialorder %v647_v61, 0.0  ;;  %v749_v1 = vmul.f32 0.2, %v647_v61  ;;  %v780_v3 = vsel %vm716_vm2, %v644_v56, %v748_v60 }
 0x1de   :  { %vm715_vm13 = vcmp.gt.f32.partialorder %v639_v0, 0.0  ;;  %v747_v2 = vmul.f32 0.2, %v639_v0  ;;  %v778_v5 = vsel %vm714_vm11, %v636_v58, %v746_v63  ;;  %vm1136_vm11 = vcmask 23552  }
 0x1df   :  { %v781_v4 = vsel %vm717_vm12, %v647_v61, %v749_v1  ;;  %v2031_v1 = vld [vmem:[%s2398_s0 + $0x10] sm:$0xff]  }
 0x1e0   :  { %v803_v6 = vpack.c.bf16 %v781_v4, %v780_v3  ;;  %v779_v7 = vsel %vm715_vm13, %v639_v0, %v747_v2  ;;  %v1899_v8 = vpop.f32.mrb[52].mxu1  ;;  %v2029_v0 = vld [vmem:[%s2398_s0] sm:$0xff]   ;;  %v2032_v2 = vld [vmem:[%s2398_s0 + $0x18] sm:$0xff]   ;;  %v2034_v4 = vld [vmem:[%s2398_s0 + $0x28] sm:$0xff]  }
 0x1e1   :  { %v802_v9 = vpack.c.bf16 %v779_v7, %v778_v5  ;;  %v660_v10 = vadd.f32 %v1899_v8, %v2230_v45  ;;  %v651_v11 = vpop.f32.mrb[53].mxu1  ;;  %v2033_v3 = vld [vmem:[%s2398_s0 + $0x20] sm:$0xff]   ;;  %v2035_v5 = vld [vmem:[%s2398_s0 + $0x30] sm:$0xff]   ;;  %v2038_v8 = vld [vmem:[%s2398_s0 + $0x48] sm:$0xff]  }
 0x1e2   :  { %v652_v12 = vadd.f32 %v2230_v45, %v651_v11  ;;  %v1900_v13 = vpop.f32.mrb[54].mxu1  ;;  %v2037_v7 = vld [vmem:[%s2398_s0 + $0x40] sm:$0xff]  }
 0x1e3   :  { %v752_v14 = vmul.f32 0.2, %v660_v10  ;;  %v663_v15 = vadd.f32 %v1900_v13, %v2230_v45  ;;  %v654_v16 = vpop.f32.mrb[55].mxu1  ;;  %1927 = vmatprep.mubr.msk.bf16.mxu0 %vm484_vm7, %v802_v9  ;;  %vm720_vm14 = vcmp.gt.f32.partialorder %v660_v10, 0.0  ;;  %v2039_v9 = vld [vmem:[%s2398_s0 + $0x50] sm:$0xff]   ;;  %v2041_v11 = vld [vmem:[%s2398_s0 + $0x60] sm:$0xff]  }
 0x1e4   :  { %v750_v17 = vmul.f32 0.2, %v652_v12  ;;  %v655_v18 = vadd.f32 %v2230_v45, %v654_v16  ;;  %1928 = vmatmul.mubr.msk.bf16.gmra.mrb[16].mxu0 %vm484_vm7, %v803_v6  ;;  %vm718_vm15 = vcmp.gt.f32.partialorder %v652_v12, 0.0  ;;  %v2036_v6 = vld [vmem:[%s2398_s0 + $0x38] sm:$0xff]   ;;  %v2043_v13 = vld [vmem:[%s2398_s0 + $0x70] sm:$0xff]  }
 0x1e5   :  { %vm721_vm1 = vcmp.gt.f32.partialorder %v663_v15, 0.0  ;;  %v753_v19 = vmul.f32 0.2, %v663_v15  ;;  %v784_v22 = vsel %vm720_vm14, %v660_v10, %v752_v14  ;;  %v2040_v10 = vld [vmem:[%s2398_s0 + $0x58] sm:$0xff]  }
 0x1e6   :  { %vm719_vm3 = vcmp.gt.f32.partialorder %v655_v18, 0.0  ;;  %v751_v21 = vmul.f32 0.2, %v655_v18  ;;  %v782_v24 = vsel %vm718_vm15, %v652_v12, %v750_v17  ;;  %v2042_v12 = vld [vmem:[%s2398_s0 + $0x68] sm:$0xff]   ;;  %v2044_v14 = vld [vmem:[%s2398_s0 + $0x78] sm:$0xff]  }
 0x1e7   :  { %v785_v23 = vsel %vm721_vm1, %v663_v15, %v753_v19 }
 0x1e8   :  { %v805_v25 = vpack.c.bf16 %v785_v23, %v784_v22  ;;  %v783_v26 = vsel %vm719_vm3, %v655_v18, %v751_v21  ;;  %v1903_v27 = vpop.f32.mrb[56].mxu1 }
 0x1e9   :  { %v804_v28 = vpack.c.bf16 %v783_v26, %v782_v24  ;;  %v676_v29 = vadd.f32 %v1903_v27, %v2230_v45  ;;  %v667_v30 = vpop.f32.mrb[57].mxu1 }
 0x1ea   :  { %v668_v31 = vadd.f32 %v2230_v45, %v667_v30  ;;  %v1904_v32 = vpop.f32.mrb[58].mxu1 }
 0x1eb   :  { %v756_v33 = vmul.f32 0.2, %v676_v29  ;;  %v679_v34 = vadd.f32 %v1904_v32, %v2230_v45  ;;  %v670_v35 = vpop.f32.mrb[59].mxu1  ;;  %1931 = vmatprep.mubr.msk.bf16.mxu0 %vm484_vm7, %v804_v28  ;;  %vm724_vm4 = vcmp.gt.f32.partialorder %v676_v29, 0.0 }
 0x1ec   :  { %v754_v36 = vmul.f32 0.2, %v668_v31  ;;  %v671_v37 = vadd.f32 %v2230_v45, %v670_v35  ;;  %1932 = vmatmul.mubr.msk.bf16.gmra.mrb[20].mxu0 %vm484_vm7, %v805_v25  ;;  %vm722_vm5 = vcmp.gt.f32.partialorder %v668_v31, 0.0 }
 0x1ed   :  { %vm725_vm6 = vcmp.gt.f32.partialorder %v679_v34, 0.0  ;;  %v757_v38 = vmul.f32 0.2, %v679_v34  ;;  %v788_v39 = vsel %vm724_vm4, %v676_v29, %v756_v33 }
 0x1ee   :  { %vm723_vm8 = vcmp.gt.f32.partialorder %v671_v37, 0.0  ;;  %v755_v20 = vmul.f32 0.2, %v671_v37  ;;  %v786_v41 = vsel %vm722_vm5, %v668_v31, %v754_v36 }
 0x1ef   :  { %v789_v40 = vsel %vm725_vm6, %v679_v34, %v757_v38 }
 0x1f0   :  { %v807_v42 = vpack.c.bf16 %v789_v40, %v788_v39  ;;  %v787_v43 = vsel %vm723_vm8, %v671_v37, %v755_v20  ;;  %v1907_v44 = vpop.f32.mrb[60].mxu1 }
 0x1f1   :  { %v806_v46 = vpack.c.bf16 %v787_v43, %v786_v41  ;;  %v692_v47 = vadd.f32 %v1907_v44, %v2230_v45  ;;  %v683_v48 = vpop.f32.mrb[61].mxu1 }
 0x1f2   :  { %v684_v49 = vadd.f32 %v2230_v45, %v683_v48  ;;  %v1908_v50 = vpop.f32.mrb[62].mxu1 }
 0x1f3   :  { %v760_v51 = vmul.f32 0.2, %v692_v47  ;;  %v695_v52 = vadd.f32 %v1908_v50, %v2230_v45  ;;  %v686_v53 = vpop.f32.mrb[63].mxu1  ;;  %1935 = vmatprep.mubr.msk.bf16.mxu0 %vm484_vm7, %v806_v46  ;;  %vm728_vm9 = vcmp.gt.f32.partialorder %v692_v47, 0.0 }
 0x1f4   :  { %v758_v54 = vmul.f32 0.2, %v684_v49  ;;  %v687_v55 = vadd.f32 %v2230_v45, %v686_v53  ;;  %1936 = vmatmul.mubr.msk.bf16.gmra.mrb[24].mxu0 %vm484_vm7, %v807_v42  ;;  %vm726_vm10 = vcmp.gt.f32.partialorder %v684_v49, 0.0  ;;  %v2030_v45 = vld [vmem:[%s2398_s0 + $0x8] sm:$0xff]  }
 0x1f5   :  { %vm729_vm0 = vcmp.gt.f32.partialorder %v695_v52, 0.0  ;;  %v761_v56 = vmul.f32 0.2, %v695_v52  ;;  %v792_v58 = vsel %vm728_vm9, %v692_v47, %v760_v51 }
 0x1f6   :  { %vm727_vm2 = vcmp.gt.f32.partialorder %v687_v55, 0.0  ;;  %v759_v57 = vmul.f32 0.2, %v687_v55  ;;  %v790_v60 = vsel %vm726_vm10, %v684_v49, %v758_v54 }
 0x1f7   :  { %v793_v59 = vsel %vm729_vm0, %v695_v52, %v761_v56 }
 0x1f8   :  { %v809_v61 = vpack.c.bf16 %v793_v59, %v792_v58  ;;  %v791_v62 = vsel %vm727_vm2, %v687_v55, %v759_v57 }
 0x1f9   :  { %v808_v63 = vpack.c.bf16 %v791_v62, %v790_v60 }
 0x1fb   :  { %1939 = vmatprep.mubr.msk.bf16.mxu0 %vm484_vm7, %v808_v63 }
 0x1fc   :  { %1940 = vmatmul.mubr.msk.bf16.gmra.mrb[28].mxu0 %vm484_vm7, %v809_v61 }
 0x1fd   :  { %1945 = vmatprep.mubr.msk.bf16.mxu0 %vm1136_vm11, %v2029_v0 }
 0x204   :  { %1946 = vmatmul.mubr.msk.bf16.vlgmr.msra.gmra.mrb[0].mxu0 %vm1136_vm11, %v2030_v45 }
 0x205   :  { %1949 = vmatprep.mubr.msk.bf16.mxu0 %vm1136_vm11, %v2031_v1 }
 0x20c   :  { %1950 = vmatmul.mubr.msk.bf16.gmra.mrb[4].mxu0 %vm1136_vm11, %v2032_v2 }
 0x20d   :  { %1953 = vmatprep.mubr.msk.bf16.mxu0 %vm1136_vm11, %v2033_v3 }
 0x214   :  { %1954 = vmatmul.mubr.msk.bf16.gmra.mrb[8].mxu0 %vm1136_vm11, %v2034_v4 }
 0x215   :  { %1957 = vmatprep.mubr.msk.bf16.mxu0 %vm1136_vm11, %v2035_v5 }
 0x21c   :  { %1958 = vmatmul.mubr.msk.bf16.gmra.mrb[12].mxu0 %vm1136_vm11, %v2036_v6 }
 0x21d   :  { %1961 = vmatprep.mubr.msk.bf16.mxu0 %vm1136_vm11, %v2037_v7 }
 0x224   :  { %1962 = vmatmul.mubr.msk.bf16.gmra.mrb[16].mxu0 %vm1136_vm11, %v2038_v8 }
 0x225   :  { %1965 = vmatprep.mubr.msk.bf16.mxu0 %vm1136_vm11, %v2039_v9 }
 0x22c   :  { %1966 = vmatmul.mubr.msk.bf16.gmra.mrb[20].mxu0 %vm1136_vm11, %v2040_v10 }
 0x22d   :  { %1969 = vmatprep.mubr.msk.bf16.mxu0 %vm1136_vm11, %v2041_v11 }
 0x234   :  { %1970 = vmatmul.mubr.msk.bf16.gmra.mrb[24].mxu0 %vm1136_vm11, %v2042_v12 }
 0x235   :  { %1973 = vmatprep.mubr.msk.bf16.mxu0 %vm1136_vm11, %v2043_v13 }
 0x23c   :  { %1974 = vmatmul.mubr.msk.bf16.gmra.mrb[28].mxu0 %vm1136_vm11, %v2044_v14 }
 0x2d7   :  { %v1947_v15 = vpop.f32.mrb[0].mxu0 }
 0x2d8   :  { %v1225_v16 = vpop.f32.mrb[1].mxu0 }
 0x2d9   :  { %v1948_v17 = vpop.f32.mrb[2].mxu0 }
 0x2da   :  { %v1686_v18 = vpack.c.bf16 %v1948_v17, %v1947_v15  ;;  %v1228_v19 = vpop.f32.mrb[3].mxu0 }
 0x2db   :  { %v1681_v21 = vpack.c.bf16 %v1228_v19, %v1225_v16 }
 0x2dc   :  { %1758 = vst [vmem:[%s2400_s8 + $0x8] sm:$0xff] %v1686_v18  }
 0x2dd   :  { %1682 = vst [vmem:[%s2400_s8] sm:$0xff] %v1681_v21  }
 0x2df   :  { %v1951_v22 = vpop.f32.mrb[4].mxu0 }
 0x2e0   :  { %v1241_v23 = vpop.f32.mrb[5].mxu0 }
 0x2e1   :  { %v1952_v24 = vpop.f32.mrb[6].mxu0 }
 0x2e2   :  { %v1696_v25 = vpack.c.bf16 %v1952_v24, %v1951_v22  ;;  %v1244_v26 = vpop.f32.mrb[7].mxu0 }
 0x2e3   :  { %v1691_v27 = vpack.c.bf16 %v1244_v26, %v1241_v23 }
 0x2e4   :  { %1760 = vst [vmem:[%s2400_s8 + $0x18] sm:$0xff] %v1696_v25  }
 0x2e5   :  { %1759 = vst [vmem:[%s2400_s8 + $0x10] sm:$0xff] %v1691_v27  }
 0x2e7   :  { %v1955_v28 = vpop.f32.mrb[8].mxu0 }
 0x2e8   :  { %v1257_v29 = vpop.f32.mrb[9].mxu0 }
 0x2e9   :  { %v1956_v30 = vpop.f32.mrb[10].mxu0 }
 0x2ea   :  { %v1706_v31 = vpack.c.bf16 %v1956_v30, %v1955_v28  ;;  %v1260_v32 = vpop.f32.mrb[11].mxu0 }
 0x2eb   :  { %v1701_v33 = vpack.c.bf16 %v1260_v32, %v1257_v29 }
 0x2ec   :  { %1762 = vst [vmem:[%s2400_s8 + $0x28] sm:$0xff] %v1706_v31  }
 0x2ed   :  { %1761 = vst [vmem:[%s2400_s8 + $0x20] sm:$0xff] %v1701_v33  }
 0x2ef   :  { %v1959_v34 = vpop.f32.mrb[12].mxu0 }
 0x2f0   :  { %v1273_v35 = vpop.f32.mrb[13].mxu0 }
 0x2f1   :  { %v1960_v36 = vpop.f32.mrb[14].mxu0 }
 0x2f2   :  { %v1716_v37 = vpack.c.bf16 %v1960_v36, %v1959_v34  ;;  %v1276_v38 = vpop.f32.mrb[15].mxu0 }
 0x2f3   :  { %v1711_v20 = vpack.c.bf16 %v1276_v38, %v1273_v35 }
 0x2f4   :  { %1764 = vst [vmem:[%s2400_s8 + $0x38] sm:$0xff] %v1716_v37  }
 0x2f5   :  { %1763 = vst [vmem:[%s2400_s8 + $0x30] sm:$0xff] %v1711_v20  }
 0x2f7   :  { %v1963_v39 = vpop.f32.mrb[16].mxu0 }
 0x2f8   :  { %v1289_v40 = vpop.f32.mrb[17].mxu0 }
 0x2f9   :  { %v1964_v41 = vpop.f32.mrb[18].mxu0 }
 0x2fa   :  { %v1726_v42 = vpack.c.bf16 %v1964_v41, %v1963_v39  ;;  %v1292_v43 = vpop.f32.mrb[19].mxu0 }
 0x2fb   :  { %v1721_v44 = vpack.c.bf16 %v1292_v43, %v1289_v40 }
 0x2fc   :  { %1766 = vst [vmem:[%s2400_s8 + $0x48] sm:$0xff] %v1726_v42  }
 0x2fd   :  { %1765 = vst [vmem:[%s2400_s8 + $0x40] sm:$0xff] %v1721_v44  }
 0x2ff   :  { %v1967_v46 = vpop.f32.mrb[20].mxu0 }
 0x300   :  { %v1305_v47 = vpop.f32.mrb[21].mxu0 }
 0x301   :  { %v1968_v48 = vpop.f32.mrb[22].mxu0 }
 0x302   :  { %v1736_v49 = vpack.c.bf16 %v1968_v48, %v1967_v46  ;;  %v1308_v50 = vpop.f32.mrb[23].mxu0 }
 0x303   :  { %v1731_v51 = vpack.c.bf16 %v1308_v50, %v1305_v47 }
 0x304   :  { %1768 = vst [vmem:[%s2400_s8 + $0x58] sm:$0xff] %v1736_v49  }
 0x305   :  { %1767 = vst [vmem:[%s2400_s8 + $0x50] sm:$0xff] %v1731_v51  }
 0x307   :  { %v1971_v52 = vpop.f32.mrb[24].mxu0 }
 0x308   :  { %v1321_v53 = vpop.f32.mrb[25].mxu0 }
 0x309   :  { %v1972_v54 = vpop.f32.mrb[26].mxu0 }
 0x30a   :  { %v1746_v55 = vpack.c.bf16 %v1972_v54, %v1971_v52  ;;  %v1324_v56 = vpop.f32.mrb[27].mxu0 }
 0x30b   :  { %v1741_v57 = vpack.c.bf16 %v1324_v56, %v1321_v53 }
 0x30c   :  { %1770 = vst [vmem:[%s2400_s8 + $0x68] sm:$0xff] %v1746_v55  }
 0x30d   :  { %1769 = vst [vmem:[%s2400_s8 + $0x60] sm:$0xff] %v1741_v57  }
 0x30f   :  { %v1975_v58 = vpop.f32.mrb[28].mxu0 }
 0x310   :  { %v1337_v59 = vpop.f32.mrb[29].mxu0 }
 0x311   :  { %v1976_v60 = vpop.f32.mrb[30].mxu0 }
 0x312   :  { %v1756_v61 = vpack.c.bf16 %v1976_v60, %v1975_v58  ;;  %v1340_v62 = vpop.f32.mrb[31].mxu0 }
 0x313   :  { %v1751_v63 = vpack.c.bf16 %v1340_v62, %v1337_v59 }
 0x314   :  { %1772 = vst [vmem:[%s2400_s8 + $0x78] sm:$0xff] %v1756_v61  }
 0x315   :  { %1771 = vst [vmem:[%s2400_s8 + $0x70] sm:$0xff] %v1751_v63  }

// kernel: pc_trs_forward.9
= control target key start
LH: loop header
LB: loop body
LE: loop exit
PB: predicated region body
PF: predicated region fallthrough
CT: control target
= control target key end

     0   :  { %s3793_s15 = smov 0   ;;  %s3795_s16 = smov 0   ;;  %s5354_s0 = inlined_call_operand.vmem [shape: bf16[2,128,128], index: 0, kind: input, shape index: {}]   ;;  %s5355_s1 = inlined_call_operand.vmem [shape: bf16[2,128,256], index: 1, kind: input, shape index: {}]   ;;  %s5356_s2 = inlined_call_operand.vmem [shape: s32[2,128,1], index: 2, kind: input, shape index: {}]   ;;  %s5357_s3 = inlined_call_operand.vmem [shape: s32[2,1,128], index: 3, kind: input, shape index: {}]   ;;  %s5358_s4 = inlined_call_operand.vmem [shape: bf16[2,128,128], index: 4, kind: output, shape index: {}]  }
   0x1   :  { %s3797_s17 = smov 0  }
   0x2 LB: > { %s26_s18 = sadd.s32 1, %s3758_s16  ;;  %p2831_p0 = scmp.ge.s32.totalorder %s3762_s17, 1  ;;  %s3762_s17 = sphi %s3797_s17, %s14_s17   ;;  %s3758_s16 = sphi %s3795_s16, %s5530_s16   ;;  %s3754_s15 = sphi %s3793_s15, %s5529_s15  }
   0x3   : > { %p28_p1 = scmp.ge.s32.totalorder %s26_s18, 2  ;;  %p218_p2 = scmp.lt.s32.totalorder %s3762_s17, 3 }
   0x5   : > { %s5532_s18 = smov (%p28_p1, %s26_s18), 0  ;;  %p219_p3 = pnand %p2831_p0, %p218_p2 }
   0x7   : > { %222 = sbr.rel (%p219_p3) target bundleno = 2393 (0x959), region = 36 }
   0xe   : > { %p270_p4 = scmp.lt.s32.totalorder %s3754_s15, 1  ;;  %v3764_v0 = vmov 0   ;;  %vm505_vm0 = vcmask 261120   ;;  %s3765_s30 = smov 96  }
   0xf   : > { %3427 = vset.pattern.permute.xlu1 %v3764_v0  ;;  %3426 = vset.pattern.permute.xlu0 %v3764_v0  ;;  %s3766_s8 = smov 64   ;;  %s3767_s9 = smov 32  }
  0x10   : > { %s5534_s15 = smov (!%p270_p4, %s3754_s15), 1 }
  0x11   : > { %s2916_s19 = sshll.u32 %s5534_s15, 7  ;;  %s2915_s23 = sshll.u32 %s5534_s15, 6 }
  0x12   : > { %s3817_s22 = scalar_lea.vmem %s5355_s1, %s2916_s19  ;;  %s3837_s26 = scalar_lea.vmem %s5354_s0, %s2915_s23 }
  0x13   : > { %v3820_v1 = vld [vmem:[%s3817_s22] ss:$8 sps:$4 sm:$0xff]   ;;  %v3823_v2 = vld [vmem:[%s3817_s22 + $0x10] ss:$8 sps:$4 sm:$0xff]   ;;  %s3854_s29 = scalar_lea.vmem %s5356_s2, %s2916_s19  ;;  %v3955_v43 = vld [vmem:[%s3817_s22 + $0x4] ss:$8 sps:$4 sm:$0xff]   ;;  %s296_s7 = scalar_lea.vmem %s5357_s3, %s5534_s15 }
  0x14   : > { %3366 = vmatprep.subr.msk.bf16.mxu0 %vm505_vm0, %v3820_v1  ;;  %v531_v3 = vsel %vm505_vm0, %v3820_v1, 0  ;;  %v3840_v4 = vld [vmem:[%s3817_s22 + $0x20] ss:$8 sps:$4 sm:$0xff]   ;;  %v534_v5 = vsel %vm505_vm0, %v3823_v2, 0  ;;  %v3859_v8 = vld [vmem:[%s3817_s22 + $0x30] ss:$8 sps:$4 sm:$0xff]   ;;  %3142 = vmatprep.subr.bf16.mxu1 %v3955_v43  ;;  %s5325_s12 = scalar_lea.vmem %s5358_s4, %s2915_s23 }
  0x15   : > { %3111 = vmatpush3.bf16.xpose.msra.mxu0 %v531_v3  ;;  %v3845_v6 = vld [vmem:[%s3837_s26] sm:$0xff]   ;;  %v537_v7 = vsel %vm505_vm0, %v3840_v4, 0  ;;  %v310_v9 = vld [vmem:[%s3854_s29 + $0x10] sm:$0xff]  ;;  %v311_v11 = vld [vmem:[%s3854_s29 + $0x18] sm:$0xff]  ;;  %v540_v15 = vsel %vm505_vm0, %v3859_v8, 0  ;;  %3143 = vmatpush3.bf16.msra.mxu1 %v3955_v43 }
  0x16   : > { %3367 = vmatprep.subr.msk.bf16.mxu0 %vm505_vm0, %v3823_v2  ;;  %5388 = vst [vmem:[#allocation3_spill] sm:$0xff] %v3845_v6  ;;  %3126 = vmatprep.mubr.msk.bf16.mxu0 %vm505_vm0, %v3845_v6  ;;  %v308_v10 = vld [vmem:[%s3854_s29] sm:$0xff]  ;;  %v309_v12 = vld [vmem:[%s3854_s29 + $0x8] sm:$0xff]  ;;  %v315_v17 = vld [vmem:[%s3854_s29 + $0x38] sm:$0xff] }
  0x17   : > { %332 = vperm.xlu1 %3427, %v310_v9   ;;  %326 = vperm.xlu0 %3426, %v308_v10   ;;  %v313_v13 = vld [vmem:[%s3854_s29 + $0x28] sm:$0xff]  ;;  %v312_v14 = vld [vmem:[%s3854_s29 + $0x20] sm:$0xff]  ;;  %v314_v18 = vld [vmem:[%s3854_s29 + $0x30] sm:$0xff] }
  0x18   : > { %v3872_v16 = vld [vmem:[%s3817_s22 + $0x40] ss:$8 sps:$4 sm:$0xff]   ;;  %v3883_v22 = vld [vmem:[%s3817_s22 + $0x50] ss:$8 sps:$4 sm:$0xff]   ;;  %v3964_v46 = vld [vmem:[%s3817_s22 + $0x14] ss:$8 sps:$4 sm:$0xff]  }
  0x19   : > { %v317_v19 = vld [vmem:[%s3854_s29 + $0x48] sm:$0xff]  ;;  %v316_v20 = vld [vmem:[%s3854_s29 + $0x40] sm:$0xff]  ;;  %v543_v21 = vsel %vm505_vm0, %v3872_v16, 0  ;;  %v319_v23 = vld [vmem:[%s3854_s29 + $0x58] sm:$0xff]  ;;  %v546_v27 = vsel %vm505_vm0, %v3883_v22, 0  ;;  %3144 = vmatprep.subr.bf16.mxu1 %v3964_v46 }
  0x1a   : > { %v318_v24 = vld [vmem:[%s3854_s29 + $0x50] sm:$0xff]  ;;  %v321_v25 = vld [vmem:[%s3854_s29 + $0x68] sm:$0xff]  ;;  %v320_v26 = vld [vmem:[%s3854_s29 + $0x60] sm:$0xff]  ;;  %3145 = vmatpush3.bf16.msra.mxu1 %v3964_v46 }
  0x1b   : > { %335 = vperm.xlu1 %3427, %v311_v11   ;;  %329 = vperm.xlu0 %3426, %v309_v12   ;;  %v3894_v28 = vld [vmem:[%s3817_s22 + $0x60] ss:$8 sps:$4 sm:$0xff]   ;;  %v323_v29 = vld [vmem:[%s3854_s29 + $0x78] sm:$0xff]  ;;  %v322_v30 = vld [vmem:[%s3854_s29 + $0x70] sm:$0xff] }
  0x1c   : > { %5389 = vst [vmem:[#allocation4_spill] sm:$0xff] %v3894_v28  ;;  %v549_v31 = vsel %vm505_vm0, %v3894_v28, 0  ;;  %v3903_v32 = vld [vmem:[%s3817_s22 + $0x70] ss:$8 sps:$4 sm:$0xff]   ;;  %v3916_v34 = vld [vmem:[%s3837_s26 + $0x8] sm:$0xff]   ;;  %v3929_v37 = vld [vmem:[%s3837_s26 + $0x20] sm:$0xff]  }
  0x1d   : > { %3113 = vmatpush3.bf16.xpose.msra.mxu0 %v534_v5  ;;  %v552_v33 = vsel %vm505_vm0, %v3903_v32, 0  ;;  %5390 = vst [vmem:[#allocation5_spill] sm:$0xff] %v3916_v34  ;;  %v3919_v35 = vld [vmem:[%s3837_s26 + $0x10] sm:$0xff]   ;;  %v3926_v36 = vld [vmem:[%s3837_s26 + $0x18] sm:$0xff]   ;;  %v3936_v38 = vld [vmem:[%s3837_s26 + $0x28] sm:$0xff]  }
  0x1e   : > { %3368 = vmatprep.subr.msk.bf16.mxu0 %vm505_vm0, %v3840_v4  ;;  %5391 = vst [vmem:[#allocation6_spill] sm:$0xff] %v3919_v35  ;;  %5392 = vst [vmem:[#allocation7_spill] sm:$0xff] %v3926_v36  ;;  %v3939_v39 = vld [vmem:[%s3837_s26 + $0x30] sm:$0xff]   ;;  %v3946_v40 = vld [vmem:[%s3837_s26 + $0x38] sm:$0xff]  }
  0x1f   : > { %341 = vperm.xlu1 %3427, %v313_v13   ;;  %338 = vperm.xlu0 %3426, %v312_v14   ;;  %5393 = vst [vmem:[#allocation8_spill] sm:$0xff] %v3936_v38  ;;  %5394 = vst [vmem:[#allocation9_spill] sm:$0xff] %v3946_v40  ;;  %v3967_v47 = vld [vmem:[%s3817_s22 + $0x24] ss:$8 sps:$4 sm:$0xff]   ;;  %v3973_v48 = vld [vmem:[%s3817_s22 + $0x34] ss:$8 sps:$4 sm:$0xff]  }
  0x20   : > { %3146 = vmatprep.subr.bf16.mxu1 %v3967_v47  ;;  %v3980_v50 = vld [vmem:[%s3817_s22 + $0x44] ss:$8 sps:$4 sm:$0xff]   ;;  %v3990_v53 = vld [vmem:[%s3817_s22 + $0x54] ss:$8 sps:$4 sm:$0xff]   ;;  %v4018_v60 = vld [vmem:[%s296_s7] ss:$0 sm:$0xff] }
  0x21   : > { %3147 = vmatpush3.bf16.msra.mxu1 %v3967_v47  ;;  %v3993_v54 = vld [vmem:[%s3817_s22 + $0x64] ss:$8 sps:$4 sm:$0xff]   ;;  %v3999_v55 = vld [vmem:[%s3817_s22 + $0x74] ss:$8 sps:$4 sm:$0xff]  }
  0x22   : > { %3148 = vmatprep.subr.bf16.mxu1 %v3973_v48  ;;  %5395 = vst [vmem:[#allocation10_spill] sm:$0xff] %v3993_v54 }
  0x23   : > { %347 = vperm.xlu1 %3427, %v315_v17   ;;  %344 = vperm.xlu0 %3426, %v314_v18  }
  0x25   : > { %3115 = vmatpush3.bf16.xpose.msra.mxu0 %v537_v7  ;;  %3149 = vmatpush3.bf16.msra.mxu1 %v3973_v48 }
  0x26   : > { %3369 = vmatprep.subr.msk.bf16.mxu0 %vm505_vm0, %v3859_v8  ;;  %3150 = vmatprep.subr.bf16.mxu1 %v3980_v50 }
  0x27   : > { %353 = vperm.xlu1 %3427, %v317_v19   ;;  %350 = vperm.xlu0 %3426, %v316_v20  }
  0x29   : > { %3151 = vmatpush3.bf16.msra.mxu1 %v3980_v50 }
  0x2a   : > { %3152 = vmatprep.subr.bf16.mxu1 %v3990_v53 }
  0x2b   : > { %359 = vperm.xlu1 %3427, %v319_v23   ;;  %356 = vperm.xlu0 %3426, %v318_v24  }
  0x2d   : > { %3117 = vmatpush3.bf16.xpose.msra.mxu0 %v540_v15  ;;  %3153 = vmatpush3.bf16.msra.mxu1 %v3990_v53 }
  0x2e   : > { %3370 = vmatprep.subr.msk.bf16.mxu0 %vm505_vm0, %v3872_v16  ;;  %3154 = vmatprep.subr.bf16.mxu1 %v3993_v54 }
  0x2f   : > { %365 = vperm.xlu1 %3427, %v321_v25   ;;  %362 = vperm.xlu0 %3426, %v320_v26  }
  0x31   : > { %3155 = vmatpush3.bf16.msra.mxu1 %v3993_v54 }
  0x32   : > { %3156 = vmatprep.subr.bf16.mxu1 %v3999_v55 }
  0x33   : > { %371 = vperm.xlu1 %3427, %v323_v29   ;;  %368 = vperm.xlu0 %3426, %v322_v30  }
  0x35   : > { %3119 = vmatpush3.bf16.xpose.msra.mxu0 %v543_v21  ;;  %3157 = vmatpush3.bf16.msra.mxu1 %v3999_v55 }
  0x36   : > { %3371 = vmatprep.subr.msk.bf16.mxu0 %vm505_vm0, %v3883_v22 }
  0x37   : > { %980 = vrot.lane.b32.xlu1 %v3820_v1, %s3765_s30  ;;  %982 = vrot.lane.b32.xlu0 %v3823_v2, %s3765_s30 }
  0x3b   : > { %984 = vrot.lane.b32.xlu1 %v3840_v4, %s3765_s30 }
  0x3d   : > { %3121 = vmatpush3.bf16.xpose.msra.mxu0 %v546_v27 }
  0x3e   : > { %3372 = vmatprep.subr.msk.bf16.mxu0 %vm505_vm0, %v3894_v28 }
  0x45   : > { %3123 = vmatpush3.bf16.xpose.msra.mxu0 %v549_v31 }
  0x46   : > { %3373 = vmatprep.subr.msk.bf16.mxu0 %vm505_vm0, %v3903_v32 }
  0x4d   : > { %3125 = vmatpush3.bf16.xpose.msra.mxu0 %v552_v33 }
  0x54   : > { %3127 = vmatmul.mubr.msk.bf16.vlgmr.msra.gmra.mrb[0].mxu0 %vm505_vm0, %v3916_v34 }
  0x55   : > { %3130 = vmatprep.mubr.msk.bf16.mxu0 %vm505_vm0, %v3919_v35 }
  0x5c   : > { %3131 = vmatmul.mubr.msk.bf16.gmra.mrb[4].mxu0 %vm505_vm0, %v3926_v36 }
  0x5d   : > { %3134 = vmatprep.mubr.msk.bf16.mxu0 %vm505_vm0, %v3929_v37 }
  0x64   : > { %3135 = vmatmul.mubr.msk.bf16.gmra.mrb[8].mxu0 %vm505_vm0, %v3936_v38 }
  0x65   : > { %3138 = vmatprep.mubr.msk.bf16.mxu0 %vm505_vm0, %v3939_v39 }
  0x6c   : > { %3139 = vmatmul.mubr.msk.bf16.gmra.mrb[12].mxu0 %vm505_vm0, %v3946_v40 }
  0x96   : > { %v3950_v41 = vpop.permute.xlu1 %332  ;;  %v4010_v58 = vpop.permute.xlu0 %326 }
  0x97   : > { %vm379_vm1 = vcmp.eq.s32.totalorder %v3950_v41, %v4018_v60  ;;  %vm377_vm3 = vcmp.eq.s32.totalorder %v4010_v58, %v4018_v60 }
  0x9a   : > { %v3952_v42 = vpop.permute.xlu1 %335  ;;  %v4016_v59 = vpop.permute.xlu0 %329 }
  0x9b   : > { %vm378_vm2 = vcmp.eq.s32.totalorder %v4016_v59, %v4018_v60  ;;  %vm380_vm4 = vcmp.eq.s32.totalorder %v3952_v42, %v4018_v60 }
  0x9e   : > { %v3959_v44 = vpop.permute.xlu1 %341  ;;  %v4022_v61 = vpop.permute.xlu0 %338 }
  0x9f   : > { %vm381_vm6 = vcmp.eq.s32.totalorder %v4022_v61, %v4018_v60  ;;  %vm382_vm9 = vcmp.eq.s32.totalorder %v3959_v44, %v4018_v60 }
  0xa2   : > { %v3961_v45 = vpop.permute.xlu1 %347  ;;  %v4039_v9 = vpop.permute.xlu0 %344 }
  0xa3   : > { %vm383_vm5 = vcmp.eq.s32.totalorder %v4039_v9, %v4018_v60  ;;  %vm384_vm7 = vcmp.eq.s32.totalorder %v3961_v45, %v4018_v60 }
  0xa6   : > { %v3975_v49 = vpop.permute.xlu1 %353  ;;  %v4064_v17 = vpop.permute.xlu0 %350 }
  0xa7   : > { %vm385_vm8 = vcmp.eq.s32.totalorder %v4064_v17, %v4018_v60  ;;  %vm386_vm10 = vcmp.eq.s32.totalorder %v3975_v49, %v4018_v60  ;;  %v3739_v49 = vld [vmem:[%s3817_s22 + $0x74] ss:$8 sps:$4 sm:$0xff]  }
  0xaa   : > { %v3982_v51 = vpop.permute.xlu1 %359  ;;  %v4078_v21 = vpop.permute.xlu0 %356 }
  0xab   : > { %vm387_vm11 = vcmp.eq.s32.totalorder %v4078_v21, %v4018_v60  ;;  %vm5359_vm12 = vcmp.eq.s32.totalorder %v3982_v51, %v4018_v60  ;;  %v3738_v21 = vld [vmem:[%s3817_s22 + $0x64] ss:$8 sps:$4 sm:$0xff]  }
  0xae   : > { %v3987_v52 = vpop.permute.xlu1 %365  ;;  %v4107_v31 = vpop.permute.xlu0 %362 }
  0xaf   : > { %vm389_vm14 = vcmp.eq.s32.totalorder %v4107_v31, %v4018_v60 }
  0xb2   : > { %v4001_v56 = vpop.permute.xlu1 %371 }
  0xb3   : > { %vm392_vm15 = vcmp.eq.s32.totalorder %v4001_v56, %v4018_v60 }
  0xb6   : > { %v4005_v57 = vpop.permute.xlu1 %980 }
  0xb7   : > { %3374 = vmatprep.subr.msk.bf16.mxu1 %vm505_vm0, %v4005_v57 }
 0x127   : > { %v3128_v62 = vpop.f32.mrb[0].mxu0 }
 0x128   : > { %v588_v63 = vpop.f32.mrb[1].mxu0  ;;  %v4029_v0 = vsel %vm379_vm1, %v3128_v62, -1e+09 }
 0x129   : > { %671 = vmax.xlane.f32.xlu0 %v4029_v0  ;;  %v3129_v3 = vpop.f32.mrb[2].mxu0  ;;  %v4045_v10 = vsel %vm377_vm3, %v588_v63, -1e+09 }
 0x12a   : > { %v591_v5 = vpop.f32.mrb[3].mxu0  ;;  %v4055_v13 = vsel %vm380_vm4, %v3129_v3, -1e+09 }
 0x12b   : > { %v4037_v7 = vsel %vm378_vm2, %v591_v5, -1e+09 }
 0x12c   : > { %669 = vmax.xlane.f32.xlu1 %v4037_v7 }
 0x12d   : > { %667 = vmax.xlane.f32.xlu0 %v4045_v10 }
 0x12f   : > { %v3132_v11 = vpop.f32.mrb[4].mxu0 }
 0x130   : > { %v604_v12 = vpop.f32.mrb[5].mxu0  ;;  %v4060_v14 = vsel %vm383_vm5, %v3132_v11, -1e+09  ;;  %v4120_v11 = vpop.permute.xlu0 %368 }
 0x131   : > { %673 = vmax.xlane.f32.xlu0 %v4055_v13  ;;  %679 = vmax.xlane.f32.xlu1 %v4060_v14  ;;  %v3133_v15 = vpop.f32.mrb[6].mxu0  ;;  %v4071_v19 = vsel %vm381_vm6, %v604_v12, -1e+09  ;;  %vm5369_vm13 = vcmp.eq.s32.totalorder %v4120_v11, %v4018_v60 }
 0x132   : > { %v607_v18 = vpop.f32.mrb[7].mxu0  ;;  %v4083_v24 = vsel %vm384_vm7, %v3133_v15, -1e+09 }
 0x133   : > { %v4099_v29 = vsel %vm382_vm9, %v607_v18, -1e+09 }
 0x135   : > { %675 = vmax.xlane.f32.xlu0 %v4071_v19 }
 0x137   : > { %v3136_v20 = vpop.f32.mrb[8].mxu0 }
 0x138   : > { %v620_v23 = vpop.f32.mrb[9].mxu0  ;;  %v4115_v63 = vsel %vm387_vm11, %v3136_v20, -1e+09 }
 0x139   : > { %681 = vmax.xlane.f32.xlu0 %v4083_v24  ;;  %v3137_v25 = vpop.f32.mrb[10].mxu0  ;;  %v4089_v26 = vsel %vm385_vm8, %v620_v23, -1e+09 }
 0x13a   : > { %683 = vmax.xlane.f32.xlu1 %v4089_v26  ;;  %v623_v27 = vpop.f32.mrb[11].mxu0  ;;  %v4125_v12 = vsel %vm5359_vm12, %v3137_v25, -1e+09  ;;  %vm390_vm12 = vcmp.eq.s32.totalorder %v3987_v52, %v4018_v60  ;;  %v4190_v25 = vpop.permute.xlu0 %982 }
 0x13b   : > { %v4105_v30 = vsel %vm386_vm10, %v623_v27, -1e+09  ;;  %v4194_v27 = vpop.permute.xlu1 %984 }
 0x13d   : > { %677 = vmax.xlane.f32.xlu0 %v4099_v29 }
 0x13e   : > { %685 = vmax.xlane.f32.xlu1 %v4105_v30 }
 0x13f   : > { %v3140_v33 = vpop.f32.mrb[12].mxu0 }
 0x140   : > { %v636_v62 = vpop.f32.mrb[13].mxu0  ;;  %v4133_v15 = vsel %vm5369_vm13, %v3140_v33, -1e+09 }
 0x141   : > { %687 = vmax.xlane.f32.xlu0 %v4115_v63  ;;  %v3141_v3 = vpop.f32.mrb[14].mxu0  ;;  %v4141_v18 = vsel %vm389_vm14, %v636_v62, -1e+09 }
 0x142   : > { %v639_v5 = vpop.f32.mrb[15].mxu0  ;;  %v4155_v20 = vsel %vm392_vm15, %v3141_v3, -1e+09 }
 0x143   : > { %v4165_v23 = vsel %vm390_vm12, %v639_v5, -1e+09 }
 0x145   : > { %689 = vmax.xlane.f32.xlu0 %v4125_v12 }
 0x149   : > { %695 = vmax.xlane.f32.xlu0 %v4133_v15 }
 0x14d   : > { %691 = vmax.xlane.f32.xlu0 %v4141_v18 }
 0x14f   : > { %986 = vrot.lane.b32.xlu1 %v3859_v8, %s3765_s30 }
 0x163   : > { %988 = vrot.lane.b32.xlu0 %v3872_v16, %s3765_s30 }
 0x167   : > { %990 = vrot.lane.b32.xlu0 %v3883_v22, %s3765_s30 }
 0x173   : > { %697 = vmax.xlane.f32.xlu1 %v4155_v20 }
 0x184   : > { %966 = vrot.lane.b32.xlu1 %v3916_v34, %s3765_s30 }
 0x186   : > { %693 = vmax.xlane.f32.xlu0 %v4165_v23 }
 0x188   : > { %976 = vrot.lane.b32.xlu1 %v3939_v39, %s3765_s30 }
 0x18c   : > { %1277 = vrot.lane.b32.xlu1 %v3955_v43, %s3765_s30 }
 0x190   : > { %1283 = vrot.lane.b32.xlu1 %v3973_v48, %s3765_s30 }
 0x194   : > { %1285 = vrot.lane.b32.xlu1 %v3980_v50, %s3765_s30 }
 0x198   : > { %1289 = vrot.lane.b32.xlu1 %v3993_v54, %s3765_s30 }
 0x19c   : > { %992 = vrot.lane.b32.xlu0 %v3894_v28, %s3765_s30  ;;  %1527 = vrot.lane.b32.xlu1 %v3820_v1, %s3766_s8 }
 0x1a0   : > { %994 = vrot.lane.b32.xlu0 %v3903_v32, %s3765_s30 }
 0x1a4   : > { %964 = vrot.lane.b32.xlu0 %v3845_v6, %s3765_s30 }
 0x1a8   : > { %968 = vrot.lane.b32.xlu0 %v3919_v35, %s3765_s30 }
 0x1ac   : > { %970 = vrot.lane.b32.xlu0 %v3926_v36, %s3765_s30 }
 0x1b0   : > { %972 = vrot.lane.b32.xlu0 %v3929_v37, %s3765_s30 }
 0x1b4   : > { %974 = vrot.lane.b32.xlu0 %v3936_v38, %s3765_s30 }
 0x1b6   : > { %v672_v33 = vpop.xlane.xlu0 %671 }
 0x1b7   : > { %v701_v3 = vsub.f32 %v4029_v0, %v672_v33 }
 0x1b8   : > { %978 = vrot.lane.b32.xlu0 %v3946_v40, %s3765_s30 }
 0x1b9   : > { %v670_v62 = vpop.xlane.xlu1 %669  ;;  %v719_v38 = vmul.f32 1.442695, %v701_v3 }
 0x1ba   : > { %v700_v5 = vsub.f32 %v4037_v7, %v670_v62  ;;  %v668_v36 = vpop.xlane.xlu0 %667 }
 0x1bb   : > { %v699_v35 = vsub.f32 %v4045_v10, %v668_v36 }
 0x1bc   : > { %v717_v34 = vmul.f32 1.442695, %v700_v5  ;;  %1279 = vrot.lane.b32.xlu0 %v3964_v46, %s3765_s30 }
 0x1bd   : > { %v715_v6 = vmul.f32 1.442695, %v699_v35 }
 0x1be   : > { %3460 = vpow2.f32 %v717_v34  ;;  %v674_v28 = vpop.xlane.xlu0 %673  ;;  %v680_v40 = vpop.xlane.xlu1 %679 }
 0x1bf   : > { %3462 = vpow2.f32 %v715_v6  ;;  %v702_v54 = vsub.f32 %v4055_v13, %v674_v28  ;;  %v705_v36 = vsub.f32 %v4060_v14, %v680_v40 }
 0x1c0   : > { %1281 = vrot.lane.b32.xlu0 %v3967_v47, %s3765_s30  ;;  %3464 = vpow2.f32 %v719_v38 }
 0x1c1   : > { %v721_v0 = vmul.f32 1.442695, %v702_v54  ;;  %v727_v35 = vmul.f32 1.442695, %v705_v36 }
 0x1c2   : > { %v676_v7 = vpop.xlane.xlu0 %675 }
 0x1c3   : > { %3466 = vpow2.f32 %v721_v0  ;;  %v703_v10 = vsub.f32 %v4071_v19, %v676_v7 }
 0x1c4   : > { %1287 = vrot.lane.b32.xlu0 %v3990_v53, %s3765_s30  ;;  %3468 = vpow2.f32 %v727_v35  ;;  %v1021_v35 = vsel %vm505_vm0, %v4005_v57, 0  ;;  %v1024_v57 = vsel %vm505_vm0, %v4190_v25, 0 }
 0x1c5   : > { %v723_v33 = vmul.f32 1.442695, %v703_v10 }
 0x1c6   : > { %v682_v34 = vpop.xlane.xlu0 %681 }
 0x1c7   : > { %v706_v6 = vsub.f32 %v4083_v24, %v682_v34  ;;  %v684_v28 = vpop.xlane.xlu1 %683  ;;  %3470 = vpow2.f32 %v723_v33 }
 0x1c8   : > { %v4211_v13 = vpop.eup %3460  ;;  %v707_v54 = vsub.f32 %v4089_v26, %v684_v28  ;;  %1291 = vrot.lane.b32.xlu0 %v3999_v55, %s3765_s30 }
 0x1c9   : > { %5396 = vst [vmem:[#allocation11_spill] sm:$0xff] %v4211_v13  ;;  %v4216_v38 = vpop.eup %3462  ;;  %v729_v40 = vmul.f32 1.442695, %v706_v6 }
 0x1ca   : > { %5397 = vst [vmem:[#allocation12_spill] sm:$0xff] %v4216_v38  ;;  %v731_v14 = vmul.f32 1.442695, %v707_v54  ;;  %v678_v19 = vpop.xlane.xlu0 %677  ;;  %v779_v62 = vpack.c.bf16 %v4211_v13, %v4216_v38  ;;  %v4221_v5 = vpop.eup %3464 }
 0x1cb   : > { %v704_v24 = vsub.f32 %v4099_v29, %v678_v19  ;;  %v686_v3 = vpop.xlane.xlu1 %685  ;;  %5398 = vst [vmem:[#allocation13_spill] sm:$0xff] %v4221_v5  ;;  %3472 = vpow2.f32 %v729_v40 }
 0x1cc   : > { %v708_v26 = vsub.f32 %v4105_v30, %v686_v3  ;;  %3158 = vmatprep.mubr.bf16.mxu1 %v779_v62  ;;  %3474 = vpow2.f32 %v731_v14  ;;  %1529 = vrot.lane.b32.xlu0 %v3823_v2, %s3766_s8 }
 0x1cd   : > { %v4224_v0 = vpop.eup %3466  ;;  %v725_v7 = vmul.f32 1.442695, %v704_v24 }
 0x1ce   : > { %5399 = vst [vmem:[#allocation14_spill] sm:$0xff] %v4224_v0  ;;  %v733_v36 = vmul.f32 1.442695, %v708_v26  ;;  %v688_v10 = vpop.xlane.xlu0 %687  ;;  %v780_v34 = vpack.c.bf16 %v4224_v0, %v4221_v5  ;;  %v4234_v33 = vpop.eup %3468 }
 0x1cf   : > { %3476 = vpow2.f32 %v725_v7  ;;  %v709_v29 = vsub.f32 %v4115_v63, %v688_v10  ;;  %5400 = vst [vmem:[#allocation15_spill] sm:$0xff] %v4234_v33  ;;  %v1027_v7 = vsel %vm505_vm0, %v4194_v27, 0  ;;  %v987_v10 = vpop.permute.xlu1 %986 }
 0x1d0   : > { %3478 = vpow2.f32 %v733_v36  ;;  %3159 = vmatmul.mubr.bf16.vlgmr.msra.gmra.mrb[0].mxu1 %v780_v34  ;;  %1531 = vrot.lane.b32.xlu0 %v3840_v4, %s3766_s8 }
 0x1d1   : > { %3175 = vmatpush3.bf16.xpose.msra.mxu1 %v1021_v35  ;;  %v735_v30 = vmul.f32 1.442695, %v709_v29  ;;  %v4236_v40 = vpop.eup %3470  ;;  %v1030_v35 = vsel %vm505_vm0, %v987_v10, 0 }
 0x1d2   : > { %3375 = vmatprep.subr.msk.bf16.mxu1 %vm505_vm0, %v4190_v25  ;;  %v690_v6 = vpop.xlane.xlu0 %689  ;;  %5401 = vst [vmem:[#allocation16_spill] sm:$0xff] %v4236_v40 }
 0x1d3   : > { %v710_v28 = vsub.f32 %v4125_v12, %v690_v6  ;;  %3480 = vpow2.f32 %v735_v30 }
 0x1d5   : > { %v737_v54 = vmul.f32 1.442695, %v710_v28  ;;  %v4238_v63 = vpop.eup %3472 }
 0x1d6   : > { %5402 = vst [vmem:[#allocation17_spill] sm:$0xff] %v4238_v63  ;;  %v4240_v14 = vpop.eup %3474  ;;  %v782_v24 = vpack.c.bf16 %v4238_v63, %v4234_v33  ;;  %v696_v26 = vpop.xlane.xlu0 %695  ;;  %v3729_v33 = vld [vmem:[%s3837_s26] sm:$0xff]  }
 0x1d7   : > { %3482 = vpow2.f32 %v737_v54  ;;  %5403 = vst [vmem:[#allocation18_spill] sm:$0xff] %v4240_v14 }
 0x1d9   : > { %v4244_v19 = vpop.eup %3476  ;;  %3177 = vmatpush3.bf16.xpose.msra.mxu1 %v1024_v57 }
 0x1da   : > { %5404 = vst [vmem:[#allocation19_spill] sm:$0xff] %v4244_v19  ;;  %v4246_v62 = vpop.eup %3478  ;;  %3376 = vmatprep.subr.msk.bf16.mxu1 %vm505_vm0, %v4194_v27  ;;  %v781_v12 = vpack.c.bf16 %v4244_v19, %v4236_v40  ;;  %v692_v29 = vpop.xlane.xlu0 %691  ;;  %v3736_v40 = vld [vmem:[%s3817_s22 + $0x24] ss:$8 sps:$4 sm:$0xff]  }
 0x1db   : > { %5405 = vst [vmem:[#allocation20_spill] sm:$0xff] %v4246_v62  ;;  %v783_v3 = vpack.c.bf16 %v4246_v62, %v4240_v14  ;;  %v711_v57 = vsub.f32 %v4141_v18, %v692_v29  ;;  %v3732_v62 = vld [vmem:[%s3837_s26 + $0x18] sm:$0xff]  }
 0x1dc   : > { %3162 = vmatprep.mubr.bf16.mxu1 %v781_v12 }
 0x1dd   : > { %3163 = vmatmul.mubr.bf16.gmra.mrb[4].mxu1 %v782_v24  ;;  %v4256_v25 = vpop.eup %3480  ;;  %v713_v24 = vsub.f32 %v4133_v15, %v696_v26 }
 0x1de   : > { %3166 = vmatprep.mubr.bf16.mxu1 %v783_v3  ;;  %5406 = vst [vmem:[#allocation21_spill] sm:$0xff] %v4256_v25  ;;  %v989_v30 = vpop.permute.xlu0 %988  ;;  %v739_v3 = vmul.f32 1.442695, %v711_v57 }
 0x1df   : > { %v1033_v6 = vsel %vm505_vm0, %v989_v30, 0 }
 0x1e0   : > { %3484 = vpow2.f32 %v739_v3 }
 0x1e1   : > { %v4260_v36 = vpop.eup %3482  ;;  %3179 = vmatpush3.bf16.xpose.msra.mxu1 %v1027_v7 }
 0x1e2   : > { %5407 = vst [vmem:[#allocation22_spill] sm:$0xff] %v4260_v36  ;;  %3377 = vmatprep.subr.msk.bf16.mxu1 %vm505_vm0, %v987_v10  ;;  %v784_v34 = vpack.c.bf16 %v4260_v36, %v4256_v25  ;;  %v991_v27 = vpop.permute.xlu0 %990  ;;  %v3726_v36 = vld [vmem:[%s3817_s22 + $0x34] ss:$8 sps:$4 sm:$0xff]  }
 0x1e3   : > { %v1036_v28 = vsel %vm505_vm0, %v991_v27, 0 }
 0x1e5   : > { %3167 = vmatmul.mubr.bf16.gmra.mrb[8].mxu1 %v784_v34 }
 0x1e9   : > { %3181 = vmatpush3.bf16.xpose.msra.mxu1 %v1030_v35  ;;  %v743_v35 = vmul.f32 1.442695, %v713_v24 }
 0x1ea   : > { %3378 = vmatprep.subr.msk.bf16.mxu1 %vm505_vm0, %v989_v30 }
 0x1f1   : > { %3183 = vmatpush3.bf16.xpose.msra.mxu1 %v1033_v6 }
 0x1f2   : > { %3379 = vmatprep.subr.msk.bf16.mxu1 %vm505_vm0, %v991_v27 }
 0x1f9   : > { %3185 = vmatpush3.bf16.xpose.msra.mxu1 %v1036_v28 }
 0x200   : > { %v698_v54 = vpop.xlane.xlu1 %697 }
 0x201   : > { %v714_v12 = vsub.f32 %v4155_v20, %v698_v54  ;;  %v4278_v20 = vpop.eup %3484 }
 0x202   : > { %5408 = vst [vmem:[#allocation23_spill] sm:$0xff] %v4278_v20 }
 0x203   : > { %v745_v7 = vmul.f32 1.442695, %v714_v12 }
 0x204   : > { %v967_v24 = vpop.permute.xlu1 %966 }
 0x205   : > { %3486 = vpow2.f32 %v745_v7 }
 0x213   : > { %v694_v10 = vpop.xlane.xlu0 %693 }
 0x214   : > { %v712_v34 = vsub.f32 %v4165_v23, %v694_v10  ;;  %v4280_v23 = vpop.eup %3486 }
 0x215   : > { %5409 = vst [vmem:[#allocation24_spill] sm:$0xff] %v4280_v23 }
 0x216   : > { %v741_v30 = vmul.f32 1.442695, %v712_v34  ;;  %v977_v34 = vpop.permute.xlu1 %976 }
 0x217   : > { %v993_v6 = vpop.permute.xlu0 %992 }
 0x218   : > { %3488 = vpow2.f32 %v741_v30  ;;  %3380 = vmatprep.subr.msk.bf16.mxu1 %vm505_vm0, %v993_v6  ;;  %v1039_v27 = vsel %vm505_vm0, %v993_v6, 0 }
 0x219   : > { %3490 = vpow2.f32 %v743_v35  ;;  %3187 = vmatpush3.bf16.xpose.msra.mxu1 %v1039_v27 }
 0x21a   : > { %v1278_v30 = vpop.permute.xlu1 %1277 }
 0x21b   : > { %v995_v18 = vpop.permute.xlu0 %994  ;;  %3206 = vmatprep.subr.bf16.mxu0 %v1278_v30 }
 0x21c   : > { %3381 = vmatprep.subr.msk.bf16.mxu1 %vm505_vm0, %v995_v18  ;;  %v1042_v15 = vsel %vm505_vm0, %v995_v18, 0  ;;  %3207 = vmatpush3.bf16.msra.mxu0 %v1278_v30 }
 0x21f   : > { %v965_v54 = vpop.permute.xlu0 %964 }
 0x221   : > { %3189 = vmatpush3.bf16.xpose.msra.mxu1 %v1042_v15 }
 0x222   : > { %v4282_v26 = vpop.eup %3488 }
 0x223   : > { %5410 = vst [vmem:[#allocation25_spill] sm:$0xff] %v4282_v26  ;;  %v4284_v29 = vpop.eup %3490  ;;  %v785_v28 = vpack.c.bf16 %v4282_v26, %v4278_v20  ;;  %v969_v12 = vpop.permute.xlu0 %968 }
 0x224   : > { %5411 = vst [vmem:[#allocation26_spill] sm:$0xff] %v4284_v29  ;;  %v786_v57 = vpack.c.bf16 %v4280_v23, %v4284_v29 }
 0x225   : > { %3170 = vmatprep.mubr.bf16.mxu1 %v785_v28 }
 0x226   : > { %3171 = vmatmul.mubr.bf16.gmra.mrb[12].mxu1 %v786_v57 }
 0x227   : > { %3190 = vmatprep.mubr.msk.bf16.mxu1 %vm505_vm0, %v965_v54  ;;  %v971_v3 = vpop.permute.xlu0 %970 }
 0x22b   : > { %v973_v7 = vpop.permute.xlu0 %972 }
 0x22e   : > { %3191 = vmatmul.mubr.msk.bf16.vlgmr.msra.gmra.mrb[16].mxu1 %vm505_vm0, %v967_v24 }
 0x22f   : > { %3194 = vmatprep.mubr.msk.bf16.mxu1 %vm505_vm0, %v969_v12  ;;  %v975_v10 = vpop.permute.xlu0 %974 }
 0x233   : > { %v979_v35 = vpop.permute.xlu0 %978 }
 0x236   : > { %3195 = vmatmul.mubr.msk.bf16.gmra.mrb[20].mxu1 %vm505_vm0, %v971_v3 }
 0x237   : > { %3198 = vmatprep.mubr.msk.bf16.mxu1 %vm505_vm0, %v973_v7  ;;  %v1280_v6 = vpop.permute.xlu0 %1279 }
 0x238   : > { %3208 = vmatprep.subr.bf16.mxu0 %v1280_v6 }
 0x239   : > { %3209 = vmatpush3.bf16.msra.mxu0 %v1280_v6 }
 0x23b   : > { %v1282_v12 = vpop.permute.xlu0 %1281 }
 0x23c   : > { %3210 = vmatprep.subr.bf16.mxu0 %v1282_v12 }
 0x23d   : > { %3211 = vmatpush3.bf16.msra.mxu0 %v1282_v12 }
 0x23e   : > { %3199 = vmatmul.mubr.msk.bf16.gmra.mrb[24].mxu1 %vm505_vm0, %v975_v10  ;;  %v1284_v10 = vpop.permute.xlu1 %1283 }
 0x23f   : > { %3202 = vmatprep.mubr.msk.bf16.mxu1 %vm505_vm0, %v977_v34  ;;  %3212 = vmatprep.subr.bf16.mxu0 %v1284_v10 }
 0x241   : > { %3213 = vmatpush3.bf16.msra.mxu0 %v1284_v10 }
 0x242   : > { %v1286_v34 = vpop.permute.xlu1 %1285 }
 0x243   : > { %3214 = vmatprep.subr.bf16.mxu0 %v1286_v34 }
 0x245   : > { %3215 = vmatpush3.bf16.msra.mxu0 %v1286_v34 }
 0x246   : > { %3203 = vmatmul.mubr.msk.bf16.gmra.mrb[28].mxu1 %vm505_vm0, %v979_v35  ;;  %v1288_v35 = vpop.permute.xlu0 %1287  ;;  %v1290_v30 = vpop.permute.xlu1 %1289 }
 0x247   : > { %3216 = vmatprep.subr.bf16.mxu0 %v1288_v35 }
 0x249   : > { %3217 = vmatpush3.bf16.msra.mxu0 %v1288_v35 }
 0x24a   : > { %3218 = vmatprep.subr.bf16.mxu0 %v1290_v30  ;;  %v1292_v6 = vpop.permute.xlu0 %1291 }
 0x24d   : > { %3219 = vmatpush3.bf16.msra.mxu0 %v1290_v30 }
 0x24e   : > { %3220 = vmatprep.subr.bf16.mxu0 %v1292_v6 }
 0x251   : > { %3221 = vmatpush3.bf16.msra.mxu0 %v1292_v6 }
 0x2a3   : > { %v4304_v1 = vpop.f32.mrb[0].mxu1 }
 0x2a4   : > { %5412 = vst [vmem:[#allocation27_spill] sm:$0xff] %v4304_v1  ;;  %v4306_v27 = vpop.f32.mrb[1].mxu1 }
 0x2a5   : > { %5413 = vst [vmem:[#allocation28_spill] sm:$0xff] %v4306_v27  ;;  %v4308_v2 = vpop.f32.mrb[2].mxu1 }
 0x2a6   : > { %5414 = vst [vmem:[#allocation29_spill] sm:$0xff] %v4308_v2  ;;  %v4310_v18 = vpop.f32.mrb[3].mxu1 }
 0x2a7   : > { %5415 = vst [vmem:[#allocation30_spill] sm:$0xff] %v4310_v18 }
 0x2b0   : > { %v4312_v15 = vpop.f32.mrb[4].mxu1 }
 0x2b1   : > { %5416 = vst [vmem:[#allocation31_spill] sm:$0xff] %v4312_v15  ;;  %v4314_v4 = vpop.f32.mrb[5].mxu1 }
 0x2b2   : > { %5417 = vst [vmem:[#allocation32_spill] sm:$0xff] %v4314_v4  ;;  %v4316_v28 = vpop.f32.mrb[6].mxu1 }
 0x2b3   : > { %5418 = vst [vmem:[#allocation33_spill] sm:$0xff] %v4316_v28  ;;  %v4318_v54 = vpop.f32.mrb[7].mxu1 }
 0x2b4   : > { %5419 = vst [vmem:[#allocation34_spill] sm:$0xff] %v4318_v54 }
 0x2b8   : > { %v4320_v57 = vpop.f32.mrb[8].mxu1 }
 0x2b9   : > { %5420 = vst [vmem:[#allocation35_spill] sm:$0xff] %v4320_v57  ;;  %v4322_v24 = vpop.f32.mrb[9].mxu1  ;;  %v4328_v57 = vpop.permute.xlu1 %1527 }
 0x2ba   : > { %5421 = vst [vmem:[#allocation36_spill] sm:$0xff] %v4322_v24  ;;  %v4324_v3 = vpop.f32.mrb[10].mxu1  ;;  %3382 = vmatprep.subr.msk.bf16.mxu0 %vm505_vm0, %v4328_v57 }
 0x2bb   : > { %5422 = vst [vmem:[#allocation37_spill] sm:$0xff] %v4324_v3  ;;  %v4326_v7 = vpop.f32.mrb[11].mxu1 }
 0x2bc   : > { %5423 = vst [vmem:[#allocation38_spill] sm:$0xff] %v4326_v7 }
 0x2f9   : > { %v4332_v12 = vpop.f32.mrb[12].mxu1 }
 0x2fa   : > { %5424 = vst [vmem:[#allocation39_spill] sm:$0xff] %v4332_v12  ;;  %v4334_v10 = vpop.f32.mrb[13].mxu1 }
 0x2fb   : > { %5425 = vst [vmem:[#allocation40_spill] sm:$0xff] %v4334_v10  ;;  %v4336_v24 = vpop.f32.mrb[14].mxu1 }
 0x2fc   : > { %5426 = vst [vmem:[#allocation41_spill] sm:$0xff] %v4336_v24  ;;  %v4338_v34 = vpop.f32.mrb[15].mxu1 }
 0x2fd   : > { %5427 = vst [vmem:[#allocation42_spill] sm:$0xff] %v4338_v34 }
 0x301   : > { %v3192_v3 = vpop.f32.mrb[16].mxu1 }
 0x302   : > { %v1078_v35 = vpop.f32.mrb[17].mxu1  ;;  %v4343_v30 = vsel %vm379_vm1, %v3192_v3, -1e+09 }
 0x303   : > { %1161 = vmax.xlane.f32.xlu0 %v4343_v30  ;;  %v3193_v6 = vpop.f32.mrb[18].mxu1  ;;  %v4349_v12 = vsel %vm377_vm3, %v1078_v35, -1e+09 }
 0x304   : > { %1157 = vmax.xlane.f32.xlu1 %v4349_v12  ;;  %v1081_v10 = vpop.f32.mrb[19].mxu1  ;;  %v4355_v24 = vsel %vm380_vm4, %v3193_v6, -1e+09 }
 0x305   : > { %v1142_v18 = vsel %vm378_vm2, %v1081_v10, -1e+09 }
 0x308   : > { %1163 = vmax.xlane.f32.xlu1 %v4355_v24 }
 0x309   : > { %v3196_v3 = vpop.f32.mrb[20].mxu1 }
 0x30a   : > { %v1094_v34 = vpop.f32.mrb[21].mxu1 }
 0x30b   : > { %v3197_v15 = vpop.f32.mrb[22].mxu1  ;;  %v4368_v29 = vsel %vm381_vm6, %v1094_v34, -1e+09 }
 0x30c   : > { %v1097_v7 = vpop.f32.mrb[23].mxu1 }
 0x30d   : > { %v4386_v10 = vsel %vm382_vm9, %v1097_v7, -1e+09 }
 0x311   : > { %v3200_v4 = vpop.f32.mrb[24].mxu1 }
 0x312   : > { %v1110_v28 = vpop.f32.mrb[25].mxu1  ;;  %v4392_v34 = vsel %vm387_vm11, %v3200_v4, -1e+09 }
 0x313   : > { %v3201_v1 = vpop.f32.mrb[26].mxu1 }
 0x314   : > { %v1113_v54 = vpop.f32.mrb[27].mxu1 }
 0x315   : > { %v4404_v7 = vsel %vm386_vm10, %v1113_v54, -1e+09 }
 0x319   : > { %1535 = vrot.lane.b32.xlu0 %v3872_v16, %s3766_s8  ;;  %1533 = vrot.lane.b32.xlu1 %v3859_v8, %s3766_s8  ;;  %v3204_v35 = vpop.f32.mrb[28].mxu1  ;;  %v4374_v8 = vsel %vm383_vm5, %v3196_v3, -1e+09  ;;  %v4380_v16 = vsel %vm384_vm7, %v3197_v15, -1e+09  ;;  %v1530_v3 = vpop.permute.xlu0 %1529 }
 0x31a   : > { %v1126_v27 = vpop.f32.mrb[29].mxu1  ;;  %v4398_v15 = vsel %vm385_vm8, %v1110_v28, -1e+09  ;;  %v4412_v4 = vsel %vm5369_vm13, %v3204_v35, -1e+09  ;;  %vm5428_vm13 = vcmp.eq.s32.totalorder %v3982_v51, %v4018_v60 }
 0x31b   : > { %v3205_v6 = vpop.f32.mrb[30].mxu1  ;;  %v4418_v28 = vsel %vm389_vm14, %v1126_v27, -1e+09 }
 0x31c   : > { %v1129_v2 = vpop.f32.mrb[31].mxu1  ;;  %v4440_v27 = vsel %vm392_vm15, %v3205_v6, -1e+09 }
 0x31d   : > { %v4424_v54 = vsel %vm390_vm12, %v1129_v2, -1e+09  ;;  %v5436_v2 = vld [vmem:[#allocation9_spill] sm:$0xff]  ;;  %v4475_v35 = vpop.permute.xlu0 %1531 }
 0x338   : > { %1159 = vmax.xlane.f32.xlu0 %v1142_v18 }
 0x33c   : > { %1165 = vmax.xlane.f32.xlu0 %v4368_v29 }
 0x33d   : > { %1169 = vmax.xlane.f32.xlu1 %v4374_v8 }
 0x341   : > { %1171 = vmax.xlane.f32.xlu1 %v4380_v16 }
 0x345   : > { %1167 = vmax.xlane.f32.xlu1 %v4386_v10 }
 0x349   : > { %1177 = vmax.xlane.f32.xlu1 %v4392_v34 }
 0x34d   : > { %1173 = vmax.xlane.f32.xlu1 %v4398_v15 }
 0x351   : > { %1175 = vmax.xlane.f32.xlu1 %v4404_v7 }
 0x352   : > { %1537 = vrot.lane.b32.xlu0 %v3883_v22, %s3766_s8  ;;  %v4432_v22 = vsel %vm5428_vm13, %v3201_v1, -1e+09  ;;  %v5431_v1 = vld [vmem:[#allocation3_spill] sm:$0xff]  ;;  %vm5456_vm13 = vcmp.eq.s32.totalorder %v4120_v11, %v4018_v60 }
 0x355   : > { %1185 = vmax.xlane.f32.xlu1 %v4412_v4 }
 0x359   : > { %1181 = vmax.xlane.f32.xlu1 %v4418_v28 }
 0x35d   : > { %1183 = vmax.xlane.f32.xlu1 %v4424_v54 }
 0x36e   : > { %1541 = vrot.lane.b32.xlu1 %v3903_v32, %s3766_s8  ;;  %v5429_v32 = vld [vmem:[#allocation10_spill] sm:$0xff] }
 0x371   : > { %1179 = vmax.xlane.f32.xlu0 %v4432_v22 }
 0x372   : > { %1519 = vrot.lane.b32.xlu1 %v3929_v37, %s3766_s8  ;;  %v5430_v37 = vld [vmem:[#allocation4_spill] sm:$0xff] }
 0x375   : > { %1187 = vmax.xlane.f32.xlu0 %v4440_v27 }
 0x376   : > { %1523 = vrot.lane.b32.xlu1 %v3939_v39, %s3766_s8  ;;  %v5432_v39 = vld [vmem:[#allocation5_spill] sm:$0xff] }
 0x37a   : > { %1824 = vrot.lane.b32.xlu1 %v3955_v43, %s3766_s8  ;;  %v5433_v43 = vld [vmem:[#allocation6_spill] sm:$0xff] }
 0x37e   : > { %1830 = vrot.lane.b32.xlu1 %v3973_v48, %s3766_s8  ;;  %v5434_v48 = vld [vmem:[#allocation7_spill] sm:$0xff] }
 0x382   : > { %1832 = vrot.lane.b32.xlu1 %v3980_v50, %s3766_s8  ;;  %v5435_v50 = vld [vmem:[#allocation8_spill] sm:$0xff] }
 0x386   : > { %1836 = vrot.lane.b32.xlu1 %v5429_v32, %s3766_s8 }
 0x38b   : > { %1539 = vrot.lane.b32.xlu0 %v5430_v37, %s3766_s8 }
 0x38f   : > { %1511 = vrot.lane.b32.xlu0 %v5431_v1, %s3766_s8 }
 0x390   : > { %v1162_v32 = vpop.xlane.xlu0 %1161 }
 0x391   : > { %v1158_v6 = vpop.xlane.xlu1 %1157 }
 0x392   : > { %v1189_v1 = vsub.f32 %v4349_v12, %v1158_v6 }
 0x393   : > { %1513 = vrot.lane.b32.xlu0 %v5432_v39, %s3766_s8 }
 0x394   : > { %v4478_v39 = vpop.permute.xlu0 %1535 }
 0x395   : > { %v1164_v37 = vpop.xlane.xlu1 %1163 }
 0x397   : > { %1515 = vrot.lane.b32.xlu0 %v5433_v43, %s3766_s8  ;;  %v1205_v43 = vmul.f32 1.442695, %v1189_v1 }
 0x399   : > { %3492 = vpow2.f32 %v1205_v43 }
 0x39b   : > { %1517 = vrot.lane.b32.xlu0 %v5434_v48, %s3766_s8 }
 0x39f   : > { %1521 = vrot.lane.b32.xlu0 %v5435_v50, %s3766_s8  ;;  %v4482_v50 = vpop.permute.xlu1 %1533 }
 0x3a3   : > { %1525 = vrot.lane.b32.xlu0 %v5436_v2, %s3766_s8 }
 0x3a7   : > { %1826 = vrot.lane.b32.xlu0 %v3964_v46, %s3766_s8  ;;  %v1192_v46 = vsub.f32 %v4355_v24, %v1164_v37  ;;  %v4487_v37 = vpop.eup %3492 }
 0x3a9   : > { %v1211_v48 = vmul.f32 1.442695, %v1192_v46 }
 0x3ab   : > { %1828 = vrot.lane.b32.xlu0 %v3967_v47, %s3766_s8  ;;  %v1191_v47 = vsub.f32 %v4343_v30, %v1162_v32  ;;  %3494 = vpow2.f32 %v1211_v48 }
 0x3af   : > { %1834 = vrot.lane.b32.xlu0 %v3990_v53, %s3766_s8 }
 0x3b3   : > { %1838 = vrot.lane.b32.xlu0 %v3999_v55, %s3766_s8  ;;  %v1209_v55 = vmul.f32 1.442695, %v1191_v47 }
 0x3b5   : > { %v4489_v46 = vpop.eup %3494 }
 0x3c5   : > { %v1160_v53 = vpop.xlane.xlu0 %1159 }
 0x3c6   : > { %v1190_v2 = vsub.f32 %v1142_v18, %v1160_v53 }
 0x3c8   : > { %v1207_v20 = vmul.f32 1.442695, %v1190_v2 }
 0x3c9   : > { %v1166_v23 = vpop.xlane.xlu0 %1165 }
 0x3ca   : > { %3496 = vpow2.f32 %v1207_v20  ;;  %v1170_v25 = vpop.xlane.xlu1 %1169  ;;  %v1193_v12 = vsub.f32 %v4368_v29, %v1166_v23 }
 0x3cb   : > { %3498 = vpow2.f32 %v1209_v55  ;;  %v1195_v30 = vsub.f32 %v4374_v8, %v1170_v25 }
 0x3cc   : > { %v1213_v32 = vmul.f32 1.442695, %v1193_v12 }
 0x3cd   : > { %v1217_v43 = vmul.f32 1.442695, %v1195_v30  ;;  %v1571_v30 = vsel %vm505_vm0, %v1530_v3, 0 }
 0x3ce   : > { %v1172_v6 = vpop.xlane.xlu1 %1171  ;;  %3500 = vpow2.f32 %v1213_v32 }
 0x3cf   : > { %v1196_v24 = vsub.f32 %v4380_v16, %v1172_v6  ;;  %v1568_v16 = vsel %vm505_vm0, %v4328_v57, 0 }
 0x3d1   : > { %v1219_v1 = vmul.f32 1.442695, %v1196_v24 }
 0x3d2   : > { %v1168_v18 = vpop.xlane.xlu1 %1167 }
 0x3d3   : > { %v1194_v47 = vsub.f32 %v4386_v10, %v1168_v18  ;;  %3502 = vpow2.f32 %v1219_v1 }
 0x3d4   : > { %v4492_v20 = vpop.eup %3496 }
 0x3d5   : > { %v4494_v48 = vpop.eup %3498  ;;  %v1215_v23 = vmul.f32 1.442695, %v1194_v47  ;;  %v1269_v29 = vpack.c.bf16 %v4492_v20, %v4487_v37 }
 0x3d6   : > { %v1178_v25 = vpop.xlane.xlu1 %1177  ;;  %v1270_v8 = vpack.c.bf16 %v4489_v46, %v4494_v48 }
 0x3d7   : > { %3504 = vpow2.f32 %v1215_v23  ;;  %3222 = vmatprep.mubr.bf16.mxu0 %v1269_v29  ;;  %v1577_v29 = vsel %vm505_vm0, %v4482_v50, 0 }
 0x3d8   : > { %3506 = vpow2.f32 %v1217_v43  ;;  %3223 = vmatmul.mubr.bf16.vlgmr.msra.gmra.mrb[16].mxu0 %v1270_v8  ;;  %v4504_v12 = vpop.eup %3500 }
 0x3d9   : > { %3239 = vmatpush3.bf16.xpose.msra.mxu0 %v1568_v16  ;;  %v1580_v16 = vsel %vm505_vm0, %v4478_v39, 0 }
 0x3da   : > { %3383 = vmatprep.subr.msk.bf16.mxu0 %vm505_vm0, %v1530_v3  ;;  %v1174_v10 = vpop.xlane.xlu1 %1173  ;;  %v1574_v3 = vsel %vm505_vm0, %v4475_v35, 0 }
 0x3db   : > { %v1197_v53 = vsub.f32 %v4398_v15, %v1174_v10  ;;  %v1538_v10 = vpop.permute.xlu0 %1537 }
 0x3dd   : > { %v1221_v2 = vmul.f32 1.442695, %v1197_v53  ;;  %v4507_v24 = vpop.eup %3502  ;;  %v1199_v53 = vsub.f32 %v4392_v34, %v1178_v25 }
 0x3de   : > { %v1176_v55 = vpop.xlane.xlu1 %1175 }
 0x3df   : > { %v1198_v6 = vsub.f32 %v4404_v7, %v1176_v55  ;;  %3508 = vpow2.f32 %v1221_v2 }
 0x3e1   : > { %v4510_v32 = vpop.eup %3504  ;;  %v1223_v1 = vmul.f32 1.442695, %v1198_v6  ;;  %3241 = vmatpush3.bf16.xpose.msra.mxu0 %v1571_v30 }
 0x3e2   : > { %v4512_v57 = vpop.eup %3506  ;;  %3384 = vmatprep.subr.msk.bf16.mxu0 %vm505_vm0, %v4475_v35  ;;  %v1271_v15 = vpack.c.bf16 %v4510_v32, %v4504_v12  ;;  %v1186_v18 = vpop.xlane.xlu1 %1185 }
 0x3e3   : > { %3510 = vpow2.f32 %v1223_v1  ;;  %v1272_v7 = vpack.c.bf16 %v4507_v24, %v4512_v57  ;;  %v1203_v25 = vsub.f32 %v4412_v4, %v1186_v18 }
 0x3e4   : > { %3226 = vmatprep.mubr.bf16.mxu0 %v1271_v15 }
 0x3e5   : > { %3227 = vmatmul.mubr.bf16.gmra.mrb[20].mxu0 %v1272_v7  ;;  %v1583_v7 = vsel %vm505_vm0, %v1538_v10, 0 }
 0x3e6   : > { %v1182_v8 = vpop.xlane.xlu1 %1181 }
 0x3e7   : > { %v1201_v55 = vsub.f32 %v4418_v28, %v1182_v8 }
 0x3e9   : > { %3243 = vmatpush3.bf16.xpose.msra.mxu0 %v1574_v3  ;;  %v4524_v47 = vpop.eup %3508  ;;  %v1229_v15 = vmul.f32 1.442695, %v1201_v55 }
 0x3ea   : > { %3385 = vmatprep.subr.msk.bf16.mxu0 %vm505_vm0, %v4482_v50  ;;  %v1184_v35 = vpop.xlane.xlu1 %1183  ;;  %v1225_v50 = vmul.f32 1.442695, %v1199_v53 }
 0x3eb   : > { %v1202_v2 = vsub.f32 %v4424_v54, %v1184_v35 }
 0x3ec   : > { %3512 = vpow2.f32 %v1225_v50 }
 0x3ed   : > { %v4526_v43 = vpop.eup %3510  ;;  %v1231_v6 = vmul.f32 1.442695, %v1202_v2 }
 0x3ee   : > { %v1273_v23 = vpack.c.bf16 %v4526_v43, %v4524_v47 }
 0x3ef   : > { %3514 = vpow2.f32 %v1231_v6 }
 0x3f0   : > { %3230 = vmatprep.mubr.bf16.mxu0 %v1273_v23  ;;  %v1233_v23 = vmul.f32 1.442695, %v1203_v25  ;;  %v3716_v25 = vld [vmem:[%s3817_s22 + $0x10] ss:$8 sps:$4 sm:$0xff]  }
 0x3f1   : > { %3245 = vmatpush3.bf16.xpose.msra.mxu0 %v1577_v29  ;;  %v1542_v29 = vpop.permute.xlu1 %1541  ;;  %2076 = vrot.lane.b32.xlu0 %v3716_v25, %s3767_s9 }
 0x3f2   : > { %3386 = vmatprep.subr.msk.bf16.mxu0 %vm505_vm0, %v4478_v39 }
 0x3f6   : > { %v4547_v8 = vpop.eup %3512 }
 0x3f9   : > { %3247 = vmatpush3.bf16.xpose.msra.mxu0 %v1580_v16  ;;  %v4549_v4 = vpop.eup %3514  ;;  %v1589_v16 = vsel %vm505_vm0, %v1542_v29, 0 }
 0x3fa   : > { %3387 = vmatprep.subr.msk.bf16.mxu0 %vm505_vm0, %v1538_v10 }
 0x3fe   : > { %v1180_v30 = vpop.xlane.xlu0 %1179 }
 0x3ff   : > { %v1200_v1 = vsub.f32 %v4432_v22, %v1180_v30 }
 0x401   : > { %v1227_v39 = vmul.f32 1.442695, %v1200_v1  ;;  %3249 = vmatpush3.bf16.xpose.msra.mxu0 %v1583_v7 }
 0x402   : > { %v1188_v34 = vpop.xlane.xlu0 %1187 }
 0x403   : > { %3516 = vpow2.f32 %v1227_v39  ;;  %v1204_v54 = vsub.f32 %v4440_v27, %v1188_v34 }
 0x404   : > { %3518 = vpow2.f32 %v1229_v15  ;;  %v1520_v15 = vpop.permute.xlu1 %1519 }
 0x405   : > { %v1235_v28 = vmul.f32 1.442695, %v1204_v54  ;;  %v3717_v54 = vld [vmem:[%s3817_s22] ss:$8 sps:$4 sm:$0xff]  }
 0x406   : > { %v1540_v3 = vpop.permute.xlu0 %1539  ;;  %2074 = vrot.lane.b32.xlu1 %v3717_v54, %s3767_s9 }
 0x407   : > { %3388 = vmatprep.subr.msk.bf16.mxu0 %vm505_vm0, %v1540_v3  ;;  %v1586_v22 = vsel %vm505_vm0, %v1540_v3, 0  ;;  %3520 = vpow2.f32 %v1235_v28  ;;  %v3718_v28 = vld [vmem:[%s3817_s22 + $0x20] ss:$8 sps:$4 sm:$0xff]  }
 0x408   : > { %3522 = vpow2.f32 %v1233_v23  ;;  %v1524_v39 = vpop.permute.xlu1 %1523  ;;  %2078 = vrot.lane.b32.xlu0 %v3718_v28, %s3767_s9 }
 0x409   : > { %3251 = vmatpush3.bf16.xpose.msra.mxu0 %v1586_v22 }
 0x40a   : > { %3389 = vmatprep.subr.msk.bf16.mxu0 %vm505_vm0, %v1542_v29  ;;  %v1512_v2 = vpop.permute.xlu0 %1511 }
 0x40c   : > { %v1825_v3 = vpop.permute.xlu1 %1824 }
 0x40d   : > { %v4551_v18 = vpop.eup %3516  ;;  %3270 = vmatprep.subr.bf16.mxu1 %v1825_v3 }
 0x40e   : > { %v4553_v27 = vpop.eup %3518  ;;  %v1274_v35 = vpack.c.bf16 %v4551_v18, %v4547_v8  ;;  %v1514_v6 = vpop.permute.xlu0 %1513  ;;  %3271 = vmatpush3.bf16.msra.mxu1 %v1825_v3 }
 0x40f   : > { %5437 = vst [vmem:[#allocation10_spill] sm:$0xff] %v4553_v27  ;;  %v1275_v10 = vpack.c.bf16 %v4549_v4, %v4553_v27 }
 0x410   : > { %3231 = vmatmul.mubr.bf16.gmra.mrb[24].mxu0 %v1274_v35 }
 0x411   : > { %3234 = vmatprep.mubr.bf16.mxu0 %v1275_v10  ;;  %3253 = vmatpush3.bf16.xpose.msra.mxu0 %v1589_v16  ;;  %v4560_v53 = vpop.eup %3520 }
 0x412   : > { %5438 = vst [vmem:[#allocation4_spill] sm:$0xff] %v4560_v53  ;;  %v4562_v55 = vpop.eup %3522  ;;  %v1516_v30 = vpop.permute.xlu0 %1515 }
 0x413   : > { %5439 = vst [vmem:[#allocation3_spill] sm:$0xff] %v4562_v55  ;;  %v1276_v50 = vpack.c.bf16 %v4560_v53, %v4562_v55 }
 0x416   : > { %v1518_v1 = vpop.permute.xlu0 %1517  ;;  %v5470_v52 = vld [vmem:[#allocation10_spill] sm:$0xff] }
 0x418   : > { %3235 = vmatmul.mubr.bf16.gmra.mrb[28].mxu0 %v1276_v50 }
 0x419   : > { %3254 = vmatprep.mubr.msk.bf16.mxu0 %vm505_vm0, %v1512_v2  ;;  %v1831_v2 = vpop.permute.xlu1 %1830 }
 0x41a   : > { %v1522_v7 = vpop.permute.xlu0 %1521  ;;  %v5471_v56 = vld [vmem:[#allocation3_spill] sm:$0xff] }
 0x41d   : > { %v1833_v50 = vpop.permute.xlu1 %1832 }
 0x41e   : > { %v1526_v34 = vpop.permute.xlu0 %1525 }
 0x420   : > { %3255 = vmatmul.mubr.msk.bf16.vlgmr.msra.gmra.mrb[32].mxu0 %vm505_vm0, %v1514_v6 }
 0x421   : > { %3258 = vmatprep.mubr.msk.bf16.mxu0 %vm505_vm0, %v1516_v30  ;;  %v1837_v30 = vpop.permute.xlu1 %1836 }
 0x422   : > { %v1827_v23 = vpop.permute.xlu0 %1826 }
 0x423   : > { %3272 = vmatprep.subr.bf16.mxu1 %v1827_v23 }
 0x424   : > { %3273 = vmatpush3.bf16.msra.mxu1 %v1827_v23 }
 0x426   : > { %v1829_v22 = vpop.permute.xlu0 %1828 }
 0x427   : > { %3274 = vmatprep.subr.bf16.mxu1 %v1829_v22 }
 0x428   : > { %3259 = vmatmul.mubr.msk.bf16.gmra.mrb[36].mxu0 %vm505_vm0, %v1518_v1  ;;  %3275 = vmatpush3.bf16.msra.mxu1 %v1829_v22 }
 0x429   : > { %3262 = vmatprep.mubr.msk.bf16.mxu0 %vm505_vm0, %v1520_v15  ;;  %3276 = vmatprep.subr.bf16.mxu1 %v1831_v2 }
 0x42a   : > { %v1835_v6 = vpop.permute.xlu0 %1834 }
 0x42c   : > { %3277 = vmatpush3.bf16.msra.mxu1 %v1831_v2 }
 0x42d   : > { %3278 = vmatprep.subr.bf16.mxu1 %v1833_v50 }
 0x430   : > { %3263 = vmatmul.mubr.msk.bf16.gmra.mrb[40].mxu0 %vm505_vm0, %v1522_v7  ;;  %3279 = vmatpush3.bf16.msra.mxu1 %v1833_v50 }
 0x431   : > { %3266 = vmatprep.mubr.msk.bf16.mxu0 %vm505_vm0, %v1524_v39  ;;  %3280 = vmatprep.subr.bf16.mxu1 %v1835_v6 }
 0x434   : > { %3281 = vmatpush3.bf16.msra.mxu1 %v1835_v6 }
 0x435   : > { %3282 = vmatprep.subr.bf16.mxu1 %v1837_v30 }
 0x438   : > { %3267 = vmatmul.mubr.msk.bf16.gmra.mrb[44].mxu0 %vm505_vm0, %v1526_v34  ;;  %3283 = vmatpush3.bf16.msra.mxu1 %v1837_v30  ;;  %v1839_v34 = vpop.permute.xlu0 %1838 }
 0x439   : > { %3284 = vmatprep.subr.bf16.mxu1 %v1839_v34 }
 0x43c   : > { %3285 = vmatpush3.bf16.msra.mxu1 %v1839_v34 }
 0x478   : > { %v4596_v25 = vpop.permute.xlu1 %2074 }
 0x479   : > { %3390 = vmatprep.subr.msk.bf16.mxu1 %vm505_vm0, %v4596_v25 }
 0x4ab   : > { %v4580_v29 = vpop.f32.mrb[16].mxu0 }
 0x4ac   : > { %5440 = vst [vmem:[#allocation5_spill] sm:$0xff] %v4580_v29  ;;  %v4582_v35 = vpop.f32.mrb[17].mxu0 }
 0x4ad   : > { %5441 = vst [vmem:[#allocation6_spill] sm:$0xff] %v4582_v35  ;;  %v4584_v16 = vpop.f32.mrb[18].mxu0 }
 0x4ae   : > { %5442 = vst [vmem:[#allocation7_spill] sm:$0xff] %v4584_v16  ;;  %v4586_v10 = vpop.f32.mrb[19].mxu0 }
 0x4af   : > { %5443 = vst [vmem:[#allocation8_spill] sm:$0xff] %v4586_v10 }
 0x4b8   : > { %v4588_v1 = vpop.f32.mrb[20].mxu0 }
 0x4b9   : > { %5444 = vst [vmem:[#allocation9_spill] sm:$0xff] %v4588_v1  ;;  %v4590_v15 = vpop.f32.mrb[21].mxu0 }
 0x4ba   : > { %5445 = vst [vmem:[#allocation43_spill] sm:$0xff] %v4590_v15  ;;  %v4592_v7 = vpop.f32.mrb[22].mxu0  ;;  %v3720_v15 = vld [vmem:[%s3817_s22 + $0x30] ss:$8 sps:$4 sm:$0xff]  }
 0x4bb   : > { %5446 = vst [vmem:[#allocation44_spill] sm:$0xff] %v4592_v7  ;;  %v4594_v39 = vpop.f32.mrb[23].mxu0 }
 0x4bc   : > { %5447 = vst [vmem:[#allocation45_spill] sm:$0xff] %v4594_v39 }
 0x4e3   : > { %v4600_v54 = vpop.f32.mrb[24].mxu0 }
 0x4e4   : > { %5448 = vst [vmem:[#allocation46_spill] sm:$0xff] %v4600_v54  ;;  %v4602_v28 = vpop.f32.mrb[25].mxu0 }
 0x4e5   : > { %5449 = vst [vmem:[#allocation47_spill] sm:$0xff] %v4602_v28  ;;  %v4604_v3 = vpop.f32.mrb[26].mxu0 }
 0x4e6   : > { %5450 = vst [vmem:[#allocation48_spill] sm:$0xff] %v4604_v3  ;;  %v4606_v23 = vpop.f32.mrb[27].mxu0 }
 0x4e7   : > { %5451 = vst [vmem:[#allocation49_spill] sm:$0xff] %v4606_v23 }
 0x4eb   : > { %v4608_v22 = vpop.f32.mrb[28].mxu0 }
 0x4ec   : > { %5452 = vst [vmem:[#allocation50_spill] sm:$0xff] %v4608_v22  ;;  %v4610_v2 = vpop.f32.mrb[29].mxu0 }
 0x4ed   : > { %5453 = vst [vmem:[#allocation51_spill] sm:$0xff] %v4610_v2  ;;  %v4612_v50 = vpop.f32.mrb[30].mxu0 }
 0x4ee   : > { %5454 = vst [vmem:[#allocation52_spill] sm:$0xff] %v4612_v50  ;;  %v4614_v6 = vpop.f32.mrb[31].mxu0 }
 0x4ef   : > { %5455 = vst [vmem:[#allocation53_spill] sm:$0xff] %v4614_v6 }
 0x4f3   : > { %v3256_v30 = vpop.f32.mrb[32].mxu0 }
 0x4f4   : > { %v4619_v34 = vsel %vm379_vm1, %v3256_v30, -1e+09  ;;  %v1625_v54 = vpop.f32.mrb[33].mxu0 }
 0x4f5   : > { %1708 = vmax.xlane.f32.xlu0 %v4619_v34  ;;  %v3257_v3 = vpop.f32.mrb[34].mxu0  ;;  %v4625_v22 = vsel %vm377_vm3, %v1625_v54, -1e+09  ;;  %v3719_v54 = vld [vmem:[%s3817_s22 + $0x40] ss:$8 sps:$4 sm:$0xff]  }
 0x4f6   : > { %1704 = vmax.xlane.f32.xlu1 %v4625_v22  ;;  %v1628_v50 = vpop.f32.mrb[35].mxu0  ;;  %v4631_v6 = vsel %vm380_vm4, %v3257_v3, -1e+09 }
 0x4f7   : > { %v4641_v26 = vsel %vm378_vm2, %v1628_v50, -1e+09 }
 0x4fa   : > { %1710 = vmax.xlane.f32.xlu1 %v4631_v6 }
 0x4fb   : > { %v3260_v30 = vpop.f32.mrb[36].mxu0 }
 0x4fc   : > { %v1641_v2 = vpop.f32.mrb[37].mxu0 }
 0x4fd   : > { %v3261_v23 = vpop.f32.mrb[38].mxu0  ;;  %v4647_v14 = vsel %vm381_vm6, %v1641_v2, -1e+09 }
 0x4fe   : > { %v1644_v28 = vpop.f32.mrb[39].mxu0  ;;  %v4659_v50 = vsel %vm384_vm7, %v3261_v23, -1e+09 }
 0x4ff   : > { %v4665_v2 = vsel %vm382_vm9, %v1644_v28, -1e+09 }
 0x503   : > { %v3264_v7 = vpop.f32.mrb[40].mxu0 }
 0x504   : > { %v1657_v1 = vpop.f32.mrb[41].mxu0 }
 0x505   : > { %v3265_v39 = vpop.f32.mrb[42].mxu0  ;;  %v4677_v23 = vsel %vm385_vm8, %v1657_v1, -1e+09 }
 0x506   : > { %v1660_v16 = vpop.f32.mrb[43].mxu0 }
 0x507   : > { %v4683_v28 = vsel %vm386_vm10, %v1660_v16, -1e+09 }
 0x50b   : > { %2082 = vrot.lane.b32.xlu0 %v3719_v54, %s3767_s9  ;;  %2080 = vrot.lane.b32.xlu1 %v3720_v15, %s3767_s9  ;;  %v3268_v35 = vpop.f32.mrb[44].mxu0  ;;  %v4653_v15 = vsel %vm383_vm5, %v3260_v30, -1e+09  ;;  %v4671_v30 = vsel %vm387_vm11, %v3264_v7, -1e+09 }
 0x50c   : > { %v1673_v29 = vpop.f32.mrb[45].mxu0  ;;  %v3721_v54 = vld [vmem:[%s3817_s22 + $0x50] ss:$8 sps:$4 sm:$0xff]   ;;  %v4691_v7 = vsel %vm5456_vm13, %v3268_v35, -1e+09  ;;  %vm5457_vm13 = vcmp.eq.s32.totalorder %v3982_v51, %v4018_v60  ;;  %v5469_v51 = vld [vmem:[#allocation4_spill] sm:$0xff] }
 0x50d   : > { %v3269_v3 = vpop.f32.mrb[46].mxu0  ;;  %v4697_v1 = vsel %vm389_vm14, %v1673_v29, -1e+09  ;;  %v3722_v35 = vld [vmem:[%s3817_s22 + $0x70] ss:$8 sps:$4 sm:$0xff]  }
 0x50e   : > { %v1676_v10 = vpop.f32.mrb[47].mxu0  ;;  %v4711_v29 = vsel %vm5457_vm13, %v3265_v39, -1e+09  ;;  %v3725_v39 = vld [vmem:[%s3817_s22 + $0x14] ss:$8 sps:$4 sm:$0xff]  }
 0x50f   : > { %v4703_v16 = vsel %vm390_vm12, %v1676_v10, -1e+09  ;;  %v4719_v10 = vsel %vm392_vm15, %v3269_v3, -1e+09  ;;  %v3728_v3 = vld [vmem:[%s3817_s22 + $0x60] ss:$8 sps:$4 sm:$0xff]  }
 0x52a   : > { %1706 = vmax.xlane.f32.xlu0 %v4641_v26 }
 0x52e   : > { %1712 = vmax.xlane.f32.xlu0 %v4647_v14 }
 0x52f   : > { %1716 = vmax.xlane.f32.xlu1 %v4653_v15 }
 0x533   : > { %1718 = vmax.xlane.f32.xlu1 %v4659_v50 }
 0x537   : > { %1714 = vmax.xlane.f32.xlu1 %v4665_v2 }
 0x53b   : > { %1724 = vmax.xlane.f32.xlu1 %v4671_v30 }
 0x53f   : > { %1720 = vmax.xlane.f32.xlu1 %v4677_v23 }
 0x543   : > { %1722 = vmax.xlane.f32.xlu1 %v4683_v28 }
 0x544   : > { %2084 = vrot.lane.b32.xlu0 %v3721_v54, %s3767_s9  ;;  %v3723_v54 = vld [vmem:[%s3837_s26 + $0x20] sm:$0xff]  }
 0x547   : > { %1732 = vmax.xlane.f32.xlu1 %v4691_v7 }
 0x54b   : > { %1728 = vmax.xlane.f32.xlu1 %v4697_v1 }
 0x54f   : > { %1730 = vmax.xlane.f32.xlu1 %v4703_v16 }
 0x560   : > { %2088 = vrot.lane.b32.xlu1 %v3722_v35, %s3767_s9  ;;  %v3724_v35 = vld [vmem:[%s3837_s26 + $0x30] sm:$0xff]  }
 0x563   : > { %1726 = vmax.xlane.f32.xlu0 %v4711_v29 }
 0x564   : > { %2066 = vrot.lane.b32.xlu1 %v3723_v54, %s3767_s9  ;;  %v3727_v54 = vld [vmem:[%s3817_s22 + $0x54] ss:$8 sps:$4 sm:$0xff]  }
 0x567   : > { %1734 = vmax.xlane.f32.xlu0 %v4719_v10 }
 0x568   : > { %2070 = vrot.lane.b32.xlu1 %v3724_v35, %s3767_s9  ;;  %v3730_v35 = vld [vmem:[%s3837_s26 + $0x8] sm:$0xff]  }
 0x56c   : > { %2373 = vrot.lane.b32.xlu1 %v3725_v39, %s3767_s9  ;;  %v3731_v39 = vld [vmem:[%s3837_s26 + $0x10] sm:$0xff]  }
 0x570   : > { %2377 = vrot.lane.b32.xlu1 %v3726_v36, %s3767_s9  ;;  %v3733_v36 = vld [vmem:[%s3837_s26 + $0x28] sm:$0xff]  }
 0x574   : > { %2381 = vrot.lane.b32.xlu1 %v3727_v54, %s3767_s9  ;;  %v3734_v54 = vld [vmem:[%s3837_s26 + $0x38] sm:$0xff]  }
 0x57d   : > { %2086 = vrot.lane.b32.xlu0 %v3728_v3, %s3767_s9  ;;  %v3735_v3 = vld [vmem:[%s3817_s22 + $0x4] ss:$8 sps:$4 sm:$0xff]  }
 0x581   : > { %2058 = vrot.lane.b32.xlu0 %v3729_v33, %s3767_s9  ;;  %v3737_v33 = vld [vmem:[%s3817_s22 + $0x44] ss:$8 sps:$4 sm:$0xff]  }
 0x583   : > { %v1705_v63 = vpop.xlane.xlu1 %1704 }
 0x585   : > { %2060 = vrot.lane.b32.xlu0 %v3730_v35, %s3767_s9  ;;  %v2077_v35 = vpop.permute.xlu0 %2076 }
 0x587   : > { %v1711_v5 = vpop.xlane.xlu1 %1710 }
 0x589   : > { %2062 = vrot.lane.b32.xlu0 %v3731_v39, %s3767_s9  ;;  %v4750_v39 = vpop.permute.xlu0 %2078 }
 0x58b   : > { %v4757_v13 = vpop.permute.xlu1 %2080 }
 0x58d   : > { %2064 = vrot.lane.b32.xlu0 %v3732_v62, %s3767_s9  ;;  %v1709_v62 = vpop.xlane.xlu0 %1708 }
 0x591   : > { %2068 = vrot.lane.b32.xlu0 %v3733_v36, %s3767_s9  ;;  %v1736_v36 = vsub.f32 %v4625_v22, %v1705_v63  ;;  %v4753_v19 = vpop.permute.xlu0 %2082 }
 0x593   : > { %v1752_v38 = vmul.f32 1.442695, %v1736_v36 }
 0x595   : > { %2072 = vrot.lane.b32.xlu0 %v3734_v54, %s3767_s9  ;;  %v1739_v54 = vsub.f32 %v4631_v6, %v1711_v5  ;;  %3524 = vpow2.f32 %v1752_v38 }
 0x597   : > { %v1758_v0 = vmul.f32 1.442695, %v1739_v54 }
 0x599   : > { %2371 = vrot.lane.b32.xlu0 %v3735_v3, %s3767_s9  ;;  %v1738_v3 = vsub.f32 %v4619_v34, %v1709_v62  ;;  %3526 = vpow2.f32 %v1758_v0 }
 0x59b   : > { %v1756_v55 = vmul.f32 1.442695, %v1738_v3 }
 0x59d   : > { %2375 = vrot.lane.b32.xlu0 %v3736_v40, %s3767_s9 }
 0x59f   : > { %v4763_v36 = vpop.eup %3524 }
 0x5a1   : > { %2379 = vrot.lane.b32.xlu0 %v3737_v33, %s3767_s9 }
 0x5a3   : > { %v4765_v3 = vpop.eup %3526 }
 0x5b7   : > { %v1707_v40 = vpop.xlane.xlu0 %1706 }
 0x5b8   : > { %v1737_v33 = vsub.f32 %v4641_v26, %v1707_v40 }
 0x5ba   : > { %v1754_v27 = vmul.f32 1.442695, %v1737_v33 }
 0x5bb   : > { %v1713_v53 = vpop.xlane.xlu0 %1712 }
 0x5bc   : > { %3528 = vpow2.f32 %v1754_v27  ;;  %v1717_v63 = vpop.xlane.xlu1 %1716  ;;  %v1740_v22 = vsub.f32 %v4647_v14, %v1713_v53 }
 0x5bd   : > { %3530 = vpow2.f32 %v1756_v55  ;;  %v1742_v34 = vsub.f32 %v4653_v15, %v1717_v63 }
 0x5be   : > { %v1760_v62 = vmul.f32 1.442695, %v1740_v22 }
 0x5bf   : > { %v1764_v27 = vmul.f32 1.442695, %v1742_v34 }
 0x5c0   : > { %v1719_v5 = vpop.xlane.xlu1 %1718  ;;  %3532 = vpow2.f32 %v1760_v62  ;;  %v2118_v62 = vsel %vm505_vm0, %v2077_v35, 0 }
 0x5c1   : > { %v1743_v6 = vsub.f32 %v4659_v50, %v1719_v5 }
 0x5c3   : > { %v1766_v54 = vmul.f32 1.442695, %v1743_v6 }
 0x5c4   : > { %v1715_v26 = vpop.xlane.xlu1 %1714 }
 0x5c5   : > { %v1741_v38 = vsub.f32 %v4665_v2, %v1715_v26  ;;  %3534 = vpow2.f32 %v1766_v54  ;;  %v2115_v2 = vsel %vm505_vm0, %v4596_v25, 0 }
 0x5c6   : > { %v4768_v0 = vpop.eup %3528 }
 0x5c7   : > { %v4770_v55 = vpop.eup %3530  ;;  %v1762_v14 = vmul.f32 1.442695, %v1741_v38  ;;  %v1816_v53 = vpack.c.bf16 %v4768_v0, %v4763_v36 }
 0x5c8   : > { %v1725_v15 = vpop.xlane.xlu1 %1724  ;;  %v1817_v50 = vpack.c.bf16 %v4765_v3, %v4770_v55 }
 0x5c9   : > { %3536 = vpow2.f32 %v1762_v14  ;;  %3286 = vmatprep.mubr.bf16.mxu1 %v1816_v53 }
 0x5ca   : > { %3538 = vpow2.f32 %v1764_v27  ;;  %3287 = vmatmul.mubr.bf16.vlgmr.msra.gmra.mrb[32].mxu1 %v1817_v50  ;;  %v4780_v5 = vpop.eup %3532  ;;  %v2124_v50 = vsel %vm505_vm0, %v4757_v13, 0 }
 0x5cb   : > { %3303 = vmatpush3.bf16.xpose.msra.mxu1 %v2115_v2 }
 0x5cc   : > { %3391 = vmatprep.subr.msk.bf16.mxu1 %vm505_vm0, %v2077_v35  ;;  %v1721_v40 = vpop.xlane.xlu1 %1720  ;;  %v2121_v35 = vsel %vm505_vm0, %v4750_v39, 0 }
 0x5cd   : > { %v1744_v33 = vsub.f32 %v4677_v23, %v1721_v40  ;;  %v2127_v40 = vsel %vm505_vm0, %v4753_v19, 0 }
 0x5cf   : > { %v1768_v63 = vmul.f32 1.442695, %v1744_v33  ;;  %v4783_v34 = vpop.eup %3534  ;;  %v2085_v33 = vpop.permute.xlu0 %2084 }
 0x5d0   : > { %v1723_v22 = vpop.xlane.xlu1 %1722 }
 0x5d1   : > { %v1745_v6 = vsub.f32 %v4683_v28, %v1723_v22  ;;  %3540 = vpow2.f32 %v1768_v63  ;;  %v1746_v63 = vsub.f32 %v4671_v30, %v1725_v15 }
 0x5d3   : > { %v4786_v54 = vpop.eup %3536  ;;  %v1770_v26 = vmul.f32 1.442695, %v1745_v6  ;;  %3305 = vmatpush3.bf16.xpose.msra.mxu1 %v2118_v62 }
 0x5d4   : > { %v4788_v25 = vpop.eup %3538  ;;  %3392 = vmatprep.subr.msk.bf16.mxu1 %vm505_vm0, %v4750_v39  ;;  %v1818_v23 = vpack.c.bf16 %v4786_v54, %v4780_v5  ;;  %v1733_v38 = vpop.xlane.xlu1 %1732 }
 0x5d5   : > { %3542 = vpow2.f32 %v1770_v26  ;;  %v1819_v28 = vpack.c.bf16 %v4783_v34, %v4788_v25  ;;  %v1750_v15 = vsub.f32 %v4691_v7, %v1733_v38 }
 0x5d6   : > { %3290 = vmatprep.mubr.bf16.mxu1 %v1818_v23 }
 0x5d7   : > { %3291 = vmatmul.mubr.bf16.gmra.mrb[36].mxu1 %v1819_v28 }
 0x5d8   : > { %v1729_v2 = vpop.xlane.xlu1 %1728 }
 0x5d9   : > { %v1748_v6 = vsub.f32 %v4697_v1, %v1729_v2 }
 0x5db   : > { %3307 = vmatpush3.bf16.xpose.msra.mxu1 %v2121_v35  ;;  %v4800_v27 = vpop.eup %3540  ;;  %v1776_v28 = vmul.f32 1.442695, %v1748_v6  ;;  %v2130_v35 = vsel %vm505_vm0, %v2085_v33, 0 }
 0x5dc   : > { %3393 = vmatprep.subr.msk.bf16.mxu1 %vm505_vm0, %v4757_v13  ;;  %v1731_v39 = vpop.xlane.xlu1 %1730  ;;  %v1772_v13 = vmul.f32 1.442695, %v1746_v63 }
 0x5dd   : > { %v1749_v22 = vsub.f32 %v4703_v16, %v1731_v39 }
 0x5de   : > { %3544 = vpow2.f32 %v1772_v13 }
 0x5df   : > { %v4802_v14 = vpop.eup %3542  ;;  %v1778_v62 = vmul.f32 1.442695, %v1749_v22 }
 0x5e0   : > { %v1820_v53 = vpack.c.bf16 %v4802_v14, %v4800_v27  ;;  %v2089_v2 = vpop.permute.xlu1 %2088 }
 0x5e1   : > { %3546 = vpow2.f32 %v1778_v62 }
 0x5e2   : > { %3294 = vmatprep.mubr.bf16.mxu1 %v1820_v53 }
 0x5e3   : > { %3309 = vmatpush3.bf16.xpose.msra.mxu1 %v2124_v50  ;;  %v1780_v50 = vmul.f32 1.442695, %v1750_v15 }
 0x5e4   : > { %3394 = vmatprep.subr.msk.bf16.mxu1 %vm505_vm0, %v4753_v19 }
 0x5e8   : > { %v4823_v39 = vpop.eup %3544 }
 0x5eb   : > { %3311 = vmatpush3.bf16.xpose.msra.mxu1 %v2127_v40  ;;  %v4825_v7 = vpop.eup %3546 }
 0x5ec   : > { %3395 = vmatprep.subr.msk.bf16.mxu1 %vm505_vm0, %v2085_v33  ;;  %v2136_v33 = vsel %vm505_vm0, %v2089_v2, 0 }
 0x5f0   : > { %v1727_v26 = vpop.xlane.xlu0 %1726 }
 0x5f1   : > { %v1747_v23 = vsub.f32 %v4711_v29, %v1727_v26 }
 0x5f3   : > { %v1774_v19 = vmul.f32 1.442695, %v1747_v23  ;;  %3313 = vmatpush3.bf16.xpose.msra.mxu1 %v2130_v35  ;;  %v2067_v35 = vpop.permute.xlu1 %2066 }
 0x5f4   : > { %v1735_v30 = vpop.xlane.xlu0 %1734 }
 0x5f5   : > { %3548 = vpow2.f32 %v1774_v19  ;;  %v1751_v16 = vsub.f32 %v4719_v10, %v1735_v30 }
 0x5f6   : > { %3550 = vpow2.f32 %v1776_v28 }
 0x5f7   : > { %v1782_v1 = vmul.f32 1.442695, %v1751_v16  ;;  %v2071_v30 = vpop.permute.xlu1 %2070 }
 0x5f8   : > { %v2087_v53 = vpop.permute.xlu0 %2086 }
 0x5f9   : > { %3396 = vmatprep.subr.msk.bf16.mxu1 %vm505_vm0, %v2087_v53  ;;  %v2133_v29 = vsel %vm505_vm0, %v2087_v53, 0  ;;  %3552 = vpow2.f32 %v1782_v1 }
 0x5fa   : > { %3554 = vpow2.f32 %v1780_v50 }
 0x5fb   : > { %3315 = vmatpush3.bf16.xpose.msra.mxu1 %v2133_v29 }
 0x5fc   : > { %3397 = vmatprep.subr.msk.bf16.mxu1 %vm505_vm0, %v2089_v2  ;;  %v2059_v22 = vpop.permute.xlu0 %2058  ;;  %v2374_v2 = vpop.permute.xlu1 %2373 }
 0x5ff   : > { %v4827_v38 = vpop.eup %3548 }
 0x600   : > { %v4829_v10 = vpop.eup %3550  ;;  %v1821_v40 = vpack.c.bf16 %v4827_v38, %v4823_v39  ;;  %v2061_v26 = vpop.permute.xlu0 %2060 }
 0x601   : > { %v1822_v63 = vpack.c.bf16 %v4825_v7, %v4829_v10 }
 0x602   : > { %3295 = vmatmul.mubr.bf16.gmra.mrb[40].mxu1 %v1821_v40 }
 0x603   : > { %3298 = vmatprep.mubr.bf16.mxu1 %v1822_v63  ;;  %3317 = vmatpush3.bf16.xpose.msra.mxu1 %v2136_v33  ;;  %v4836_v6 = vpop.eup %3552 }
 0x604   : > { %v4838_v13 = vpop.eup %3554  ;;  %v2063_v23 = vpop.permute.xlu0 %2062 }
 0x605   : > { %v1823_v62 = vpack.c.bf16 %v4836_v6, %v4838_v13 }
 0x608   : > { %v2065_v28 = vpop.permute.xlu0 %2064 }
 0x60a   : > { %3299 = vmatmul.mubr.bf16.gmra.mrb[44].mxu1 %v1823_v62 }
 0x60b   : > { %3318 = vmatprep.mubr.msk.bf16.mxu1 %vm505_vm0, %v2059_v22 }
 0x60c   : > { %v2069_v19 = vpop.permute.xlu0 %2068 }
 0x610   : > { %v2073_v15 = vpop.permute.xlu0 %2072 }
 0x612   : > { %3319 = vmatmul.mubr.msk.bf16.vlgmr.msra.gmra.mrb[48].mxu1 %vm505_vm0, %v2061_v26  ;;  %v2378_v26 = vpop.permute.xlu1 %2377 }
 0x613   : > { %3322 = vmatprep.mubr.msk.bf16.mxu1 %vm505_vm0, %v2063_v23 }
 0x614   : > { %v2372_v29 = vpop.permute.xlu0 %2371 }
 0x615   : > { %3334 = vmatprep.subr.bf16.mxu0 %v2372_v29 }
 0x616   : > { %3335 = vmatpush3.bf16.msra.mxu0 %v2372_v29 }
 0x617   : > { %3336 = vmatprep.subr.bf16.mxu0 %v2374_v2 }
 0x618   : > { %v2376_v62 = vpop.permute.xlu0 %2375 }
 0x61a   : > { %3323 = vmatmul.mubr.msk.bf16.gmra.mrb[52].mxu1 %vm505_vm0, %v2065_v28  ;;  %3337 = vmatpush3.bf16.msra.mxu0 %v2374_v2  ;;  %v2382_v28 = vpop.permute.xlu1 %2381 }
 0x61b   : > { %3326 = vmatprep.mubr.msk.bf16.mxu1 %vm505_vm0, %v2067_v35  ;;  %3338 = vmatprep.subr.bf16.mxu0 %v2376_v62 }
 0x61c   : > { %v2380_v23 = vpop.permute.xlu0 %2379 }
 0x61e   : > { %3339 = vmatpush3.bf16.msra.mxu0 %v2376_v62 }
 0x61f   : > { %3340 = vmatprep.subr.bf16.mxu0 %v2378_v26 }
 0x622   : > { %3327 = vmatmul.mubr.msk.bf16.gmra.mrb[56].mxu1 %vm505_vm0, %v2069_v19  ;;  %3341 = vmatpush3.bf16.msra.mxu0 %v2378_v26 }
 0x623   : > { %3330 = vmatprep.mubr.msk.bf16.mxu1 %vm505_vm0, %v2071_v30  ;;  %3342 = vmatprep.subr.bf16.mxu0 %v2380_v23 }
 0x626   : > { %3343 = vmatpush3.bf16.msra.mxu0 %v2380_v23 }
 0x627   : > { %3344 = vmatprep.subr.bf16.mxu0 %v2382_v28 }
 0x62a   : > { %3331 = vmatmul.mubr.msk.bf16.gmra.mrb[60].mxu1 %vm505_vm0, %v2073_v15  ;;  %3345 = vmatpush3.bf16.msra.mxu0 %v2382_v28 }
 0x69d   : > { %v4850_v16 = vpop.f32.mrb[32].mxu1 }
 0x69e   : > { %v4852_v1 = vpop.f32.mrb[33].mxu1 }
 0x69f   : > { %v4854_v53 = vpop.f32.mrb[34].mxu1 }
 0x6a0   : > { %v4856_v50 = vpop.f32.mrb[35].mxu1 }
 0x6aa   : > { %v4858_v40 = vpop.f32.mrb[36].mxu1 }
 0x6ab   : > { %5458 = vst [vmem:[#allocation54_spill] sm:$0xff] %v4858_v40  ;;  %v4860_v33 = vpop.f32.mrb[37].mxu1 }
 0x6ac   : > { %v4862_v63 = vpop.f32.mrb[38].mxu1 }
 0x6ad   : > { %v4864_v22 = vpop.f32.mrb[39].mxu1 }
 0x6d5   : > { %v4866_v35 = vpop.f32.mrb[40].mxu1 }
 0x6d6   : > { %5459 = vst [vmem:[#allocation55_spill] sm:$0xff] %v4866_v35  ;;  %v4868_v19 = vpop.f32.mrb[41].mxu1 }
 0x6d7   : > { %5460 = vst [vmem:[#allocation56_spill] sm:$0xff] %v4868_v19  ;;  %v4870_v30 = vpop.f32.mrb[42].mxu1 }
 0x6d8   : > { %5461 = vst [vmem:[#allocation57_spill] sm:$0xff] %v4870_v30  ;;  %v4872_v15 = vpop.f32.mrb[43].mxu1 }
 0x6d9   : > { %5462 = vst [vmem:[#allocation58_spill] sm:$0xff] %v4872_v15 }
 0x6dd   : > { %v4874_v29 = vpop.f32.mrb[44].mxu1 }
 0x6de   : > { %5463 = vst [vmem:[#allocation59_spill] sm:$0xff] %v4874_v29  ;;  %v4876_v2 = vpop.f32.mrb[45].mxu1 }
 0x6df   : > { %5464 = vst [vmem:[#allocation60_spill] sm:$0xff] %v4876_v2  ;;  %v4878_v62 = vpop.f32.mrb[46].mxu1 }
 0x6e0   : > { %5465 = vst [vmem:[#allocation61_spill] sm:$0xff] %v4878_v62  ;;  %v4880_v26 = vpop.f32.mrb[47].mxu1 }
 0x6e1   : > { %5466 = vst [vmem:[#allocation62_spill] sm:$0xff] %v4880_v26 }
 0x6e5   : > { %v3320_v23 = vpop.f32.mrb[48].mxu1 }
 0x6e6   : > { %v4885_v28 = vsel %vm379_vm1, %v3320_v23, -1e+09  ;;  %v2172_v35 = vpop.f32.mrb[49].mxu1  ;;  %vm5467_vm1 = vcmp.eq.s32.totalorder %v4120_v11, %v4018_v60 }
 0x6e7   : > { %2255 = vmax.xlane.f32.xlu1 %v4885_v28  ;;  %v3321_v19 = vpop.f32.mrb[50].mxu1  ;;  %v4896_v2 = vsel %vm377_vm3, %v2172_v35, -1e+09  ;;  %vm1494_vm3 = vcmask 523520  }
 0x6e8   : > { %v2175_v30 = vpop.f32.mrb[51].mxu1  ;;  %v4903_v23 = vsel %vm380_vm4, %v3321_v19, -1e+09  ;;  %vm2588_vm4 = vcmask 1048320  }
 0x6e9   : > { %v4891_v29 = vsel %vm378_vm2, %v2175_v30, -1e+09  ;;  %vm5468_vm2 = vmmov %vm5457_vm13 }
 0x6ea   : > { %2253 = vmax.xlane.f32.xlu0 %v4891_v29 }
 0x6eb   : > { %2251 = vmax.xlane.f32.xlu1 %v4896_v2 }
 0x6ed   : > { %v3324_v41 = vpop.f32.mrb[52].mxu1 }
 0x6ee   : > { %v2188_v62 = vpop.f32.mrb[53].mxu1  ;;  %v4915_v30 = vsel %vm383_vm5, %v3324_v41, -1e+09 }
 0x6ef   : > { %v4908_v59 = vsel %vm381_vm6, %v2188_v62, -1e+09  ;;  %2257 = vmax.xlane.f32.xlu1 %v4903_v23  ;;  %v3325_v58 = vpop.f32.mrb[54].mxu1 }
 0x6f0   : > { %2259 = vmax.xlane.f32.xlu0 %v4908_v59  ;;  %v2191_v35 = vpop.f32.mrb[55].mxu1  ;;  %v4921_v61 = vsel %vm384_vm7, %v3325_v58, -1e+09 }
 0x6f1   : > { %v4927_v9 = vsel %vm382_vm9, %v2191_v35, -1e+09 }
 0x6f3   : > { %2263 = vmax.xlane.f32.xlu1 %v4915_v30 }
 0x6f5   : > { %v3328_v42 = vpop.f32.mrb[56].mxu1 }
 0x6f6   : > { %v2204_v19 = vpop.f32.mrb[57].mxu1  ;;  %v4933_v45 = vsel %vm387_vm11, %v3328_v42, -1e+09 }
 0x6f7   : > { %2265 = vmax.xlane.f32.xlu1 %v4921_v61  ;;  %v3329_v62 = vpop.f32.mrb[58].mxu1  ;;  %v4961_v11 = vsel %vm385_vm8, %v2204_v19, -1e+09 }
 0x6f8   : > { %v2207_v26 = vpop.f32.mrb[59].mxu1 }
 0x6f9   : > { %v4939_v44 = vsel %vm386_vm10, %v2207_v26, -1e+09  ;;  %v4967_v26 = vsel %vm5468_vm2, %v3329_v62, -1e+09 }
 0x6fb   : > { %2261 = vmax.xlane.f32.xlu1 %v4927_v9 }
 0x6fd   : > { %v3332_v41 = vpop.f32.mrb[60].mxu1 }
 0x6fe   : > { %v2220_v58 = vpop.f32.mrb[61].mxu1  ;;  %v4945_v35 = vsel %vm5467_vm1, %v3332_v41, -1e+09  ;;  %v5483_v41 = vld [vmem:[#allocation25_spill] sm:$0xff] }
 0x6ff   : > { %2271 = vmax.xlane.f32.xlu1 %v4933_v45  ;;  %v3333_v40 = vpop.f32.mrb[62].mxu1  ;;  %v4953_v42 = vsel %vm389_vm14, %v2220_v58, -1e+09 }
 0x700   : > { %v2223_v15 = vpop.f32.mrb[63].mxu1  ;;  %v4979_v17 = vsel %vm392_vm15, %v3333_v40, -1e+09 }
 0x701   : > { %v4973_v31 = vsel %vm390_vm12, %v2223_v15, -1e+09  ;;  %v5482_v15 = vld [vmem:[#allocation18_spill] sm:$0xff] }
 0x703   : > { %2269 = vmax.xlane.f32.xlu1 %v4939_v44 }
 0x706   : > { %2383 = vrot.lane.b32.xlu0 %v3738_v21, %s3767_s9 }
 0x707   : > { %2279 = vmax.xlane.f32.xlu1 %v4945_v35 }
 0x70b   : > { %2275 = vmax.xlane.f32.xlu1 %v4953_v42 }
 0x71c   : > { %2385 = vrot.lane.b32.xlu1 %v3739_v49, %s3767_s9  ;;  %v5486_v49 = vld [vmem:[#allocation23_spill] sm:$0xff] }
 0x725   : > { %2267 = vmax.xlane.f32.xlu0 %v4961_v11 }
 0x729   : > { %2273 = vmax.xlane.f32.xlu0 %v4967_v26 }
 0x72d   : > { %2277 = vmax.xlane.f32.xlu0 %v4973_v31 }
 0x731   : > { %2281 = vmax.xlane.f32.xlu0 %v4979_v17 }
 0x735   : > { %1239 = vadd.xlane.f32.xlu0 %v4492_v20 }
 0x739   : > { %1241 = vadd.xlane.f32.xlu0 %v4494_v48  ;;  %v5472_v48 = vld [vmem:[#allocation11_spill] sm:$0xff] }
 0x73d   : > { %1243 = vadd.xlane.f32.xlu0 %v4489_v46 }
 0x740   : > { %1237 = vadd.xlane.f32.xlu1 %v4487_v37 }
 0x741   : > { %1245 = vadd.xlane.f32.xlu0 %v4504_v12 }
 0x744   : > { %1251 = vadd.xlane.f32.xlu1 %v4507_v24 }
 0x745   : > { %1247 = vadd.xlane.f32.xlu0 %v4510_v32 }
 0x748   : > { %1255 = vadd.xlane.f32.xlu1 %v4526_v43  ;;  %v5474_v43 = vld [vmem:[#allocation12_spill] sm:$0xff] }
 0x749   : > { %1249 = vadd.xlane.f32.xlu0 %v4512_v57 }
 0x74c   : > { %1259 = vadd.xlane.f32.xlu1 %v4551_v18  ;;  %v5475_v18 = vld [vmem:[#allocation19_spill] sm:$0xff] }
 0x74d   : > { %1253 = vadd.xlane.f32.xlu0 %v4524_v47  ;;  %v5473_v47 = vld [vmem:[#allocation14_spill] sm:$0xff] }
 0x750   : > { %1263 = vadd.xlane.f32.xlu1 %v4549_v4 }
 0x751   : > { %1257 = vadd.xlane.f32.xlu0 %v4547_v8 }
 0x754   : > { %1267 = vadd.xlane.f32.xlu1 %v5469_v51 }
 0x755   : > { %1261 = vadd.xlane.f32.xlu0 %v5470_v52 }
 0x758   : > { %1786 = vadd.xlane.f32.xlu1 %v4768_v0 }
 0x759   : > { %1265 = vadd.xlane.f32.xlu0 %v5471_v56 }
 0x75c   : > { %1790 = vadd.xlane.f32.xlu1 %v4765_v3 }
 0x75d   : > { %1784 = vadd.xlane.f32.xlu0 %v4763_v36  ;;  %v5476_v36 = vld [vmem:[#allocation13_spill] sm:$0xff] }
 0x760   : > { %1794 = vadd.xlane.f32.xlu1 %v4786_v54 }
 0x761   : > { %1788 = vadd.xlane.f32.xlu0 %v4770_v55  ;;  %v5477_v55 = vld [vmem:[#allocation17_spill] sm:$0xff] }
 0x764   : > { %1798 = vadd.xlane.f32.xlu1 %v4783_v34 }
 0x765   : > { %1792 = vadd.xlane.f32.xlu0 %v4780_v5  ;;  %v5478_v5 = vld [vmem:[#allocation16_spill] sm:$0xff] }
 0x768   : > { %1802 = vadd.xlane.f32.xlu1 %v4802_v14 }
 0x769   : > { %1796 = vadd.xlane.f32.xlu0 %v4788_v25 }
 0x76c   : > { %1806 = vadd.xlane.f32.xlu1 %v4827_v38 }
 0x76d   : > { %1800 = vadd.xlane.f32.xlu0 %v4800_v27  ;;  %v5479_v27 = vld [vmem:[#allocation20_spill] sm:$0xff] }
 0x770   : > { %1810 = vadd.xlane.f32.xlu1 %v4825_v7 }
 0x771   : > { %1804 = vadd.xlane.f32.xlu0 %v4823_v39  ;;  %v5480_v39 = vld [vmem:[#allocation15_spill] sm:$0xff] }
 0x774   : > { %v2256_v60 = vpop.xlane.xlu1 %2255  ;;  %1814 = vadd.xlane.f32.xlu1 %v4836_v6 }
 0x775   : > { %1808 = vadd.xlane.f32.xlu0 %v4829_v10  ;;  %v2285_v10 = vsub.f32 %v4885_v28, %v2256_v60  ;;  %v5487_v60 = vld [vmem:[#allocation26_spill] sm:$0xff] }
 0x777   : > { %v2254_v37 = vpop.xlane.xlu0 %2253  ;;  %v2303_v19 = vmul.f32 1.442695, %v2285_v10 }
 0x778   : > { %v2284_v46 = vsub.f32 %v4891_v29, %v2254_v37  ;;  %v2252_v20 = vpop.xlane.xlu1 %2251  ;;  %749 = vadd.xlane.f32.xlu1 %v5472_v48 }
 0x779   : > { %v2283_v12 = vsub.f32 %v4896_v2, %v2252_v20  ;;  %1812 = vadd.xlane.f32.xlu0 %v4838_v13  ;;  %v5481_v13 = vld [vmem:[#allocation22_spill] sm:$0xff] }
 0x77a   : > { %v2301_v24 = vmul.f32 1.442695, %v2284_v46 }
 0x77b   : > { %v2299_v32 = vmul.f32 1.442695, %v2283_v12 }
 0x77c   : > { %3556 = vpow2.f32 %v2301_v24  ;;  %v2258_v57 = vpop.xlane.xlu1 %2257  ;;  %753 = vadd.xlane.f32.xlu1 %v5473_v47 }
 0x77d   : > { %3558 = vpow2.f32 %v2299_v32  ;;  %747 = vadd.xlane.f32.xlu0 %v5474_v43  ;;  %v2260_v8 = vpop.xlane.xlu0 %2259  ;;  %v2286_v7 = vsub.f32 %v4903_v23, %v2258_v57  ;;  %v5484_v23 = vld [vmem:[#allocation21_spill] sm:$0xff] }
 0x77e   : > { %v2287_v40 = vsub.f32 %v4908_v59, %v2260_v8  ;;  %v5485_v59 = vld [vmem:[#allocation24_spill] sm:$0xff] }
 0x77f   : > { %v2305_v29 = vmul.f32 1.442695, %v2286_v7 }
 0x780   : > { %v2264_v4 = vpop.xlane.xlu1 %2263  ;;  %757 = vadd.xlane.f32.xlu1 %v5475_v18  ;;  %v2307_v58 = vmul.f32 1.442695, %v2287_v40 }
 0x781   : > { %751 = vadd.xlane.f32.xlu0 %v5476_v36  ;;  %v2384_v3 = vpop.permute.xlu0 %2383  ;;  %3560 = vpow2.f32 %v2305_v29  ;;  %v2289_v28 = vsub.f32 %v4915_v30, %v2264_v4 }
 0x782   : > { %3346 = vmatprep.subr.bf16.mxu0 %v2384_v3 }
 0x783   : > { %3347 = vmatpush3.bf16.msra.mxu0 %v2384_v3  ;;  %v2311_v52 = vmul.f32 1.442695, %v2289_v28 }
 0x784   : > { %v2266_v0 = vpop.xlane.xlu1 %2265  ;;  %761 = vadd.xlane.f32.xlu1 %v5477_v55 }
 0x785   : > { %755 = vadd.xlane.f32.xlu0 %v5478_v5 }
 0x786   : > { %v5023_v34 = vpop.eup %3556 }
 0x787   : > { %v5025_v54 = vpop.eup %3558 }
 0x788   : > { %v2262_v25 = vpop.xlane.xlu1 %2261  ;;  %765 = vadd.xlane.f32.xlu1 %v5479_v27  ;;  %v2363_v14 = vpack.c.bf16 %v5023_v34, %v5025_v54 }
 0x789   : > { %759 = vadd.xlane.f32.xlu0 %v5480_v39  ;;  %v2288_v38 = vsub.f32 %v4927_v9, %v2262_v25  ;;  %v2290_v9 = vsub.f32 %v4921_v61, %v2266_v0 }
 0x78a   : > { %3350 = vmatprep.mubr.bf16.mxu0 %v2363_v14 }
 0x78b   : > { %v2309_v2 = vmul.f32 1.442695, %v2288_v38  ;;  %v2313_v51 = vmul.f32 1.442695, %v2290_v9  ;;  %v5044_v37 = vpop.eup %3560 }
 0x78c   : > { %v2272_v6 = vpop.xlane.xlu1 %2271  ;;  %769 = vadd.xlane.f32.xlu1 %v5481_v13 }
 0x78d   : > { %763 = vadd.xlane.f32.xlu0 %v5482_v15  ;;  %3562 = vpow2.f32 %v2309_v2  ;;  %v2293_v43 = vsub.f32 %v4933_v45, %v2272_v6 }
 0x78e   : > { %3564 = vpow2.f32 %v2303_v19 }
 0x78f   : > { %3566 = vpow2.f32 %v2307_v58  ;;  %v2319_v3 = vmul.f32 1.442695, %v2293_v43  ;;  %v5490_v43 = vld [vmem:[#allocation6_spill] sm:$0xff] }
 0x790   : > { %v2270_v62 = vpop.xlane.xlu1 %2269  ;;  %773 = vadd.xlane.f32.xlu1 %v5483_v41  ;;  %3568 = vpow2.f32 %v2313_v51 }
 0x791   : > { %767 = vadd.xlane.f32.xlu0 %v5484_v23  ;;  %3570 = vpow2.f32 %v2311_v52  ;;  %v2292_v47 = vsub.f32 %v4939_v44, %v2270_v62 }
 0x793   : > { %v2317_v8 = vmul.f32 1.442695, %v2292_v47 }
 0x794   : > { %v2280_v21 = vpop.xlane.xlu1 %2279  ;;  %777 = vadd.xlane.f32.xlu1 %v5485_v59 }
 0x795   : > { %771 = vadd.xlane.f32.xlu0 %v5486_v49  ;;  %3572 = vpow2.f32 %v2317_v8  ;;  %v2297_v27 = vsub.f32 %v4945_v35, %v2280_v21  ;;  %v5488_v21 = vld [vmem:[#allocation8_spill] sm:$0xff] }
 0x797   : > { %v5046_v46 = vpop.eup %3562 }
 0x798   : > { %v2276_v56 = vpop.xlane.xlu1 %2275  ;;  %v5048_v30 = vpop.eup %3564 }
 0x799   : > { %775 = vadd.xlane.f32.xlu0 %v5487_v60  ;;  %v5050_v20 = vpop.eup %3566  ;;  %v2364_v48 = vpack.c.bf16 %v5044_v37, %v5048_v30  ;;  %v2295_v0 = vsub.f32 %v4953_v42, %v2276_v56  ;;  %v5489_v56 = vld [vmem:[#allocation5_spill] sm:$0xff] }
 0x79a   : > { %v2365_v12 = vpack.c.bf16 %v5046_v46, %v5050_v20  ;;  %v5056_v24 = vpop.eup %3568 }
 0x79b   : > { %v5058_v32 = vpop.eup %3570  ;;  %v2323_v44 = vmul.f32 1.442695, %v2295_v0 }
 0x79c   : > { %v2386_v61 = vpop.permute.xlu1 %2385  ;;  %v2366_v57 = vpack.c.bf16 %v5056_v24, %v5058_v32 }
 0x79d   : > { %3348 = vmatprep.subr.bf16.mxu0 %v2386_v61 }
 0x79e   : > { %3349 = vmatpush3.bf16.msra.mxu0 %v2386_v61 }
 0x79f   : > { %v5070_v38 = vpop.eup %3572 }
 0x7a1   : > { %3351 = vmatmul.mubr.bf16.vlgmr.msra.gmra.mrb[48].mxu0 %v2364_v48 }
 0x7a2   : > { %3354 = vmatprep.mubr.bf16.mxu0 %v2365_v12 }
 0x7a9   : > { %3355 = vmatmul.mubr.bf16.gmra.mrb[52].mxu0 %v2366_v57 }
 0x7b2   : > { %v2268_v4 = vpop.xlane.xlu0 %2267 }
 0x7b3   : > { %v2291_v18 = vsub.f32 %v4961_v11, %v2268_v4  ;;  %v2327_v11 = vmul.f32 1.442695, %v2297_v27 }
 0x7b5   : > { %v2315_v36 = vmul.f32 1.442695, %v2291_v18 }
 0x7b6   : > { %v2274_v55 = vpop.xlane.xlu0 %2273 }
 0x7b7   : > { %3574 = vpow2.f32 %v2315_v36  ;;  %v2294_v5 = vsub.f32 %v4967_v26, %v2274_v55  ;;  %v5491_v36 = vld [vmem:[#allocation43_spill] sm:$0xff] }
 0x7b8   : > { %3576 = vpow2.f32 %v2319_v3  ;;  %v5492_v55 = vld [vmem:[#allocation7_spill] sm:$0xff] }
 0x7b9   : > { %v2321_v25 = vmul.f32 1.442695, %v2294_v5 }
 0x7ba   : > { %v2278_v14 = vpop.xlane.xlu0 %2277 }
 0x7bb   : > { %3578 = vpow2.f32 %v2321_v25  ;;  %v2296_v45 = vsub.f32 %v4973_v31, %v2278_v14 }
 0x7bc   : > { %3580 = vpow2.f32 %v2323_v44 }
 0x7bd   : > { %v2325_v39 = vmul.f32 1.442695, %v2296_v45  ;;  %v5493_v45 = vld [vmem:[#allocation45_spill] sm:$0xff] }
 0x7be   : > { %v2282_v7 = vpop.xlane.xlu0 %2281 }
 0x7bf   : > { %3582 = vpow2.f32 %v2325_v39  ;;  %v2298_v42 = vsub.f32 %v4979_v17, %v2282_v7 }
 0x7c0   : > { %3584 = vpow2.f32 %v2327_v11 }
 0x7c1   : > { %v5072_v10 = vpop.eup %3574  ;;  %v2329_v26 = vmul.f32 1.442695, %v2298_v42  ;;  %v5494_v42 = vld [vmem:[#allocation9_spill] sm:$0xff] }
 0x7c2   : > { %v1240_v6 = vpop.xlane.xlu0 %1239  ;;  %v2367_v35 = vpack.c.bf16 %v5070_v38, %v5072_v10  ;;  %v5076_v13 = vpop.eup %3576 }
 0x7c3   : > { %3586 = vpow2.f32 %v2329_v26 }
 0x7c4   : > { %3588 = vrcp.f32 %v1240_v6  ;;  %3358 = vmatprep.mubr.bf16.mxu0 %v2367_v35 }
 0x7c5   : > { %v5078_v31 = vpop.eup %3578 }
 0x7c6   : > { %v1242_v40 = vpop.xlane.xlu0 %1241  ;;  %v2368_v17 = vpack.c.bf16 %v5078_v31, %v5076_v13  ;;  %v5082_v15 = vpop.eup %3580 }
 0x7c7   : > { %3590 = vrcp.f32 %v1242_v40  ;;  %v5495_v40 = vld [vmem:[#allocation44_spill] sm:$0xff] }
 0x7c8   : > { %3359 = vmatmul.mubr.bf16.gmra.mrb[56].mxu0 %v2368_v17 }
 0x7c9   : > { %v5084_v29 = vpop.eup %3582 }
 0x7ca   : > { %v1244_v2 = vpop.xlane.xlu0 %1243  ;;  %v2369_v19 = vpack.c.bf16 %v5084_v29, %v5082_v15  ;;  %v5088_v62 = vpop.eup %3584 }
 0x7cc   : > { %3362 = vmatprep.mubr.bf16.mxu0 %v2369_v19 }
 0x7cd   : > { %v5090_v41 = vpop.eup %3586  ;;  %v1238_v58 = vpop.xlane.xlu1 %1237 }
 0x7ce   : > { %v3589_v23 = vpop.eup %3588  ;;  %3592 = vrcp.f32 %v1238_v58  ;;  %v1246_v9 = vpop.xlane.xlu0 %1245  ;;  %v2370_v28 = vpack.c.bf16 %v5090_v41, %v5088_v62  ;;  %v5496_v58 = vld [vmem:[#allocation47_spill] sm:$0xff] }
 0x7cf   : > { %3594 = vrcp.f32 %v1246_v9  ;;  %v1415_v59 = vmul.f32 %v3589_v23, %v5488_v21  ;;  %v5497_v21 = vld [vmem:[#allocation49_spill] sm:$0xff] }
 0x7d0   : > { %3596 = vrcp.f32 %v1244_v2  ;;  %3363 = vmatmul.mubr.bf16.gmra.mrb[60].mxu0 %v2370_v28 }
 0x7d1   : > { %v3591_v49 = vpop.eup %3590  ;;  %1448 = vrot.lane.b32.xlu1 %v1415_v59, %s3767_s9  ;;  %v1252_v51 = vpop.xlane.xlu1 %1251 }
 0x7d2   : > { %v1248_v52 = vpop.xlane.xlu0 %1247  ;;  %v1416_v60 = vmul.f32 %v3591_v49, %v5489_v56 }
 0x7d3   : > { %3598 = vrcp.f32 %v1248_v52  ;;  %v5498_v52 = vld [vmem:[#allocation46_spill] sm:$0xff] }
 0x7d5   : > { %1450 = vrot.lane.b32.xlu1 %v1416_v60, %s3767_s9  ;;  %v1256_v61 = vpop.xlane.xlu1 %1255 }
 0x7d6   : > { %v1250_v48 = vpop.xlane.xlu0 %1249 }
 0x7d7   : > { %3600 = vrcp.f32 %v1250_v48  ;;  %v5499_v48 = vld [vmem:[#allocation48_spill] sm:$0xff] }
 0x7d8   : > { %v3593_v12 = vpop.eup %3592  ;;  %3602 = vrcp.f32 %v1252_v51 }
 0x7d9   : > { %v3595_v57 = vpop.eup %3594  ;;  %v1260_v47 = vpop.xlane.xlu1 %1259  ;;  %v1414_v8 = vmul.f32 %v3593_v12, %v5490_v43  ;;  %v5500_v43 = vld [vmem:[#allocation51_spill] sm:$0xff] }
 0x7da   : > { %v3597_v4 = vpop.eup %3596  ;;  %v1254_v18 = vpop.xlane.xlu0 %1253  ;;  %v1418_v3 = vmul.f32 %v3595_v57, %v5491_v36  ;;  %v5501_v36 = vld [vmem:[#allocation53_spill] sm:$0xff] }
 0x7db   : > { %3604 = vrcp.f32 %v1254_v18  ;;  %1446 = vrot.lane.b32.xlu0 %v1414_v8, %s3767_s9  ;;  %v1417_v5 = vmul.f32 %v3597_v4, %v5492_v55 }
 0x7dc   : > { %3606 = vrcp.f32 %v1256_v61  ;;  %1454 = vrot.lane.b32.xlu1 %v1418_v3, %s3767_s9 }
 0x7dd   : > { %v1264_v0 = vpop.xlane.xlu1 %1263  ;;  %v3599_v25 = vpop.eup %3598 }
 0x7de   : > { %v1258_v27 = vpop.xlane.xlu0 %1257  ;;  %v1419_v39 = vmul.f32 %v3599_v25, %v5493_v45  ;;  %v5503_v45 = vld [vmem:[#allocation52_spill] sm:$0xff] }
 0x7df   : > { %3608 = vrcp.f32 %v1258_v27  ;;  %1452 = vrot.lane.b32.xlu0 %v1417_v5, %s3767_s9  ;;  %v5502_v5 = vld [vmem:[#allocation50_spill] sm:$0xff] }
 0x7e0   : > { %3610 = vrcp.f32 %v1260_v47 }
 0x7e1   : > { %v3601_v44 = vpop.eup %3600  ;;  %v1268_v14 = vpop.xlane.xlu1 %1267 }
 0x7e2   : > { %v3603_v11 = vpop.eup %3602  ;;  %v1262_v7 = vpop.xlane.xlu0 %1261  ;;  %v1420_v26 = vmul.f32 %v3601_v44, %v5494_v42 }
 0x7e3   : > { %3612 = vrcp.f32 %v1262_v7  ;;  %1456 = vrot.lane.b32.xlu0 %v1419_v39, %s3767_s9  ;;  %v1421_v17 = vmul.f32 %v3603_v11, %v5495_v40 }
 0x7e4   : > { %3614 = vrcp.f32 %v1264_v0  ;;  %1458 = vrot.lane.b32.xlu1 %v1420_v26, %s3767_s9 }
 0x7e5   : > { %v3605_v6 = vpop.eup %3604  ;;  %v1787_v35 = vpop.xlane.xlu1 %1786 }
 0x7e6   : > { %v3607_v2 = vpop.eup %3606  ;;  %v1266_v19 = vpop.xlane.xlu0 %1265  ;;  %v1422_v23 = vmul.f32 %v3605_v6, %v5496_v58 }
 0x7e7   : > { %3616 = vrcp.f32 %v1266_v19  ;;  %1460 = vrot.lane.b32.xlu0 %v1421_v17, %s3767_s9  ;;  %v1423_v59 = vmul.f32 %v3607_v2, %v5497_v21 }
 0x7e8   : > { %3618 = vrcp.f32 %v1268_v14  ;;  %1462 = vrot.lane.b32.xlu1 %v1422_v23, %s3767_s9 }
 0x7e9   : > { %v3609_v9 = vpop.eup %3608  ;;  %v1791_v28 = vpop.xlane.xlu1 %1790 }
 0x7ea   : > { %v3611_v49 = vpop.eup %3610  ;;  %3620 = vrcp.f32 %v1791_v28  ;;  %v1785_v51 = vpop.xlane.xlu0 %1784  ;;  %v1424_v56 = vmul.f32 %v3609_v9, %v5498_v52  ;;  %v5505_v52 = vld [vmem:[#allocation54_spill] sm:$0xff] }
 0x7eb   : > { %3622 = vrcp.f32 %v1785_v51  ;;  %1464 = vrot.lane.b32.xlu0 %v1423_v59, %s3767_s9  ;;  %v1425_v12 = vmul.f32 %v3611_v49, %v5499_v48  ;;  %v5504_v59 = vld [vmem:[#allocation58_spill] sm:$0xff]  ;;  %v5506_v48 = vld [vmem:[#allocation57_spill] sm:$0xff] }
 0x7ec   : > { %3624 = vrcp.f32 %v1787_v35  ;;  %1466 = vrot.lane.b32.xlu1 %v1424_v56, %s3767_s9 }
 0x7ed   : > { %v3613_v60 = vpop.eup %3612  ;;  %v1795_v61 = vpop.xlane.xlu1 %1794 }
 0x7ee   : > { %v3615_v57 = vpop.eup %3614  ;;  %3626 = vrcp.f32 %v1795_v61  ;;  %v1789_v47 = vpop.xlane.xlu0 %1788  ;;  %v1426_v8 = vmul.f32 %v3613_v60, %v5500_v43 }
 0x7ef   : > { %3628 = vrcp.f32 %v1789_v47  ;;  %1468 = vrot.lane.b32.xlu0 %v1425_v12, %s3767_s9  ;;  %v1427_v3 = vmul.f32 %v3615_v57, %v5501_v36  ;;  %v5507_v57 = vld [vmem:[#allocation56_spill] sm:$0xff] }
 0x7f0   : > { %1470 = vrot.lane.b32.xlu1 %v1426_v8, %s3767_s9 }
 0x7f1   : > { %v3617_v4 = vpop.eup %3616  ;;  %v1799_v18 = vpop.xlane.xlu1 %1798 }
 0x7f2   : > { %v3619_v0 = vpop.eup %3618  ;;  %3630 = vrcp.f32 %v1799_v18  ;;  %v1793_v55 = vpop.xlane.xlu0 %1792  ;;  %v1428_v25 = vmul.f32 %v3617_v4, %v5502_v5  ;;  %v5508_v18 = vld [vmem:[#allocation62_spill] sm:$0xff] }
 0x7f3   : > { %3632 = vrcp.f32 %v1793_v55  ;;  %1472 = vrot.lane.b32.xlu0 %v1427_v3, %s3767_s9  ;;  %v1429_v39 = vmul.f32 %v3619_v0, %v5503_v45  ;;  %v5509_v0 = vld [vmem:[#allocation55_spill] sm:$0xff] }
 0x7f4   : > { %v3621_v27 = vpop.eup %3620  ;;  %1474 = vrot.lane.b32.xlu1 %v1428_v25, %s3767_s9 }
 0x7f5   : > { %v3623_v44 = vpop.eup %3622  ;;  %v1803_v14 = vpop.xlane.xlu1 %1802  ;;  %v5126_v11 = vmul.f32 %v3621_v27, %v4854_v53 }
 0x7f6   : > { %v3625_v7 = vpop.eup %3624  ;;  %3634 = vrcp.f32 %v1803_v14  ;;  %v1797_v42 = vpop.xlane.xlu0 %1796  ;;  %v1961_v26 = vmul.f32 %v3623_v44, %v4852_v1  ;;  %v5510_v44 = vld [vmem:[#allocation61_spill] sm:$0xff] }
 0x7f7   : > { %3636 = vrcp.f32 %v1797_v42  ;;  %1476 = vrot.lane.b32.xlu0 %v1429_v39, %s3767_s9  ;;  %v1962_v17 = vmul.f32 %v3625_v7, %v4856_v50  ;;  %v5511_v39 = vld [vmem:[#allocation60_spill] sm:$0xff] }
 0x7f8   : > { %v3627_v6 = vpop.eup %3626  ;;  %1993 = vrot.lane.b32.xlu1 %v1961_v26, %s3766_s8 }
 0x7f9   : > { %v3629_v35 = vpop.eup %3628  ;;  %v1807_v40 = vpop.xlane.xlu1 %1806  ;;  %v5133_v2 = vmul.f32 %v3627_v6, %v4864_v22 }
 0x7fa   : > { %3638 = vrcp.f32 %v1807_v40  ;;  %v1801_v53 = vpop.xlane.xlu0 %1800  ;;  %v1963_v19 = vmul.f32 %v3629_v35, %v4850_v16  ;;  %v5512_v35 = vld [vmem:[#allocation30_spill] sm:$0xff] }
 0x7fb   : > { %3640 = vrcp.f32 %v1801_v53  ;;  %1995 = vrot.lane.b32.xlu0 %v1962_v17, %s3766_s8  ;;  %v5513_v53 = vld [vmem:[#allocation59_spill] sm:$0xff] }
 0x7fc   : > { %v3631_v1 = vpop.eup %3630  ;;  %1997 = vrot.lane.b32.xlu1 %v1963_v19, %s3766_s8 }
 0x7fd   : > { %v3633_v58 = vpop.eup %3632  ;;  %v1811_v23 = vpop.xlane.xlu1 %1810  ;;  %v5139_v9 = vmul.f32 %v3631_v1, %v4862_v63 }
 0x7fe   : > { %3642 = vrcp.f32 %v1811_v23  ;;  %v1805_v50 = vpop.xlane.xlu0 %1804  ;;  %v5142_v22 = vmul.f32 %v3633_v58, %v4860_v33 }
 0x7ff   : > { %3644 = vrcp.f32 %v1805_v50  ;;  %v5514_v50 = vld [vmem:[#allocation29_spill] sm:$0xff] }
 0x800   : > { %v3635_v28 = vpop.eup %3634 }
 0x801   : > { %v3637_v21 = vpop.eup %3636  ;;  %v1815_v16 = vpop.xlane.xlu1 %1814  ;;  %v5145_v49 = vmul.f32 %v3635_v28, %v5504_v59 }
 0x802   : > { %3646 = vrcp.f32 %v1815_v16  ;;  %v1809_v51 = vpop.xlane.xlu0 %1808  ;;  %v5148_v56 = vmul.f32 %v3637_v21, %v5505_v52  ;;  %v5515_v16 = vld [vmem:[#allocation28_spill] sm:$0xff] }
 0x803   : > { %3648 = vrcp.f32 %v1809_v51 }
 0x804   : > { %v3639_v63 = vpop.eup %3638 }
 0x805   : > { %v3641_v60 = vpop.eup %3640  ;;  %v750_v61 = vpop.xlane.xlu1 %749  ;;  %v5151_v12 = vmul.f32 %v3639_v63, %v5506_v48 }
 0x806   : > { %3650 = vrcp.f32 %v750_v61  ;;  %v1813_v33 = vpop.xlane.xlu0 %1812  ;;  %v5154_v47 = vmul.f32 %v3641_v60, %v5507_v57  ;;  %v5516_v60 = vld [vmem:[#allocation34_spill] sm:$0xff] }
 0x807   : > { %3652 = vrcp.f32 %v1813_v33  ;;  %v5517_v33 = vld [vmem:[#allocation27_spill] sm:$0xff] }
 0x808   : > { %v3643_v43 = vpop.eup %3642 }
 0x809   : > { %v3645_v8 = vpop.eup %3644  ;;  %v754_v4 = vpop.xlane.xlu1 %753  ;;  %v5157_v36 = vmul.f32 %v3643_v43, %v5508_v18  ;;  %v5518_v18 = vld [vmem:[#allocation33_spill] sm:$0xff] }
 0x80a   : > { %3654 = vrcp.f32 %v754_v4  ;;  %v748_v3 = vpop.xlane.xlu0 %747  ;;  %v5160_v55 = vmul.f32 %v3645_v8, %v5509_v0 }
 0x80b   : > { %3656 = vrcp.f32 %v748_v3 }
 0x80c   : > { %v3647_v5 = vpop.eup %3646 }
 0x80d   : > { %v3649_v25 = vpop.eup %3648  ;;  %v758_v27 = vpop.xlane.xlu1 %757  ;;  %v5163_v14 = vmul.f32 %v3647_v5, %v5510_v44  ;;  %v5519_v5 = vld [vmem:[#allocation32_spill] sm:$0xff] }
 0x80e   : > { %3658 = vrcp.f32 %v758_v27  ;;  %v752_v45 = vpop.xlane.xlu0 %751  ;;  %v5166_v7 = vmul.f32 %v3649_v25, %v5511_v39 }
 0x80f   : > { %3660 = vrcp.f32 %v752_v45  ;;  %v5520_v45 = vld [vmem:[#allocation38_spill] sm:$0xff] }
 0x810   : > { %v3651_v42 = vpop.eup %3650 }
 0x811   : > { %v3653_v26 = vpop.eup %3652  ;;  %v762_v6 = vpop.xlane.xlu1 %761  ;;  %v933_v40 = vmul.f32 %v3651_v42, %v5512_v35  ;;  %v5522_v35 = vld [vmem:[#allocation37_spill] sm:$0xff] }
 0x812   : > { %3662 = vrcp.f32 %v762_v6  ;;  %v756_v17 = vpop.xlane.xlu0 %755  ;;  %v5170_v19 = vmul.f32 %v3653_v26, %v5513_v53  ;;  %v5523_v53 = vld [vmem:[#allocation36_spill] sm:$0xff] }
 0x813   : > { %3664 = vrcp.f32 %v756_v17  ;;  %949 = vst.msk [vmem:[#allocation2 + $0x8] sm:$0xff] %vm505_vm0, %v933_v40 }
 0x814   : > { %v3655_v1 = vpop.eup %3654 }
 0x815   : > { %v3657_v58 = vpop.eup %3656  ;;  %v766_v23 = vpop.xlane.xlu1 %765  ;;  %v935_v28 = vmul.f32 %v3655_v1, %v5514_v50  ;;  %v5525_v50 = vld [vmem:[#allocation35_spill] sm:$0xff] }
 0x816   : > { %3666 = vrcp.f32 %v766_v23  ;;  %v760_v21 = vpop.xlane.xlu0 %759  ;;  %v932_v59 = vmul.f32 %v3657_v58, %v5515_v16  ;;  %v5526_v16 = vld [vmem:[#allocation41_spill] sm:$0xff] }
 0x817   : > { %3668 = vrcp.f32 %v760_v21  ;;  %951 = vst.msk [vmem:[#allocation2 + $0x18] sm:$0xff] %vm505_vm0, %v935_v28 }
 0x818   : > { %v3659_v51 = vpop.eup %3658  ;;  %948 = vst.msk [vmem:[#allocation2] sm:$0xff] %vm505_vm0, %v932_v59 }
 0x819   : > { %v3661_v52 = vpop.eup %3660  ;;  %v770_v63 = vpop.xlane.xlu1 %769  ;;  %v937_v61 = vmul.f32 %v3659_v51, %v5516_v60 }
 0x81a   : > { %3670 = vrcp.f32 %v770_v63  ;;  %2335 = vadd.xlane.f32.xlu0 %v5048_v30  ;;  %v764_v48 = vpop.xlane.xlu0 %763  ;;  %v934_v57 = vmul.f32 %v3661_v52, %v5517_v33  ;;  %v5528_v52 = vld [vmem:[#allocation39_spill] sm:$0xff] }
 0x81b   : > { %3672 = vrcp.f32 %v764_v48  ;;  %953 = vst.msk [vmem:[#allocation2 + $0x28] sm:$0xff] %vm505_vm0, %v937_v61 }
 0x81c   : > { %v3663_v43 = vpop.eup %3662  ;;  %950 = vst.msk [vmem:[#allocation2 + $0x10] sm:$0xff] %vm505_vm0, %v934_v57 }
 0x81d   : > { %v3665_v8 = vpop.eup %3664  ;;  %v774_v4 = vpop.xlane.xlu1 %773  ;;  %v939_v3 = vmul.f32 %v3663_v43, %v5518_v18 }
 0x81e   : > { %3674 = vrcp.f32 %v774_v4  ;;  %2331 = vadd.xlane.f32.xlu0 %v5025_v54  ;;  %v768_v0 = vpop.xlane.xlu0 %767  ;;  %v936_v25 = vmul.f32 %v3665_v8, %v5519_v5  ;;  %v5521_v54 = vld [vmem:[#allocation31_spill] sm:$0xff] }
 0x81f   : > { %3676 = vrcp.f32 %v768_v0  ;;  %955 = vst.msk [vmem:[#allocation2 + $0x38] sm:$0xff] %vm505_vm0, %v939_v3 }
 0x820   : > { %v3667_v30 = vpop.eup %3666  ;;  %2337 = vadd.xlane.f32.xlu1 %v5044_v37  ;;  %952 = vst.msk [vmem:[#allocation2 + $0x20] sm:$0xff] %vm505_vm0, %v936_v25 }
 0x821   : > { %v3669_v27 = vpop.eup %3668  ;;  %v778_v44 = vpop.xlane.xlu1 %777  ;;  %v941_v39 = vmul.f32 %v3667_v30, %v5520_v45 }
 0x822   : > { %3678 = vrcp.f32 %v778_v44  ;;  %2343 = vadd.xlane.f32.xlu0 %v5058_v32  ;;  %v772_v42 = vpop.xlane.xlu0 %771  ;;  %v938_v26 = vmul.f32 %v3669_v27, %v5521_v54 }
 0x823   : > { %3680 = vrcp.f32 %v772_v42  ;;  %957 = vst.msk [vmem:[#allocation2 + $0x48] sm:$0xff] %vm505_vm0, %v941_v39 }
 0x824   : > { %v3671_v6 = vpop.eup %3670  ;;  %2333 = vadd.xlane.f32.xlu1 %v5023_v34  ;;  %954 = vst.msk [vmem:[#allocation2 + $0x30] sm:$0xff] %vm505_vm0, %v938_v26  ;;  %v5524_v34 = vld [vmem:[#allocation42_spill] sm:$0xff] }
 0x825   : > { %v3673_v37 = vpop.eup %3672  ;;  %v943_v40 = vmul.f32 %v3671_v6, %v5522_v35 }
 0x826   : > { %2339 = vadd.xlane.f32.xlu0 %v5050_v20  ;;  %v776_v17 = vpop.xlane.xlu0 %775  ;;  %v940_v1 = vmul.f32 %v3673_v37, %v5523_v53 }
 0x827   : > { %3682 = vrcp.f32 %v776_v17  ;;  %959 = vst.msk [vmem:[#allocation2 + $0x58] sm:$0xff] %vm505_vm0, %v943_v40 }
 0x828   : > { %v3675_v32 = vpop.eup %3674  ;;  %2345 = vadd.xlane.f32.xlu1 %v5056_v24  ;;  %956 = vst.msk [vmem:[#allocation2 + $0x40] sm:$0xff] %vm505_vm0, %v940_v1  ;;  %v5527_v24 = vld [vmem:[#allocation40_spill] sm:$0xff] }
 0x829   : > { %v3677_v58 = vpop.eup %3676  ;;  %v945_v23 = vmul.f32 %v3675_v32, %v5524_v34 }
 0x82a   : > { %2351 = vadd.xlane.f32.xlu0 %v5076_v13  ;;  %v942_v28 = vmul.f32 %v3677_v58, %v5525_v50 }
 0x82b   : > { %961 = vst.msk [vmem:[#allocation2 + $0x68] sm:$0xff] %vm505_vm0, %v945_v23 }
 0x82c   : > { %v3679_v20 = vpop.eup %3678  ;;  %2341 = vadd.xlane.f32.xlu1 %v5046_v46  ;;  %958 = vst.msk [vmem:[#allocation2 + $0x50] sm:$0xff] %vm505_vm0, %v942_v28 }
 0x82d   : > { %v3681_v21 = vpop.eup %3680  ;;  %v947_v59 = vmul.f32 %v3679_v20, %v5526_v16 }
 0x82e   : > { %2347 = vadd.xlane.f32.xlu0 %v5072_v10  ;;  %v944_v51 = vmul.f32 %v3681_v21, %v5527_v24 }
 0x82f   : > { %963 = vst.msk [vmem:[#allocation2 + $0x78] sm:$0xff] %vm505_vm0, %v947_v59 }
 0x830   : > { %2353 = vadd.xlane.f32.xlu1 %v5078_v31  ;;  %960 = vst.msk [vmem:[#allocation2 + $0x60] sm:$0xff] %vm505_vm0, %v944_v51 }
 0x831   : > { %v3683_v13 = vpop.eup %3682 }
 0x832   : > { %2359 = vadd.xlane.f32.xlu0 %v5088_v62  ;;  %v946_v46 = vmul.f32 %v3683_v13, %v5528_v52 }
 0x834   : > { %2349 = vadd.xlane.f32.xlu1 %v5070_v38  ;;  %962 = vst.msk [vmem:[#allocation2 + $0x70] sm:$0xff] %vm505_vm0, %v946_v46  ;;  %vm2041_vm0 = vcmask 785920  }
 0x836   : > { %2355 = vadd.xlane.f32.xlu0 %v5082_v15 }
 0x838   : > { %2361 = vadd.xlane.f32.xlu1 %v5090_v41 }
 0x83c   : > { %2357 = vadd.xlane.f32.xlu1 %v5084_v29 }
 0x843   : > { %v1449_v10 = vpop.permute.xlu1 %1448 }
 0x844   : > { %1496 = vst.msk [vmem:[#allocation2 + $0x8] sm:$0xff] %vm1494_vm3, %v1449_v10 }
 0x847   : > { %v1451_v31 = vpop.permute.xlu1 %1450 }
 0x848   : > { %1497 = vst.msk [vmem:[#allocation2 + $0x10] sm:$0xff] %vm1494_vm3, %v1451_v31 }
 0x84c   : > { %1999 = vrot.lane.b32.xlu0 %v5126_v11, %s3766_s8 }
 0x84d   : > { %2001 = vrot.lane.b32.xlu1 %v5142_v22, %s3766_s8  ;;  %v1447_v38 = vpop.permute.xlu0 %1446 }
 0x84e   : > { %1495 = vst.msk [vmem:[#allocation2] sm:$0xff] %vm1494_vm3, %v1447_v38  ;;  %v1455_v15 = vpop.permute.xlu1 %1454 }
 0x84f   : > { %1499 = vst.msk [vmem:[#allocation2 + $0x20] sm:$0xff] %vm1494_vm3, %v1455_v15 }
 0x850   : > { %2003 = vrot.lane.b32.xlu0 %v5133_v2, %s3766_s8 }
 0x851   : > { %2005 = vrot.lane.b32.xlu1 %v5148_v56, %s3766_s8  ;;  %v1453_v29 = vpop.permute.xlu0 %1452 }
 0x852   : > { %1498 = vst.msk [vmem:[#allocation2 + $0x18] sm:$0xff] %vm1494_vm3, %v1453_v29 }
 0x854   : > { %2007 = vrot.lane.b32.xlu0 %v5139_v9, %s3766_s8 }
 0x855   : > { %2009 = vrot.lane.b32.xlu1 %v5154_v47, %s3766_s8  ;;  %v1457_v62 = vpop.permute.xlu0 %1456 }
 0x856   : > { %1500 = vst.msk [vmem:[#allocation2 + $0x28] sm:$0xff] %vm1494_vm3, %v1457_v62  ;;  %v1459_v41 = vpop.permute.xlu1 %1458 }
 0x857   : > { %1501 = vst.msk [vmem:[#allocation2 + $0x30] sm:$0xff] %vm1494_vm3, %v1459_v41 }
 0x858   : > { %2011 = vrot.lane.b32.xlu0 %v5145_v49, %s3766_s8 }
 0x859   : > { %2013 = vrot.lane.b32.xlu1 %v5160_v55, %s3766_s8  ;;  %v1461_v11 = vpop.permute.xlu0 %1460 }
 0x85a   : > { %1502 = vst.msk [vmem:[#allocation2 + $0x38] sm:$0xff] %vm1494_vm3, %v1461_v11  ;;  %v1463_v2 = vpop.permute.xlu1 %1462 }
 0x85b   : > { %1503 = vst.msk [vmem:[#allocation2 + $0x40] sm:$0xff] %vm1494_vm3, %v1463_v2 }
 0x85c   : > { %2015 = vrot.lane.b32.xlu0 %v5151_v12, %s3766_s8 }
 0x85d   : > { %2017 = vrot.lane.b32.xlu1 %v5166_v7, %s3766_s8  ;;  %v1465_v9 = vpop.permute.xlu0 %1464 }
 0x85e   : > { %1504 = vst.msk [vmem:[#allocation2 + $0x48] sm:$0xff] %vm1494_vm3, %v1465_v9  ;;  %v1467_v22 = vpop.permute.xlu1 %1466 }
 0x85f   : > { %1505 = vst.msk [vmem:[#allocation2 + $0x50] sm:$0xff] %vm1494_vm3, %v1467_v22 }
 0x860   : > { %2019 = vrot.lane.b32.xlu0 %v5157_v36, %s3766_s8 }
 0x861   : > { %2021 = vrot.lane.b32.xlu1 %v5170_v19, %s3766_s8  ;;  %v1469_v49 = vpop.permute.xlu0 %1468 }
 0x862   : > { %1506 = vst.msk [vmem:[#allocation2 + $0x58] sm:$0xff] %vm1494_vm3, %v1469_v49  ;;  %v1471_v56 = vpop.permute.xlu1 %1470 }
 0x863   : > { %1507 = vst.msk [vmem:[#allocation2 + $0x60] sm:$0xff] %vm1494_vm3, %v1471_v56 }
 0x864   : > { %2023 = vrot.lane.b32.xlu0 %v5163_v14, %s3766_s8 }
 0x865   : > { %v1473_v12 = vpop.permute.xlu0 %1472 }
 0x866   : > { %1508 = vst.msk [vmem:[#allocation2 + $0x68] sm:$0xff] %vm1494_vm3, %v1473_v12  ;;  %v1475_v47 = vpop.permute.xlu1 %1474 }
 0x867   : > { %1509 = vst.msk [vmem:[#allocation2 + $0x70] sm:$0xff] %vm1494_vm3, %v1475_v47 }
 0x869   : > { %v1477_v36 = vpop.permute.xlu0 %1476 }
 0x86a   : > { %1510 = vst.msk [vmem:[#allocation2 + $0x78] sm:$0xff] %vm1494_vm3, %v1477_v36  ;;  %v1994_v55 = vpop.permute.xlu1 %1993 }
 0x86b   : > { %2042 = vst.msk [vmem:[#allocation2] sm:$0xff] %vm2041_vm0, %v1994_v55 }
 0x86d   : > { %v1996_v7 = vpop.permute.xlu0 %1995 }
 0x86e   : > { %2043 = vst.msk [vmem:[#allocation2 + $0x8] sm:$0xff] %vm2041_vm0, %v1996_v7  ;;  %v1998_v19 = vpop.permute.xlu1 %1997 }
 0x86f   : > { %2044 = vst.msk [vmem:[#allocation2 + $0x10] sm:$0xff] %vm2041_vm0, %v1998_v19 }
 0x874   : > { %v3352_v14 = vpop.f32.mrb[48].mxu0 }
 0x875   : > { %v2429_v63 = vpop.f32.mrb[49].mxu0 }
 0x876   : > { %v3353_v60 = vpop.f32.mrb[50].mxu0 }
 0x877   : > { %v2432_v61 = vpop.f32.mrb[51].mxu0 }
 0x87c   : > { %v3356_v48 = vpop.f32.mrb[52].mxu0 }
 0x87d   : > { %v2445_v33 = vpop.f32.mrb[53].mxu0 }
 0x87e   : > { %v3357_v57 = vpop.f32.mrb[54].mxu0 }
 0x87f   : > { %v2448_v43 = vpop.f32.mrb[55].mxu0 }
 0x89b   : > { %v3360_v8 = vpop.f32.mrb[56].mxu0 }
 0x89c   : > { %v5264_v4 = vpop.f32.mrb[57].mxu0 }
 0x89d   : > { %v5266_v18 = vpop.f32.mrb[58].mxu0 }
 0x89e   : > { %v5268_v3 = vpop.f32.mrb[59].mxu0 }
 0x8a3   : > { %v5270_v0 = vpop.f32.mrb[60].mxu0 }
 0x8a4   : > { %v5272_v5 = vpop.f32.mrb[61].mxu0 }
 0x8a5   : > { %v5274_v25 = vpop.f32.mrb[62].mxu0 }
 0x8a6   : > { %v5276_v30 = vpop.f32.mrb[63].mxu0 }
 0x8a7   : > { %v2336_v27 = vpop.xlane.xlu0 %2335 }
 0x8a8   : > { %3684 = vrcp.f32 %v2336_v27 }
 0x8ab   : > { %v2332_v44 = vpop.xlane.xlu0 %2331 }
 0x8ac   : > { %3686 = vrcp.f32 %v2332_v44 }
 0x8ad   : > { %v2338_v45 = vpop.xlane.xlu1 %2337 }
 0x8ae   : > { %3688 = vrcp.f32 %v2338_v45 }
 0x8af   : > { %v2344_v39 = vpop.xlane.xlu0 %2343 }
 0x8b0   : > { %3690 = vrcp.f32 %v2344_v39 }
 0x8b1   : > { %v2334_v42 = vpop.xlane.xlu1 %2333 }
 0x8b2   : > { %v3685_v54 = vpop.eup %3684  ;;  %3692 = vrcp.f32 %v2334_v42 }
 0x8b3   : > { %v2340_v26 = vpop.xlane.xlu0 %2339  ;;  %v2510_v6 = vmul.f32 %v3685_v54, %v3352_v14 }
 0x8b4   : > { %3694 = vrcp.f32 %v2340_v26 }
 0x8b5   : > { %v2346_v37 = vpop.xlane.xlu1 %2345  ;;  %2544 = vrot.lane.b32.xlu1 %v2510_v6, %s3765_s30 }
 0x8b6   : > { %v3687_v35 = vpop.eup %3686  ;;  %3696 = vrcp.f32 %v2346_v37 }
 0x8b7   : > { %v2352_v40 = vpop.xlane.xlu0 %2351  ;;  %v2508_v17 = vmul.f32 %v3687_v35, %v2429_v63 }
 0x8b8   : > { %v3689_v53 = vpop.eup %3688  ;;  %3698 = vrcp.f32 %v2352_v40 }
 0x8b9   : > { %v2342_v1 = vpop.xlane.xlu1 %2341  ;;  %2540 = vrot.lane.b32.xlu1 %v2508_v17, %s3765_s30  ;;  %v2511_v32 = vmul.f32 %v3689_v53, %v3353_v60 }
 0x8ba   : > { %v3691_v58 = vpop.eup %3690  ;;  %3700 = vrcp.f32 %v2342_v1 }
 0x8bb   : > { %2546 = vrot.lane.b32.xlu0 %v2511_v32, %s3765_s30  ;;  %v2348_v34 = vpop.xlane.xlu0 %2347  ;;  %v2514_v23 = vmul.f32 %v3691_v58, %v3356_v48 }
 0x8bc   : > { %v3693_v50 = vpop.eup %3692  ;;  %3702 = vrcp.f32 %v2348_v34 }
 0x8bd   : > { %v2354_v28 = vpop.xlane.xlu1 %2353  ;;  %2552 = vrot.lane.b32.xlu1 %v2514_v23, %s3765_s30  ;;  %v2509_v20 = vmul.f32 %v3693_v50, %v2432_v61 }
 0x8be   : > { %v3695_v21 = vpop.eup %3694  ;;  %3704 = vrcp.f32 %v2354_v28 }
 0x8bf   : > { %2542 = vrot.lane.b32.xlu0 %v2509_v20, %s3765_s30  ;;  %v2360_v16 = vpop.xlane.xlu0 %2359  ;;  %v2512_v59 = vmul.f32 %v3695_v21, %v2445_v33 }
 0x8c0   : > { %v3697_v24 = vpop.eup %3696 }
 0x8c1   : > { %v2350_v51 = vpop.xlane.xlu1 %2349  ;;  %2548 = vrot.lane.b32.xlu1 %v2512_v59, %s3765_s30  ;;  %v2515_v13 = vmul.f32 %v3697_v24, %v3357_v57 }
 0x8c2   : > { %v3699_v52 = vpop.eup %3698  ;;  %3706 = vrcp.f32 %v2350_v51 }
 0x8c3   : > { %2554 = vrot.lane.b32.xlu0 %v2515_v13, %s3765_s30  ;;  %v2356_v46 = vpop.xlane.xlu0 %2355  ;;  %v2518_v10 = vmul.f32 %v3699_v52, %v3360_v8 }
 0x8c4   : > { %v3701_v31 = vpop.eup %3700  ;;  %3708 = vrcp.f32 %v2356_v46 }
 0x8c5   : > { %v2362_v38 = vpop.xlane.xlu1 %2361  ;;  %2560 = vrot.lane.b32.xlu1 %v2518_v10, %s3765_s30  ;;  %v2513_v15 = vmul.f32 %v3701_v31, %v2448_v43  ;;  %3710 = vrcp.f32 %v2360_v16 }
 0x8c6   : > { %v3703_v29 = vpop.eup %3702 }
 0x8c7   : > { %2550 = vrot.lane.b32.xlu0 %v2513_v15, %s3765_s30  ;;  %v2000_v62 = vpop.permute.xlu0 %1999  ;;  %v2516_v41 = vmul.f32 %v3703_v29, %v5264_v4 }
 0x8c8   : > { %v3705_v11 = vpop.eup %3704  ;;  %2045 = vst.msk [vmem:[#allocation2 + $0x18] sm:$0xff] %vm2041_vm0, %v2000_v62 }
 0x8c9   : > { %v2358_v2 = vpop.xlane.xlu1 %2357  ;;  %2556 = vrot.lane.b32.xlu1 %v2516_v41, %s3765_s30  ;;  %v2519_v9 = vmul.f32 %v3705_v11, %v5266_v18 }
 0x8ca   : > { %3712 = vrcp.f32 %v2358_v2 }
 0x8cb   : > { %2562 = vrot.lane.b32.xlu0 %v2519_v9, %s3765_s30  ;;  %v2004_v22 = vpop.permute.xlu0 %2003  ;;  %3714 = vrcp.f32 %v2362_v38 }
 0x8cc   : > { %v3707_v49 = vpop.eup %3706  ;;  %2047 = vst.msk [vmem:[#allocation2 + $0x28] sm:$0xff] %vm2041_vm0, %v2004_v22 }
 0x8cd   : > { %v2002_v56 = vpop.permute.xlu1 %2001  ;;  %v2517_v12 = vmul.f32 %v3707_v49, %v5268_v3 }
 0x8ce   : > { %v3709_v47 = vpop.eup %3708  ;;  %2046 = vst.msk [vmem:[#allocation2 + $0x20] sm:$0xff] %vm2041_vm0, %v2002_v56 }
 0x8cf   : > { %2558 = vrot.lane.b32.xlu0 %v2517_v12, %s3765_s30  ;;  %v2008_v36 = vpop.permute.xlu0 %2007  ;;  %v2520_v55 = vmul.f32 %v3709_v47, %v5272_v5  ;;  %v3711_v7 = vpop.eup %3710 }
 0x8d0   : > { %2049 = vst.msk [vmem:[#allocation2 + $0x38] sm:$0xff] %vm2041_vm0, %v2008_v36  ;;  %v2522_v63 = vmul.f32 %v3711_v7, %v5270_v0 }
 0x8d1   : > { %v2006_v19 = vpop.permute.xlu1 %2005  ;;  %2564 = vrot.lane.b32.xlu1 %v2520_v55, %s3765_s30 }
 0x8d2   : > { %2048 = vst.msk [vmem:[#allocation2 + $0x30] sm:$0xff] %vm2041_vm0, %v2006_v19 }
 0x8d3   : > { %v2012_v14 = vpop.permute.xlu0 %2011 }
 0x8d4   : > { %v3713_v60 = vpop.eup %3712  ;;  %2051 = vst.msk [vmem:[#allocation2 + $0x48] sm:$0xff] %vm2041_vm0, %v2012_v14 }
 0x8d5   : > { %v2010_v61 = vpop.permute.xlu1 %2009  ;;  %2568 = vrot.lane.b32.xlu1 %v2522_v63, %s3765_s30  ;;  %v2521_v48 = vmul.f32 %v3713_v60, %v5276_v30  ;;  %v3715_v33 = vpop.eup %3714 }
 0x8d6   : > { %2050 = vst.msk [vmem:[#allocation2 + $0x40] sm:$0xff] %vm2041_vm0, %v2010_v61  ;;  %v2523_v8 = vmul.f32 %v3715_v33, %v5274_v25 }
 0x8d7   : > { %2566 = vrot.lane.b32.xlu0 %v2521_v48, %s3765_s30  ;;  %v2016_v57 = vpop.permute.xlu0 %2015 }
 0x8d8   : > { %2053 = vst.msk [vmem:[#allocation2 + $0x58] sm:$0xff] %vm2041_vm0, %v2016_v57 }
 0x8d9   : > { %v2014_v43 = vpop.permute.xlu1 %2013 }
 0x8da   : > { %2052 = vst.msk [vmem:[#allocation2 + $0x50] sm:$0xff] %vm2041_vm0, %v2014_v43 }
 0x8db   : > { %2570 = vrot.lane.b32.xlu0 %v2523_v8, %s3765_s30  ;;  %v2020_v4 = vpop.permute.xlu0 %2019 }
 0x8dc   : > { %2055 = vst.msk [vmem:[#allocation2 + $0x68] sm:$0xff] %vm2041_vm0, %v2020_v4 }
 0x8dd   : > { %v2018_v18 = vpop.permute.xlu1 %2017 }
 0x8de   : > { %2054 = vst.msk [vmem:[#allocation2 + $0x60] sm:$0xff] %vm2041_vm0, %v2018_v18 }
 0x8df   : > { %v2024_v3 = vpop.permute.xlu0 %2023 }
 0x8e0   : > { %2057 = vst.msk [vmem:[#allocation2 + $0x78] sm:$0xff] %vm2041_vm0, %v2024_v3 }
 0x8e1   : > { %v2022_v0 = vpop.permute.xlu1 %2021 }
 0x8e2   : > { %2056 = vst.msk [vmem:[#allocation2 + $0x70] sm:$0xff] %vm2041_vm0, %v2022_v0 }
 0x927   : > { %v2545_v5 = vpop.permute.xlu1 %2544 }
 0x928   : > { %2591 = vst.msk [vmem:[#allocation2 + $0x10] sm:$0xff] %vm2588_vm4, %v2545_v5 }
 0x92b   : > { %v2541_v25 = vpop.permute.xlu1 %2540 }
 0x92c   : > { %2589 = vst.msk [vmem:[#allocation2] sm:$0xff] %vm2588_vm4, %v2541_v25 }
 0x92d   : > { %v2547_v30 = vpop.permute.xlu0 %2546 }
 0x92e   : > { %2592 = vst.msk [vmem:[#allocation2 + $0x18] sm:$0xff] %vm2588_vm4, %v2547_v30 }
 0x92f   : > { %v2553_v27 = vpop.permute.xlu1 %2552  ;;  %v2607_v39 = vld [vmem:[#allocation2 + $0x10] sm:$0xff] }
 0x930   : > { %2595 = vst.msk [vmem:[#allocation2 + $0x30] sm:$0xff] %vm2588_vm4, %v2553_v27 }
 0x931   : > { %v2543_v44 = vpop.permute.xlu0 %2542 }
 0x932   : > { %2590 = vst.msk [vmem:[#allocation2 + $0x8] sm:$0xff] %vm2588_vm4, %v2543_v44 }
 0x933   : > { %v2549_v45 = vpop.permute.xlu1 %2548  ;;  %v2605_v37 = vld [vmem:[#allocation2] sm:$0xff] }
 0x934   : > { %2593 = vst.msk [vmem:[#allocation2 + $0x20] sm:$0xff] %vm2588_vm4, %v2549_v45 }
 0x935   : > { %v2608_v42 = vld [vmem:[#allocation2 + $0x18] sm:$0xff]  ;;  %v2555_v54 = vpop.permute.xlu0 %2554 }
 0x936   : > { %v2943_v26 = vpack.c.bf16 %v2608_v42, %v2607_v39  ;;  %2596 = vst.msk [vmem:[#allocation2 + $0x38] sm:$0xff] %vm2588_vm4, %v2555_v54 }
 0x937   : > { %v2561_v6 = vpop.permute.xlu1 %2560  ;;  %v2611_v1 = vld [vmem:[#allocation2 + $0x30] sm:$0xff] }
 0x938   : > { %2975 = vst [vmem:[%s5325_s12 + $0x8] sm:$0xff] %v2943_v26   ;;  %2599 = vst.msk [vmem:[#allocation2 + $0x50] sm:$0xff] %vm2588_vm4, %v2561_v6 }
 0x939   : > { %v2606_v35 = vld [vmem:[#allocation2 + $0x8] sm:$0xff]  ;;  %v2551_v40 = vpop.permute.xlu0 %2550 }
 0x93a   : > { %v2938_v17 = vpack.c.bf16 %v2606_v35, %v2605_v37  ;;  %2594 = vst.msk [vmem:[#allocation2 + $0x28] sm:$0xff] %vm2588_vm4, %v2551_v40 }
 0x93b   : > { %v2557_v53 = vpop.permute.xlu1 %2556  ;;  %v2609_v23 = vld [vmem:[#allocation2 + $0x20] sm:$0xff] }
 0x93c   : > { %2939 = vst [vmem:[%s5325_s12] sm:$0xff] %v2938_v17   ;;  %2597 = vst.msk [vmem:[#allocation2 + $0x40] sm:$0xff] %vm2588_vm4, %v2557_v53 }
 0x93d   : > { %v2612_v32 = vld [vmem:[#allocation2 + $0x38] sm:$0xff]  ;;  %v2563_v58 = vpop.permute.xlu0 %2562 }
 0x93e   : > { %v2953_v34 = vpack.c.bf16 %v2612_v32, %v2611_v1  ;;  %2600 = vst.msk [vmem:[#allocation2 + $0x58] sm:$0xff] %vm2588_vm4, %v2563_v58 }
 0x93f   : > { %v2615_v16 = vld [vmem:[#allocation2 + $0x50] sm:$0xff] }
 0x940   : > { %2977 = vst [vmem:[%s5325_s12 + $0x18] sm:$0xff] %v2953_v34  }
 0x941   : > { %v2610_v50 = vld [vmem:[#allocation2 + $0x28] sm:$0xff]  ;;  %v2559_v28 = vpop.permute.xlu0 %2558 }
 0x942   : > { %v2948_v20 = vpack.c.bf16 %v2610_v50, %v2609_v23  ;;  %2598 = vst.msk [vmem:[#allocation2 + $0x48] sm:$0xff] %vm2588_vm4, %v2559_v28 }
 0x943   : > { %v2565_v21 = vpop.permute.xlu1 %2564  ;;  %v2613_v13 = vld [vmem:[#allocation2 + $0x40] sm:$0xff] }
 0x944   : > { %2976 = vst [vmem:[%s5325_s12 + $0x10] sm:$0xff] %v2948_v20   ;;  %2601 = vst.msk [vmem:[#allocation2 + $0x60] sm:$0xff] %vm2588_vm4, %v2565_v21 }
 0x945   : > { %v2616_v59 = vld [vmem:[#allocation2 + $0x58] sm:$0xff] }
 0x946   : > { %v2963_v24 = vpack.c.bf16 %v2616_v59, %v2615_v16 }
 0x947   : > { %v2569_v51 = vpop.permute.xlu1 %2568 }
 0x948   : > { %2979 = vst [vmem:[%s5325_s12 + $0x28] sm:$0xff] %v2963_v24   ;;  %2603 = vst.msk [vmem:[#allocation2 + $0x70] sm:$0xff] %vm2588_vm4, %v2569_v51 }
 0x949   : > { %v2614_v52 = vld [vmem:[#allocation2 + $0x48] sm:$0xff]  ;;  %v2567_v46 = vpop.permute.xlu0 %2566 }
 0x94a   : > { %v2958_v10 = vpack.c.bf16 %v2614_v52, %v2613_v13  ;;  %2602 = vst.msk [vmem:[#allocation2 + $0x68] sm:$0xff] %vm2588_vm4, %v2567_v46 }
 0x94b   : > { %v2617_v38 = vld [vmem:[#allocation2 + $0x60] sm:$0xff] }
 0x94c   : > { %2978 = vst [vmem:[%s5325_s12 + $0x20] sm:$0xff] %v2958_v10  }
 0x94d   : > { %v2571_v31 = vpop.permute.xlu0 %2570 }
 0x94e   : > { %2604 = vst.msk [vmem:[#allocation2 + $0x78] sm:$0xff] %vm2588_vm4, %v2571_v31 }
 0x94f   : > { %v2619_v62 = vld [vmem:[#allocation2 + $0x70] sm:$0xff] }
 0x951   : > { %v2618_v15 = vld [vmem:[#allocation2 + $0x68] sm:$0xff] }
 0x952   : > { %v2968_v29 = vpack.c.bf16 %v2618_v15, %v2617_v38 }
 0x954   : > { %2980 = vst [vmem:[%s5325_s12 + $0x30] sm:$0xff] %v2968_v29  }
 0x955   : > { %v2620_v41 = vld [vmem:[#allocation2 + $0x78] sm:$0xff] }
 0x956   : > { %v2973_v11 = vpack.c.bf16 %v2620_v41, %v2619_v62 }
 0x958   : > { %2981 = vst [vmem:[%s5325_s12 + $0x38] sm:$0xff] %v2973_v11  }
 0x959 PF: > { %s14_s17 = sadd.s32 1, %s3762_s17   ;;  %s5529_s15 = smov %s3758_s16 }
 0x95a   : > { %p11_p5 = scmp.ge.s32.totalorder %s14_s17, 4   ;;  %s5530_s16 = smov %s5532_s18 }
 0x95c   :  { %13 = sbr.rel (!%p11_p5) target bundleno = 2 (0x2), region = 75 }

// kernel: pc_trs_forward.10
= control target key start
LH: loop header
LB: loop body
LE: loop exit
PB: predicated region body
PF: predicated region fallthrough
CT: control target
= control target key end

     0   :  { %s4348_s2 = inlined_call_operand.vmem [shape: bf16[128,128], index: 2, kind: input, shape index: {}]   ;;  %s4349_s0 = inlined_call_operand.vmem [shape: bf16[256,128], index: 0, kind: input, shape index: {}]   ;;  %s4350_s1 = inlined_call_operand.vmem [shape: bf16[256,128], index: 1, kind: input, shape index: {}]   ;;  %s4351_s3 = inlined_call_operand.vmem [shape: f32[1,128], index: 3, kind: input, shape index: {}]   ;;  %s4352_s6 = inlined_call_operand.vmem [shape: bf16[128,256], index: 6, kind: input, shape index: {}]   ;;  %s4353_s4 = inlined_call_operand.vmem [shape: f32[1,128], index: 4, kind: input, shape index: {}]   ;;  %s4354_s5 = inlined_call_operand.vmem [shape: f32[1,128], index: 5, kind: input, shape index: {}]   ;;  %s4355_s8 = inlined_call_operand.vmem [shape: bf16[256,128], index: 8, kind: input, shape index: {}]   ;;  %s4356_s7 = inlined_call_operand.vmem [shape: f32[1,256], index: 7, kind: input, shape index: {}]   ;;  %s4357_s9 = inlined_call_operand.vmem [shape: f32[1,128], index: 9, kind: input, shape index: {}]   ;;  %s4358_s10 = inlined_call_operand.vmem [shape: f32[1,128], index: 10, kind: input, shape index: {}]   ;;  %s4359_s11 = inlined_call_operand.vmem [shape: f32[1,128], index: 11, kind: input, shape index: {}]   ;;  %s4360_s12 = inlined_call_operand.vmem [shape: bf16[256,128], index: 12, kind: output, shape index: {}]  }
   0x1   :  { %v2765_v0 = vld [vmem:[%s4348_s2] sm:$0xff]   ;;  %v2766_v1 = vld [vmem:[%s4348_s2 + $0x8] sm:$0xff]   ;;  %v2767_v2 = vld [vmem:[%s4348_s2 + $0x10] sm:$0xff]  }
   0x2   :  { %2700 = vmatprep.subr.bf16.mxu0 %v2765_v0  ;;  %2748 = vmatprep.subr.bf16.mxu1 %v2765_v0  ;;  %v2768_v3 = vld [vmem:[%s4348_s2 + $0x18] sm:$0xff]   ;;  %v2773_v4 = vld [vmem:[%s4349_s0] sm:$0xff]   ;;  %v2770_v6 = vld [vmem:[%s4348_s2 + $0x28] sm:$0xff]  }
   0x3   :  { %2701 = vmatpush3.bf16.msra.mxu0 %v2765_v0  ;;  %2756 = vmatpush3.bf16.msra.mxu1 %v2765_v0  ;;  %v2769_v5 = vld [vmem:[%s4348_s2 + $0x20] sm:$0xff]   ;;  %v2771_v8 = vld [vmem:[%s4348_s2 + $0x30] sm:$0xff]   ;;  %v2772_v9 = vld [vmem:[%s4348_s2 + $0x38] sm:$0xff]  }
   0x4   :  { %2702 = vmatprep.subr.bf16.mxu0 %v2766_v1  ;;  %2749 = vmatprep.subr.bf16.mxu1 %v2766_v1  ;;  %v2781_v7 = vld [vmem:[%s4349_s0 + $0x40] sm:$0xff]   ;;  %v2774_v10 = vld [vmem:[%s4349_s0 + $0x8] sm:$0xff]   ;;  %v2775_v12 = vld [vmem:[%s4349_s0 + $0x10] sm:$0xff]  }
   0x5   :  { %2716 = vmatprep.mubr.bf16.mxu0 %v2773_v4  ;;  %2732 = vmatprep.mubr.bf16.mxu1 %v2781_v7  ;;  %v2782_v11 = vld [vmem:[%s4349_s0 + $0x48] sm:$0xff]   ;;  %v2783_v13 = vld [vmem:[%s4349_s0 + $0x50] sm:$0xff]   ;;  %v2776_v14 = vld [vmem:[%s4349_s0 + $0x18] sm:$0xff]  }
   0x6   :  { %v2784_v15 = vld [vmem:[%s4349_s0 + $0x58] sm:$0xff]   ;;  %v2777_v16 = vld [vmem:[%s4349_s0 + $0x20] sm:$0xff]   ;;  %v2778_v18 = vld [vmem:[%s4349_s0 + $0x28] sm:$0xff]  }
   0x7   :  { %2703 = vmatpush3.bf16.msra.mxu0 %v2766_v1  ;;  %2757 = vmatpush3.bf16.msra.mxu1 %v2766_v1  ;;  %v2785_v17 = vld [vmem:[%s4349_s0 + $0x60] sm:$0xff]   ;;  %v2786_v19 = vld [vmem:[%s4349_s0 + $0x68] sm:$0xff]   ;;  %v2779_v20 = vld [vmem:[%s4349_s0 + $0x30] sm:$0xff]  }
   0x8   :  { %2704 = vmatprep.subr.bf16.mxu0 %v2767_v2  ;;  %2750 = vmatprep.subr.bf16.mxu1 %v2767_v2  ;;  %v2787_v21 = vld [vmem:[%s4349_s0 + $0x70] sm:$0xff]   ;;  %v2780_v22 = vld [vmem:[%s4349_s0 + $0x38] sm:$0xff]   ;;  %v2534_v24 = vld [vmem:[%s4350_s1 + $0x8] sm:$0xff]  }
   0x9   :  { %v2788_v23 = vld [vmem:[%s4349_s0 + $0x78] sm:$0xff]   ;;  %v2391_v25 = vld [vmem:[%s4350_s1] sm:$0xff]   ;;  %v2396_v27 = vunpack.c.l.bf16 %v2534_v24  ;;  %v2397_v40 = vunpack.c.h.bf16 %v2534_v24  ;;  %v2535_v45 = vld [vmem:[%s4350_s1 + $0x10] sm:$0xff]  }
   0xa   :  { %v3104_v26 = vld [vmem:[%s4351_s3] ss:$0 sm:$0xff]  ;;  %v2392_v29 = vunpack.c.l.bf16 %v2391_v25  ;;  %v2393_v44 = vunpack.c.h.bf16 %v2391_v25  ;;  %v2536_v47 = vld [vmem:[%s4350_s1 + $0x18] sm:$0xff]   ;;  %v2400_v50 = vunpack.c.l.bf16 %v2535_v45  ;;  %v2401_v55 = vunpack.c.h.bf16 %v2535_v45  ;;  %v2538_v1 = vld [vmem:[%s4350_s1 + $0x28] sm:$0xff]  }
   0xb   :  { %2705 = vmatpush3.bf16.msra.mxu0 %v2767_v2  ;;  %2758 = vmatpush3.bf16.msra.mxu1 %v2767_v2  ;;  %v2404_v56 = vunpack.c.l.bf16 %v2536_v47  ;;  %v2405_v61 = vunpack.c.h.bf16 %v2536_v47  ;;  %v2537_v62 = vld [vmem:[%s4350_s1 + $0x20] sm:$0xff]  }
   0xc   :  { %2706 = vmatprep.subr.bf16.mxu0 %v2768_v3  ;;  %2751 = vmatprep.subr.bf16.mxu1 %v2768_v3  ;;  %v2408_v4 = vunpack.c.l.bf16 %v2537_v62 }
   0xf   :  { %2707 = vmatpush3.bf16.msra.mxu0 %v2768_v3  ;;  %2759 = vmatpush3.bf16.msra.mxu1 %v2768_v3 }
  0x10   :  { %2708 = vmatprep.subr.bf16.mxu0 %v2769_v5  ;;  %2752 = vmatprep.subr.bf16.mxu1 %v2769_v5 }
  0x13   :  { %2709 = vmatpush3.bf16.msra.mxu0 %v2769_v5  ;;  %2760 = vmatpush3.bf16.msra.mxu1 %v2769_v5 }
  0x14   :  { %2710 = vmatprep.subr.bf16.mxu0 %v2770_v6  ;;  %2753 = vmatprep.subr.bf16.mxu1 %v2770_v6 }
  0x17   :  { %2711 = vmatpush3.bf16.msra.mxu0 %v2770_v6  ;;  %2761 = vmatpush3.bf16.msra.mxu1 %v2770_v6 }
  0x18   :  { %2712 = vmatprep.subr.bf16.mxu0 %v2771_v8  ;;  %2754 = vmatprep.subr.bf16.mxu1 %v2771_v8 }
  0x1b   :  { %2713 = vmatpush3.bf16.msra.mxu0 %v2771_v8  ;;  %2762 = vmatpush3.bf16.msra.mxu1 %v2771_v8 }
  0x1c   :  { %2714 = vmatprep.subr.bf16.mxu0 %v2772_v9  ;;  %2755 = vmatprep.subr.bf16.mxu1 %v2772_v9 }
  0x1f   :  { %2715 = vmatpush3.bf16.msra.mxu0 %v2772_v9  ;;  %2763 = vmatpush3.bf16.msra.mxu1 %v2772_v9  ;;  %v2409_v9 = vunpack.c.h.bf16 %v2537_v62 }
  0x22   :  { %2717 = vmatmul.mubr.bf16.vlgmr.msra.gmra.mrb[0].mxu0 %v2774_v10  ;;  %2733 = vmatmul.mubr.bf16.vlgmr.msra.gmra.mrb[0].mxu1 %v2782_v11  ;;  %v2412_v10 = vunpack.c.l.bf16 %v2538_v1 }
  0x23   :  { %2720 = vmatprep.mubr.bf16.mxu0 %v2775_v12  ;;  %2736 = vmatprep.mubr.bf16.mxu1 %v2783_v13 }
  0x2a   :  { %2721 = vmatmul.mubr.bf16.gmra.mrb[4].mxu0 %v2776_v14  ;;  %2737 = vmatmul.mubr.bf16.gmra.mrb[4].mxu1 %v2784_v15  ;;  %v2413_v15 = vunpack.c.h.bf16 %v2538_v1 }
  0x2b   :  { %2724 = vmatprep.mubr.bf16.mxu0 %v2777_v16  ;;  %2740 = vmatprep.mubr.bf16.mxu1 %v2785_v17  ;;  %v2539_v16 = vld [vmem:[%s4350_s1 + $0x30] sm:$0xff]  }
  0x32   :  { %2725 = vmatmul.mubr.bf16.gmra.mrb[8].mxu0 %v2778_v18  ;;  %2741 = vmatmul.mubr.bf16.gmra.mrb[8].mxu1 %v2786_v19  ;;  %v2540_v19 = vld [vmem:[%s4350_s1 + $0x38] sm:$0xff]  }
  0x33   :  { %2728 = vmatprep.mubr.bf16.mxu0 %v2779_v20  ;;  %2744 = vmatprep.mubr.bf16.mxu1 %v2787_v21 }
  0x3a   :  { %2729 = vmatmul.mubr.bf16.gmra.mrb[12].mxu0 %v2780_v22  ;;  %2745 = vmatmul.mubr.bf16.gmra.mrb[12].mxu1 %v2788_v23  ;;  %v2416_v23 = vunpack.c.l.bf16 %v2539_v16 }
  0xf5   :  { %v2718_v28 = vpop.f32.mrb[0].mxu0  ;;  %v3106_v30 = vpop.f32.mrb[0].mxu1 }
  0xf6   :  { %v284_v31 = vadd.f32 %v2718_v28, %v3104_v26  ;;  %v275_v32 = vpop.f32.mrb[1].mxu0  ;;  %v3109_v33 = vpop.f32.mrb[1].mxu1  ;;  %v2417_v28 = vunpack.c.h.bf16 %v2539_v16 }
  0xf7   :  { %v276_v34 = vadd.f32 %v3104_v26, %v275_v32  ;;  %v2719_v35 = vpop.f32.mrb[2].mxu0  ;;  %v3112_v36 = vpop.f32.mrb[2].mxu1 }
  0xf8   :  { %v287_v37 = vadd.f32 %v2719_v35, %v3104_v26  ;;  %v278_v38 = vpop.f32.mrb[3].mxu0  ;;  %v3115_v39 = vadd.f32 %v2396_v27, %v284_v31  ;;  %v3117_v41 = vpop.f32.mrb[3].mxu1  ;;  %v351_v1 = vadd.f32 %v3112_v36, %v3104_v26 }
  0xf9   :  { %v279_v42 = vadd.f32 %v3104_v26, %v278_v38  ;;  %v3120_v43 = vadd.f32 %v2392_v29, %v276_v34 }
  0xfa   :  { %502 = vadd.xlane.f32.xlu1 %v3115_v39  ;;  %v3127_v46 = vadd.f32 %v2397_v40, %v287_v37  ;;  %v2420_v37 = vunpack.c.l.bf16 %v2540_v19 }
  0xfb   :  { %498 = vadd.xlane.f32.xlu0 %v3120_v43  ;;  %v3132_v49 = vadd.f32 %v2393_v44, %v279_v42  ;;  %v2541_v44 = vld [vmem:[%s4350_s1 + $0x40] sm:$0xff]  }
  0xfd   :  { %v2722_v48 = vpop.f32.mrb[4].mxu0  ;;  %v2738_v20 = vpop.f32.mrb[4].mxu1 }
  0xfe   :  { %504 = vadd.xlane.f32.xlu1 %v3127_v46  ;;  %v291_v51 = vpop.f32.mrb[5].mxu0  ;;  %v300_v52 = vadd.f32 %v2722_v48, %v3104_v26  ;;  %v3179_v24 = vadd.f32 %v2738_v20, %v3104_v26  ;;  %v355_v25 = vpop.f32.mrb[5].mxu1 }
  0xff   :  { %v292_v53 = vadd.f32 %v3104_v26, %v291_v51  ;;  %v2723_v54 = vpop.f32.mrb[6].mxu0  ;;  %500 = vadd.xlane.f32.xlu0 %v3132_v49  ;;  %v3182_v29 = vadd.f32 %v3104_v26, %v355_v25  ;;  %v2739_v31 = vpop.f32.mrb[6].mxu1  ;;  %v2421_v51 = vunpack.c.h.bf16 %v2540_v19  ;;  %v2789_v25 = vld [vmem:[%s4352_s6] ss:$8 sps:$4 sm:$0xff]  }
 0x100   :  { %v294_v57 = vpop.f32.mrb[7].mxu0  ;;  %v303_v58 = vadd.f32 %v2723_v54, %v3104_v26  ;;  %v3148_v0 = vadd.f32 %v2404_v56, %v300_v52  ;;  %v3188_v38 = vadd.f32 %v2739_v31, %v3104_v26  ;;  %v358_v40 = vpop.f32.mrb[7].mxu1  ;;  %v2542_v56 = vld [vmem:[%s4350_s1 + $0x48] sm:$0xff]   ;;  %v2794_v31 = vld [vmem:[%s4352_s6 + $0x14] ss:$8 sps:$4 sm:$0xff]  }
 0x101   :  { %v295_v59 = vadd.f32 %v3104_v26, %v294_v57  ;;  %v3140_v60 = vadd.f32 %v2400_v50, %v292_v53  ;;  %v3194_v45 = vadd.f32 %v3104_v26, %v358_v40  ;;  %v340_v53 = vadd.f32 %v3104_v26, %v3109_v33 }
 0x102   :  { %v3154_v3 = vadd.f32 %v2405_v61, %v303_v58  ;;  %v343_v57 = vadd.f32 %v3104_v26, %v3117_v41  ;;  %v348_v61 = vadd.f32 %v3106_v30, %v3104_v26  ;;  %v2428_v62 = vunpack.c.l.bf16 %v2542_v56 }
 0x103   :  { %506 = vadd.xlane.f32.xlu0 %v3140_v60  ;;  %v3146_v63 = vadd.f32 %v2401_v55, %v295_v59  ;;  %v2424_v55 = vunpack.c.l.bf16 %v2541_v44  ;;  %v2425_v59 = vunpack.c.h.bf16 %v2541_v44 }
 0x104   :  { %v3227_v41 = vadd.f32 %v2428_v62, %v348_v61  ;;  %v2544_v61 = vld [vmem:[%s4350_s1 + $0x58] sm:$0xff]  }
 0x105   :  { %v2726_v2 = vpop.f32.mrb[8].mxu0  ;;  %508 = vadd.xlane.f32.xlu1 %v3146_v63  ;;  %v3219_v33 = vadd.f32 %v2424_v55, %v340_v53 }
 0x106   :  { %v307_v5 = vpop.f32.mrb[9].mxu0  ;;  %v316_v6 = vadd.f32 %v2726_v2, %v3104_v26  ;;  %v3224_v2 = vadd.f32 %v2425_v59, %v343_v57 }
 0x107   :  { %v308_v7 = vadd.f32 %v3104_v26, %v307_v5  ;;  %v2727_v8 = vpop.f32.mrb[10].mxu0  ;;  %510 = vadd.xlane.f32.xlu0 %v3148_v0  ;;  %v2742_v5 = vpop.f32.mrb[8].mxu1 }
 0x108   :  { %v310_v11 = vpop.f32.mrb[11].mxu0  ;;  %v319_v12 = vadd.f32 %v2727_v8, %v3104_v26  ;;  %v3170_v18 = vadd.f32 %v2412_v10, %v316_v6  ;;  %v3230_v30 = vadd.f32 %v2742_v5, %v3104_v26 }
 0x109   :  { %v311_v13 = vadd.f32 %v3104_v26, %v310_v11  ;;  %512 = vadd.xlane.f32.xlu1 %v3154_v3  ;;  %v3162_v14 = vadd.f32 %v2408_v4, %v308_v7  ;;  %v2429_v4 = vunpack.c.h.bf16 %v2542_v56  ;;  %v371_v7 = vpop.f32.mrb[9].mxu1 }
 0x10a   :  { %v3176_v22 = vadd.f32 %v2413_v15, %v319_v12  ;;  %v3236_v36 = vadd.f32 %v3104_v26, %v371_v7  ;;  %v2743_v8 = vpop.f32.mrb[10].mxu1  ;;  %v2437_v7 = vunpack.c.h.bf16 %v2544_v61 }
 0x10b   :  { %514 = vadd.xlane.f32.xlu0 %v3162_v14  ;;  %v3168_v17 = vadd.f32 %v2409_v9, %v311_v13  ;;  %v3233_v6 = vadd.f32 %v2429_v4, %v351_v1  ;;  %v3240_v9 = vadd.f32 %v2743_v8, %v3104_v26  ;;  %v374_v10 = vpop.f32.mrb[11].mxu1  ;;  %v2545_v8 = vld [vmem:[%s4350_s1 + $0x60] sm:$0xff]  }
 0x10c   :  { %v3243_v11 = vadd.f32 %v3104_v26, %v374_v10 }
 0x10d   :  { %v2730_v21 = vpop.f32.mrb[12].mxu0  ;;  %516 = vadd.xlane.f32.xlu1 %v3168_v17  ;;  %v2746_v12 = vpop.f32.mrb[12].mxu1 }
 0x10e   :  { %v323_v27 = vpop.f32.mrb[13].mxu0  ;;  %v332_v32 = vadd.f32 %v2730_v21, %v3104_v26  ;;  %v3247_v13 = vadd.f32 %v2746_v12, %v3104_v26  ;;  %v387_v15 = vpop.f32.mrb[13].mxu1 }
 0x10f   :  { %v324_v34 = vadd.f32 %v3104_v26, %v323_v27  ;;  %v2731_v35 = vpop.f32.mrb[14].mxu0  ;;  %518 = vadd.xlane.f32.xlu0 %v3170_v18  ;;  %v3250_v16 = vadd.f32 %v3104_v26, %v387_v15  ;;  %v2747_v19 = vpop.f32.mrb[14].mxu1  ;;  %v2791_v27 = vld [vmem:[%s4352_s6 + $0x4] ss:$8 sps:$4 sm:$0xff]  }
 0x110   :  { %v326_v42 = vpop.f32.mrb[15].mxu0  ;;  %v335_v47 = vadd.f32 %v2731_v35, %v3104_v26  ;;  %v3206_v54 = vadd.f32 %v2420_v37, %v332_v32  ;;  %v3253_v20 = vadd.f32 %v2747_v19, %v3104_v26  ;;  %v390_v21 = vpop.f32.mrb[15].mxu1  ;;  %1053 = vmatprep.subr.bf16.mxu1 %v2791_v27  ;;  %v2440_v19 = vunpack.c.l.bf16 %v2545_v8 }
 0x111   :  { %v327_v48 = vadd.f32 %v3104_v26, %v326_v42  ;;  %520 = vadd.xlane.f32.xlu1 %v3176_v22  ;;  %v3199_v50 = vadd.f32 %v2416_v23, %v324_v34  ;;  %v3256_v23 = vadd.f32 %v3104_v26, %v390_v21  ;;  %1054 = vmatpush1.bf16.msra.mxu1 %v2789_v25  ;;  %v2543_v34 = vld [vmem:[%s4350_s1 + $0x50] sm:$0xff]  }
 0x112   :  { %v3214_v58 = vadd.f32 %v2421_v51, %v335_v47  ;;  %1055 = vmatprep.subr.bf16.mxu1 %v2794_v31  ;;  %v2432_v40 = vunpack.c.l.bf16 %v2543_v34  ;;  %v2433_v59 = vunpack.c.h.bf16 %v2543_v34  ;;  %v3315_v25 = vadd.f32 %v2437_v7, %v3188_v38  ;;  %v2795_v38 = vld [vmem:[%s4352_s6 + $0x20] ss:$8 sps:$4 sm:$0xff]   ;;  %v2806_v7 = vld [vmem:[%s4352_s6 + $0x54] ss:$8 sps:$4 sm:$0xff]  }
 0x113   :  { %522 = vadd.xlane.f32.xlu0 %v3199_v50  ;;  %v3202_v52 = vadd.f32 %v2417_v28, %v327_v48  ;;  %v2792_v28 = vld [vmem:[%s4352_s6 + $0x10] ss:$8 sps:$4 sm:$0xff]   ;;  %v3327_v31 = vadd.f32 %v2440_v19, %v3236_v36  ;;  %v2441_v34 = vunpack.c.h.bf16 %v2545_v8  ;;  %v2800_v36 = vld [vmem:[%s4352_s6 + $0x34] ss:$8 sps:$4 sm:$0xff]  }
 0x114   :  { %v3279_v53 = vadd.f32 %v2432_v40, %v3182_v29  ;;  %v2436_v29 = vunpack.c.l.bf16 %v2544_v61  ;;  %v3296_v4 = vadd.f32 %v2433_v59, %v3194_v45  ;;  %v2546_v40 = vld [vmem:[%s4350_s1 + $0x68] sm:$0xff]  }
 0x115   :  { %524 = vadd.xlane.f32.xlu1 %v3202_v52  ;;  %1056 = vmatpush1.bf16.msra.mxu1 %v2792_v28  ;;  %v2803_v59 = vld [vmem:[%s4352_s6 + $0x44] ss:$8 sps:$4 sm:$0xff]   ;;  %v2445_v61 = vunpack.c.h.bf16 %v2546_v40 }
 0x116   :  { %v3306_v12 = vadd.f32 %v2436_v29, %v3179_v24 }
 0x117   :  { %526 = vadd.xlane.f32.xlu0 %v3206_v54 }
 0x119   :  { %528 = vadd.xlane.f32.xlu1 %v3214_v58 }
 0x11b   :  { %530 = vadd.xlane.f32.xlu0 %v3219_v33 }
 0x11d   :  { %532 = vadd.xlane.f32.xlu1 %v3224_v2 }
 0x11f   :  { %534 = vadd.xlane.f32.xlu0 %v3227_v41 }
 0x121   :  { %536 = vadd.xlane.f32.xlu1 %v3233_v6 }
 0x187   :  { %v503_v26 = vpop.xlane.xlu1 %502 }
 0x188   :  { %v499_v32 = vpop.xlane.xlu0 %498  ;;  %v565_v44 = vmul.f32 0.0078125, %v503_v26 }
 0x189   :  { %v563_v35 = vmul.f32 0.0078125, %v499_v32 }
 0x18a   :  { %v3287_v57 = vsub.f32 %v3115_v39, %v565_v44 }
 0x18b   :  { %v3274_v37 = vsub.f32 %v3120_v43, %v563_v35  ;;  %v505_v51 = vpop.xlane.xlu1 %504 }
 0x18c   :  { %v501_v42 = vpop.xlane.xlu0 %500  ;;  %v566_v56 = vmul.f32 0.0078125, %v505_v51 }
 0x18d   :  { %v564_v47 = vmul.f32 0.0078125, %v501_v42  ;;  %v627_v48 = vmul.f32 %v3274_v37, %v3274_v37  ;;  %v2798_v42 = vld [vmem:[%s4352_s6 + $0x30] ss:$8 sps:$4 sm:$0xff]  }
 0x18e   :  { %v3299_v39 = vsub.f32 %v3127_v46, %v566_v56 }
 0x18f   :  { %659 = vadd.xlane.f32.xlu0 %v627_v48  ;;  %v3282_v55 = vsub.f32 %v3132_v49, %v564_v47  ;;  %v629_v49 = vmul.f32 %v3287_v57, %v3287_v57  ;;  %v2444_v47 = vunpack.c.l.bf16 %v2546_v40  ;;  %v3348_v48 = vadd.f32 %v2441_v34, %v3243_v11  ;;  %v2801_v11 = vld [vmem:[%s4352_s6 + $0x40] ss:$8 sps:$4 sm:$0xff]   ;;  %v2810_v34 = vld [vmem:[%s4352_s6 + $0x70] ss:$8 sps:$4 sm:$0xff]  }
 0x190   :  { %v507_v62 = vpop.xlane.xlu0 %506  ;;  %v630_v45 = vmul.f32 %v3299_v39, %v3299_v39 }
 0x191   :  { %v628_v43 = vmul.f32 %v3282_v55, %v3282_v55  ;;  %v567_v1 = vmul.f32 0.0078125, %v507_v62  ;;  %v2547_v62 = vld [vmem:[%s4350_s1 + $0x70] sm:$0xff]  }
 0x192   :  { %v509_v5 = vpop.xlane.xlu1 %508  ;;  %v2448_v8 = vunpack.c.l.bf16 %v2547_v62 }
 0x193   :  { %538 = vadd.xlane.f32.xlu0 %v3279_v53  ;;  %661 = vadd.xlane.f32.xlu1 %v628_v43  ;;  %v568_v10 = vmul.f32 0.0078125, %v509_v5  ;;  %v3311_v15 = vsub.f32 %v3140_v60, %v567_v1  ;;  %v2797_v60 = vld [vmem:[%s4352_s6 + $0x24] ss:$8 sps:$4 sm:$0xff]   ;;  %v3368_v1 = vadd.f32 %v2444_v47, %v3230_v30 }
 0x194   :  { %v511_v46 = vpop.xlane.xlu0 %510  ;;  %1057 = vmatprep.subr.bf16.mxu1 %v2797_v60 }
 0x195   :  { %v569_v21 = vmul.f32 0.0078125, %v511_v46  ;;  %v631_v27 = vmul.f32 %v3311_v15, %v3311_v15  ;;  %v3320_v24 = vsub.f32 %v3146_v63, %v568_v10  ;;  %1058 = vmatpush1.bf16.msra.mxu1 %v2795_v38  ;;  %v2804_v10 = vld [vmem:[%s4352_s6 + $0x50] ss:$8 sps:$4 sm:$0xff]   ;;  %v2449_v38 = vunpack.c.h.bf16 %v2547_v62 }
 0x196   :  { %v513_v28 = vpop.xlane.xlu1 %512  ;;  %1059 = vmatprep.subr.bf16.mxu1 %v2800_v36 }
 0x197   :  { %663 = vadd.xlane.f32.xlu0 %v629_v49  ;;  %540 = vadd.xlane.f32.xlu1 %v3296_v4  ;;  %v570_v32 = vmul.f32 0.0078125, %v513_v28  ;;  %v632_v63 = vmul.f32 %v3320_v24, %v3320_v24  ;;  %v3335_v35 = vsub.f32 %v3148_v0, %v569_v21  ;;  %v2809_v21 = vld [vmem:[%s4352_s6 + $0x64] ss:$8 sps:$4 sm:$0xff]   ;;  %v3414_v36 = vadd.f32 %v2449_v38, %v3256_v23 }
 0x198   :  { %v515_v26 = vpop.xlane.xlu0 %514 }
 0x199   :  { %v571_v0 = vmul.f32 0.0078125, %v515_v26  ;;  %v633_v51 = vmul.f32 %v3335_v35, %v3335_v35  ;;  %v3353_v56 = vsub.f32 %v3154_v3, %v570_v32  ;;  %1060 = vmatpush1.bf16.msra.mxu1 %v2798_v42  ;;  %v2548_v32 = vld [vmem:[%s4350_s1 + $0x78] sm:$0xff]  }
 0x19a   :  { %v517_v44 = vpop.xlane.xlu1 %516  ;;  %1061 = vmatprep.subr.bf16.mxu1 %v2803_v59  ;;  %v2452_v40 = vunpack.c.l.bf16 %v2548_v32  ;;  %v2957_v59 = vmov 0  }
 0x19b   :  { %542 = vadd.xlane.f32.xlu0 %v3306_v12  ;;  %665 = vadd.xlane.f32.xlu1 %v630_v45  ;;  %v572_v3 = vmul.f32 0.0078125, %v517_v44  ;;  %v634_v29 = vmul.f32 %v3353_v56, %v3353_v56  ;;  %v3371_v49 = vsub.f32 %v3162_v14, %v571_v0  ;;  %v3381_v14 = vadd.f32 %v2445_v61, %v3240_v9  ;;  %v2807_v9 = vld [vmem:[%s4352_s6 + $0x60] ss:$8 sps:$4 sm:$0xff]  }
 0x19c   :  { %v519_v43 = vpop.xlane.xlu0 %518  ;;  %1085 = vmatprep.mubr.bf16.mxu1 %v2957_v59  ;;  %v3426_v61 = vadd.f32 %v2452_v40, %v3247_v13 }
 0x19d   :  { %1062 = vmatpush1.bf16.msra.mxu1 %v2801_v11  ;;  %v573_v30 = vmul.f32 0.0078125, %v519_v43  ;;  %v635_v46 = vmul.f32 %v3371_v49, %v3371_v49  ;;  %v3386_v19 = vsub.f32 %v3168_v17, %v572_v3  ;;  %v2453_v43 = vunpack.c.h.bf16 %v2548_v32 }
 0x19e   :  { %v521_v5 = vpop.xlane.xlu1 %520  ;;  %1063 = vmatprep.subr.bf16.mxu1 %v2806_v7 }
 0x19f   :  { %544 = vadd.xlane.f32.xlu1 %v3315_v25  ;;  %667 = vadd.xlane.f32.xlu0 %v631_v27  ;;  %v3393_v27 = vadd.f32 %v2448_v8, %v3250_v16  ;;  %v574_v60 = vmul.f32 0.0078125, %v521_v5  ;;  %v636_v17 = vmul.f32 %v3386_v19, %v3386_v19  ;;  %v3401_v26 = vsub.f32 %v3170_v18, %v573_v30 }
 0x1a0   :  { %v523_v45 = vpop.xlane.xlu0 %522  ;;  %v3436_v7 = vadd.f32 %v2453_v43, %v3253_v20 }
 0x1a1   :  { %1064 = vmatpush1.bf16.msra.mxu1 %v2804_v10  ;;  %v575_v18 = vmul.f32 0.0078125, %v523_v45  ;;  %v637_v42 = vmul.f32 %v3401_v26, %v3401_v26  ;;  %v3419_v44 = vsub.f32 %v3176_v22, %v574_v60 }
 0x1a2   :  { %v525_v28 = vpop.xlane.xlu1 %524  ;;  %1065 = vmatprep.subr.bf16.mxu1 %v2809_v21 }
 0x1a3   :  { %669 = vadd.xlane.f32.xlu1 %v632_v63  ;;  %546 = vadd.xlane.f32.xlu0 %v3327_v31  ;;  %v2812_v63 = vld [vmem:[%s4352_s6 + $0x74] ss:$8 sps:$4 sm:$0xff]   ;;  %v576_v0 = vmul.f32 0.0078125, %v525_v28  ;;  %v638_v23 = vmul.f32 %v3419_v44, %v3419_v44  ;;  %v3429_v22 = vsub.f32 %v3199_v50, %v575_v18 }
 0x1a4   :  { %v527_v16 = vpop.xlane.xlu0 %526 }
 0x1a5   :  { %1066 = vmatpush1.bf16.msra.mxu1 %v2807_v9  ;;  %v577_v11 = vmul.f32 0.0078125, %v527_v16  ;;  %v639_v8 = vmul.f32 %v3429_v22, %v3429_v22 }
 0x1a6   :  { %1067 = vmatprep.subr.bf16.mxu1 %v2812_v63  ;;  %v529_v47 = vpop.xlane.xlu1 %528 }
 0x1a7   :  { %548 = vadd.xlane.f32.xlu1 %v3348_v48  ;;  %671 = vadd.xlane.f32.xlu0 %v633_v51  ;;  %v578_v62 = vmul.f32 0.0078125, %v529_v47  ;;  %v3441_v13 = vsub.f32 %v3206_v54, %v577_v11 }
 0x1a8   :  { %v531_v51 = vpop.xlane.xlu0 %530 }
 0x1a9   :  { %1068 = vmatpush1.bf16.msra.mxu1 %v2810_v34  ;;  %v579_v5 = vmul.f32 0.0078125, %v531_v51  ;;  %v641_v20 = vmul.f32 %v3441_v13, %v3441_v13 }
 0x1aa   :  { %v533_v3 = vpop.xlane.xlu1 %532 }
 0x1ab   :  { %673 = vadd.xlane.f32.xlu1 %v634_v29  ;;  %550 = vadd.xlane.f32.xlu0 %v3368_v1  ;;  %v3433_v29 = vsub.f32 %v3202_v52, %v576_v0  ;;  %v3447_v52 = vsub.f32 %v3214_v58, %v578_v62  ;;  %v580_v45 = vmul.f32 0.0078125, %v533_v3 }
 0x1ac   :  { %v535_v50 = vpop.xlane.xlu0 %534 }
 0x1ad   :  { %v640_v10 = vmul.f32 %v3433_v29, %v3433_v29  ;;  %v581_v30 = vmul.f32 0.0078125, %v535_v50  ;;  %v642_v21 = vmul.f32 %v3447_v52, %v3447_v52  ;;  %v3459_v58 = vsub.f32 %v3224_v2, %v580_v45 }
 0x1ae   :  { %v537_v54 = vpop.xlane.xlu1 %536 }
 0x1af   :  { %552 = vadd.xlane.f32.xlu1 %v3381_v14  ;;  %675 = vadd.xlane.f32.xlu0 %v635_v46  ;;  %v3452_v46 = vsub.f32 %v3219_v33, %v579_v5  ;;  %v582_v9 = vmul.f32 0.0078125, %v537_v54  ;;  %v3462_v60 = vsub.f32 %v3227_v41, %v581_v30  ;;  %v644_v33 = vmul.f32 %v3459_v58, %v3459_v58 }
 0x1b1   :  { %v643_v28 = vmul.f32 %v3452_v46, %v3452_v46  ;;  %v3469_v38 = vsub.f32 %v3233_v6, %v582_v9 }
 0x1b3   :  { %677 = vadd.xlane.f32.xlu1 %v636_v17  ;;  %554 = vadd.xlane.f32.xlu0 %v3393_v27  ;;  %v645_v17 = vmul.f32 %v3462_v60, %v3462_v60  ;;  %v646_v2 = vmul.f32 %v3469_v38, %v3469_v38 }
 0x1b7   :  { %556 = vadd.xlane.f32.xlu1 %v3414_v36  ;;  %679 = vadd.xlane.f32.xlu0 %v637_v42 }
 0x1bb   :  { %681 = vadd.xlane.f32.xlu1 %v638_v23  ;;  %558 = vadd.xlane.f32.xlu0 %v3426_v61 }
 0x1bf   :  { %560 = vadd.xlane.f32.xlu1 %v3436_v7  ;;  %683 = vadd.xlane.f32.xlu0 %v639_v8 }
 0x1c3   :  { %685 = vadd.xlane.f32.xlu1 %v640_v10  ;;  %687 = vadd.xlane.f32.xlu0 %v641_v20 }
 0x1c7   :  { %689 = vadd.xlane.f32.xlu1 %v642_v21  ;;  %691 = vadd.xlane.f32.xlu0 %v643_v28 }
 0x1cb   :  { %693 = vadd.xlane.f32.xlu1 %v644_v33  ;;  %695 = vadd.xlane.f32.xlu0 %v645_v17 }
 0x1cf   :  { %697 = vadd.xlane.f32.xlu1 %v646_v2 }
 0x21c   :  { %v660_v32 = vpop.xlane.xlu0 %659 }
 0x21d   :  { %v723_v41 = vmul.f32 0.0078125, %v660_v32 }
 0x21f   :  { %v755_v16 = vadd.f32 1e-05, %v723_v41 }
 0x220   :  { %v662_v63 = vpop.xlane.xlu1 %661  ;;  %v539_v34 = vpop.xlane.xlu0 %538 }
 0x221   :  { %2829 = vrsqrt.f32 %v755_v16  ;;  %v724_v40 = vmul.f32 0.0078125, %v662_v63  ;;  %v583_v18 = vmul.f32 0.0078125, %v539_v34 }
 0x223   :  { %v756_v42 = vadd.f32 1e-05, %v724_v40  ;;  %v3474_v47 = vsub.f32 %v3279_v53, %v583_v18  ;;  %v3504_v18 = vld [vmem:[%s4354_s5] ss:$0 sm:$0xff] }
 0x224   :  { %v541_v6 = vpop.xlane.xlu1 %540  ;;  %v664_v0 = vpop.xlane.xlu0 %663 }
 0x225   :  { %2831 = vrsqrt.f32 %v756_v42  ;;  %v584_v51 = vmul.f32 0.0078125, %v541_v6  ;;  %v725_v43 = vmul.f32 0.0078125, %v664_v0  ;;  %v647_v11 = vmul.f32 %v3474_v47, %v3474_v47 }
 0x227   :  { %v757_v23 = vadd.f32 1e-05, %v725_v43  ;;  %699 = vadd.xlane.f32.xlu0 %v647_v11  ;;  %v3479_v62 = vsub.f32 %v3296_v4, %v584_v51  ;;  %v3490_v4 = vld [vmem:[%s4353_s4] ss:$0 sm:$0xff] }
 0x228   :  { %v666_v3 = vpop.xlane.xlu1 %665  ;;  %v543_v5 = vpop.xlane.xlu0 %542 }
 0x229   :  { %2833 = vrsqrt.f32 %v757_v23  ;;  %v726_v8 = vmul.f32 0.0078125, %v666_v3  ;;  %v585_v50 = vmul.f32 0.0078125, %v543_v5  ;;  %v648_v53 = vmul.f32 %v3479_v62, %v3479_v62 }
 0x22b   :  { %v2830_v10 = vpop.eup %2829  ;;  %v758_v45 = vadd.f32 1e-05, %v726_v8  ;;  %701 = vadd.xlane.f32.xlu1 %v648_v53  ;;  %v3484_v30 = vsub.f32 %v3306_v12, %v585_v50 }
 0x22c   :  { %v819_v20 = vmul.f32 %v2830_v10, %v3274_v37  ;;  %v545_v54 = vpop.xlane.xlu1 %544  ;;  %v668_v21 = vpop.xlane.xlu0 %667 }
 0x22d   :  { %2835 = vrsqrt.f32 %v758_v45  ;;  %v586_v9 = vmul.f32 0.0078125, %v545_v54  ;;  %v727_v28 = vmul.f32 0.0078125, %v668_v21  ;;  %v649_v33 = vmul.f32 %v3484_v30, %v3484_v30 }
 0x22e   :  { %v858_v37 = vmul.f32 %v3490_v4, %v819_v20 }
 0x22f   :  { %v2832_v17 = vpop.eup %2831  ;;  %v759_v2 = vadd.f32 1e-05, %v727_v28  ;;  %703 = vadd.xlane.f32.xlu0 %v649_v33  ;;  %v3495_v12 = vsub.f32 %v3315_v25, %v586_v9 }
 0x230   :  { %v820_v32 = vmul.f32 %v2832_v17, %v3282_v55  ;;  %v670_v41 = vpop.xlane.xlu1 %669  ;;  %v547_v16 = vpop.xlane.xlu0 %546  ;;  %v3511_v43 = vadd.f32 %v3504_v18, %v858_v37 }
 0x231   :  { %2837 = vrsqrt.f32 %v759_v2  ;;  %v728_v63 = vmul.f32 0.0078125, %v670_v41  ;;  %v587_v34 = vmul.f32 0.0078125, %v547_v16  ;;  %v650_v40 = vmul.f32 %v3495_v12, %v3495_v12 }
 0x232   :  { %v859_v25 = vmul.f32 %v3490_v4, %v820_v32 }
 0x233   :  { %v2834_v42 = vpop.eup %2833  ;;  %v760_v6 = vadd.f32 1e-05, %v728_v63  ;;  %v3508_v0 = vsub.f32 %v3327_v31, %v587_v34  ;;  %705 = vadd.xlane.f32.xlu1 %v650_v40 }
 0x234   :  { %v549_v55 = vpop.xlane.xlu1 %548  ;;  %v672_v51 = vpop.xlane.xlu0 %671  ;;  %v3514_v11 = vadd.f32 %v3504_v18, %v859_v25  ;;  %v821_v23 = vmul.f32 %v2834_v42, %v3287_v57 }
 0x235   :  { %2839 = vrsqrt.f32 %v760_v6  ;;  %v588_v3 = vmul.f32 0.0078125, %v549_v55  ;;  %v729_v5 = vmul.f32 0.0078125, %v672_v51  ;;  %v651_v8 = vmul.f32 %v3508_v0, %v3508_v0 }
 0x236   :  { %v929_v31 = vpack.c.bf16 %v3514_v11, %v3511_v43  ;;  %v860_v54 = vmul.f32 %v3490_v4, %v821_v23 }
 0x237   :  { %v2836_v50 = vpop.eup %2835  ;;  %v3522_v53 = vsub.f32 %v3348_v48, %v588_v3  ;;  %v761_v10 = vadd.f32 1e-05, %v729_v5  ;;  %707 = vadd.xlane.f32.xlu0 %v651_v8 }
 0x238   :  { %v674_v45 = vpop.xlane.xlu1 %673  ;;  %1086 = vmatmul.mubr.bf16.vlgmr.msra.gmra.mrb[16].mxu1 %v929_v31  ;;  %v551_v20 = vpop.xlane.xlu0 %550  ;;  %v822_v57 = vmul.f32 %v2836_v50, %v3299_v39  ;;  %v3534_v32 = vadd.f32 %v3504_v18, %v860_v54 }
 0x239   :  { %2841 = vrsqrt.f32 %v761_v10  ;;  %v730_v21 = vmul.f32 0.0078125, %v674_v45  ;;  %v589_v9 = vmul.f32 0.0078125, %v551_v20  ;;  %v652_v28 = vmul.f32 %v3522_v53, %v3522_v53  ;;  %1095 = vmatprep.mubr.bf16.mxu1 %v2957_v59 }
 0x23a   :  { %v861_v48 = vmul.f32 %v3490_v4, %v822_v57 }
 0x23b   :  { %v2838_v33 = vpop.eup %2837  ;;  %v762_v17 = vadd.f32 1e-05, %v730_v21  ;;  %v3531_v2 = vsub.f32 %v3368_v1, %v589_v9  ;;  %709 = vadd.xlane.f32.xlu1 %v652_v28 }
 0x23c   :  { %v553_v37 = vpop.xlane.xlu1 %552  ;;  %v676_v39 = vpop.xlane.xlu0 %675  ;;  %v3537_v41 = vadd.f32 %v3504_v18, %v861_v48  ;;  %v823_v16 = vmul.f32 %v2838_v33, %v3311_v15 }
 0x23d   :  { %2843 = vrsqrt.f32 %v762_v17  ;;  %v590_v63 = vmul.f32 0.0078125, %v553_v37  ;;  %v731_v34 = vmul.f32 0.0078125, %v676_v39  ;;  %v653_v40 = vmul.f32 %v3531_v2, %v3531_v2 }
 0x23e   :  { %v930_v1 = vpack.c.bf16 %v3537_v41, %v3534_v32  ;;  %v862_v23 = vmul.f32 %v3490_v4, %v823_v16 }
 0x23f   :  { %v2840_v25 = vpop.eup %2839  ;;  %v3545_v42 = vsub.f32 %v3381_v14, %v590_v63  ;;  %v763_v6 = vadd.f32 1e-05, %v731_v34  ;;  %711 = vadd.xlane.f32.xlu0 %v653_v40 }
 0x240   :  { %v678_v55 = vpop.xlane.xlu1 %677  ;;  %1096 = vmatmul.mubr.bf16.gmra.mrb[20].mxu1 %v930_v1  ;;  %v555_v51 = vpop.xlane.xlu0 %554  ;;  %v824_v15 = vmul.f32 %v2840_v25, %v3320_v24  ;;  %v3557_v20 = vadd.f32 %v3504_v18, %v862_v23 }
 0x241   :  { %2845 = vrsqrt.f32 %v763_v6  ;;  %v732_v3 = vmul.f32 0.0078125, %v678_v55  ;;  %v591_v5 = vmul.f32 0.0078125, %v555_v51  ;;  %v654_v8 = vmul.f32 %v3545_v42, %v3545_v42  ;;  %1105 = vmatprep.mubr.bf16.mxu1 %v2957_v59 }
 0x242   :  { %v863_v14 = vmul.f32 %v3490_v4, %v824_v15 }
 0x243   :  { %v2842_v31 = vpop.eup %2841  ;;  %v764_v50 = vadd.f32 1e-05, %v732_v3  ;;  %v3554_v10 = vsub.f32 %v3393_v27, %v591_v5  ;;  %713 = vadd.xlane.f32.xlu1 %v654_v8 }
 0x244   :  { %v557_v45 = vpop.xlane.xlu1 %556  ;;  %v680_v24 = vpop.xlane.xlu0 %679  ;;  %v3560_v57 = vadd.f32 %v3504_v18, %v863_v14  ;;  %v825_v54 = vmul.f32 %v2842_v31, %v3335_v35 }
 0x245   :  { %2847 = vrsqrt.f32 %v764_v50  ;;  %v592_v21 = vmul.f32 0.0078125, %v557_v45  ;;  %v733_v9 = vmul.f32 0.0078125, %v680_v24  ;;  %v655_v28 = vmul.f32 %v3554_v10, %v3554_v10 }
 0x246   :  { %v931_v27 = vpack.c.bf16 %v3560_v57, %v3557_v20  ;;  %v864_v16 = vmul.f32 %v3490_v4, %v825_v54 }
 0x247   :  { %v2844_v48 = vpop.eup %2843  ;;  %v3568_v33 = vsub.f32 %v3414_v36, %v592_v21  ;;  %v765_v17 = vadd.f32 1e-05, %v733_v9  ;;  %715 = vadd.xlane.f32.xlu0 %v655_v28 }
 0x248   :  { %v682_v37 = vpop.xlane.xlu1 %681  ;;  %1106 = vmatmul.mubr.bf16.gmra.mrb[24].mxu1 %v931_v27  ;;  %v559_v39 = vpop.xlane.xlu0 %558  ;;  %v826_v35 = vmul.f32 %v2844_v48, %v3353_v56  ;;  %v3580_v51 = vadd.f32 %v3504_v18, %v864_v16 }
 0x249   :  { %2849 = vrsqrt.f32 %v765_v17  ;;  %v734_v63 = vmul.f32 0.0078125, %v682_v37  ;;  %v593_v34 = vmul.f32 0.0078125, %v559_v39  ;;  %v656_v40 = vmul.f32 %v3568_v33, %v3568_v33  ;;  %1115 = vmatprep.mubr.bf16.mxu1 %v2957_v59 }
 0x24a   :  { %v865_v36 = vmul.f32 %v3490_v4, %v826_v35 }
 0x24b   :  { %v2846_v1 = vpop.eup %2845  ;;  %v766_v25 = vadd.f32 1e-05, %v734_v63  ;;  %v3577_v6 = vsub.f32 %v3426_v61, %v593_v34  ;;  %717 = vadd.xlane.f32.xlu1 %v656_v40 }
 0x24c   :  { %v561_v55 = vpop.xlane.xlu1 %560  ;;  %v684_v56 = vpop.xlane.xlu0 %683  ;;  %v3583_v15 = vadd.f32 %v3504_v18, %v865_v36  ;;  %v827_v23 = vmul.f32 %v2846_v1, %v3371_v49 }
 0x24d   :  { %2851 = vrsqrt.f32 %v766_v25  ;;  %v594_v3 = vmul.f32 0.0078125, %v561_v55  ;;  %v735_v5 = vmul.f32 0.0078125, %v684_v56  ;;  %v657_v8 = vmul.f32 %v3577_v6, %v3577_v6 }
 0x24e   :  { %v932_v61 = vpack.c.bf16 %v3583_v15, %v3580_v51  ;;  %v866_v54 = vmul.f32 %v3490_v4, %v827_v23 }
 0x24f   :  { %v2848_v14 = vpop.eup %2847  ;;  %v3591_v31 = vsub.f32 %v3436_v7, %v594_v3  ;;  %v767_v50 = vadd.f32 1e-05, %v735_v5  ;;  %719 = vadd.xlane.f32.xlu0 %v657_v8 }
 0x250   :  { %v686_v45 = vpop.xlane.xlu1 %685  ;;  %1116 = vmatmul.mubr.bf16.gmra.mrb[28].mxu1 %v932_v61  ;;  %v688_v24 = vpop.xlane.xlu0 %687  ;;  %v828_v49 = vmul.f32 %v2848_v14, %v3386_v19  ;;  %v3600_v19 = vadd.f32 %v3504_v18, %v866_v54 }
 0x251   :  { %2853 = vrsqrt.f32 %v767_v50  ;;  %v736_v21 = vmul.f32 0.0078125, %v686_v45  ;;  %v737_v9 = vmul.f32 0.0078125, %v688_v24  ;;  %v658_v28 = vmul.f32 %v3591_v31, %v3591_v31  ;;  %1125 = vmatprep.mubr.bf16.mxu1 %v2957_v59 }
 0x252   :  { %v867_v7 = vmul.f32 %v3490_v4, %v828_v49 }
 0x253   :  { %v2850_v27 = vpop.eup %2849  ;;  %v768_v48 = vadd.f32 1e-05, %v736_v21  ;;  %v769_v17 = vadd.f32 1e-05, %v737_v9  ;;  %721 = vadd.xlane.f32.xlu1 %v658_v28 }
 0x254   :  { %v690_v37 = vpop.xlane.xlu1 %689  ;;  %v692_v39 = vpop.xlane.xlu0 %691  ;;  %v3603_v35 = vadd.f32 %v3504_v18, %v867_v7  ;;  %v829_v16 = vmul.f32 %v2850_v27, %v3401_v26 }
 0x255   :  { %2855 = vrsqrt.f32 %v768_v48  ;;  %v738_v63 = vmul.f32 0.0078125, %v690_v37  ;;  %v739_v1 = vmul.f32 0.0078125, %v692_v39 }
 0x256   :  { %v933_v34 = vpack.c.bf16 %v3603_v35, %v3600_v19  ;;  %2857 = vrsqrt.f32 %v769_v17  ;;  %v868_v56 = vmul.f32 %v3490_v4, %v829_v16 }
 0x257   :  { %v2852_v40 = vpop.eup %2851  ;;  %v770_v36 = vadd.f32 1e-05, %v738_v63  ;;  %v771_v5 = vadd.f32 1e-05, %v739_v1 }
 0x258   :  { %v694_v25 = vpop.xlane.xlu1 %693  ;;  %1126 = vmatmul.mubr.bf16.gmra.mrb[32].mxu1 %v933_v34  ;;  %v830_v55 = vmul.f32 %v2852_v40, %v3419_v44  ;;  %v696_v61 = vpop.xlane.xlu0 %695  ;;  %v3613_v50 = vadd.f32 %v3504_v18, %v868_v56 }
 0x259   :  { %2859 = vrsqrt.f32 %v770_v36  ;;  %v740_v23 = vmul.f32 0.0078125, %v694_v25  ;;  %1135 = vmatprep.mubr.bf16.mxu1 %v2957_v59  ;;  %v741_v21 = vmul.f32 0.0078125, %v696_v61  ;;  %v2814_v61 = vld [vmem:[%s4355_s8] sm:$0xff]  }
 0x25a   :  { %v869_v26 = vmul.f32 %v3490_v4, %v830_v55 }
 0x25b   :  { %v2854_v3 = vpop.eup %2853  ;;  %v772_v8 = vadd.f32 1e-05, %v740_v23  ;;  %v773_v17 = vadd.f32 1e-05, %v741_v21  ;;  %v2816_v21 = vld [vmem:[%s4355_s8 + $0x8] sm:$0xff]  }
 0x25c   :  { %v698_v14 = vpop.xlane.xlu1 %697  ;;  %v3616_v45 = vadd.f32 %v3504_v18, %v869_v26  ;;  %v831_v44 = vmul.f32 %v2854_v3, %v3429_v22 }
 0x25d   :  { %2861 = vrsqrt.f32 %v772_v8  ;;  %v742_v24 = vmul.f32 0.0078125, %v698_v14 }
 0x25e   :  { %v934_v49 = vpack.c.bf16 %v3616_v45, %v3613_v50  ;;  %2863 = vrsqrt.f32 %v771_v5  ;;  %v870_v28 = vmul.f32 %v3490_v4, %v831_v44 }
 0x25f   :  { %v2856_v54 = vpop.eup %2855  ;;  %v774_v27 = vadd.f32 1e-05, %v742_v24 }
 0x260   :  { %1136 = vmatmul.mubr.bf16.gmra.mrb[36].mxu1 %v934_v49  ;;  %v832_v9 = vmul.f32 %v2856_v54, %v3433_v29  ;;  %v2858_v7 = vpop.eup %2857  ;;  %v3626_v37 = vadd.f32 %v3504_v18, %v870_v28  ;;  %v2818_v28 = vld [vmem:[%s4355_s8 + $0x10] sm:$0xff]  }
 0x261   :  { %1145 = vmatprep.mubr.bf16.mxu1 %v2957_v59  ;;  %v833_v16 = vmul.f32 %v2858_v7, %v3441_v13  ;;  %2865 = vrsqrt.f32 %v774_v27  ;;  %v2819_v27 = vld [vmem:[%s4355_s8 + $0x58] sm:$0xff]  }
 0x262   :  { %v871_v48 = vmul.f32 %v3490_v4, %v832_v9  ;;  %2867 = vrsqrt.f32 %v773_v17  ;;  %v2821_v17 = vld [vmem:[%s4355_s8 + $0x60] sm:$0xff]  }
 0x263   :  { %v2860_v22 = vpop.eup %2859  ;;  %v872_v36 = vmul.f32 %v3490_v4, %v833_v16  ;;  %v2822_v16 = vld [vmem:[%s4355_s8 + $0x20] sm:$0xff]  }
 0x264   :  { %v3629_v39 = vadd.f32 %v3504_v18, %v871_v48  ;;  %v834_v29 = vmul.f32 %v2860_v22, %v3447_v52  ;;  %v2820_v48 = vld [vmem:[%s4355_s8 + $0x18] sm:$0xff]  }
 0x265   :  { %v3643_v52 = vadd.f32 %v3504_v18, %v872_v36  ;;  %v2827_v36 = vld [vmem:[%s4355_s8 + $0x78] sm:$0xff]  }
 0x266   :  { %v935_v63 = vpack.c.bf16 %v3629_v39, %v3626_v37  ;;  %v873_v34 = vmul.f32 %v3490_v4, %v834_v29  ;;  %v2823_v29 = vld [vmem:[%s4355_s8 + $0x68] sm:$0xff]  }
 0x267   :  { %v2862_v40 = vpop.eup %2861 }
 0x268   :  { %1146 = vmatmul.mubr.bf16.gmra.mrb[40].mxu1 %v935_v63  ;;  %v2864_v1 = vpop.eup %2863  ;;  %v3639_v25 = vadd.f32 %v3504_v18, %v873_v34  ;;  %v836_v13 = vmul.f32 %v2862_v40, %v3459_v58  ;;  %v2813_v58 = vld [vmem:[%s4355_s8 + $0x40] sm:$0xff]   ;;  %v2824_v63 = vld [vmem:[%s4355_s8 + $0x28] sm:$0xff]   ;;  %v2825_v34 = vld [vmem:[%s4355_s8 + $0x70] sm:$0xff]  }
 0x269   :  { %1155 = vmatprep.mubr.bf16.mxu1 %v2957_v59  ;;  %v835_v55 = vmul.f32 %v2864_v1, %v3452_v46  ;;  %2588 = vmatprep.subr.bf16.mxu0 %v2813_v58  ;;  %v2826_v40 = vld [vmem:[%s4355_s8 + $0x30] sm:$0xff]   ;;  %v2828_v1 = vld [vmem:[%s4355_s8 + $0x38] sm:$0xff]  }
 0x26a   :  { %v936_v56 = vpack.c.bf16 %v3639_v25, %v3643_v52  ;;  %v875_v23 = vmul.f32 %v3490_v4, %v836_v13  ;;  %2589 = vmatpush3.bf16.msra.mxu0 %v2814_v61 }
 0x26b   :  { %v2866_v26 = vpop.eup %2865  ;;  %v874_v3 = vmul.f32 %v3490_v4, %v835_v55 }
 0x26c   :  { %v2868_v5 = vpop.eup %2867  ;;  %v3655_v8 = vadd.f32 %v3504_v18, %v875_v23  ;;  %v838_v46 = vmul.f32 %v2866_v26, %v3469_v38  ;;  %v2815_v38 = vld [vmem:[%s4355_s8 + $0x48] sm:$0xff]  }
 0x26d   :  { %v3662_v14 = vadd.f32 %v3504_v18, %v874_v3  ;;  %v837_v44 = vmul.f32 %v2868_v5, %v3462_v60  ;;  %v2817_v60 = vld [vmem:[%s4355_s8 + $0x50] sm:$0xff]   ;;  %2590 = vmatprep.subr.bf16.mxu0 %v2815_v38 }
 0x26e   :  { %v877_v49 = vmul.f32 %v3490_v4, %v838_v46  ;;  %2591 = vmatpush3.bf16.msra.mxu0 %v2816_v21 }
 0x26f   :  { %v937_v24 = vpack.c.bf16 %v3655_v8, %v3662_v14  ;;  %v876_v54 = vmul.f32 %v3490_v4, %v837_v44  ;;  %2592 = vmatprep.subr.bf16.mxu0 %v2817_v60 }
 0x270   :  { %1156 = vmatmul.mubr.bf16.gmra.mrb[44].mxu1 %v936_v56  ;;  %v3680_v9 = vadd.f32 %v3504_v18, %v877_v49 }
 0x271   :  { %1165 = vmatprep.mubr.bf16.mxu1 %v2957_v59  ;;  %v3686_v7 = vadd.f32 %v3504_v18, %v876_v54 }
 0x272   :  { %2593 = vmatpush3.bf16.msra.mxu0 %v2818_v28 }
 0x273   :  { %v938_v22 = vpack.c.bf16 %v3680_v9, %v3686_v7  ;;  %2594 = vmatprep.subr.bf16.mxu0 %v2819_v27 }
 0x276   :  { %2595 = vmatpush3.bf16.msra.mxu0 %v2820_v48 }
 0x277   :  { %2596 = vmatprep.subr.bf16.mxu0 %v2821_v17 }
 0x278   :  { %1166 = vmatmul.mubr.bf16.gmra.mrb[48].mxu1 %v937_v24 }
 0x279   :  { %1175 = vmatprep.mubr.bf16.mxu1 %v2957_v59 }
 0x27a   :  { %2597 = vmatpush3.bf16.msra.mxu0 %v2822_v16 }
 0x27b   :  { %2598 = vmatprep.subr.bf16.mxu0 %v2823_v29 }
 0x27e   :  { %2599 = vmatpush3.bf16.msra.mxu0 %v2824_v63 }
 0x27f   :  { %2600 = vmatprep.subr.bf16.mxu0 %v2825_v34 }
 0x280   :  { %1176 = vmatmul.mubr.bf16.gmra.mrb[52].mxu1 %v938_v22 }
 0x281   :  { %1185 = vmatprep.mubr.bf16.mxu1 %v2957_v59 }
 0x282   :  { %2601 = vmatpush3.bf16.msra.mxu0 %v2826_v40 }
 0x283   :  { %2602 = vmatprep.subr.bf16.mxu0 %v2827_v36 }
 0x286   :  { %2603 = vmatpush3.bf16.msra.mxu0 %v2828_v1 }
 0x2b4   :  { %v700_v13 = vpop.xlane.xlu0 %699 }
 0x2b5   :  { %v743_v55 = vmul.f32 0.0078125, %v700_v13 }
 0x2b7   :  { %v775_v56 = vadd.f32 1e-05, %v743_v55 }
 0x2b8   :  { %v702_v23 = vpop.xlane.xlu1 %701 }
 0x2b9   :  { %2869 = vrsqrt.f32 %v775_v56  ;;  %v744_v26 = vmul.f32 0.0078125, %v702_v23 }
 0x2bb   :  { %v776_v3 = vadd.f32 1e-05, %v744_v26 }
 0x2bc   :  { %v704_v5 = vpop.xlane.xlu0 %703 }
 0x2bd   :  { %2871 = vrsqrt.f32 %v776_v3  ;;  %v745_v58 = vmul.f32 0.0078125, %v704_v5 }
 0x2bf   :  { %v777_v46 = vadd.f32 1e-05, %v745_v58 }
 0x2c0   :  { %v706_v61 = vpop.xlane.xlu1 %705 }
 0x2c1   :  { %2873 = vrsqrt.f32 %v777_v46  ;;  %v746_v44 = vmul.f32 0.0078125, %v706_v61 }
 0x2c3   :  { %v2870_v24 = vpop.eup %2869  ;;  %v778_v49 = vadd.f32 1e-05, %v746_v44 }
 0x2c4   :  { %v708_v54 = vpop.xlane.xlu0 %707  ;;  %v839_v38 = vmul.f32 %v2870_v24, %v3474_v47 }
 0x2c5   :  { %2875 = vrsqrt.f32 %v778_v49  ;;  %v747_v21 = vmul.f32 0.0078125, %v708_v54 }
 0x2c6   :  { %v878_v22 = vmul.f32 %v3490_v4, %v839_v38 }
 0x2c7   :  { %v2872_v60 = vpop.eup %2871  ;;  %v779_v28 = vadd.f32 1e-05, %v747_v21 }
 0x2c8   :  { %v710_v27 = vpop.xlane.xlu1 %709  ;;  %v840_v48 = vmul.f32 %v2872_v60, %v3479_v62  ;;  %v3726_v40 = vadd.f32 %v3504_v18, %v878_v22 }
 0x2c9   :  { %2877 = vrsqrt.f32 %v779_v28  ;;  %v748_v17 = vmul.f32 0.0078125, %v710_v27 }
 0x2ca   :  { %v879_v16 = vmul.f32 %v3490_v4, %v840_v48 }
 0x2cb   :  { %v2874_v29 = vpop.eup %2873  ;;  %v780_v63 = vadd.f32 1e-05, %v748_v17 }
 0x2cc   :  { %v712_v34 = vpop.xlane.xlu0 %711  ;;  %v3729_v47 = vadd.f32 %v3504_v18, %v879_v16  ;;  %v841_v36 = vmul.f32 %v2874_v29, %v3484_v30 }
 0x2cd   :  { %2879 = vrsqrt.f32 %v780_v63  ;;  %v749_v1 = vmul.f32 0.0078125, %v712_v34 }
 0x2ce   :  { %v939_v62 = vpack.c.bf16 %v3729_v47, %v3726_v40  ;;  %v880_v26 = vmul.f32 %v3490_v4, %v841_v36 }
 0x2cf   :  { %v2876_v13 = vpop.eup %2875  ;;  %v781_v55 = vadd.f32 1e-05, %v749_v1 }
 0x2d0   :  { %v714_v56 = vpop.xlane.xlu1 %713  ;;  %1186 = vmatmul.mubr.bf16.gmra.mrb[56].mxu1 %v939_v62  ;;  %v842_v23 = vmul.f32 %v2876_v13, %v3495_v12  ;;  %v3739_v61 = vadd.f32 %v3504_v18, %v880_v26 }
 0x2d1   :  { %2881 = vrsqrt.f32 %v781_v55  ;;  %v750_v3 = vmul.f32 0.0078125, %v714_v56  ;;  %1195 = vmatprep.mubr.bf16.mxu1 %v2957_v59 }
 0x2d2   :  { %v881_v5 = vmul.f32 %v3490_v4, %v842_v23 }
 0x2d3   :  { %v2878_v30 = vpop.eup %2877  ;;  %v782_v58 = vadd.f32 1e-05, %v750_v3 }
 0x2d4   :  { %v716_v46 = vpop.xlane.xlu0 %715  ;;  %v3742_v44 = vadd.f32 %v3504_v18, %v881_v5  ;;  %v843_v24 = vmul.f32 %v2878_v30, %v3508_v0 }
 0x2d5   :  { %2883 = vrsqrt.f32 %v782_v58  ;;  %v751_v12 = vmul.f32 0.0078125, %v716_v46 }
 0x2d6   :  { %v940_v49 = vpack.c.bf16 %v3742_v44, %v3739_v61  ;;  %v882_v28 = vmul.f32 %v3490_v4, %v843_v24 }
 0x2d7   :  { %v2880_v54 = vpop.eup %2879  ;;  %v783_v38 = vadd.f32 1e-05, %v751_v12 }
 0x2d8   :  { %v718_v21 = vpop.xlane.xlu1 %717  ;;  %1196 = vmatmul.mubr.bf16.gmra.mrb[60].mxu1 %v940_v49  ;;  %v844_v60 = vmul.f32 %v2880_v54, %v3522_v53  ;;  %v3752_v16 = vadd.f32 %v3504_v18, %v882_v28 }
 0x2d9   :  { %2885 = vrsqrt.f32 %v783_v38  ;;  %v752_v27 = vmul.f32 0.0078125, %v718_v21  ;;  %1205 = vmatprep.mubr.bf16.mxu1 %v2957_v59 }
 0x2da   :  { %v883_v48 = vmul.f32 %v3490_v4, %v844_v60 }
 0x2db   :  { %v2882_v0 = vpop.eup %2881  ;;  %v784_v22 = vadd.f32 1e-05, %v752_v27 }
 0x2dc   :  { %v720_v17 = vpop.xlane.xlu0 %719  ;;  %v3755_v29 = vadd.f32 %v3504_v18, %v883_v48  ;;  %v845_v63 = vmul.f32 %v2882_v0, %v3531_v2 }
 0x2dd   :  { %2887 = vrsqrt.f32 %v784_v22  ;;  %v753_v53 = vmul.f32 0.0078125, %v720_v17  ;;  %v963_v22 = vlaneseq }
 0x2de   :  { %v941_v34 = vpack.c.bf16 %v3755_v29, %v3752_v16  ;;  %v884_v55 = vmul.f32 %v3490_v4, %v845_v63 }
 0x2df   :  { %v2884_v36 = vpop.eup %2883  ;;  %v785_v1 = vadd.f32 1e-05, %v753_v53  ;;  %v964_v17 = vshrl.u32 %v963_v22, 7 }
 0x2e0   :  { %v722_v62 = vpop.xlane.xlu1 %721  ;;  %1206 = vmatmul.mubr.bf16.gmra.mrb[64].mxu1 %v941_v34  ;;  %v846_v13 = vmul.f32 %v2884_v36, %v3545_v42  ;;  %v3765_v3 = vadd.f32 %v3504_v18, %v884_v55 }
 0x2e1   :  { %2889 = vrsqrt.f32 %v785_v1  ;;  %v754_v56 = vmul.f32 0.0078125, %v722_v62  ;;  %1215 = vmatprep.mubr.bf16.mxu1 %v2957_v59  ;;  %v965_v63 = vsub.s32 0, %v964_v17 }
 0x2e2   :  { %v885_v23 = vmul.f32 %v3490_v4, %v846_v13 }
 0x2e3   :  { %v2886_v2 = vpop.eup %2885  ;;  %v786_v26 = vadd.f32 1e-05, %v754_v56 }
 0x2e4   :  { %v3768_v5 = vadd.f32 %v3504_v18, %v885_v23  ;;  %v847_v30 = vmul.f32 %v2886_v2, %v3554_v10 }
 0x2e5   :  { %2891 = vrsqrt.f32 %v786_v26 }
 0x2e6   :  { %v942_v42 = vpack.c.bf16 %v3768_v5, %v3765_v3  ;;  %v886_v24 = vmul.f32 %v3490_v4, %v847_v30 }
 0x2e7   :  { %v2888_v58 = vpop.eup %2887 }
 0x2e8   :  { %1216 = vmatmul.mubr.bf16.gmra.mrb[68].mxu1 %v942_v42  ;;  %v848_v46 = vmul.f32 %v2888_v58, %v3568_v33  ;;  %v3778_v54 = vadd.f32 %v3504_v18, %v886_v24 }
 0x2e9   :  { %1225 = vmatprep.mubr.bf16.mxu1 %v2957_v59 }
 0x2ea   :  { %v887_v12 = vmul.f32 %v3490_v4, %v848_v46 }
 0x2eb   :  { %v2890_v49 = vpop.eup %2889 }
 0x2ec   :  { %v3781_v10 = vadd.f32 %v3504_v18, %v887_v12  ;;  %v849_v38 = vmul.f32 %v2890_v49, %v3577_v6 }
 0x2ee   :  { %v943_v21 = vpack.c.bf16 %v3781_v10, %v3778_v54  ;;  %v888_v28 = vmul.f32 %v3490_v4, %v849_v38 }
 0x2ef   :  { %v2892_v60 = vpop.eup %2891 }
 0x2f0   :  { %1226 = vmatmul.mubr.bf16.gmra.mrb[72].mxu1 %v943_v21  ;;  %v850_v33 = vmul.f32 %v2892_v60, %v3591_v31  ;;  %v3791_v48 = vadd.f32 %v3504_v18, %v888_v28  ;;  %v961_v31 = vld [vmem:[%s4356_s7] sm:$0x3] }
 0x2f1   :  { %1235 = vmatprep.mubr.bf16.mxu1 %v2957_v59  ;;  %v969_v59 = vsub.s32 1, %v964_v17  ;;  %v3801_v53 = vrot.slane %v961_v31, %v965_v63 }
 0x2f2   :  { %v889_v27 = vmul.f32 %v3490_v4, %v850_v33 }
 0x2f3   :  { %v3803_v4 = vrot.slane %v961_v31, %v969_v59 }
 0x2f4   :  { %v3794_v0 = vadd.f32 %v3504_v18, %v889_v27 }
 0x2f6   :  { %v944_v6 = vpack.c.bf16 %v3794_v0, %v3791_v48 }
 0x2f8   :  { %1236 = vmatmul.mubr.bf16.gmra.mrb[76].mxu1 %v944_v6 }
 0x30b   :  { %v1087_v34 = vpop.f32.mrb[16].mxu1 }
 0x30c   :  { %v1088_v18 = vadd.f32 %v1087_v34, %v3801_v53  ;;  %v1089_v36 = vpop.f32.mrb[17].mxu1 }
 0x30d   :  { %v1090_v1 = vadd.f32 %v1089_v36, %v3803_v4  ;;  %v1091_v62 = vpop.f32.mrb[18].mxu1 }
 0x30e   :  { %v1092_v13 = vadd.f32 %v1091_v62, %v3801_v53  ;;  %v1093_v55 = vpop.f32.mrb[19].mxu1  ;;  %v1246_v23 = vmax.f32 %v1088_v18, 0.0 }
 0x30f   :  { %v1094_v56 = vadd.f32 %v1093_v55, %v3803_v4  ;;  %v1247_v26 = vmax.f32 %v1090_v1, 0.0 }
 0x310   :  { %v1248_v2 = vmax.f32 %v1092_v13, 0.0 }
 0x311   :  { %v1249_v30 = vmax.f32 %v1094_v56, 0.0 }
 0x312   :  { %v1310_v42 = vpack.c.bf16 %v1248_v2, %v1246_v23 }
 0x313   :  { %v1311_v58 = vpack.c.bf16 %v1249_v30, %v1247_v26  ;;  %v1097_v46 = vpop.f32.mrb[20].mxu1 }
 0x314   :  { %v1098_v24 = vadd.f32 %v1097_v46, %v3801_v53  ;;  %v1099_v12 = vpop.f32.mrb[21].mxu1 }
 0x315   :  { %v1100_v49 = vadd.f32 %v1099_v12, %v3803_v4  ;;  %v1101_v38 = vpop.f32.mrb[22].mxu1  ;;  %1509 = vmatprep.mubr.bf16.mxu0 %v1311_v58 }
 0x316   :  { %v1102_v21 = vadd.f32 %v1101_v38, %v3801_v53  ;;  %v1103_v60 = vpop.f32.mrb[23].mxu1  ;;  %1510 = vmatmul.mubr.bf16.vlgmr.msra.gmra.mrb[16].mxu0 %v1310_v42  ;;  %v1250_v28 = vmax.f32 %v1098_v24, 0.0 }
 0x317   :  { %v1104_v33 = vadd.f32 %v1103_v60, %v3803_v4  ;;  %v1251_v6 = vmax.f32 %v1100_v49, 0.0 }
 0x318   :  { %v1252_v27 = vmax.f32 %v1102_v21, 0.0 }
 0x319   :  { %v1253_v22 = vmax.f32 %v1104_v33, 0.0 }
 0x31a   :  { %v1312_v17 = vpack.c.bf16 %v1252_v27, %v1250_v28 }
 0x31b   :  { %v1313_v63 = vpack.c.bf16 %v1253_v22, %v1251_v6  ;;  %v1107_v31 = vpop.f32.mrb[24].mxu1 }
 0x31c   :  { %v1108_v59 = vadd.f32 %v1107_v31, %v3801_v53  ;;  %v1109_v34 = vpop.f32.mrb[25].mxu1 }
 0x31d   :  { %v1110_v18 = vadd.f32 %v1109_v34, %v3803_v4  ;;  %v1111_v36 = vpop.f32.mrb[26].mxu1  ;;  %1517 = vmatprep.mubr.bf16.mxu0 %v1313_v63 }
 0x31e   :  { %v1112_v1 = vadd.f32 %v1111_v36, %v3801_v53  ;;  %v1113_v62 = vpop.f32.mrb[27].mxu1  ;;  %1518 = vmatmul.mubr.bf16.gmra.mrb[20].mxu0 %v1312_v17  ;;  %v1254_v55 = vmax.f32 %v1108_v59, 0.0 }
 0x31f   :  { %v1114_v13 = vadd.f32 %v1113_v62, %v3803_v4  ;;  %v1255_v23 = vmax.f32 %v1110_v18, 0.0 }
 0x320   :  { %v1256_v56 = vmax.f32 %v1112_v1, 0.0 }
 0x321   :  { %v1257_v2 = vmax.f32 %v1114_v13, 0.0 }
 0x322   :  { %v1314_v26 = vpack.c.bf16 %v1256_v56, %v1254_v55 }
 0x323   :  { %v1315_v30 = vpack.c.bf16 %v1257_v2, %v1255_v23  ;;  %v1117_v42 = vpop.f32.mrb[28].mxu1 }
 0x324   :  { %v1118_v58 = vadd.f32 %v1117_v42, %v3801_v53  ;;  %v1119_v46 = vpop.f32.mrb[29].mxu1 }
 0x325   :  { %v1120_v24 = vadd.f32 %v1119_v46, %v3803_v4  ;;  %v1121_v12 = vpop.f32.mrb[30].mxu1  ;;  %1525 = vmatprep.mubr.bf16.mxu0 %v1315_v30 }
 0x326   :  { %v1122_v49 = vadd.f32 %v1121_v12, %v3801_v53  ;;  %v1123_v38 = vpop.f32.mrb[31].mxu1  ;;  %1526 = vmatmul.mubr.bf16.gmra.mrb[24].mxu0 %v1314_v26  ;;  %v1258_v60 = vmax.f32 %v1118_v58, 0.0 }
 0x327   :  { %v1124_v21 = vadd.f32 %v1123_v38, %v3803_v4  ;;  %v1259_v28 = vmax.f32 %v1120_v24, 0.0 }
 0x328   :  { %v1260_v33 = vmax.f32 %v1122_v49, 0.0 }
 0x329   :  { %v1261_v27 = vmax.f32 %v1124_v21, 0.0 }
 0x32a   :  { %v1316_v6 = vpack.c.bf16 %v1260_v33, %v1258_v60 }
 0x32b   :  { %v1317_v22 = vpack.c.bf16 %v1261_v27, %v1259_v28  ;;  %v1127_v17 = vpop.f32.mrb[32].mxu1 }
 0x32c   :  { %v1128_v63 = vadd.f32 %v1127_v17, %v3801_v53  ;;  %v1129_v31 = vpop.f32.mrb[33].mxu1 }
 0x32d   :  { %v1130_v59 = vadd.f32 %v1129_v31, %v3803_v4  ;;  %v1131_v34 = vpop.f32.mrb[34].mxu1  ;;  %1533 = vmatprep.mubr.bf16.mxu0 %v1317_v22 }
 0x32e   :  { %v1132_v18 = vadd.f32 %v1131_v34, %v3801_v53  ;;  %v1133_v36 = vpop.f32.mrb[35].mxu1  ;;  %1534 = vmatmul.mubr.bf16.gmra.mrb[28].mxu0 %v1316_v6  ;;  %v1262_v62 = vmax.f32 %v1128_v63, 0.0 }
 0x32f   :  { %v1134_v1 = vadd.f32 %v1133_v36, %v3803_v4  ;;  %v1263_v55 = vmax.f32 %v1130_v59, 0.0 }
 0x330   :  { %v1264_v13 = vmax.f32 %v1132_v18, 0.0 }
 0x331   :  { %v1265_v56 = vmax.f32 %v1134_v1, 0.0 }
 0x332   :  { %v1318_v23 = vpack.c.bf16 %v1264_v13, %v1262_v62 }
 0x333   :  { %v1319_v2 = vpack.c.bf16 %v1265_v56, %v1263_v55  ;;  %v1137_v26 = vpop.f32.mrb[36].mxu1 }
 0x334   :  { %v1138_v30 = vadd.f32 %v1137_v26, %v3801_v53  ;;  %v1139_v42 = vpop.f32.mrb[37].mxu1 }
 0x335   :  { %v1140_v58 = vadd.f32 %v1139_v42, %v3803_v4  ;;  %v1141_v46 = vpop.f32.mrb[38].mxu1  ;;  %1541 = vmatprep.mubr.bf16.mxu0 %v1319_v2 }
 0x336   :  { %v1142_v24 = vadd.f32 %v1141_v46, %v3801_v53  ;;  %v1143_v12 = vpop.f32.mrb[39].mxu1  ;;  %1542 = vmatmul.mubr.bf16.gmra.mrb[32].mxu0 %v1318_v23  ;;  %v1266_v38 = vmax.f32 %v1138_v30, 0.0 }
 0x337   :  { %v1144_v49 = vadd.f32 %v1143_v12, %v3803_v4  ;;  %v1267_v60 = vmax.f32 %v1140_v58, 0.0 }
 0x338   :  { %v1268_v21 = vmax.f32 %v1142_v24, 0.0 }
 0x339   :  { %v1269_v33 = vmax.f32 %v1144_v49, 0.0 }
 0x33a   :  { %v1320_v28 = vpack.c.bf16 %v1268_v21, %v1266_v38 }
 0x33b   :  { %v1321_v27 = vpack.c.bf16 %v1269_v33, %v1267_v60  ;;  %v1147_v6 = vpop.f32.mrb[40].mxu1 }
 0x33c   :  { %v1148_v22 = vadd.f32 %v1147_v6, %v3801_v53  ;;  %v1149_v17 = vpop.f32.mrb[41].mxu1 }
 0x33d   :  { %v1150_v63 = vadd.f32 %v1149_v17, %v3803_v4  ;;  %v1151_v31 = vpop.f32.mrb[42].mxu1  ;;  %1549 = vmatprep.mubr.bf16.mxu0 %v1321_v27 }
 0x33e   :  { %v1152_v59 = vadd.f32 %v1151_v31, %v3801_v53  ;;  %v1153_v34 = vpop.f32.mrb[43].mxu1  ;;  %1550 = vmatmul.mubr.bf16.gmra.mrb[36].mxu0 %v1320_v28  ;;  %v1270_v36 = vmax.f32 %v1148_v22, 0.0 }
 0x33f   :  { %v1154_v18 = vadd.f32 %v1153_v34, %v3803_v4  ;;  %v1271_v62 = vmax.f32 %v1150_v63, 0.0 }
 0x340   :  { %v1272_v1 = vmax.f32 %v1152_v59, 0.0 }
 0x341   :  { %v1273_v13 = vmax.f32 %v1154_v18, 0.0 }
 0x342   :  { %v1322_v55 = vpack.c.bf16 %v1272_v1, %v1270_v36 }
 0x343   :  { %v1323_v56 = vpack.c.bf16 %v1273_v13, %v1271_v62  ;;  %v1157_v23 = vpop.f32.mrb[44].mxu1 }
 0x344   :  { %v1158_v2 = vadd.f32 %v1157_v23, %v3801_v53  ;;  %v1159_v26 = vpop.f32.mrb[45].mxu1 }
 0x345   :  { %v1160_v30 = vadd.f32 %v1159_v26, %v3803_v4  ;;  %v1161_v42 = vpop.f32.mrb[46].mxu1  ;;  %1557 = vmatprep.mubr.bf16.mxu0 %v1323_v56 }
 0x346   :  { %v1162_v58 = vadd.f32 %v1161_v42, %v3801_v53  ;;  %v1163_v46 = vpop.f32.mrb[47].mxu1  ;;  %1558 = vmatmul.mubr.bf16.gmra.mrb[40].mxu0 %v1322_v55  ;;  %v1274_v12 = vmax.f32 %v1158_v2, 0.0 }
 0x347   :  { %v1164_v24 = vadd.f32 %v1163_v46, %v3803_v4  ;;  %v1275_v38 = vmax.f32 %v1160_v30, 0.0 }
 0x348   :  { %v1276_v49 = vmax.f32 %v1162_v58, 0.0 }
 0x349   :  { %v1277_v21 = vmax.f32 %v1164_v24, 0.0 }
 0x34a   :  { %v1324_v60 = vpack.c.bf16 %v1276_v49, %v1274_v12 }
 0x34b   :  { %v1325_v33 = vpack.c.bf16 %v1277_v21, %v1275_v38  ;;  %v1167_v28 = vpop.f32.mrb[48].mxu1 }
 0x34c   :  { %v1168_v27 = vadd.f32 %v1167_v28, %v3801_v53  ;;  %v1169_v6 = vpop.f32.mrb[49].mxu1 }
 0x34d   :  { %v1170_v22 = vadd.f32 %v1169_v6, %v3803_v4  ;;  %v1171_v17 = vpop.f32.mrb[50].mxu1  ;;  %1565 = vmatprep.mubr.bf16.mxu0 %v1325_v33 }
 0x34e   :  { %v1172_v63 = vadd.f32 %v1171_v17, %v3801_v53  ;;  %v1173_v31 = vpop.f32.mrb[51].mxu1  ;;  %1566 = vmatmul.mubr.bf16.gmra.mrb[44].mxu0 %v1324_v60  ;;  %v1278_v34 = vmax.f32 %v1168_v27, 0.0 }
 0x34f   :  { %v1174_v59 = vadd.f32 %v1173_v31, %v3803_v4  ;;  %v1279_v36 = vmax.f32 %v1170_v22, 0.0 }
 0x350   :  { %v1280_v18 = vmax.f32 %v1172_v63, 0.0 }
 0x351   :  { %v1281_v1 = vmax.f32 %v1174_v59, 0.0 }
 0x352   :  { %v1326_v62 = vpack.c.bf16 %v1280_v18, %v1278_v34 }
 0x353   :  { %v1327_v13 = vpack.c.bf16 %v1281_v1, %v1279_v36  ;;  %v1177_v55 = vpop.f32.mrb[52].mxu1 }
 0x354   :  { %v1178_v56 = vadd.f32 %v1177_v55, %v3801_v53  ;;  %v1179_v23 = vpop.f32.mrb[53].mxu1 }
 0x355   :  { %v1180_v2 = vadd.f32 %v1179_v23, %v3803_v4  ;;  %v1181_v26 = vpop.f32.mrb[54].mxu1  ;;  %1573 = vmatprep.mubr.bf16.mxu0 %v1327_v13 }
 0x356   :  { %v1182_v30 = vadd.f32 %v1181_v26, %v3801_v53  ;;  %v1183_v42 = vpop.f32.mrb[55].mxu1  ;;  %1574 = vmatmul.mubr.bf16.gmra.mrb[48].mxu0 %v1326_v62  ;;  %v1282_v46 = vmax.f32 %v1178_v56, 0.0 }
 0x357   :  { %v1184_v58 = vadd.f32 %v1183_v42, %v3803_v4  ;;  %v1283_v12 = vmax.f32 %v1180_v2, 0.0 }
 0x358   :  { %v1284_v24 = vmax.f32 %v1182_v30, 0.0 }
 0x359   :  { %v1285_v49 = vmax.f32 %v1184_v58, 0.0 }
 0x35a   :  { %v1328_v38 = vpack.c.bf16 %v1284_v24, %v1282_v46 }
 0x35b   :  { %v1329_v21 = vpack.c.bf16 %v1285_v49, %v1283_v12 }
 0x35d   :  { %1581 = vmatprep.mubr.bf16.mxu0 %v1329_v21 }
 0x35e   :  { %1582 = vmatmul.mubr.bf16.gmra.mrb[52].mxu0 %v1328_v38 }
 0x3a3   :  { %v1187_v60 = vpop.f32.mrb[56].mxu1 }
 0x3a4   :  { %v1188_v33 = vadd.f32 %v1187_v60, %v3801_v53  ;;  %v1189_v28 = vpop.f32.mrb[57].mxu1 }
 0x3a5   :  { %v1190_v27 = vadd.f32 %v1189_v28, %v3803_v4  ;;  %v1191_v6 = vpop.f32.mrb[58].mxu1 }
 0x3a6   :  { %v1192_v22 = vadd.f32 %v1191_v6, %v3801_v53  ;;  %v1193_v17 = vpop.f32.mrb[59].mxu1  ;;  %v1286_v31 = vmax.f32 %v1188_v33, 0.0 }
 0x3a7   :  { %v1194_v63 = vadd.f32 %v1193_v17, %v3803_v4  ;;  %v1287_v34 = vmax.f32 %v1190_v27, 0.0 }
 0x3a8   :  { %v1288_v59 = vmax.f32 %v1192_v22, 0.0 }
 0x3a9   :  { %v1289_v18 = vmax.f32 %v1194_v63, 0.0 }
 0x3aa   :  { %v1330_v36 = vpack.c.bf16 %v1288_v59, %v1286_v31 }
 0x3ab   :  { %v1331_v1 = vpack.c.bf16 %v1289_v18, %v1287_v34  ;;  %v1197_v62 = vpop.f32.mrb[60].mxu1 }
 0x3ac   :  { %v1198_v13 = vadd.f32 %v1197_v62, %v3801_v53  ;;  %v1199_v55 = vpop.f32.mrb[61].mxu1 }
 0x3ad   :  { %v1200_v56 = vadd.f32 %v1199_v55, %v3803_v4  ;;  %v1201_v23 = vpop.f32.mrb[62].mxu1  ;;  %1589 = vmatprep.mubr.bf16.mxu0 %v1331_v1 }
 0x3ae   :  { %v1202_v2 = vadd.f32 %v1201_v23, %v3801_v53  ;;  %v1203_v26 = vpop.f32.mrb[63].mxu1  ;;  %1590 = vmatmul.mubr.bf16.gmra.mrb[56].mxu0 %v1330_v36  ;;  %v1290_v42 = vmax.f32 %v1198_v13, 0.0 }
 0x3af   :  { %v1204_v30 = vadd.f32 %v1203_v26, %v3803_v4  ;;  %v1291_v46 = vmax.f32 %v1200_v56, 0.0 }
 0x3b0   :  { %v1292_v58 = vmax.f32 %v1202_v2, 0.0 }
 0x3b1   :  { %v1293_v24 = vmax.f32 %v1204_v30, 0.0 }
 0x3b2   :  { %v1332_v12 = vpack.c.bf16 %v1292_v58, %v1290_v42 }
 0x3b3   :  { %v1333_v49 = vpack.c.bf16 %v1293_v24, %v1291_v46  ;;  %v1207_v38 = vpop.f32.mrb[64].mxu1 }
 0x3b4   :  { %v1208_v21 = vadd.f32 %v1207_v38, %v3801_v53  ;;  %v1209_v60 = vpop.f32.mrb[65].mxu1 }
 0x3b5   :  { %v1210_v33 = vadd.f32 %v1209_v60, %v3803_v4  ;;  %v1211_v28 = vpop.f32.mrb[66].mxu1  ;;  %1597 = vmatprep.mubr.bf16.mxu0 %v1333_v49 }
 0x3b6   :  { %v1212_v27 = vadd.f32 %v1211_v28, %v3801_v53  ;;  %v1213_v6 = vpop.f32.mrb[67].mxu1  ;;  %1598 = vmatmul.mubr.bf16.gmra.mrb[60].mxu0 %v1332_v12  ;;  %v1294_v17 = vmax.f32 %v1208_v21, 0.0 }
 0x3b7   :  { %v1214_v22 = vadd.f32 %v1213_v6, %v3803_v4  ;;  %v1295_v31 = vmax.f32 %v1210_v33, 0.0 }
 0x3b8   :  { %v1296_v63 = vmax.f32 %v1212_v27, 0.0 }
 0x3b9   :  { %v1297_v59 = vmax.f32 %v1214_v22, 0.0 }
 0x3ba   :  { %v1334_v34 = vpack.c.bf16 %v1296_v63, %v1294_v17 }
 0x3bb   :  { %v1335_v18 = vpack.c.bf16 %v1297_v59, %v1295_v31  ;;  %v1217_v36 = vpop.f32.mrb[68].mxu1 }
 0x3bc   :  { %v1218_v1 = vadd.f32 %v1217_v36, %v3801_v53  ;;  %v1219_v62 = vpop.f32.mrb[69].mxu1 }
 0x3bd   :  { %v1220_v13 = vadd.f32 %v1219_v62, %v3803_v4  ;;  %v1221_v55 = vpop.f32.mrb[70].mxu1  ;;  %1605 = vmatprep.mubr.bf16.mxu0 %v1335_v18 }
 0x3be   :  { %v1222_v56 = vadd.f32 %v1221_v55, %v3801_v53  ;;  %v1223_v23 = vpop.f32.mrb[71].mxu1  ;;  %1606 = vmatmul.mubr.bf16.gmra.mrb[64].mxu0 %v1334_v34  ;;  %v1298_v26 = vmax.f32 %v1218_v1, 0.0 }
 0x3bf   :  { %v1224_v2 = vadd.f32 %v1223_v23, %v3803_v4  ;;  %v1299_v42 = vmax.f32 %v1220_v13, 0.0 }
 0x3c0   :  { %v1300_v30 = vmax.f32 %v1222_v56, 0.0 }
 0x3c1   :  { %v1301_v58 = vmax.f32 %v1224_v2, 0.0 }
 0x3c2   :  { %v1336_v46 = vpack.c.bf16 %v1300_v30, %v1298_v26 }
 0x3c3   :  { %v1337_v24 = vpack.c.bf16 %v1301_v58, %v1299_v42  ;;  %v1227_v12 = vpop.f32.mrb[72].mxu1 }
 0x3c4   :  { %v1228_v49 = vadd.f32 %v1227_v12, %v3801_v53  ;;  %v1229_v38 = vpop.f32.mrb[73].mxu1 }
 0x3c5   :  { %v1230_v21 = vadd.f32 %v1229_v38, %v3803_v4  ;;  %v1231_v60 = vpop.f32.mrb[74].mxu1  ;;  %1613 = vmatprep.mubr.bf16.mxu0 %v1337_v24  ;;  %v3872_v24 = vld [vmem:[%s4357_s9] ss:$0 sm:$0xff] }
 0x3c6   :  { %v1232_v33 = vadd.f32 %v1231_v60, %v3801_v53  ;;  %v1233_v28 = vpop.f32.mrb[75].mxu1  ;;  %1614 = vmatmul.mubr.bf16.gmra.mrb[68].mxu0 %v1336_v46  ;;  %v1302_v6 = vmax.f32 %v1228_v49, 0.0 }
 0x3c7   :  { %v1234_v27 = vadd.f32 %v1233_v28, %v3803_v4  ;;  %v1303_v17 = vmax.f32 %v1230_v21, 0.0 }
 0x3c8   :  { %v1304_v22 = vmax.f32 %v1232_v33, 0.0 }
 0x3c9   :  { %v1305_v63 = vmax.f32 %v1234_v27, 0.0 }
 0x3ca   :  { %v1338_v31 = vpack.c.bf16 %v1304_v22, %v1302_v6 }
 0x3cb   :  { %v1339_v59 = vpack.c.bf16 %v1305_v63, %v1303_v17  ;;  %v1237_v34 = vpop.f32.mrb[76].mxu1 }
 0x3cc   :  { %v1238_v18 = vadd.f32 %v1237_v34, %v3801_v53  ;;  %v1239_v36 = vpop.f32.mrb[77].mxu1 }
 0x3cd   :  { %v1240_v1 = vadd.f32 %v1239_v36, %v3803_v4  ;;  %v1241_v62 = vpop.f32.mrb[78].mxu1  ;;  %1621 = vmatprep.mubr.bf16.mxu0 %v1339_v59 }
 0x3ce   :  { %v1242_v13 = vadd.f32 %v1241_v62, %v3801_v53  ;;  %v1243_v55 = vpop.f32.mrb[79].mxu1  ;;  %1622 = vmatmul.mubr.bf16.gmra.mrb[72].mxu0 %v1338_v31  ;;  %v1306_v23 = vmax.f32 %v1238_v18, 0.0 }
 0x3cf   :  { %v1244_v56 = vadd.f32 %v1243_v55, %v3803_v4  ;;  %v1307_v26 = vmax.f32 %v1240_v1, 0.0 }
 0x3d0   :  { %v1308_v2 = vmax.f32 %v1242_v13, 0.0 }
 0x3d1   :  { %v1309_v30 = vmax.f32 %v1244_v56, 0.0 }
 0x3d2   :  { %v1340_v42 = vpack.c.bf16 %v1308_v2, %v1306_v23 }
 0x3d3   :  { %v1341_v58 = vpack.c.bf16 %v1309_v30, %v1307_v26 }
 0x3d5   :  { %1629 = vmatprep.mubr.bf16.mxu0 %v1341_v58 }
 0x3d6   :  { %1630 = vmatmul.mubr.bf16.gmra.mrb[76].mxu0 %v1340_v42 }
 0x3e9   :  { %v2604_v46 = vpop.f32.mrb[16].mxu0 }
 0x3ea   :  { %v2605_v12 = vpop.f32.mrb[17].mxu0 }
 0x3eb   :  { %v2606_v53 = vadd.f32 %v2605_v12, %v2604_v46  ;;  %v2607_v49 = vpop.f32.mrb[18].mxu0 }
 0x3ec   :  { %v2608_v38 = vpop.f32.mrb[19].mxu0 }
 0x3ed   :  { %v1512_v4 = vadd.f32 %v2606_v53, %v3872_v24  ;;  %v2609_v21 = vadd.f32 %v2608_v38, %v2607_v49 }
 0x3ef   :  { %v1515_v60 = vadd.f32 %v2609_v21, %v3872_v24  ;;  %v3877_v33 = vadd.f32 %v1512_v4, %v3511_v43 }
 0x3f1   :  { %v2610_v28 = vpop.f32.mrb[20].mxu0  ;;  %1670 = vadd.xlane.f32.xlu0 %v3877_v33  ;;  %v3881_v27 = vadd.f32 %v1515_v60, %v3514_v11 }
 0x3f2   :  { %v2611_v6 = vpop.f32.mrb[21].mxu0 }
 0x3f3   :  { %v2612_v22 = vadd.f32 %v2611_v6, %v2610_v28  ;;  %1672 = vadd.xlane.f32.xlu1 %v3881_v27  ;;  %v2613_v17 = vpop.f32.mrb[22].mxu0 }
 0x3f4   :  { %v2614_v63 = vpop.f32.mrb[23].mxu0 }
 0x3f5   :  { %v1520_v31 = vadd.f32 %v2612_v22, %v3872_v24  ;;  %v2615_v59 = vadd.f32 %v2614_v63, %v2613_v17 }
 0x3f7   :  { %v1523_v34 = vadd.f32 %v2615_v59, %v3872_v24  ;;  %v3887_v43 = vadd.f32 %v1520_v31, %v3534_v32 }
 0x3f9   :  { %v2616_v18 = vpop.f32.mrb[24].mxu0  ;;  %1674 = vadd.xlane.f32.xlu0 %v3887_v43  ;;  %v3891_v11 = vadd.f32 %v1523_v34, %v3537_v41 }
 0x3fa   :  { %v2617_v36 = vpop.f32.mrb[25].mxu0 }
 0x3fb   :  { %v2618_v1 = vadd.f32 %v2617_v36, %v2616_v18  ;;  %1676 = vadd.xlane.f32.xlu1 %v3891_v11  ;;  %v2619_v62 = vpop.f32.mrb[26].mxu0 }
 0x3fc   :  { %v2620_v13 = vpop.f32.mrb[27].mxu0 }
 0x3fd   :  { %v1528_v55 = vadd.f32 %v2618_v1, %v3872_v24  ;;  %v2621_v56 = vadd.f32 %v2620_v13, %v2619_v62 }
 0x3ff   :  { %v1531_v23 = vadd.f32 %v2621_v56, %v3872_v24  ;;  %v3897_v32 = vadd.f32 %v1528_v55, %v3557_v20 }
 0x401   :  { %v2622_v2 = vpop.f32.mrb[28].mxu0  ;;  %1678 = vadd.xlane.f32.xlu0 %v3897_v32  ;;  %v3901_v41 = vadd.f32 %v1531_v23, %v3560_v57 }
 0x402   :  { %v2623_v26 = vpop.f32.mrb[29].mxu0 }
 0x403   :  { %v2624_v30 = vadd.f32 %v2623_v26, %v2622_v2  ;;  %1680 = vadd.xlane.f32.xlu1 %v3901_v41  ;;  %v2625_v42 = vpop.f32.mrb[30].mxu0 }
 0x404   :  { %v2626_v58 = vpop.f32.mrb[31].mxu0 }
 0x405   :  { %v1536_v46 = vadd.f32 %v2624_v30, %v3872_v24  ;;  %v2627_v12 = vadd.f32 %v2626_v58, %v2625_v42 }
 0x407   :  { %v1539_v53 = vadd.f32 %v2627_v12, %v3872_v24  ;;  %v3907_v20 = vadd.f32 %v1536_v46, %v3580_v51 }
 0x409   :  { %v2628_v49 = vpop.f32.mrb[32].mxu0  ;;  %1682 = vadd.xlane.f32.xlu0 %v3907_v20  ;;  %v3911_v57 = vadd.f32 %v1539_v53, %v3583_v15 }
 0x40a   :  { %v2629_v38 = vpop.f32.mrb[33].mxu0 }
 0x40b   :  { %v2630_v4 = vadd.f32 %v2629_v38, %v2628_v49  ;;  %1684 = vadd.xlane.f32.xlu1 %v3911_v57  ;;  %v2631_v21 = vpop.f32.mrb[34].mxu0 }
 0x40c   :  { %v2632_v60 = vpop.f32.mrb[35].mxu0 }
 0x40d   :  { %v1544_v28 = vadd.f32 %v2630_v4, %v3872_v24  ;;  %v2633_v6 = vadd.f32 %v2632_v60, %v2631_v21 }
 0x40f   :  { %v1547_v22 = vadd.f32 %v2633_v6, %v3872_v24  ;;  %v3917_v51 = vadd.f32 %v1544_v28, %v3600_v19 }
 0x411   :  { %v2634_v17 = vpop.f32.mrb[36].mxu0  ;;  %1686 = vadd.xlane.f32.xlu0 %v3917_v51  ;;  %v3921_v15 = vadd.f32 %v1547_v22, %v3603_v35 }
 0x412   :  { %v2635_v63 = vpop.f32.mrb[37].mxu0 }
 0x413   :  { %v2636_v31 = vadd.f32 %v2635_v63, %v2634_v17  ;;  %1688 = vadd.xlane.f32.xlu1 %v3921_v15  ;;  %v2637_v59 = vpop.f32.mrb[38].mxu0 }
 0x414   :  { %v2638_v34 = vpop.f32.mrb[39].mxu0 }
 0x415   :  { %v1552_v18 = vadd.f32 %v2636_v31, %v3872_v24  ;;  %v2639_v36 = vadd.f32 %v2638_v34, %v2637_v59 }
 0x417   :  { %v1555_v1 = vadd.f32 %v2639_v36, %v3872_v24  ;;  %v3927_v19 = vadd.f32 %v1552_v18, %v3613_v50 }
 0x419   :  { %1690 = vadd.xlane.f32.xlu0 %v3927_v19  ;;  %v2640_v62 = vpop.f32.mrb[40].mxu0  ;;  %v3931_v35 = vadd.f32 %v1555_v1, %v3616_v45 }
 0x41a   :  { %v2641_v13 = vpop.f32.mrb[41].mxu0 }
 0x41b   :  { %v2642_v55 = vadd.f32 %v2641_v13, %v2640_v62  ;;  %1692 = vadd.xlane.f32.xlu1 %v3931_v35  ;;  %v2643_v56 = vpop.f32.mrb[42].mxu0 }
 0x41c   :  { %v2644_v23 = vpop.f32.mrb[43].mxu0 }
 0x41d   :  { %v1560_v2 = vadd.f32 %v2642_v55, %v3872_v24  ;;  %v2645_v26 = vadd.f32 %v2644_v23, %v2643_v56 }
 0x41f   :  { %v1563_v30 = vadd.f32 %v2645_v26, %v3872_v24  ;;  %v3937_v50 = vadd.f32 %v1560_v2, %v3626_v37 }
 0x421   :  { %1694 = vadd.xlane.f32.xlu0 %v3937_v50  ;;  %v2646_v42 = vpop.f32.mrb[44].mxu0  ;;  %v3941_v45 = vadd.f32 %v1563_v30, %v3629_v39 }
 0x422   :  { %v2647_v58 = vpop.f32.mrb[45].mxu0 }
 0x423   :  { %v2648_v46 = vadd.f32 %v2647_v58, %v2646_v42  ;;  %1696 = vadd.xlane.f32.xlu1 %v3941_v45  ;;  %v2649_v12 = vpop.f32.mrb[46].mxu0 }
 0x424   :  { %v2650_v53 = vpop.f32.mrb[47].mxu0 }
 0x425   :  { %v1568_v49 = vadd.f32 %v2648_v46, %v3872_v24  ;;  %v2651_v38 = vadd.f32 %v2650_v53, %v2649_v12 }
 0x427   :  { %v1571_v4 = vadd.f32 %v2651_v38, %v3872_v24  ;;  %v3947_v37 = vadd.f32 %v1568_v49, %v3643_v52 }
 0x429   :  { %1698 = vadd.xlane.f32.xlu0 %v3947_v37  ;;  %v2652_v21 = vpop.f32.mrb[48].mxu0  ;;  %v3951_v39 = vadd.f32 %v1571_v4, %v3639_v25 }
 0x42a   :  { %v2653_v60 = vpop.f32.mrb[49].mxu0 }
 0x42b   :  { %v2654_v28 = vadd.f32 %v2653_v60, %v2652_v21  ;;  %1700 = vadd.xlane.f32.xlu1 %v3951_v39  ;;  %v2655_v6 = vpop.f32.mrb[50].mxu0 }
 0x42c   :  { %v2656_v22 = vpop.f32.mrb[51].mxu0 }
 0x42d   :  { %v1576_v17 = vadd.f32 %v2654_v28, %v3872_v24  ;;  %v2657_v63 = vadd.f32 %v2656_v22, %v2655_v6 }
 0x42f   :  { %v1579_v31 = vadd.f32 %v2657_v63, %v3872_v24  ;;  %v3957_v52 = vadd.f32 %v1576_v17, %v3662_v14 }
 0x431   :  { %1702 = vadd.xlane.f32.xlu0 %v3957_v52  ;;  %v2658_v59 = vpop.f32.mrb[52].mxu0  ;;  %v3961_v25 = vadd.f32 %v1579_v31, %v3655_v8 }
 0x432   :  { %v2659_v34 = vpop.f32.mrb[53].mxu0 }
 0x433   :  { %v2660_v18 = vadd.f32 %v2659_v34, %v2658_v59  ;;  %1704 = vadd.xlane.f32.xlu1 %v3961_v25  ;;  %v2661_v36 = vpop.f32.mrb[54].mxu0 }
 0x434   :  { %v2662_v1 = vpop.f32.mrb[55].mxu0 }
 0x435   :  { %v1584_v62 = vadd.f32 %v2660_v18, %v3872_v24  ;;  %v2663_v13 = vadd.f32 %v2662_v1, %v2661_v36 }
 0x437   :  { %v1587_v55 = vadd.f32 %v2663_v13, %v3872_v24  ;;  %v3967_v14 = vadd.f32 %v1584_v62, %v3686_v7 }
 0x439   :  { %1706 = vadd.xlane.f32.xlu0 %v3967_v14  ;;  %v3971_v56 = vadd.f32 %v1587_v55, %v3680_v9 }
 0x43b   :  { %1708 = vadd.xlane.f32.xlu1 %v3971_v56 }
 0x481   :  { %v2664_v8 = vpop.f32.mrb[56].mxu0 }
 0x482   :  { %v2665_v23 = vpop.f32.mrb[57].mxu0 }
 0x483   :  { %v2666_v2 = vadd.f32 %v2665_v23, %v2664_v8  ;;  %v2667_v26 = vpop.f32.mrb[58].mxu0 }
 0x484   :  { %v2668_v30 = vpop.f32.mrb[59].mxu0 }
 0x485   :  { %v1592_v42 = vadd.f32 %v2666_v2, %v3872_v24  ;;  %v2669_v58 = vadd.f32 %v2668_v30, %v2667_v26 }
 0x487   :  { %v1595_v46 = vadd.f32 %v2669_v58, %v3872_v24  ;;  %v3977_v7 = vadd.f32 %v1592_v42, %v3726_v40 }
 0x489   :  { %1710 = vadd.xlane.f32.xlu0 %v3977_v7  ;;  %v2670_v12 = vpop.f32.mrb[60].mxu0  ;;  %v3981_v9 = vadd.f32 %v1595_v46, %v3729_v47 }
 0x48a   :  { %v2671_v53 = vpop.f32.mrb[61].mxu0 }
 0x48b   :  { %v2672_v49 = vadd.f32 %v2671_v53, %v2670_v12  ;;  %1712 = vadd.xlane.f32.xlu1 %v3981_v9  ;;  %v2673_v38 = vpop.f32.mrb[62].mxu0 }
 0x48c   :  { %v2674_v4 = vpop.f32.mrb[63].mxu0 }
 0x48d   :  { %v1600_v21 = vadd.f32 %v2672_v49, %v3872_v24  ;;  %v2675_v60 = vadd.f32 %v2674_v4, %v2673_v38  ;;  %v1671_v38 = vpop.xlane.xlu0 %1670 }
 0x48f   :  { %v1603_v28 = vadd.f32 %v2675_v60, %v3872_v24  ;;  %v3987_v40 = vadd.f32 %v1600_v21, %v3739_v61  ;;  %v1673_v21 = vpop.xlane.xlu1 %1672 }
 0x491   :  { %1714 = vadd.xlane.f32.xlu0 %v3987_v40  ;;  %v2676_v6 = vpop.f32.mrb[64].mxu0  ;;  %v3991_v47 = vadd.f32 %v1603_v28, %v3742_v44  ;;  %v1734_v28 = vmul.f32 0.0078125, %v1671_v38 }
 0x492   :  { %v2677_v22 = vpop.f32.mrb[65].mxu0 }
 0x493   :  { %v2678_v17 = vadd.f32 %v2677_v22, %v2676_v6  ;;  %1716 = vadd.xlane.f32.xlu1 %v3991_v47  ;;  %v2679_v63 = vpop.f32.mrb[66].mxu0 }
 0x494   :  { %v2680_v31 = vpop.f32.mrb[67].mxu0 }
 0x495   :  { %v1608_v59 = vadd.f32 %v2678_v17, %v3872_v24  ;;  %v2681_v34 = vadd.f32 %v2680_v31, %v2679_v63  ;;  %v1675_v17 = vpop.xlane.xlu0 %1674  ;;  %v1735_v31 = vmul.f32 0.0078125, %v1673_v21 }
 0x497   :  { %v1611_v18 = vadd.f32 %v2681_v34, %v3872_v24  ;;  %v3997_v61 = vadd.f32 %v1608_v59, %v3752_v16  ;;  %v1677_v34 = vpop.xlane.xlu1 %1676 }
 0x499   :  { %1718 = vadd.xlane.f32.xlu0 %v3997_v61  ;;  %v2682_v36 = vpop.f32.mrb[68].mxu0  ;;  %v4001_v44 = vadd.f32 %v1611_v18, %v3755_v29  ;;  %v4026_v18 = vsub.f32 %v3877_v33, %v1734_v28 }
 0x49a   :  { %v2683_v1 = vpop.f32.mrb[69].mxu0 }
 0x49b   :  { %v2684_v62 = vadd.f32 %v2683_v1, %v2682_v36  ;;  %1720 = vadd.xlane.f32.xlu1 %v4001_v44  ;;  %v2685_v13 = vpop.f32.mrb[70].mxu0  ;;  %v1736_v36 = vmul.f32 0.0078125, %v1675_v17 }
 0x49c   :  { %v2686_v55 = vpop.f32.mrb[71].mxu0 }
 0x49d   :  { %v1616_v8 = vadd.f32 %v2684_v62, %v3872_v24  ;;  %v2687_v23 = vadd.f32 %v2686_v55, %v2685_v13  ;;  %v1679_v62 = vpop.xlane.xlu0 %1678  ;;  %v4033_v13 = vsub.f32 %v3881_v27, %v1735_v31  ;;  %v1737_v55 = vmul.f32 0.0078125, %v1677_v34 }
 0x49e   :  { %v4040_v33 = vsub.f32 %v3887_v43, %v1736_v36 }
 0x49f   :  { %v1619_v2 = vadd.f32 %v2687_v23, %v3872_v24  ;;  %v4007_v16 = vadd.f32 %v1616_v8, %v3765_v3  ;;  %v1681_v23 = vpop.xlane.xlu1 %1680  ;;  %v4046_v27 = vsub.f32 %v3891_v11, %v1737_v55 }
 0x4a1   :  { %1722 = vadd.xlane.f32.xlu0 %v4007_v16  ;;  %v2688_v26 = vpop.f32.mrb[72].mxu0  ;;  %v4011_v29 = vadd.f32 %v1619_v2, %v3768_v5  ;;  %v1738_v2 = vmul.f32 0.0078125, %v1679_v62 }
 0x4a2   :  { %v2689_v30 = vpop.f32.mrb[73].mxu0 }
 0x4a3   :  { %v2690_v42 = vadd.f32 %v2689_v30, %v2688_v26  ;;  %1724 = vadd.xlane.f32.xlu1 %v4011_v29  ;;  %v2691_v58 = vpop.f32.mrb[74].mxu0  ;;  %v1739_v26 = vmul.f32 0.0078125, %v1681_v23  ;;  %v1685_v30 = vpop.xlane.xlu1 %1684 }
 0x4a4   :  { %v2692_v46 = vpop.f32.mrb[75].mxu0  ;;  %v1741_v11 = vmul.f32 0.0078125, %v1685_v30 }
 0x4a5   :  { %v1624_v12 = vadd.f32 %v2690_v42, %v3872_v24  ;;  %v2693_v53 = vadd.f32 %v2692_v46, %v2691_v58  ;;  %v4051_v42 = vsub.f32 %v3897_v32, %v1738_v2  ;;  %v1800_v58 = vmul.f32 %v4040_v33, %v4040_v33 }
 0x4a7   :  { %v1627_v49 = vadd.f32 %v2693_v53, %v3872_v24  ;;  %v4017_v3 = vadd.f32 %v1624_v12, %v3778_v54  ;;  %v4056_v12 = vsub.f32 %v3901_v41, %v1739_v26  ;;  %v1801_v53 = vmul.f32 %v4046_v27, %v4046_v27 }
 0x4a9   :  { %1726 = vadd.xlane.f32.xlu0 %v4017_v3  ;;  %v2694_v4 = vpop.f32.mrb[76].mxu0  ;;  %v4021_v5 = vadd.f32 %v1627_v49, %v3781_v10  ;;  %v1689_v49 = vpop.xlane.xlu1 %1688  ;;  %v1803_v28 = vmul.f32 %v4056_v12, %v4056_v12 }
 0x4aa   :  { %v2695_v60 = vpop.f32.mrb[77].mxu0  ;;  %v1743_v41 = vmul.f32 0.0078125, %v1689_v49 }
 0x4ab   :  { %v2696_v6 = vadd.f32 %v2695_v60, %v2694_v4  ;;  %1728 = vadd.xlane.f32.xlu1 %v4021_v5  ;;  %v2697_v22 = vpop.f32.mrb[78].mxu0  ;;  %v1802_v4 = vmul.f32 %v4051_v42, %v4051_v42  ;;  %v4066_v60 = vsub.f32 %v3911_v57, %v1741_v11 }
 0x4ac   :  { %v2698_v63 = vpop.f32.mrb[79].mxu0  ;;  %v4076_v31 = vsub.f32 %v3921_v15, %v1743_v41 }
 0x4ad   :  { %v1632_v54 = vadd.f32 %v2696_v6, %v3872_v24  ;;  %v2699_v59 = vadd.f32 %v2698_v63, %v2697_v22  ;;  %v1693_v6 = vpop.xlane.xlu1 %1692 }
 0x4ae   :  { %v1745_v57 = vmul.f32 0.0078125, %v1693_v6  ;;  %v1807_v55 = vmul.f32 %v4076_v31, %v4076_v31 }
 0x4af   :  { %v1635_v10 = vadd.f32 %v2699_v59, %v3872_v24  ;;  %v4030_v1 = vadd.f32 %v1632_v54, %v3791_v48  ;;  %v1798_v48 = vmul.f32 %v4026_v18, %v4026_v18  ;;  %v1683_v24 = vpop.xlane.xlu0 %1682  ;;  %v1805_v54 = vmul.f32 %v4066_v60, %v4066_v60 }
 0x4b0   :  { %v1740_v43 = vmul.f32 0.0078125, %v1683_v24  ;;  %v4086_v62 = vsub.f32 %v3931_v35, %v1745_v57 }
 0x4b1   :  { %1730 = vadd.xlane.f32.xlu0 %v4030_v1  ;;  %v4037_v8 = vadd.f32 %v1635_v10, %v3794_v0  ;;  %v1799_v0 = vmul.f32 %v4033_v13, %v4033_v13  ;;  %v1697_v59 = vpop.xlane.xlu1 %1696 }
 0x4b2   :  { %v4061_v38 = vsub.f32 %v3907_v20, %v1740_v43  ;;  %v1747_v15 = vmul.f32 0.0078125, %v1697_v59 }
 0x4b3   :  { %1732 = vadd.xlane.f32.xlu1 %v4037_v8  ;;  %v1687_v46 = vpop.xlane.xlu0 %1686 }
 0x4b4   :  { %v1742_v32 = vmul.f32 0.0078125, %v1687_v46  ;;  %v1804_v17 = vmul.f32 %v4061_v38, %v4061_v38  ;;  %v4096_v26 = vsub.f32 %v3941_v45, %v1747_v15 }
 0x4b5   :  { %1830 = vadd.xlane.f32.xlu0 %v1798_v48 }
 0x4b6   :  { %v4071_v22 = vsub.f32 %v3917_v51, %v1742_v32 }
 0x4b7   :  { %1832 = vadd.xlane.f32.xlu1 %v1799_v0  ;;  %v1691_v21 = vpop.xlane.xlu0 %1690  ;;  %v1809_v0 = vmul.f32 %v4086_v62, %v4086_v62 }
 0x4b8   :  { %v1744_v20 = vmul.f32 0.0078125, %v1691_v21  ;;  %v1806_v36 = vmul.f32 %v4071_v22, %v4071_v22  ;;  %v1701_v23 = vpop.xlane.xlu1 %1700 }
 0x4b9   :  { %1834 = vadd.xlane.f32.xlu0 %v1800_v58  ;;  %v1749_v35 = vmul.f32 0.0078125, %v1701_v23 }
 0x4ba   :  { %v4081_v34 = vsub.f32 %v3927_v19, %v1744_v20 }
 0x4bb   :  { %1836 = vadd.xlane.f32.xlu1 %v1801_v53  ;;  %v1695_v63 = vpop.xlane.xlu0 %1694  ;;  %v4106_v11 = vsub.f32 %v3951_v39, %v1749_v35  ;;  %v1811_v53 = vmul.f32 %v4096_v26, %v4096_v26 }
 0x4bc   :  { %v1746_v51 = vmul.f32 0.0078125, %v1695_v63  ;;  %v1808_v48 = vmul.f32 %v4081_v34, %v4081_v34 }
 0x4bd   :  { %1838 = vadd.xlane.f32.xlu0 %v1802_v4  ;;  %v1813_v39 = vmul.f32 %v4106_v11, %v4106_v11 }
 0x4be   :  { %v4091_v2 = vsub.f32 %v3937_v50, %v1746_v51 }
 0x4bf   :  { %1840 = vadd.xlane.f32.xlu1 %v1803_v28  ;;  %v1699_v10 = vpop.xlane.xlu0 %1698 }
 0x4c0   :  { %v1748_v19 = vmul.f32 0.0078125, %v1699_v10  ;;  %v1705_v30 = vpop.xlane.xlu1 %1704  ;;  %v1810_v58 = vmul.f32 %v4091_v2, %v4091_v2 }
 0x4c1   :  { %1842 = vadd.xlane.f32.xlu0 %v1804_v17  ;;  %v1751_v45 = vmul.f32 0.0078125, %v1705_v30 }
 0x4c2   :  { %v4101_v43 = vsub.f32 %v3947_v37, %v1748_v19 }
 0x4c3   :  { %1844 = vadd.xlane.f32.xlu1 %v1805_v54  ;;  %v1703_v24 = vpop.xlane.xlu0 %1702  ;;  %v4116_v21 = vsub.f32 %v3961_v25, %v1751_v45 }
 0x4c4   :  { %v1750_v50 = vmul.f32 0.0078125, %v1703_v24  ;;  %v1812_v4 = vmul.f32 %v4101_v43, %v4101_v43 }
 0x4c5   :  { %1846 = vadd.xlane.f32.xlu0 %v1806_v36  ;;  %v1815_v25 = vmul.f32 %v4116_v21, %v4116_v21 }
 0x4c6   :  { %v4111_v32 = vsub.f32 %v3957_v52, %v1750_v50 }
 0x4c7   :  { %1848 = vadd.xlane.f32.xlu1 %v1807_v55  ;;  %v1707_v46 = vpop.xlane.xlu0 %1706 }
 0x4c8   :  { %v1709_v49 = vpop.xlane.xlu1 %1708  ;;  %v1752_v37 = vmul.f32 0.0078125, %v1707_v46  ;;  %v1814_v52 = vmul.f32 %v4111_v32, %v4111_v32 }
 0x4c9   :  { %1850 = vadd.xlane.f32.xlu0 %v1808_v48  ;;  %v1753_v41 = vmul.f32 0.0078125, %v1709_v49 }
 0x4ca   :  { %v4121_v28 = vsub.f32 %v3967_v14, %v1752_v37 }
 0x4cb   :  { %1852 = vadd.xlane.f32.xlu1 %v1809_v0  ;;  %v4126_v6 = vsub.f32 %v3971_v56, %v1753_v41 }
 0x4cc   :  { %v1816_v20 = vmul.f32 %v4121_v28, %v4121_v28 }
 0x4cd   :  { %1854 = vadd.xlane.f32.xlu0 %v1810_v58  ;;  %v1817_v14 = vmul.f32 %v4126_v6, %v4126_v6 }
 0x4cf   :  { %1856 = vadd.xlane.f32.xlu1 %v1811_v53 }
 0x4d1   :  { %1858 = vadd.xlane.f32.xlu0 %v1812_v4 }
 0x4d3   :  { %1860 = vadd.xlane.f32.xlu1 %v1813_v39 }
 0x4d5   :  { %1862 = vadd.xlane.f32.xlu0 %v1814_v52 }
 0x4d7   :  { %1864 = vadd.xlane.f32.xlu1 %v1815_v25 }
 0x4d9   :  { %1866 = vadd.xlane.f32.xlu0 %v1816_v20 }
 0x4db   :  { %1868 = vadd.xlane.f32.xlu1 %v1817_v14 }
 0x516   :  { %v1711_v17 = vpop.xlane.xlu0 %1710 }
 0x517   :  { %v1754_v63 = vmul.f32 0.0078125, %v1711_v17 }
 0x518   :  { %v1713_v57 = vpop.xlane.xlu1 %1712 }
 0x519   :  { %v4135_v54 = vsub.f32 %v3977_v7, %v1754_v63  ;;  %v1755_v56 = vmul.f32 0.0078125, %v1713_v57 }
 0x51b   :  { %v4138_v59 = vsub.f32 %v3981_v9, %v1755_v56  ;;  %v1818_v51 = vmul.f32 %v4135_v54, %v4135_v54 }
 0x51d   :  { %1870 = vadd.xlane.f32.xlu0 %v1818_v51  ;;  %v1819_v36 = vmul.f32 %v4138_v59, %v4138_v59 }
 0x51e   :  { %v1715_v10 = vpop.xlane.xlu0 %1714 }
 0x51f   :  { %v1756_v15 = vmul.f32 0.0078125, %v1715_v10  ;;  %1872 = vadd.xlane.f32.xlu1 %v1819_v36 }
 0x520   :  { %v1717_v55 = vpop.xlane.xlu1 %1716 }
 0x521   :  { %v4145_v23 = vsub.f32 %v3987_v40, %v1756_v15  ;;  %v1757_v7 = vmul.f32 0.0078125, %v1717_v55 }
 0x523   :  { %v4148_v19 = vsub.f32 %v3991_v47, %v1757_v7  ;;  %v1820_v9 = vmul.f32 %v4145_v23, %v4145_v23 }
 0x525   :  { %1874 = vadd.xlane.f32.xlu0 %v1820_v9  ;;  %v1821_v48 = vmul.f32 %v4148_v19, %v4148_v19 }
 0x526   :  { %v1719_v24 = vpop.xlane.xlu0 %1718 }
 0x527   :  { %v1758_v35 = vmul.f32 0.0078125, %v1719_v24  ;;  %1876 = vadd.xlane.f32.xlu1 %v1821_v48 }
 0x528   :  { %v1721_v0 = vpop.xlane.xlu1 %1720 }
 0x529   :  { %v4155_v30 = vsub.f32 %v3997_v61, %v1758_v35  ;;  %v1759_v40 = vmul.f32 0.0078125, %v1721_v0 }
 0x52b   :  { %v4158_v50 = vsub.f32 %v4001_v44, %v1759_v40  ;;  %v1822_v47 = vmul.f32 %v4155_v30, %v4155_v30 }
 0x52d   :  { %1878 = vadd.xlane.f32.xlu0 %v1822_v47  ;;  %v1823_v58 = vmul.f32 %v4158_v50, %v4158_v50 }
 0x52e   :  { %v1723_v46 = vpop.xlane.xlu0 %1722 }
 0x52f   :  { %v1760_v45 = vmul.f32 0.0078125, %v1723_v46  ;;  %1880 = vadd.xlane.f32.xlu1 %v1823_v58 }
 0x530   :  { %v1725_v53 = vpop.xlane.xlu1 %1724 }
 0x531   :  { %v4165_v49 = vsub.f32 %v4007_v16, %v1760_v45  ;;  %v1761_v61 = vmul.f32 0.0078125, %v1725_v53 }
 0x533   :  { %v4168_v37 = vsub.f32 %v4011_v29, %v1761_v61  ;;  %v1824_v44 = vmul.f32 %v4165_v49, %v4165_v49 }
 0x535   :  { %1882 = vadd.xlane.f32.xlu0 %v1824_v44  ;;  %v1825_v4 = vmul.f32 %v4168_v37, %v4168_v37 }
 0x536   :  { %v1727_v41 = vpop.xlane.xlu0 %1726 }
 0x537   :  { %v1762_v39 = vmul.f32 0.0078125, %v1727_v41  ;;  %1884 = vadd.xlane.f32.xlu1 %v1825_v4 }
 0x538   :  { %v1729_v52 = vpop.xlane.xlu1 %1728 }
 0x539   :  { %v4175_v25 = vsub.f32 %v4017_v3, %v1762_v39  ;;  %v1763_v16 = vmul.f32 0.0078125, %v1729_v52  ;;  %v4197_v52 = vld [vmem:[%s4358_s10] ss:$0 sm:$0xff] }
 0x53b   :  { %v4178_v20 = vsub.f32 %v4021_v5, %v1763_v16  ;;  %v1826_v29 = vmul.f32 %v4175_v25, %v4175_v25 }
 0x53d   :  { %1886 = vadd.xlane.f32.xlu0 %v1826_v29  ;;  %v1827_v14 = vmul.f32 %v4178_v20, %v4178_v20 }
 0x53e   :  { %v1731_v17 = vpop.xlane.xlu0 %1730 }
 0x53f   :  { %v1764_v63 = vmul.f32 0.0078125, %v1731_v17  ;;  %1888 = vadd.xlane.f32.xlu1 %v1827_v14 }
 0x540   :  { %v1733_v57 = vpop.xlane.xlu1 %1732 }
 0x541   :  { %v4185_v56 = vsub.f32 %v4030_v1, %v1764_v63  ;;  %v1765_v3 = vmul.f32 0.0078125, %v1733_v57 }
 0x542   :  { %v1831_v51 = vpop.xlane.xlu0 %1830 }
 0x543   :  { %v4188_v36 = vsub.f32 %v4037_v8, %v1765_v3  ;;  %v1894_v5 = vmul.f32 0.0078125, %v1831_v51  ;;  %v1828_v10 = vmul.f32 %v4185_v56, %v4185_v56 }
 0x544   :  { %v1833_v15 = vpop.xlane.xlu1 %1832 }
 0x545   :  { %v1926_v55 = vadd.f32 1e-05, %v1894_v5  ;;  %v1895_v7 = vmul.f32 0.0078125, %v1833_v15  ;;  %1890 = vadd.xlane.f32.xlu0 %v1828_v10  ;;  %v1829_v9 = vmul.f32 %v4188_v36, %v4188_v36 }
 0x546   :  { %v1835_v48 = vpop.xlane.xlu0 %1834 }
 0x547   :  { %2893 = vrsqrt.f32 %v1926_v55  ;;  %v1927_v1 = vadd.f32 1e-05, %v1895_v7  ;;  %v1896_v24 = vmul.f32 0.0078125, %v1835_v48  ;;  %1892 = vadd.xlane.f32.xlu1 %v1829_v9  ;;  %v4205_v55 = vld [vmem:[%s4359_s11] ss:$0 sm:$0xff] }
 0x548   :  { %v1837_v35 = vpop.xlane.xlu1 %1836 }
 0x549   :  { %2895 = vrsqrt.f32 %v1927_v1  ;;  %v1928_v8 = vadd.f32 1e-05, %v1896_v24  ;;  %v1897_v0 = vmul.f32 0.0078125, %v1837_v35 }
 0x54a   :  { %v1839_v40 = vpop.xlane.xlu0 %1838 }
 0x54b   :  { %2897 = vrsqrt.f32 %v1928_v8  ;;  %v1929_v47 = vadd.f32 1e-05, %v1897_v0  ;;  %v1898_v58 = vmul.f32 0.0078125, %v1839_v40 }
 0x54c   :  { %v1841_v46 = vpop.xlane.xlu1 %1840 }
 0x54d   :  { %2899 = vrsqrt.f32 %v1929_v47  ;;  %v1930_v45 = vadd.f32 1e-05, %v1898_v58  ;;  %v1899_v53 = vmul.f32 0.0078125, %v1841_v46 }
 0x54e   :  { %v1843_v61 = vpop.xlane.xlu0 %1842 }
 0x54f   :  { %2901 = vrsqrt.f32 %v1930_v45  ;;  %v1931_v44 = vadd.f32 1e-05, %v1899_v53  ;;  %v1900_v4 = vmul.f32 0.0078125, %v1843_v61 }
 0x550   :  { %v1845_v41 = vpop.xlane.xlu1 %1844 }
 0x551   :  { %v2894_v39 = vpop.eup %2893  ;;  %2903 = vrsqrt.f32 %v1931_v44  ;;  %v1932_v16 = vadd.f32 1e-05, %v1900_v4  ;;  %v1901_v29 = vmul.f32 0.0078125, %v1845_v41 }
 0x552   :  { %v1990_v14 = vmul.f32 %v2894_v39, %v4026_v18  ;;  %v1847_v17 = vpop.xlane.xlu0 %1846 }
 0x553   :  { %v2896_v63 = vpop.eup %2895  ;;  %2905 = vrsqrt.f32 %v1932_v16  ;;  %v1933_v57 = vadd.f32 1e-05, %v1901_v29  ;;  %v1902_v3 = vmul.f32 0.0078125, %v1847_v17 }
 0x554   :  { %v2029_v51 = vmul.f32 %v4197_v52, %v1990_v14  ;;  %v1991_v5 = vmul.f32 %v2896_v63, %v4033_v13  ;;  %v1849_v10 = vpop.xlane.xlu1 %1848 }
 0x555   :  { %v2898_v15 = vpop.eup %2897  ;;  %2907 = vrsqrt.f32 %v1933_v57  ;;  %v1934_v7 = vadd.f32 1e-05, %v1902_v3  ;;  %v1903_v9 = vmul.f32 0.0078125, %v1849_v10 }
 0x556   :  { %v2030_v18 = vmul.f32 %v4197_v52, %v1991_v5  ;;  %v1992_v48 = vmul.f32 %v2898_v15, %v4040_v33  ;;  %v1851_v1 = vpop.xlane.xlu0 %1850  ;;  %v2068_v13 = vadd.f32 %v4205_v55, %v2029_v51 }
 0x557   :  { %v2900_v24 = vpop.eup %2899  ;;  %2909 = vrsqrt.f32 %v1934_v7  ;;  %v1935_v35 = vadd.f32 1e-05, %v1903_v9  ;;  %v1904_v8 = vmul.f32 0.0078125, %v1851_v1 }
 0x558   :  { %v2069_v0 = vadd.f32 %v4205_v55, %v2030_v18  ;;  %v2031_v40 = vmul.f32 %v4197_v52, %v1992_v48  ;;  %v1993_v47 = vmul.f32 %v2900_v24, %v4046_v27  ;;  %v1853_v58 = vpop.xlane.xlu1 %1852 }
 0x559   :  { %v2902_v46 = vpop.eup %2901  ;;  %2911 = vrsqrt.f32 %v1935_v35  ;;  %v1936_v45 = vadd.f32 1e-05, %v1904_v8  ;;  %v1905_v53 = vmul.f32 0.0078125, %v1853_v58 }
 0x55a   :  { %v2457_v61 = vpack.c.bf16 %v2069_v0, %v2068_v13  ;;  %v2032_v33 = vmul.f32 %v4197_v52, %v1993_v47  ;;  %v1994_v44 = vmul.f32 %v2902_v46, %v4051_v42  ;;  %v1855_v4 = vpop.xlane.xlu0 %1854  ;;  %v2070_v27 = vadd.f32 %v4205_v55, %v2031_v40 }
 0x55b   :  { %v2904_v41 = vpop.eup %2903  ;;  %2913 = vrsqrt.f32 %v1936_v45  ;;  %v1937_v39 = vadd.f32 1e-05, %v1905_v53  ;;  %v1906_v16 = vmul.f32 0.0078125, %v1855_v4 }
 0x55c   :  { %2458 = vst [vmem:[%s4360_s12] sm:$0xff] %v2457_v61   ;;  %v2071_v29 = vadd.f32 %v4205_v55, %v2032_v33  ;;  %v2033_v14 = vmul.f32 %v4197_v52, %v1994_v44  ;;  %v1995_v17 = vmul.f32 %v2904_v41, %v4056_v12  ;;  %v1857_v63 = vpop.xlane.xlu1 %1856 }
 0x55d   :  { %v2906_v57 = vpop.eup %2905  ;;  %2915 = vrsqrt.f32 %v1937_v39  ;;  %v1938_v42 = vadd.f32 1e-05, %v1906_v16  ;;  %v1907_v3 = vmul.f32 0.0078125, %v1857_v63 }
 0x55e   :  { %v2462_v51 = vpack.c.bf16 %v2071_v29, %v2070_v27  ;;  %v2034_v5 = vmul.f32 %v4197_v52, %v1995_v17  ;;  %v1996_v10 = vmul.f32 %v2906_v57, %v4061_v38  ;;  %v1859_v15 = vpop.xlane.xlu0 %1858  ;;  %v2072_v12 = vadd.f32 %v4205_v55, %v2033_v14 }
 0x55f   :  { %v2908_v7 = vpop.eup %2907  ;;  %2917 = vrsqrt.f32 %v1938_v42  ;;  %v1939_v9 = vadd.f32 1e-05, %v1907_v3  ;;  %v1908_v18 = vmul.f32 0.0078125, %v1859_v15 }
 0x560   :  { %2549 = vst [vmem:[%s4360_s12 + $0x8] sm:$0xff] %v2462_v51   ;;  %v2073_v48 = vadd.f32 %v4205_v55, %v2034_v5  ;;  %v2035_v1 = vmul.f32 %v4197_v52, %v1996_v10  ;;  %v1997_v24 = vmul.f32 %v2908_v7, %v4066_v60  ;;  %v1861_v35 = vpop.xlane.xlu1 %1860 }
 0x561   :  { %v2910_v8 = vpop.eup %2909  ;;  %2919 = vrsqrt.f32 %v1939_v9  ;;  %v1940_v38 = vadd.f32 1e-05, %v1908_v18  ;;  %v1909_v13 = vmul.f32 0.0078125, %v1861_v35 }
 0x562   :  { %v2467_v0 = vpack.c.bf16 %v2073_v48, %v2072_v12  ;;  %v2036_v40 = vmul.f32 %v4197_v52, %v1997_v24  ;;  %v1998_v47 = vmul.f32 %v2910_v8, %v4071_v22  ;;  %v1863_v58 = vpop.xlane.xlu0 %1862  ;;  %v2074_v60 = vadd.f32 %v4205_v55, %v2035_v1 }
 0x563   :  { %v2912_v46 = vpop.eup %2911  ;;  %2921 = vrsqrt.f32 %v1940_v38  ;;  %v1941_v45 = vadd.f32 1e-05, %v1909_v13  ;;  %v1910_v53 = vmul.f32 0.0078125, %v1863_v58 }
 0x564   :  { %2550 = vst [vmem:[%s4360_s12 + $0x10] sm:$0xff] %v2467_v0   ;;  %v2075_v61 = vadd.f32 %v4205_v55, %v2036_v40  ;;  %v2037_v33 = vmul.f32 %v4197_v52, %v1998_v47  ;;  %v1999_v44 = vmul.f32 %v2912_v46, %v4076_v31  ;;  %v1865_v4 = vpop.xlane.xlu1 %1864 }
 0x565   :  { %v2914_v41 = vpop.eup %2913  ;;  %2923 = vrsqrt.f32 %v1941_v45  ;;  %v1942_v22 = vadd.f32 1e-05, %v1910_v53  ;;  %v1911_v39 = vmul.f32 0.0078125, %v1865_v4 }
 0x566   :  { %v2472_v16 = vpack.c.bf16 %v2075_v61, %v2074_v60  ;;  %v2038_v27 = vmul.f32 %v4197_v52, %v1999_v44  ;;  %v2000_v29 = vmul.f32 %v2914_v41, %v4081_v34  ;;  %v1867_v14 = vpop.xlane.xlu0 %1866  ;;  %v2076_v31 = vadd.f32 %v4205_v55, %v2037_v33 }
 0x567   :  { %v2916_v17 = vpop.eup %2915  ;;  %2925 = vrsqrt.f32 %v1942_v22  ;;  %v1943_v63 = vadd.f32 1e-05, %v1911_v39  ;;  %v1912_v57 = vmul.f32 0.0078125, %v1867_v14 }
 0x568   :  { %2551 = vst [vmem:[%s4360_s12 + $0x18] sm:$0xff] %v2472_v16   ;;  %v2077_v42 = vadd.f32 %v4205_v55, %v2038_v27  ;;  %v2039_v3 = vmul.f32 %v4197_v52, %v2000_v29  ;;  %v2001_v51 = vmul.f32 %v2916_v17, %v4086_v62  ;;  %v1869_v5 = vpop.xlane.xlu1 %1868 }
 0x569   :  { %v2918_v10 = vpop.eup %2917  ;;  %2927 = vrsqrt.f32 %v1943_v63  ;;  %v1944_v34 = vadd.f32 1e-05, %v1912_v57  ;;  %v1913_v15 = vmul.f32 0.0078125, %v1869_v5 }
 0x56a   :  { %v2477_v7 = vpack.c.bf16 %v2077_v42, %v2076_v31  ;;  %v2040_v9 = vmul.f32 %v4197_v52, %v2001_v51  ;;  %v2002_v18 = vmul.f32 %v2918_v10, %v4091_v2  ;;  %v2078_v1 = vadd.f32 %v4205_v55, %v2039_v3 }
 0x56b   :  { %v2920_v12 = vpop.eup %2919  ;;  %2929 = vrsqrt.f32 %v1944_v34  ;;  %v1945_v48 = vadd.f32 1e-05, %v1913_v15 }
 0x56c   :  { %2552 = vst [vmem:[%s4360_s12 + $0x20] sm:$0xff] %v2477_v7   ;;  %v2079_v62 = vadd.f32 %v4205_v55, %v2040_v9  ;;  %v2041_v24 = vmul.f32 %v4197_v52, %v2002_v18  ;;  %v2003_v35 = vmul.f32 %v2920_v12, %v4096_v26 }
 0x56d   :  { %v2922_v8 = vpop.eup %2921  ;;  %2931 = vrsqrt.f32 %v1945_v48 }
 0x56e   :  { %v2482_v38 = vpack.c.bf16 %v2079_v62, %v2078_v1  ;;  %v2042_v2 = vmul.f32 %v4197_v52, %v2003_v35  ;;  %v2004_v13 = vmul.f32 %v2922_v8, %v4101_v43  ;;  %v2080_v40 = vadd.f32 %v4205_v55, %v2041_v24 }
 0x56f   :  { %v2924_v0 = vpop.eup %2923 }
 0x570   :  { %2553 = vst [vmem:[%s4360_s12 + $0x28] sm:$0xff] %v2482_v38   ;;  %v2081_v47 = vadd.f32 %v4205_v55, %v2042_v2  ;;  %v2043_v58 = vmul.f32 %v4197_v52, %v2004_v13  ;;  %v2005_v26 = vmul.f32 %v2924_v0, %v4106_v11 }
 0x571   :  { %v2926_v46 = vpop.eup %2925 }
 0x572   :  { %v2487_v45 = vpack.c.bf16 %v2081_v47, %v2080_v40  ;;  %v2044_v53 = vmul.f32 %v4197_v52, %v2005_v26  ;;  %v2006_v60 = vmul.f32 %v2926_v46, %v4111_v32  ;;  %v2082_v61 = vadd.f32 %v4205_v55, %v2043_v58 }
 0x573   :  { %v2928_v43 = vpop.eup %2927 }
 0x574   :  { %2554 = vst [vmem:[%s4360_s12 + $0x30] sm:$0xff] %v2487_v45   ;;  %v2083_v33 = vadd.f32 %v4205_v55, %v2044_v53  ;;  %v2045_v44 = vmul.f32 %v4197_v52, %v2006_v60  ;;  %v2007_v4 = vmul.f32 %v2928_v43, %v4116_v21 }
 0x575   :  { %v2930_v11 = vpop.eup %2929 }
 0x576   :  { %v2492_v41 = vpack.c.bf16 %v2083_v33, %v2082_v61  ;;  %v2046_v22 = vmul.f32 %v4197_v52, %v2007_v4  ;;  %v2008_v39 = vmul.f32 %v2930_v11, %v4121_v28  ;;  %v2084_v16 = vadd.f32 %v4205_v55, %v2045_v44 }
 0x577   :  { %v2932_v32 = vpop.eup %2931 }
 0x578   :  { %2555 = vst [vmem:[%s4360_s12 + $0x38] sm:$0xff] %v2492_v41   ;;  %v2085_v27 = vadd.f32 %v4205_v55, %v2046_v22  ;;  %v2047_v29 = vmul.f32 %v4197_v52, %v2008_v39  ;;  %v2009_v14 = vmul.f32 %v2932_v32, %v4126_v6 }
 0x57a   :  { %v2497_v21 = vpack.c.bf16 %v2085_v27, %v2084_v16  ;;  %v2048_v17 = vmul.f32 %v4197_v52, %v2009_v14  ;;  %v2086_v28 = vadd.f32 %v4205_v55, %v2047_v29 }
 0x57c   :  { %2556 = vst [vmem:[%s4360_s12 + $0x40] sm:$0xff] %v2497_v21   ;;  %v2087_v63 = vadd.f32 %v4205_v55, %v2048_v17 }
 0x57e   :  { %v2502_v57 = vpack.c.bf16 %v2087_v63, %v2086_v28 }
 0x580   :  { %2557 = vst [vmem:[%s4360_s12 + $0x48] sm:$0xff] %v2502_v57  }
 0x5aa   :  { %v1871_v31 = vpop.xlane.xlu0 %1870 }
 0x5ab   :  { %v1914_v42 = vmul.f32 0.0078125, %v1871_v31 }
 0x5ac   :  { %v1873_v3 = vpop.xlane.xlu1 %1872 }
 0x5ad   :  { %v1946_v6 = vadd.f32 1e-05, %v1914_v42  ;;  %v1915_v51 = vmul.f32 0.0078125, %v1873_v3 }
 0x5af   :  { %2933 = vrsqrt.f32 %v1946_v6  ;;  %v1947_v5 = vadd.f32 1e-05, %v1915_v51 }
 0x5b1   :  { %2935 = vrsqrt.f32 %v1947_v5 }
 0x5b2   :  { %v1875_v10 = vpop.xlane.xlu0 %1874 }
 0x5b3   :  { %v1916_v34 = vmul.f32 0.0078125, %v1875_v10 }
 0x5b4   :  { %v1877_v15 = vpop.xlane.xlu1 %1876 }
 0x5b5   :  { %v1948_v7 = vadd.f32 1e-05, %v1916_v34  ;;  %v1917_v9 = vmul.f32 0.0078125, %v1877_v15 }
 0x5b7   :  { %2937 = vrsqrt.f32 %v1948_v7  ;;  %v1949_v18 = vadd.f32 1e-05, %v1917_v9 }
 0x5b9   :  { %v2934_v12 = vpop.eup %2933  ;;  %2939 = vrsqrt.f32 %v1949_v18 }
 0x5ba   :  { %v2010_v48 = vmul.f32 %v2934_v12, %v4135_v54  ;;  %v1879_v1 = vpop.xlane.xlu0 %1878 }
 0x5bb   :  { %v2936_v62 = vpop.eup %2935  ;;  %v1918_v24 = vmul.f32 0.0078125, %v1879_v1 }
 0x5bc   :  { %v2049_v35 = vmul.f32 %v4197_v52, %v2010_v48  ;;  %v2011_v8 = vmul.f32 %v2936_v62, %v4138_v59  ;;  %v1881_v38 = vpop.xlane.xlu1 %1880 }
 0x5bd   :  { %v1950_v2 = vadd.f32 1e-05, %v1918_v24  ;;  %v1919_v13 = vmul.f32 0.0078125, %v1881_v38 }
 0x5be   :  { %v2050_v0 = vmul.f32 %v4197_v52, %v2011_v8  ;;  %v2088_v47 = vadd.f32 %v4205_v55, %v2049_v35 }
 0x5bf   :  { %2941 = vrsqrt.f32 %v1950_v2  ;;  %v1951_v40 = vadd.f32 1e-05, %v1919_v13 }
 0x5c0   :  { %v2089_v58 = vadd.f32 %v4205_v55, %v2050_v0 }
 0x5c1   :  { %v2938_v26 = vpop.eup %2937  ;;  %2943 = vrsqrt.f32 %v1951_v40 }
 0x5c2   :  { %v2507_v54 = vpack.c.bf16 %v2089_v58, %v2088_v47  ;;  %v2012_v46 = vmul.f32 %v2938_v26, %v4145_v23  ;;  %v1883_v45 = vpop.xlane.xlu0 %1882 }
 0x5c3   :  { %v2940_v53 = vpop.eup %2939  ;;  %v1920_v60 = vmul.f32 0.0078125, %v1883_v45 }
 0x5c4   :  { %2558 = vst [vmem:[%s4360_s12 + $0x50] sm:$0xff] %v2507_v54   ;;  %v2051_v59 = vmul.f32 %v4197_v52, %v2012_v46  ;;  %v2013_v43 = vmul.f32 %v2940_v53, %v4148_v19  ;;  %v1885_v61 = vpop.xlane.xlu1 %1884 }
 0x5c5   :  { %v1952_v33 = vadd.f32 1e-05, %v1920_v60  ;;  %v1921_v44 = vmul.f32 0.0078125, %v1885_v61 }
 0x5c6   :  { %v2052_v4 = vmul.f32 %v4197_v52, %v2013_v43  ;;  %v2090_v23 = vadd.f32 %v4205_v55, %v2051_v59 }
 0x5c7   :  { %2945 = vrsqrt.f32 %v1952_v33  ;;  %v1953_v11 = vadd.f32 1e-05, %v1921_v44 }
 0x5c8   :  { %v2091_v41 = vadd.f32 %v4205_v55, %v2052_v4 }
 0x5c9   :  { %v2942_v22 = vpop.eup %2941  ;;  %2947 = vrsqrt.f32 %v1953_v11 }
 0x5ca   :  { %v2512_v39 = vpack.c.bf16 %v2091_v41, %v2090_v23  ;;  %v2014_v32 = vmul.f32 %v2942_v22, %v4155_v30  ;;  %v1887_v16 = vpop.xlane.xlu0 %1886 }
 0x5cb   :  { %v2944_v27 = vpop.eup %2943  ;;  %v1922_v29 = vmul.f32 0.0078125, %v1887_v16 }
 0x5cc   :  { %2559 = vst [vmem:[%s4360_s12 + $0x58] sm:$0xff] %v2512_v39   ;;  %v2053_v19 = vmul.f32 %v4197_v52, %v2014_v32  ;;  %v2015_v14 = vmul.f32 %v2944_v27, %v4158_v50  ;;  %v1889_v21 = vpop.xlane.xlu1 %1888 }
 0x5cd   :  { %v1954_v17 = vadd.f32 1e-05, %v1922_v29  ;;  %v1923_v28 = vmul.f32 0.0078125, %v1889_v21 }
 0x5ce   :  { %v2054_v63 = vmul.f32 %v4197_v52, %v2015_v14  ;;  %v2092_v30 = vadd.f32 %v4205_v55, %v2053_v19 }
 0x5cf   :  { %2949 = vrsqrt.f32 %v1954_v17  ;;  %v1955_v57 = vadd.f32 1e-05, %v1923_v28 }
 0x5d0   :  { %v2093_v31 = vadd.f32 %v4205_v55, %v2054_v63 }
 0x5d1   :  { %v2946_v42 = vpop.eup %2945  ;;  %2951 = vrsqrt.f32 %v1955_v57 }
 0x5d2   :  { %v2517_v3 = vpack.c.bf16 %v2093_v31, %v2092_v30  ;;  %v2016_v6 = vmul.f32 %v2946_v42, %v4165_v49  ;;  %v1891_v51 = vpop.xlane.xlu0 %1890 }
 0x5d3   :  { %v2948_v5 = vpop.eup %2947  ;;  %v1924_v10 = vmul.f32 0.0078125, %v1891_v51 }
 0x5d4   :  { %2560 = vst [vmem:[%s4360_s12 + $0x60] sm:$0xff] %v2517_v3   ;;  %v2055_v50 = vmul.f32 %v4197_v52, %v2016_v6  ;;  %v2017_v34 = vmul.f32 %v2948_v5, %v4168_v37  ;;  %v1893_v15 = vpop.xlane.xlu1 %1892 }
 0x5d5   :  { %v1956_v7 = vadd.f32 1e-05, %v1924_v10  ;;  %v1925_v9 = vmul.f32 0.0078125, %v1893_v15 }
 0x5d6   :  { %v2056_v18 = vmul.f32 %v4197_v52, %v2017_v34  ;;  %v2094_v49 = vadd.f32 %v4205_v55, %v2055_v50 }
 0x5d7   :  { %2953 = vrsqrt.f32 %v1956_v7  ;;  %v1957_v12 = vadd.f32 1e-05, %v1925_v9 }
 0x5d8   :  { %v2095_v48 = vadd.f32 %v4205_v55, %v2056_v18 }
 0x5d9   :  { %v2950_v1 = vpop.eup %2949  ;;  %2955 = vrsqrt.f32 %v1957_v12 }
 0x5da   :  { %v2522_v62 = vpack.c.bf16 %v2095_v48, %v2094_v49  ;;  %v2018_v24 = vmul.f32 %v2950_v1, %v4175_v25 }
 0x5db   :  { %v2952_v35 = vpop.eup %2951 }
 0x5dc   :  { %2561 = vst [vmem:[%s4360_s12 + $0x68] sm:$0xff] %v2522_v62   ;;  %v2057_v37 = vmul.f32 %v4197_v52, %v2018_v24  ;;  %v2019_v8 = vmul.f32 %v2952_v35, %v4178_v20 }
 0x5de   :  { %v2058_v38 = vmul.f32 %v4197_v52, %v2019_v8  ;;  %v2096_v2 = vadd.f32 %v4205_v55, %v2057_v37 }
 0x5e0   :  { %v2097_v13 = vadd.f32 %v4205_v55, %v2058_v38 }
 0x5e1   :  { %v2954_v0 = vpop.eup %2953 }
 0x5e2   :  { %v2527_v40 = vpack.c.bf16 %v2097_v13, %v2096_v2  ;;  %v2020_v47 = vmul.f32 %v2954_v0, %v4185_v56 }
 0x5e3   :  { %v2956_v25 = vpop.eup %2955 }
 0x5e4   :  { %2562 = vst [vmem:[%s4360_s12 + $0x70] sm:$0xff] %v2527_v40   ;;  %v2059_v58 = vmul.f32 %v4197_v52, %v2020_v47  ;;  %v2021_v26 = vmul.f32 %v2956_v25, %v4188_v36 }
 0x5e6   :  { %v2060_v20 = vmul.f32 %v4197_v52, %v2021_v26  ;;  %v2098_v54 = vadd.f32 %v4205_v55, %v2059_v58 }
 0x5e8   :  { %v2099_v46 = vadd.f32 %v4205_v55, %v2060_v20 }
 0x5ea   :  { %v2532_v45 = vpack.c.bf16 %v2099_v46, %v2098_v54 }
 0x5ec   :  { %2563 = vst [vmem:[%s4360_s12 + $0x78] sm:$0xff] %v2532_v45  }

// kernel: pc_trs_forward.13
= control target key start
LH: loop header
LB: loop body
LE: loop exit
PB: predicated region body
PF: predicated region fallthrough
CT: control target
= control target key end

     0   :  { %s4068_s0 = inlined_call_operand.vmem [shape: bf16[256,128], index: 0, kind: input, shape index: {}]   ;;  %s4069_s1 = inlined_call_operand.vmem [shape: bf16[256,128], index: 1, kind: input, shape index: {}]   ;;  %s4070_s2 = inlined_call_operand.vmem [shape: bf16[128,128], index: 2, kind: input, shape index: {}]   ;;  %s4071_s3 = inlined_call_operand.vmem [shape: f32[1,128], index: 3, kind: input, shape index: {}]   ;;  %s4072_s4 = inlined_call_operand.vmem [shape: f32[1,128], index: 4, kind: input, shape index: {}]   ;;  %s4073_s5 = inlined_call_operand.vmem [shape: f32[1,128], index: 5, kind: input, shape index: {}]   ;;  %s4074_s6 = inlined_call_operand.vmem [shape: bf16[128,256], index: 6, kind: input, shape index: {}]   ;;  %s4075_s7 = inlined_call_operand.vmem [shape: f32[1,256], index: 7, kind: input, shape index: {}]   ;;  %s4076_s8 = inlined_call_operand.vmem [shape: bf16[256,128], index: 8, kind: input, shape index: {}]   ;;  %s4077_s9 = inlined_call_operand.vmem [shape: f32[1,128], index: 9, kind: input, shape index: {}]   ;;  %s4078_s10 = inlined_call_operand.vmem [shape: f32[1,128], index: 10, kind: input, shape index: {}]   ;;  %s4079_s11 = inlined_call_operand.vmem [shape: f32[1,128], index: 11, kind: input, shape index: {}]   ;;  %s4080_s12 = inlined_call_operand.hbm [shape: f32[256,128], index: 12, kind: output, shape index: {}]  }
   0x1   :  { %v2494_v0 = vld [vmem:[%s4070_s2] sm:$0xff]   ;;  %v2495_v1 = vld [vmem:[%s4070_s2 + $0x8] sm:$0xff]   ;;  %v2496_v2 = vld [vmem:[%s4070_s2 + $0x10] sm:$0xff]  }
   0x2   :  { %2426 = vmatprep.subr.bf16.mxu0 %v2494_v0  ;;  %2474 = vmatprep.subr.bf16.mxu1 %v2494_v0  ;;  %v2497_v3 = vld [vmem:[%s4070_s2 + $0x18] sm:$0xff]   ;;  %v2502_v4 = vld [vmem:[%s4068_s0] sm:$0xff]   ;;  %v2499_v6 = vld [vmem:[%s4070_s2 + $0x28] sm:$0xff]  }
   0x3   :  { %2427 = vmatpush3.bf16.msra.mxu0 %v2494_v0  ;;  %2482 = vmatpush3.bf16.msra.mxu1 %v2494_v0  ;;  %v2498_v5 = vld [vmem:[%s4070_s2 + $0x20] sm:$0xff]   ;;  %v2500_v8 = vld [vmem:[%s4070_s2 + $0x30] sm:$0xff]   ;;  %v2501_v9 = vld [vmem:[%s4070_s2 + $0x38] sm:$0xff]  }
   0x4   :  { %2428 = vmatprep.subr.bf16.mxu0 %v2495_v1  ;;  %2475 = vmatprep.subr.bf16.mxu1 %v2495_v1  ;;  %v2510_v7 = vld [vmem:[%s4068_s0 + $0x40] sm:$0xff]   ;;  %v2503_v10 = vld [vmem:[%s4068_s0 + $0x8] sm:$0xff]   ;;  %v2504_v12 = vld [vmem:[%s4068_s0 + $0x10] sm:$0xff]  }
   0x5   :  { %2442 = vmatprep.mubr.bf16.mxu0 %v2502_v4  ;;  %2458 = vmatprep.mubr.bf16.mxu1 %v2510_v7  ;;  %v2511_v11 = vld [vmem:[%s4068_s0 + $0x48] sm:$0xff]   ;;  %v2512_v13 = vld [vmem:[%s4068_s0 + $0x50] sm:$0xff]   ;;  %v2505_v14 = vld [vmem:[%s4068_s0 + $0x18] sm:$0xff]  }
   0x6   :  { %v2513_v15 = vld [vmem:[%s4068_s0 + $0x58] sm:$0xff]   ;;  %v2506_v16 = vld [vmem:[%s4068_s0 + $0x20] sm:$0xff]  }
   0x7   :  { %2429 = vmatpush3.bf16.msra.mxu0 %v2495_v1  ;;  %2483 = vmatpush3.bf16.msra.mxu1 %v2495_v1  ;;  %v2514_v17 = vld [vmem:[%s4068_s0 + $0x60] sm:$0xff]  }
   0x8   :  { %2430 = vmatprep.subr.bf16.mxu0 %v2496_v2  ;;  %2476 = vmatprep.subr.bf16.mxu1 %v2496_v2 }
   0xb   :  { %2431 = vmatpush3.bf16.msra.mxu0 %v2496_v2  ;;  %2484 = vmatpush3.bf16.msra.mxu1 %v2496_v2 }
   0xc   :  { %2432 = vmatprep.subr.bf16.mxu0 %v2497_v3  ;;  %2477 = vmatprep.subr.bf16.mxu1 %v2497_v3 }
   0xf   :  { %2433 = vmatpush3.bf16.msra.mxu0 %v2497_v3  ;;  %2485 = vmatpush3.bf16.msra.mxu1 %v2497_v3 }
  0x10   :  { %2434 = vmatprep.subr.bf16.mxu0 %v2498_v5  ;;  %2478 = vmatprep.subr.bf16.mxu1 %v2498_v5 }
  0x13   :  { %2435 = vmatpush3.bf16.msra.mxu0 %v2498_v5  ;;  %2486 = vmatpush3.bf16.msra.mxu1 %v2498_v5 }
  0x14   :  { %2436 = vmatprep.subr.bf16.mxu0 %v2499_v6  ;;  %2479 = vmatprep.subr.bf16.mxu1 %v2499_v6 }
  0x17   :  { %2437 = vmatpush3.bf16.msra.mxu0 %v2499_v6  ;;  %2487 = vmatpush3.bf16.msra.mxu1 %v2499_v6 }
  0x18   :  { %2438 = vmatprep.subr.bf16.mxu0 %v2500_v8  ;;  %2480 = vmatprep.subr.bf16.mxu1 %v2500_v8 }
  0x1b   :  { %2439 = vmatpush3.bf16.msra.mxu0 %v2500_v8  ;;  %2488 = vmatpush3.bf16.msra.mxu1 %v2500_v8 }
  0x1c   :  { %2440 = vmatprep.subr.bf16.mxu0 %v2501_v9  ;;  %2481 = vmatprep.subr.bf16.mxu1 %v2501_v9 }
  0x1f   :  { %2441 = vmatpush3.bf16.msra.mxu0 %v2501_v9  ;;  %2489 = vmatpush3.bf16.msra.mxu1 %v2501_v9 }
  0x22   :  { %2443 = vmatmul.mubr.bf16.vlgmr.msra.gmra.mrb[0].mxu0 %v2503_v10  ;;  %2459 = vmatmul.mubr.bf16.vlgmr.msra.gmra.mrb[0].mxu1 %v2511_v11 }
  0x23   :  { %2446 = vmatprep.mubr.bf16.mxu0 %v2504_v12  ;;  %2462 = vmatprep.mubr.bf16.mxu1 %v2512_v13 }
  0x24   :  { %17 = vsyncpa [#allocation3], 0  ;;  %v2507_v18 = vld [vmem:[%s4068_s0 + $0x28] sm:$0xff]   ;;  %v2508_v20 = vld [vmem:[%s4068_s0 + $0x30] sm:$0xff]  }
  0x25   :  { %v2515_v19 = vld [vmem:[%s4068_s0 + $0x68] sm:$0xff]   ;;  %v2516_v21 = vld [vmem:[%s4068_s0 + $0x70] sm:$0xff]   ;;  %v2509_v22 = vld [vmem:[%s4068_s0 + $0x38] sm:$0xff]  }
  0x26   :  { %v2517_v23 = vld [vmem:[%s4068_s0 + $0x78] sm:$0xff]   ;;  %v2275_v24 = vld [vmem:[%s4069_s1 + $0x8] sm:$0xff]   ;;  %v2212_v25 = vld [vmem:[%s4069_s1] sm:$0xff]  }
  0x27   :  { %v2860_v26 = vld [vmem:[%s4071_s3] ss:$0 sm:$0xff]  ;;  %v2217_v27 = vunpack.c.l.bf16 %v2275_v24  ;;  %v2213_v29 = vunpack.c.l.bf16 %v2212_v25  ;;  %v2218_v40 = vunpack.c.h.bf16 %v2275_v24  ;;  %v2214_v44 = vunpack.c.h.bf16 %v2212_v25  ;;  %v2276_v45 = vld [vmem:[%s4069_s1 + $0x10] sm:$0xff]   ;;  %v2277_v47 = vld [vmem:[%s4069_s1 + $0x18] sm:$0xff]  }
  0x28   :  { %v2221_v50 = vunpack.c.l.bf16 %v2276_v45  ;;  %v2222_v55 = vunpack.c.h.bf16 %v2276_v45  ;;  %v2225_v56 = vunpack.c.l.bf16 %v2277_v47  ;;  %v2226_v61 = vunpack.c.h.bf16 %v2277_v47  ;;  %v2278_v62 = vld [vmem:[%s4069_s1 + $0x20] sm:$0xff]   ;;  %v2279_v1 = vld [vmem:[%s4069_s1 + $0x28] sm:$0xff]  }
  0x29   :  { %v2229_v4 = vunpack.c.l.bf16 %v2278_v62  ;;  %v2230_v9 = vunpack.c.h.bf16 %v2278_v62  ;;  %v2233_v10 = vunpack.c.l.bf16 %v2279_v1 }
  0x2a   :  { %2447 = vmatmul.mubr.bf16.gmra.mrb[4].mxu0 %v2505_v14  ;;  %2463 = vmatmul.mubr.bf16.gmra.mrb[4].mxu1 %v2513_v15  ;;  %v2234_v15 = vunpack.c.h.bf16 %v2279_v1 }
  0x2b   :  { %2450 = vmatprep.mubr.bf16.mxu0 %v2506_v16  ;;  %2466 = vmatprep.mubr.bf16.mxu1 %v2514_v17  ;;  %v2280_v16 = vld [vmem:[%s4069_s1 + $0x30] sm:$0xff]  }
  0x32   :  { %2451 = vmatmul.mubr.bf16.gmra.mrb[8].mxu0 %v2507_v18  ;;  %2467 = vmatmul.mubr.bf16.gmra.mrb[8].mxu1 %v2515_v19  ;;  %v2281_v19 = vld [vmem:[%s4069_s1 + $0x38] sm:$0xff]  }
  0x33   :  { %2454 = vmatprep.mubr.bf16.mxu0 %v2508_v20  ;;  %2470 = vmatprep.mubr.bf16.mxu1 %v2516_v21 }
  0x3a   :  { %2455 = vmatmul.mubr.bf16.gmra.mrb[12].mxu0 %v2509_v22  ;;  %2471 = vmatmul.mubr.bf16.gmra.mrb[12].mxu1 %v2517_v23  ;;  %v2237_v23 = vunpack.c.l.bf16 %v2280_v16 }
  0xf5   :  { %v2444_v28 = vpop.f32.mrb[0].mxu0  ;;  %v2862_v30 = vpop.f32.mrb[0].mxu1 }
  0xf6   :  { %v285_v31 = vadd.f32 %v2444_v28, %v2860_v26  ;;  %v276_v32 = vpop.f32.mrb[1].mxu0  ;;  %v2865_v33 = vpop.f32.mrb[1].mxu1  ;;  %v2238_v28 = vunpack.c.h.bf16 %v2280_v16 }
  0xf7   :  { %v277_v34 = vadd.f32 %v2860_v26, %v276_v32  ;;  %v2445_v35 = vpop.f32.mrb[2].mxu0  ;;  %v2868_v36 = vpop.f32.mrb[2].mxu1 }
  0xf8   :  { %v288_v37 = vadd.f32 %v2445_v35, %v2860_v26  ;;  %v279_v38 = vpop.f32.mrb[3].mxu0  ;;  %v2871_v39 = vadd.f32 %v2217_v27, %v285_v31  ;;  %v2873_v41 = vpop.f32.mrb[3].mxu1  ;;  %v352_v1 = vadd.f32 %v2868_v36, %v2860_v26 }
  0xf9   :  { %v280_v42 = vadd.f32 %v2860_v26, %v279_v38  ;;  %v2876_v43 = vadd.f32 %v2213_v29, %v277_v34 }
  0xfa   :  { %503 = vadd.xlane.f32.xlu1 %v2871_v39  ;;  %v2883_v46 = vadd.f32 %v2218_v40, %v288_v37  ;;  %v2241_v37 = vunpack.c.l.bf16 %v2281_v19 }
  0xfb   :  { %499 = vadd.xlane.f32.xlu0 %v2876_v43  ;;  %v2888_v49 = vadd.f32 %v2214_v44, %v280_v42  ;;  %v2282_v44 = vld [vmem:[%s4069_s1 + $0x40] sm:$0xff]  }
  0xfd   :  { %v2448_v48 = vpop.f32.mrb[4].mxu0  ;;  %v2464_v20 = vpop.f32.mrb[4].mxu1 }
  0xfe   :  { %505 = vadd.xlane.f32.xlu1 %v2883_v46  ;;  %v292_v51 = vpop.f32.mrb[5].mxu0  ;;  %v301_v52 = vadd.f32 %v2448_v48, %v2860_v26  ;;  %v2935_v24 = vadd.f32 %v2464_v20, %v2860_v26  ;;  %v356_v25 = vpop.f32.mrb[5].mxu1 }
  0xff   :  { %v293_v53 = vadd.f32 %v2860_v26, %v292_v51  ;;  %v2449_v54 = vpop.f32.mrb[6].mxu0  ;;  %501 = vadd.xlane.f32.xlu0 %v2888_v49  ;;  %v2938_v29 = vadd.f32 %v2860_v26, %v356_v25  ;;  %v2465_v31 = vpop.f32.mrb[6].mxu1  ;;  %v2242_v51 = vunpack.c.h.bf16 %v2281_v19  ;;  %v2518_v25 = vld [vmem:[%s4074_s6] ss:$8 sps:$4 sm:$0xff]  }
 0x100   :  { %v295_v57 = vpop.f32.mrb[7].mxu0  ;;  %v304_v58 = vadd.f32 %v2449_v54, %v2860_v26  ;;  %v2904_v0 = vadd.f32 %v2225_v56, %v301_v52  ;;  %v2944_v38 = vadd.f32 %v2465_v31, %v2860_v26  ;;  %v359_v40 = vpop.f32.mrb[7].mxu1  ;;  %v2283_v56 = vld [vmem:[%s4069_s1 + $0x48] sm:$0xff]   ;;  %v2521_v31 = vld [vmem:[%s4074_s6 + $0x10] ss:$8 sps:$4 sm:$0xff]  }
 0x101   :  { %v296_v59 = vadd.f32 %v2860_v26, %v295_v57  ;;  %v2896_v60 = vadd.f32 %v2221_v50, %v293_v53  ;;  %v2950_v45 = vadd.f32 %v2860_v26, %v359_v40  ;;  %v341_v53 = vadd.f32 %v2860_v26, %v2865_v33 }
 0x102   :  { %v2910_v3 = vadd.f32 %v2226_v61, %v304_v58  ;;  %v344_v57 = vadd.f32 %v2860_v26, %v2873_v41  ;;  %v349_v61 = vadd.f32 %v2862_v30, %v2860_v26  ;;  %v2249_v62 = vunpack.c.l.bf16 %v2283_v56 }
 0x103   :  { %507 = vadd.xlane.f32.xlu0 %v2896_v60  ;;  %v2902_v63 = vadd.f32 %v2222_v55, %v296_v59  ;;  %v2245_v55 = vunpack.c.l.bf16 %v2282_v44  ;;  %v2246_v59 = vunpack.c.h.bf16 %v2282_v44 }
 0x104   :  { %v2983_v41 = vadd.f32 %v2249_v62, %v349_v61  ;;  %v2285_v61 = vld [vmem:[%s4069_s1 + $0x58] sm:$0xff]  }
 0x105   :  { %v2452_v2 = vpop.f32.mrb[8].mxu0  ;;  %509 = vadd.xlane.f32.xlu1 %v2902_v63  ;;  %v2975_v33 = vadd.f32 %v2245_v55, %v341_v53 }
 0x106   :  { %v308_v5 = vpop.f32.mrb[9].mxu0  ;;  %v317_v6 = vadd.f32 %v2452_v2, %v2860_v26  ;;  %v2980_v2 = vadd.f32 %v2246_v59, %v344_v57 }
 0x107   :  { %v309_v7 = vadd.f32 %v2860_v26, %v308_v5  ;;  %v2453_v8 = vpop.f32.mrb[10].mxu0  ;;  %511 = vadd.xlane.f32.xlu0 %v2904_v0  ;;  %v2468_v5 = vpop.f32.mrb[8].mxu1 }
 0x108   :  { %v311_v11 = vpop.f32.mrb[11].mxu0  ;;  %v320_v12 = vadd.f32 %v2453_v8, %v2860_v26  ;;  %v2926_v18 = vadd.f32 %v2233_v10, %v317_v6  ;;  %v2986_v30 = vadd.f32 %v2468_v5, %v2860_v26 }
 0x109   :  { %v312_v13 = vadd.f32 %v2860_v26, %v311_v11  ;;  %513 = vadd.xlane.f32.xlu1 %v2910_v3  ;;  %v2918_v14 = vadd.f32 %v2229_v4, %v309_v7  ;;  %v2250_v4 = vunpack.c.h.bf16 %v2283_v56  ;;  %v372_v7 = vpop.f32.mrb[9].mxu1 }
 0x10a   :  { %v2932_v22 = vadd.f32 %v2234_v15, %v320_v12  ;;  %v2992_v36 = vadd.f32 %v2860_v26, %v372_v7  ;;  %v2469_v8 = vpop.f32.mrb[10].mxu1  ;;  %v2258_v7 = vunpack.c.h.bf16 %v2285_v61 }
 0x10b   :  { %515 = vadd.xlane.f32.xlu0 %v2918_v14  ;;  %v2924_v17 = vadd.f32 %v2230_v9, %v312_v13  ;;  %v2989_v6 = vadd.f32 %v2250_v4, %v352_v1  ;;  %v2996_v9 = vadd.f32 %v2469_v8, %v2860_v26  ;;  %v375_v10 = vpop.f32.mrb[11].mxu1  ;;  %v2286_v8 = vld [vmem:[%s4069_s1 + $0x60] sm:$0xff]  }
 0x10c   :  { %v2999_v11 = vadd.f32 %v2860_v26, %v375_v10 }
 0x10d   :  { %v2456_v21 = vpop.f32.mrb[12].mxu0  ;;  %517 = vadd.xlane.f32.xlu1 %v2924_v17  ;;  %v2472_v12 = vpop.f32.mrb[12].mxu1 }
 0x10e   :  { %v324_v27 = vpop.f32.mrb[13].mxu0  ;;  %v333_v32 = vadd.f32 %v2456_v21, %v2860_v26  ;;  %v3003_v13 = vadd.f32 %v2472_v12, %v2860_v26  ;;  %v388_v15 = vpop.f32.mrb[13].mxu1 }
 0x10f   :  { %v325_v34 = vadd.f32 %v2860_v26, %v324_v27  ;;  %v2457_v35 = vpop.f32.mrb[14].mxu0  ;;  %519 = vadd.xlane.f32.xlu0 %v2926_v18  ;;  %v3006_v16 = vadd.f32 %v2860_v26, %v388_v15  ;;  %v2473_v19 = vpop.f32.mrb[14].mxu1  ;;  %v2520_v27 = vld [vmem:[%s4074_s6 + $0x4] ss:$8 sps:$4 sm:$0xff]  }
 0x110   :  { %v327_v42 = vpop.f32.mrb[15].mxu0  ;;  %v336_v47 = vadd.f32 %v2457_v35, %v2860_v26  ;;  %v2962_v54 = vadd.f32 %v2241_v37, %v333_v32  ;;  %v3009_v20 = vadd.f32 %v2473_v19, %v2860_v26  ;;  %v391_v21 = vpop.f32.mrb[15].mxu1  ;;  %1054 = vmatprep.subr.bf16.mxu1 %v2520_v27  ;;  %v2261_v19 = vunpack.c.l.bf16 %v2286_v8 }
 0x111   :  { %v328_v48 = vadd.f32 %v2860_v26, %v327_v42  ;;  %521 = vadd.xlane.f32.xlu1 %v2932_v22  ;;  %v2955_v50 = vadd.f32 %v2237_v23, %v325_v34  ;;  %v3012_v23 = vadd.f32 %v2860_v26, %v391_v21  ;;  %1055 = vmatpush1.bf16.msra.mxu1 %v2518_v25  ;;  %v2284_v34 = vld [vmem:[%s4069_s1 + $0x50] sm:$0xff]  }
 0x112   :  { %v2970_v58 = vadd.f32 %v2242_v51, %v336_v47  ;;  %v2253_v40 = vunpack.c.l.bf16 %v2284_v34  ;;  %v2254_v59 = vunpack.c.h.bf16 %v2284_v34  ;;  %v3071_v25 = vadd.f32 %v2258_v7, %v2944_v38  ;;  %v2524_v38 = vld [vmem:[%s4074_s6 + $0x20] ss:$8 sps:$4 sm:$0xff]   ;;  %v2535_v7 = vld [vmem:[%s4074_s6 + $0x54] ss:$8 sps:$4 sm:$0xff]  }
 0x113   :  { %523 = vadd.xlane.f32.xlu0 %v2955_v50  ;;  %v2958_v52 = vadd.f32 %v2238_v28, %v328_v48  ;;  %v2523_v28 = vld [vmem:[%s4074_s6 + $0x14] ss:$8 sps:$4 sm:$0xff]   ;;  %v2262_v34 = vunpack.c.h.bf16 %v2286_v8 }
 0x114   :  { %1056 = vmatprep.subr.bf16.mxu1 %v2523_v28  ;;  %v3035_v53 = vadd.f32 %v2253_v40, %v2938_v29  ;;  %v2257_v29 = vunpack.c.l.bf16 %v2285_v61  ;;  %v3052_v4 = vadd.f32 %v2254_v59, %v2950_v45  ;;  %v2287_v40 = vld [vmem:[%s4069_s1 + $0x68] sm:$0xff]  }
 0x115   :  { %525 = vadd.xlane.f32.xlu1 %v2958_v52  ;;  %1057 = vmatpush1.bf16.msra.mxu1 %v2521_v31  ;;  %v3083_v31 = vadd.f32 %v2261_v19, %v2992_v36  ;;  %v2529_v36 = vld [vmem:[%s4074_s6 + $0x34] ss:$8 sps:$4 sm:$0xff]   ;;  %v2532_v59 = vld [vmem:[%s4074_s6 + $0x44] ss:$8 sps:$4 sm:$0xff]   ;;  %v2266_v61 = vunpack.c.h.bf16 %v2287_v40 }
 0x116   :  { %v3062_v12 = vadd.f32 %v2257_v29, %v2935_v24 }
 0x117   :  { %527 = vadd.xlane.f32.xlu0 %v2962_v54 }
 0x119   :  { %529 = vadd.xlane.f32.xlu1 %v2970_v58 }
 0x11b   :  { %531 = vadd.xlane.f32.xlu0 %v2975_v33 }
 0x11d   :  { %533 = vadd.xlane.f32.xlu1 %v2980_v2 }
 0x11f   :  { %535 = vadd.xlane.f32.xlu0 %v2983_v41 }
 0x121   :  { %537 = vadd.xlane.f32.xlu1 %v2989_v6 }
 0x187   :  { %v504_v26 = vpop.xlane.xlu1 %503 }
 0x188   :  { %v500_v32 = vpop.xlane.xlu0 %499  ;;  %v566_v44 = vmul.f32 0.0078125, %v504_v26 }
 0x189   :  { %v564_v35 = vmul.f32 0.0078125, %v500_v32 }
 0x18a   :  { %v3043_v57 = vsub.f32 %v2871_v39, %v566_v44 }
 0x18b   :  { %v3030_v37 = vsub.f32 %v2876_v43, %v564_v35  ;;  %v506_v51 = vpop.xlane.xlu1 %505 }
 0x18c   :  { %v502_v42 = vpop.xlane.xlu0 %501  ;;  %v567_v56 = vmul.f32 0.0078125, %v506_v51 }
 0x18d   :  { %v565_v47 = vmul.f32 0.0078125, %v502_v42  ;;  %v628_v48 = vmul.f32 %v3030_v37, %v3030_v37  ;;  %v2527_v42 = vld [vmem:[%s4074_s6 + $0x30] ss:$8 sps:$4 sm:$0xff]  }
 0x18e   :  { %v3055_v39 = vsub.f32 %v2883_v46, %v567_v56 }
 0x18f   :  { %660 = vadd.xlane.f32.xlu0 %v628_v48  ;;  %v3038_v55 = vsub.f32 %v2888_v49, %v565_v47  ;;  %v630_v49 = vmul.f32 %v3043_v57, %v3043_v57  ;;  %v2265_v47 = vunpack.c.l.bf16 %v2287_v40  ;;  %v3104_v48 = vadd.f32 %v2262_v34, %v2999_v11  ;;  %v2530_v11 = vld [vmem:[%s4074_s6 + $0x40] ss:$8 sps:$4 sm:$0xff]   ;;  %v2539_v34 = vld [vmem:[%s4074_s6 + $0x70] ss:$8 sps:$4 sm:$0xff]  }
 0x190   :  { %v508_v62 = vpop.xlane.xlu0 %507  ;;  %v631_v45 = vmul.f32 %v3055_v39, %v3055_v39 }
 0x191   :  { %v629_v43 = vmul.f32 %v3038_v55, %v3038_v55  ;;  %v568_v1 = vmul.f32 0.0078125, %v508_v62  ;;  %v2288_v62 = vld [vmem:[%s4069_s1 + $0x70] sm:$0xff]  }
 0x192   :  { %v510_v5 = vpop.xlane.xlu1 %509  ;;  %v2269_v8 = vunpack.c.l.bf16 %v2288_v62 }
 0x193   :  { %539 = vadd.xlane.f32.xlu0 %v3035_v53  ;;  %662 = vadd.xlane.f32.xlu1 %v629_v43  ;;  %v569_v10 = vmul.f32 0.0078125, %v510_v5  ;;  %v3067_v15 = vsub.f32 %v2896_v60, %v568_v1  ;;  %v2526_v60 = vld [vmem:[%s4074_s6 + $0x24] ss:$8 sps:$4 sm:$0xff]   ;;  %v3124_v1 = vadd.f32 %v2265_v47, %v2986_v30 }
 0x194   :  { %v512_v46 = vpop.xlane.xlu0 %511  ;;  %1058 = vmatprep.subr.bf16.mxu1 %v2526_v60 }
 0x195   :  { %v570_v21 = vmul.f32 0.0078125, %v512_v46  ;;  %v632_v27 = vmul.f32 %v3067_v15, %v3067_v15  ;;  %v3076_v24 = vsub.f32 %v2902_v63, %v569_v10  ;;  %1059 = vmatpush1.bf16.msra.mxu1 %v2524_v38  ;;  %v2533_v10 = vld [vmem:[%s4074_s6 + $0x50] ss:$8 sps:$4 sm:$0xff]   ;;  %v2270_v38 = vunpack.c.h.bf16 %v2288_v62 }
 0x196   :  { %v514_v28 = vpop.xlane.xlu1 %513  ;;  %1060 = vmatprep.subr.bf16.mxu1 %v2529_v36 }
 0x197   :  { %664 = vadd.xlane.f32.xlu0 %v630_v49  ;;  %541 = vadd.xlane.f32.xlu1 %v3052_v4  ;;  %v571_v32 = vmul.f32 0.0078125, %v514_v28  ;;  %v633_v63 = vmul.f32 %v3076_v24, %v3076_v24  ;;  %v3091_v35 = vsub.f32 %v2904_v0, %v570_v21  ;;  %v2538_v21 = vld [vmem:[%s4074_s6 + $0x64] ss:$8 sps:$4 sm:$0xff]   ;;  %v3170_v36 = vadd.f32 %v2270_v38, %v3012_v23 }
 0x198   :  { %v516_v26 = vpop.xlane.xlu0 %515 }
 0x199   :  { %v572_v0 = vmul.f32 0.0078125, %v516_v26  ;;  %v634_v51 = vmul.f32 %v3091_v35, %v3091_v35  ;;  %v3109_v56 = vsub.f32 %v2910_v3, %v571_v32  ;;  %1061 = vmatpush1.bf16.msra.mxu1 %v2527_v42  ;;  %v2289_v32 = vld [vmem:[%s4069_s1 + $0x78] sm:$0xff]  }
 0x19a   :  { %v518_v44 = vpop.xlane.xlu1 %517  ;;  %1062 = vmatprep.subr.bf16.mxu1 %v2532_v59  ;;  %v2273_v40 = vunpack.c.l.bf16 %v2289_v32  ;;  %v2710_v59 = vmov 0  }
 0x19b   :  { %543 = vadd.xlane.f32.xlu0 %v3062_v12  ;;  %666 = vadd.xlane.f32.xlu1 %v631_v45  ;;  %v573_v3 = vmul.f32 0.0078125, %v518_v44  ;;  %v635_v29 = vmul.f32 %v3109_v56, %v3109_v56  ;;  %v3127_v49 = vsub.f32 %v2918_v14, %v572_v0  ;;  %v3137_v14 = vadd.f32 %v2266_v61, %v2996_v9  ;;  %v2536_v9 = vld [vmem:[%s4074_s6 + $0x60] ss:$8 sps:$4 sm:$0xff]  }
 0x19c   :  { %v520_v43 = vpop.xlane.xlu0 %519  ;;  %1086 = vmatprep.mubr.bf16.mxu1 %v2710_v59  ;;  %v3182_v61 = vadd.f32 %v2273_v40, %v3003_v13 }
 0x19d   :  { %1063 = vmatpush1.bf16.msra.mxu1 %v2530_v11  ;;  %v574_v30 = vmul.f32 0.0078125, %v520_v43  ;;  %v636_v46 = vmul.f32 %v3127_v49, %v3127_v49  ;;  %v3142_v19 = vsub.f32 %v2924_v17, %v573_v3  ;;  %v2274_v43 = vunpack.c.h.bf16 %v2289_v32 }
 0x19e   :  { %v522_v5 = vpop.xlane.xlu1 %521  ;;  %1064 = vmatprep.subr.bf16.mxu1 %v2535_v7 }
 0x19f   :  { %545 = vadd.xlane.f32.xlu1 %v3071_v25  ;;  %668 = vadd.xlane.f32.xlu0 %v632_v27  ;;  %v3149_v27 = vadd.f32 %v2269_v8, %v3006_v16  ;;  %v575_v60 = vmul.f32 0.0078125, %v522_v5  ;;  %v637_v17 = vmul.f32 %v3142_v19, %v3142_v19  ;;  %v3157_v26 = vsub.f32 %v2926_v18, %v574_v30 }
 0x1a0   :  { %v524_v45 = vpop.xlane.xlu0 %523  ;;  %v3192_v7 = vadd.f32 %v2274_v43, %v3009_v20 }
 0x1a1   :  { %1065 = vmatpush1.bf16.msra.mxu1 %v2533_v10  ;;  %v576_v18 = vmul.f32 0.0078125, %v524_v45  ;;  %v638_v42 = vmul.f32 %v3157_v26, %v3157_v26  ;;  %v3175_v44 = vsub.f32 %v2932_v22, %v575_v60 }
 0x1a2   :  { %v526_v28 = vpop.xlane.xlu1 %525  ;;  %1066 = vmatprep.subr.bf16.mxu1 %v2538_v21 }
 0x1a3   :  { %670 = vadd.xlane.f32.xlu1 %v633_v63  ;;  %547 = vadd.xlane.f32.xlu0 %v3083_v31  ;;  %v2541_v63 = vld [vmem:[%s4074_s6 + $0x74] ss:$8 sps:$4 sm:$0xff]   ;;  %v577_v0 = vmul.f32 0.0078125, %v526_v28  ;;  %v639_v23 = vmul.f32 %v3175_v44, %v3175_v44  ;;  %v3185_v22 = vsub.f32 %v2955_v50, %v576_v18 }
 0x1a4   :  { %v528_v16 = vpop.xlane.xlu0 %527 }
 0x1a5   :  { %1067 = vmatpush1.bf16.msra.mxu1 %v2536_v9  ;;  %v578_v11 = vmul.f32 0.0078125, %v528_v16  ;;  %v640_v8 = vmul.f32 %v3185_v22, %v3185_v22 }
 0x1a6   :  { %1068 = vmatprep.subr.bf16.mxu1 %v2541_v63  ;;  %v530_v47 = vpop.xlane.xlu1 %529 }
 0x1a7   :  { %549 = vadd.xlane.f32.xlu1 %v3104_v48  ;;  %672 = vadd.xlane.f32.xlu0 %v634_v51  ;;  %v579_v62 = vmul.f32 0.0078125, %v530_v47  ;;  %v3197_v13 = vsub.f32 %v2962_v54, %v578_v11 }
 0x1a8   :  { %v532_v51 = vpop.xlane.xlu0 %531 }
 0x1a9   :  { %1069 = vmatpush1.bf16.msra.mxu1 %v2539_v34  ;;  %v580_v5 = vmul.f32 0.0078125, %v532_v51  ;;  %v642_v20 = vmul.f32 %v3197_v13, %v3197_v13 }
 0x1aa   :  { %v534_v3 = vpop.xlane.xlu1 %533 }
 0x1ab   :  { %674 = vadd.xlane.f32.xlu1 %v635_v29  ;;  %551 = vadd.xlane.f32.xlu0 %v3124_v1  ;;  %v3189_v29 = vsub.f32 %v2958_v52, %v577_v0  ;;  %v3203_v52 = vsub.f32 %v2970_v58, %v579_v62  ;;  %v581_v45 = vmul.f32 0.0078125, %v534_v3 }
 0x1ac   :  { %v536_v50 = vpop.xlane.xlu0 %535 }
 0x1ad   :  { %v641_v10 = vmul.f32 %v3189_v29, %v3189_v29  ;;  %v582_v30 = vmul.f32 0.0078125, %v536_v50  ;;  %v643_v21 = vmul.f32 %v3203_v52, %v3203_v52  ;;  %v3215_v58 = vsub.f32 %v2980_v2, %v581_v45 }
 0x1ae   :  { %v538_v54 = vpop.xlane.xlu1 %537 }
 0x1af   :  { %553 = vadd.xlane.f32.xlu1 %v3137_v14  ;;  %676 = vadd.xlane.f32.xlu0 %v636_v46  ;;  %v3208_v46 = vsub.f32 %v2975_v33, %v580_v5  ;;  %v583_v9 = vmul.f32 0.0078125, %v538_v54  ;;  %v3218_v60 = vsub.f32 %v2983_v41, %v582_v30  ;;  %v645_v33 = vmul.f32 %v3215_v58, %v3215_v58 }
 0x1b1   :  { %v644_v28 = vmul.f32 %v3208_v46, %v3208_v46  ;;  %v3225_v38 = vsub.f32 %v2989_v6, %v583_v9 }
 0x1b3   :  { %678 = vadd.xlane.f32.xlu1 %v637_v17  ;;  %555 = vadd.xlane.f32.xlu0 %v3149_v27  ;;  %v646_v17 = vmul.f32 %v3218_v60, %v3218_v60  ;;  %v647_v2 = vmul.f32 %v3225_v38, %v3225_v38 }
 0x1b7   :  { %557 = vadd.xlane.f32.xlu1 %v3170_v36  ;;  %680 = vadd.xlane.f32.xlu0 %v638_v42 }
 0x1bb   :  { %682 = vadd.xlane.f32.xlu1 %v639_v23  ;;  %559 = vadd.xlane.f32.xlu0 %v3182_v61 }
 0x1bf   :  { %561 = vadd.xlane.f32.xlu1 %v3192_v7  ;;  %684 = vadd.xlane.f32.xlu0 %v640_v8 }
 0x1c3   :  { %686 = vadd.xlane.f32.xlu1 %v641_v10  ;;  %688 = vadd.xlane.f32.xlu0 %v642_v20 }
 0x1c7   :  { %690 = vadd.xlane.f32.xlu1 %v643_v21  ;;  %692 = vadd.xlane.f32.xlu0 %v644_v28 }
 0x1cb   :  { %694 = vadd.xlane.f32.xlu1 %v645_v33  ;;  %696 = vadd.xlane.f32.xlu0 %v646_v17 }
 0x1cf   :  { %698 = vadd.xlane.f32.xlu1 %v647_v2 }
 0x21c   :  { %v661_v32 = vpop.xlane.xlu0 %660 }
 0x21d   :  { %v724_v41 = vmul.f32 0.0078125, %v661_v32 }
 0x21f   :  { %v756_v16 = vadd.f32 1e-05, %v724_v41 }
 0x220   :  { %v663_v63 = vpop.xlane.xlu1 %662  ;;  %v540_v34 = vpop.xlane.xlu0 %539 }
 0x221   :  { %2558 = vrsqrt.f32 %v756_v16  ;;  %v725_v40 = vmul.f32 0.0078125, %v663_v63  ;;  %v584_v18 = vmul.f32 0.0078125, %v540_v34 }
 0x223   :  { %v757_v42 = vadd.f32 1e-05, %v725_v40  ;;  %v3230_v47 = vsub.f32 %v3035_v53, %v584_v18  ;;  %v3260_v18 = vld [vmem:[%s4073_s5] ss:$0 sm:$0xff] }
 0x224   :  { %v542_v6 = vpop.xlane.xlu1 %541  ;;  %v665_v0 = vpop.xlane.xlu0 %664 }
 0x225   :  { %2560 = vrsqrt.f32 %v757_v42  ;;  %v585_v51 = vmul.f32 0.0078125, %v542_v6  ;;  %v726_v43 = vmul.f32 0.0078125, %v665_v0  ;;  %v648_v11 = vmul.f32 %v3230_v47, %v3230_v47 }
 0x227   :  { %v758_v23 = vadd.f32 1e-05, %v726_v43  ;;  %700 = vadd.xlane.f32.xlu0 %v648_v11  ;;  %v3235_v62 = vsub.f32 %v3052_v4, %v585_v51  ;;  %v3246_v4 = vld [vmem:[%s4072_s4] ss:$0 sm:$0xff] }
 0x228   :  { %v667_v3 = vpop.xlane.xlu1 %666  ;;  %v544_v5 = vpop.xlane.xlu0 %543 }
 0x229   :  { %2562 = vrsqrt.f32 %v758_v23  ;;  %v727_v8 = vmul.f32 0.0078125, %v667_v3  ;;  %v586_v50 = vmul.f32 0.0078125, %v544_v5  ;;  %v649_v53 = vmul.f32 %v3235_v62, %v3235_v62 }
 0x22b   :  { %v2559_v10 = vpop.eup %2558  ;;  %v759_v45 = vadd.f32 1e-05, %v727_v8  ;;  %702 = vadd.xlane.f32.xlu1 %v649_v53  ;;  %v3240_v30 = vsub.f32 %v3062_v12, %v586_v50 }
 0x22c   :  { %v820_v20 = vmul.f32 %v2559_v10, %v3030_v37  ;;  %v546_v54 = vpop.xlane.xlu1 %545  ;;  %v669_v21 = vpop.xlane.xlu0 %668 }
 0x22d   :  { %2564 = vrsqrt.f32 %v759_v45  ;;  %v587_v9 = vmul.f32 0.0078125, %v546_v54  ;;  %v728_v28 = vmul.f32 0.0078125, %v669_v21  ;;  %v650_v33 = vmul.f32 %v3240_v30, %v3240_v30 }
 0x22e   :  { %v859_v37 = vmul.f32 %v3246_v4, %v820_v20 }
 0x22f   :  { %v2561_v17 = vpop.eup %2560  ;;  %v760_v2 = vadd.f32 1e-05, %v728_v28  ;;  %704 = vadd.xlane.f32.xlu0 %v650_v33  ;;  %v3251_v12 = vsub.f32 %v3071_v25, %v587_v9 }
 0x230   :  { %v821_v32 = vmul.f32 %v2561_v17, %v3038_v55  ;;  %v671_v41 = vpop.xlane.xlu1 %670  ;;  %v548_v16 = vpop.xlane.xlu0 %547  ;;  %v3267_v43 = vadd.f32 %v3260_v18, %v859_v37 }
 0x231   :  { %2566 = vrsqrt.f32 %v760_v2  ;;  %v729_v63 = vmul.f32 0.0078125, %v671_v41  ;;  %v588_v34 = vmul.f32 0.0078125, %v548_v16  ;;  %v651_v40 = vmul.f32 %v3251_v12, %v3251_v12 }
 0x232   :  { %v860_v25 = vmul.f32 %v3246_v4, %v821_v32 }
 0x233   :  { %v2563_v42 = vpop.eup %2562  ;;  %v761_v6 = vadd.f32 1e-05, %v729_v63  ;;  %v3264_v0 = vsub.f32 %v3083_v31, %v588_v34  ;;  %706 = vadd.xlane.f32.xlu1 %v651_v40 }
 0x234   :  { %v550_v55 = vpop.xlane.xlu1 %549  ;;  %v673_v51 = vpop.xlane.xlu0 %672  ;;  %v3270_v11 = vadd.f32 %v3260_v18, %v860_v25  ;;  %v822_v23 = vmul.f32 %v2563_v42, %v3043_v57 }
 0x235   :  { %2568 = vrsqrt.f32 %v761_v6  ;;  %v589_v3 = vmul.f32 0.0078125, %v550_v55  ;;  %v730_v5 = vmul.f32 0.0078125, %v673_v51  ;;  %v652_v8 = vmul.f32 %v3264_v0, %v3264_v0 }
 0x236   :  { %v930_v31 = vpack.c.bf16 %v3270_v11, %v3267_v43  ;;  %v861_v54 = vmul.f32 %v3246_v4, %v822_v23 }
 0x237   :  { %v2565_v50 = vpop.eup %2564  ;;  %v3278_v53 = vsub.f32 %v3104_v48, %v589_v3  ;;  %v762_v10 = vadd.f32 1e-05, %v730_v5  ;;  %708 = vadd.xlane.f32.xlu0 %v652_v8 }
 0x238   :  { %v675_v45 = vpop.xlane.xlu1 %674  ;;  %1087 = vmatmul.mubr.bf16.vlgmr.msra.gmra.mrb[16].mxu1 %v930_v31  ;;  %v552_v20 = vpop.xlane.xlu0 %551  ;;  %v823_v57 = vmul.f32 %v2565_v50, %v3055_v39  ;;  %v3290_v32 = vadd.f32 %v3260_v18, %v861_v54 }
 0x239   :  { %2570 = vrsqrt.f32 %v762_v10  ;;  %v731_v21 = vmul.f32 0.0078125, %v675_v45  ;;  %v590_v9 = vmul.f32 0.0078125, %v552_v20  ;;  %v653_v28 = vmul.f32 %v3278_v53, %v3278_v53  ;;  %1096 = vmatprep.mubr.bf16.mxu1 %v2710_v59 }
 0x23a   :  { %v862_v48 = vmul.f32 %v3246_v4, %v823_v57 }
 0x23b   :  { %v2567_v33 = vpop.eup %2566  ;;  %v763_v17 = vadd.f32 1e-05, %v731_v21  ;;  %v3287_v2 = vsub.f32 %v3124_v1, %v590_v9  ;;  %710 = vadd.xlane.f32.xlu1 %v653_v28 }
 0x23c   :  { %v554_v37 = vpop.xlane.xlu1 %553  ;;  %v677_v39 = vpop.xlane.xlu0 %676  ;;  %v3293_v41 = vadd.f32 %v3260_v18, %v862_v48  ;;  %v824_v16 = vmul.f32 %v2567_v33, %v3067_v15 }
 0x23d   :  { %2572 = vrsqrt.f32 %v763_v17  ;;  %v591_v63 = vmul.f32 0.0078125, %v554_v37  ;;  %v732_v34 = vmul.f32 0.0078125, %v677_v39  ;;  %v654_v40 = vmul.f32 %v3287_v2, %v3287_v2 }
 0x23e   :  { %v931_v1 = vpack.c.bf16 %v3293_v41, %v3290_v32  ;;  %v863_v23 = vmul.f32 %v3246_v4, %v824_v16 }
 0x23f   :  { %v2569_v25 = vpop.eup %2568  ;;  %v3301_v42 = vsub.f32 %v3137_v14, %v591_v63  ;;  %v764_v6 = vadd.f32 1e-05, %v732_v34  ;;  %712 = vadd.xlane.f32.xlu0 %v654_v40 }
 0x240   :  { %v679_v55 = vpop.xlane.xlu1 %678  ;;  %1097 = vmatmul.mubr.bf16.gmra.mrb[20].mxu1 %v931_v1  ;;  %v556_v51 = vpop.xlane.xlu0 %555  ;;  %v825_v15 = vmul.f32 %v2569_v25, %v3076_v24  ;;  %v3313_v20 = vadd.f32 %v3260_v18, %v863_v23 }
 0x241   :  { %2574 = vrsqrt.f32 %v764_v6  ;;  %v733_v3 = vmul.f32 0.0078125, %v679_v55  ;;  %v592_v5 = vmul.f32 0.0078125, %v556_v51  ;;  %v655_v8 = vmul.f32 %v3301_v42, %v3301_v42  ;;  %1106 = vmatprep.mubr.bf16.mxu1 %v2710_v59 }
 0x242   :  { %v864_v14 = vmul.f32 %v3246_v4, %v825_v15 }
 0x243   :  { %v2571_v31 = vpop.eup %2570  ;;  %v765_v50 = vadd.f32 1e-05, %v733_v3  ;;  %v3310_v10 = vsub.f32 %v3149_v27, %v592_v5  ;;  %714 = vadd.xlane.f32.xlu1 %v655_v8 }
 0x244   :  { %v558_v45 = vpop.xlane.xlu1 %557  ;;  %v681_v24 = vpop.xlane.xlu0 %680  ;;  %v3316_v57 = vadd.f32 %v3260_v18, %v864_v14  ;;  %v826_v54 = vmul.f32 %v2571_v31, %v3091_v35 }
 0x245   :  { %2576 = vrsqrt.f32 %v765_v50  ;;  %v593_v21 = vmul.f32 0.0078125, %v558_v45  ;;  %v734_v9 = vmul.f32 0.0078125, %v681_v24  ;;  %v656_v28 = vmul.f32 %v3310_v10, %v3310_v10 }
 0x246   :  { %v932_v27 = vpack.c.bf16 %v3316_v57, %v3313_v20  ;;  %v865_v16 = vmul.f32 %v3246_v4, %v826_v54 }
 0x247   :  { %v2573_v48 = vpop.eup %2572  ;;  %v3324_v33 = vsub.f32 %v3170_v36, %v593_v21  ;;  %v766_v17 = vadd.f32 1e-05, %v734_v9  ;;  %716 = vadd.xlane.f32.xlu0 %v656_v28 }
 0x248   :  { %v683_v37 = vpop.xlane.xlu1 %682  ;;  %1107 = vmatmul.mubr.bf16.gmra.mrb[24].mxu1 %v932_v27  ;;  %v560_v39 = vpop.xlane.xlu0 %559  ;;  %v827_v35 = vmul.f32 %v2573_v48, %v3109_v56  ;;  %v3336_v51 = vadd.f32 %v3260_v18, %v865_v16 }
 0x249   :  { %2578 = vrsqrt.f32 %v766_v17  ;;  %v735_v63 = vmul.f32 0.0078125, %v683_v37  ;;  %v594_v34 = vmul.f32 0.0078125, %v560_v39  ;;  %v657_v40 = vmul.f32 %v3324_v33, %v3324_v33  ;;  %1116 = vmatprep.mubr.bf16.mxu1 %v2710_v59 }
 0x24a   :  { %v866_v36 = vmul.f32 %v3246_v4, %v827_v35 }
 0x24b   :  { %v2575_v1 = vpop.eup %2574  ;;  %v767_v25 = vadd.f32 1e-05, %v735_v63  ;;  %v3333_v6 = vsub.f32 %v3182_v61, %v594_v34  ;;  %718 = vadd.xlane.f32.xlu1 %v657_v40 }
 0x24c   :  { %v562_v55 = vpop.xlane.xlu1 %561  ;;  %v685_v56 = vpop.xlane.xlu0 %684  ;;  %v3339_v15 = vadd.f32 %v3260_v18, %v866_v36  ;;  %v828_v23 = vmul.f32 %v2575_v1, %v3127_v49 }
 0x24d   :  { %2580 = vrsqrt.f32 %v767_v25  ;;  %v595_v3 = vmul.f32 0.0078125, %v562_v55  ;;  %v736_v5 = vmul.f32 0.0078125, %v685_v56  ;;  %v658_v8 = vmul.f32 %v3333_v6, %v3333_v6 }
 0x24e   :  { %v933_v61 = vpack.c.bf16 %v3339_v15, %v3336_v51  ;;  %v867_v54 = vmul.f32 %v3246_v4, %v828_v23 }
 0x24f   :  { %v2577_v14 = vpop.eup %2576  ;;  %v3347_v31 = vsub.f32 %v3192_v7, %v595_v3  ;;  %v768_v50 = vadd.f32 1e-05, %v736_v5  ;;  %720 = vadd.xlane.f32.xlu0 %v658_v8 }
 0x250   :  { %v687_v45 = vpop.xlane.xlu1 %686  ;;  %1117 = vmatmul.mubr.bf16.gmra.mrb[28].mxu1 %v933_v61  ;;  %v689_v24 = vpop.xlane.xlu0 %688  ;;  %v829_v49 = vmul.f32 %v2577_v14, %v3142_v19  ;;  %v3356_v19 = vadd.f32 %v3260_v18, %v867_v54 }
 0x251   :  { %2582 = vrsqrt.f32 %v768_v50  ;;  %v737_v21 = vmul.f32 0.0078125, %v687_v45  ;;  %v738_v9 = vmul.f32 0.0078125, %v689_v24  ;;  %v659_v28 = vmul.f32 %v3347_v31, %v3347_v31  ;;  %1126 = vmatprep.mubr.bf16.mxu1 %v2710_v59 }
 0x252   :  { %v868_v7 = vmul.f32 %v3246_v4, %v829_v49 }
 0x253   :  { %v2579_v27 = vpop.eup %2578  ;;  %v769_v48 = vadd.f32 1e-05, %v737_v21  ;;  %v770_v17 = vadd.f32 1e-05, %v738_v9  ;;  %722 = vadd.xlane.f32.xlu1 %v659_v28 }
 0x254   :  { %v691_v37 = vpop.xlane.xlu1 %690  ;;  %v693_v39 = vpop.xlane.xlu0 %692  ;;  %v3359_v35 = vadd.f32 %v3260_v18, %v868_v7  ;;  %v830_v16 = vmul.f32 %v2579_v27, %v3157_v26 }
 0x255   :  { %2584 = vrsqrt.f32 %v769_v48  ;;  %v739_v63 = vmul.f32 0.0078125, %v691_v37  ;;  %v740_v1 = vmul.f32 0.0078125, %v693_v39 }
 0x256   :  { %v934_v34 = vpack.c.bf16 %v3359_v35, %v3356_v19  ;;  %2586 = vrsqrt.f32 %v770_v17  ;;  %v869_v56 = vmul.f32 %v3246_v4, %v830_v16 }
 0x257   :  { %v2581_v40 = vpop.eup %2580  ;;  %v771_v36 = vadd.f32 1e-05, %v739_v63  ;;  %v772_v5 = vadd.f32 1e-05, %v740_v1 }
 0x258   :  { %v695_v25 = vpop.xlane.xlu1 %694  ;;  %1127 = vmatmul.mubr.bf16.gmra.mrb[32].mxu1 %v934_v34  ;;  %v831_v55 = vmul.f32 %v2581_v40, %v3175_v44  ;;  %v697_v61 = vpop.xlane.xlu0 %696  ;;  %v3369_v50 = vadd.f32 %v3260_v18, %v869_v56 }
 0x259   :  { %2588 = vrsqrt.f32 %v771_v36  ;;  %v741_v23 = vmul.f32 0.0078125, %v695_v25  ;;  %1136 = vmatprep.mubr.bf16.mxu1 %v2710_v59  ;;  %v742_v21 = vmul.f32 0.0078125, %v697_v61 }
 0x25a   :  { %v870_v26 = vmul.f32 %v3246_v4, %v831_v55 }
 0x25b   :  { %v2583_v3 = vpop.eup %2582  ;;  %v773_v8 = vadd.f32 1e-05, %v741_v23  ;;  %v774_v17 = vadd.f32 1e-05, %v742_v21  ;;  %v2544_v21 = vld [vmem:[%s4076_s8 + $0x48] sm:$0xff]  }
 0x25c   :  { %v699_v14 = vpop.xlane.xlu1 %698  ;;  %v3372_v45 = vadd.f32 %v3260_v18, %v870_v26  ;;  %v832_v44 = vmul.f32 %v2583_v3, %v3185_v22 }
 0x25d   :  { %2590 = vrsqrt.f32 %v773_v8  ;;  %v743_v24 = vmul.f32 0.0078125, %v699_v14 }
 0x25e   :  { %v935_v49 = vpack.c.bf16 %v3372_v45, %v3369_v50  ;;  %2592 = vrsqrt.f32 %v772_v5  ;;  %v871_v28 = vmul.f32 %v3246_v4, %v832_v44  ;;  %v2542_v5 = vld [vmem:[%s4076_s8 + $0x40] sm:$0xff]  }
 0x25f   :  { %v2585_v54 = vpop.eup %2584  ;;  %v775_v27 = vadd.f32 1e-05, %v743_v24  ;;  %2314 = vmatprep.subr.bf16.mxu0 %v2542_v5 }
 0x260   :  { %1137 = vmatmul.mubr.bf16.gmra.mrb[36].mxu1 %v935_v49  ;;  %v833_v9 = vmul.f32 %v2585_v54, %v3189_v29  ;;  %v2587_v7 = vpop.eup %2586  ;;  %v3382_v37 = vadd.f32 %v3260_v18, %v871_v28  ;;  %v2547_v28 = vld [vmem:[%s4076_s8 + $0x10] sm:$0xff]  }
 0x261   :  { %1146 = vmatprep.mubr.bf16.mxu1 %v2710_v59  ;;  %v834_v16 = vmul.f32 %v2587_v7, %v3197_v13  ;;  %2594 = vrsqrt.f32 %v775_v27  ;;  %v2548_v27 = vld [vmem:[%s4076_s8 + $0x58] sm:$0xff]  }
 0x262   :  { %v872_v48 = vmul.f32 %v3246_v4, %v833_v9  ;;  %2596 = vrsqrt.f32 %v774_v17  ;;  %v2550_v17 = vld [vmem:[%s4076_s8 + $0x60] sm:$0xff]  }
 0x263   :  { %v2589_v22 = vpop.eup %2588  ;;  %v873_v36 = vmul.f32 %v3246_v4, %v834_v16  ;;  %v2551_v16 = vld [vmem:[%s4076_s8 + $0x20] sm:$0xff]  }
 0x264   :  { %v3385_v39 = vadd.f32 %v3260_v18, %v872_v48  ;;  %v835_v29 = vmul.f32 %v2589_v22, %v3203_v52  ;;  %v2549_v22 = vld [vmem:[%s4076_s8 + $0x18] sm:$0xff]  }
 0x265   :  { %v3399_v52 = vadd.f32 %v3260_v18, %v873_v36  ;;  %v2556_v36 = vld [vmem:[%s4076_s8 + $0x78] sm:$0xff]  }
 0x266   :  { %v936_v63 = vpack.c.bf16 %v3385_v39, %v3382_v37  ;;  %v874_v34 = vmul.f32 %v3246_v4, %v835_v29  ;;  %v2552_v29 = vld [vmem:[%s4076_s8 + $0x68] sm:$0xff]  }
 0x267   :  { %v2591_v40 = vpop.eup %2590 }
 0x268   :  { %1147 = vmatmul.mubr.bf16.gmra.mrb[40].mxu1 %v936_v63  ;;  %v2593_v1 = vpop.eup %2592  ;;  %v3395_v25 = vadd.f32 %v3260_v18, %v874_v34  ;;  %v837_v13 = vmul.f32 %v2591_v40, %v3215_v58  ;;  %v2553_v63 = vld [vmem:[%s4076_s8 + $0x28] sm:$0xff]   ;;  %v2554_v34 = vld [vmem:[%s4076_s8 + $0x70] sm:$0xff]  }
 0x269   :  { %1156 = vmatprep.mubr.bf16.mxu1 %v2710_v59  ;;  %v836_v55 = vmul.f32 %v2593_v1, %v3208_v46  ;;  %v2543_v46 = vld [vmem:[%s4076_s8] sm:$0xff]   ;;  %v2555_v40 = vld [vmem:[%s4076_s8 + $0x30] sm:$0xff]   ;;  %v2557_v1 = vld [vmem:[%s4076_s8 + $0x38] sm:$0xff]  }
 0x26a   :  { %v937_v56 = vpack.c.bf16 %v3395_v25, %v3399_v52  ;;  %v876_v23 = vmul.f32 %v3246_v4, %v837_v13  ;;  %2315 = vmatpush3.bf16.msra.mxu0 %v2543_v46 }
 0x26b   :  { %v2595_v26 = vpop.eup %2594  ;;  %v875_v3 = vmul.f32 %v3246_v4, %v836_v55  ;;  %2316 = vmatprep.subr.bf16.mxu0 %v2544_v21 }
 0x26c   :  { %v2597_v8 = vpop.eup %2596  ;;  %v3414_v58 = vadd.f32 %v3260_v18, %v876_v23  ;;  %v839_v61 = vmul.f32 %v2595_v26, %v3225_v38  ;;  %v2545_v38 = vld [vmem:[%s4076_s8 + $0x8] sm:$0xff]  }
 0x26d   :  { %v3418_v14 = vadd.f32 %v3260_v18, %v875_v3  ;;  %v838_v44 = vmul.f32 %v2597_v8, %v3218_v60  ;;  %v2546_v60 = vld [vmem:[%s4076_s8 + $0x50] sm:$0xff]  }
 0x26e   :  { %v878_v49 = vmul.f32 %v3246_v4, %v839_v61  ;;  %2317 = vmatpush3.bf16.msra.mxu0 %v2545_v38 }
 0x26f   :  { %v938_v24 = vpack.c.bf16 %v3414_v58, %v3418_v14  ;;  %v877_v54 = vmul.f32 %v3246_v4, %v838_v44  ;;  %2318 = vmatprep.subr.bf16.mxu0 %v2546_v60 }
 0x270   :  { %1157 = vmatmul.mubr.bf16.gmra.mrb[44].mxu1 %v937_v56  ;;  %v3436_v9 = vadd.f32 %v3260_v18, %v878_v49 }
 0x271   :  { %1166 = vmatprep.mubr.bf16.mxu1 %v2710_v59  ;;  %v3442_v7 = vadd.f32 %v3260_v18, %v877_v54 }
 0x272   :  { %2319 = vmatpush3.bf16.msra.mxu0 %v2547_v28 }
 0x273   :  { %v939_v48 = vpack.c.bf16 %v3436_v9, %v3442_v7  ;;  %2320 = vmatprep.subr.bf16.mxu0 %v2548_v27 }
 0x276   :  { %2321 = vmatpush3.bf16.msra.mxu0 %v2549_v22 }
 0x277   :  { %2322 = vmatprep.subr.bf16.mxu0 %v2550_v17 }
 0x278   :  { %1167 = vmatmul.mubr.bf16.gmra.mrb[48].mxu1 %v938_v24 }
 0x279   :  { %1176 = vmatprep.mubr.bf16.mxu1 %v2710_v59 }
 0x27a   :  { %2323 = vmatpush3.bf16.msra.mxu0 %v2551_v16 }
 0x27b   :  { %2324 = vmatprep.subr.bf16.mxu0 %v2552_v29 }
 0x27e   :  { %2325 = vmatpush3.bf16.msra.mxu0 %v2553_v63 }
 0x27f   :  { %2326 = vmatprep.subr.bf16.mxu0 %v2554_v34 }
 0x280   :  { %1177 = vmatmul.mubr.bf16.gmra.mrb[52].mxu1 %v939_v48 }
 0x281   :  { %1186 = vmatprep.mubr.bf16.mxu1 %v2710_v59 }
 0x282   :  { %2327 = vmatpush3.bf16.msra.mxu0 %v2555_v40 }
 0x283   :  { %2328 = vmatprep.subr.bf16.mxu0 %v2556_v36 }
 0x286   :  { %2329 = vmatpush3.bf16.msra.mxu0 %v2557_v1 }
 0x2b4   :  { %v701_v13 = vpop.xlane.xlu0 %700 }
 0x2b5   :  { %v744_v55 = vmul.f32 0.0078125, %v701_v13 }
 0x2b7   :  { %v776_v56 = vadd.f32 1e-05, %v744_v55 }
 0x2b8   :  { %v703_v23 = vpop.xlane.xlu1 %702 }
 0x2b9   :  { %2598 = vrsqrt.f32 %v776_v56  ;;  %v745_v26 = vmul.f32 0.0078125, %v703_v23 }
 0x2bb   :  { %v777_v3 = vadd.f32 1e-05, %v745_v26 }
 0x2bc   :  { %v705_v5 = vpop.xlane.xlu0 %704 }
 0x2bd   :  { %2600 = vrsqrt.f32 %v777_v3  ;;  %v746_v8 = vmul.f32 0.0078125, %v705_v5 }
 0x2bf   :  { %v778_v46 = vadd.f32 1e-05, %v746_v8 }
 0x2c0   :  { %v707_v61 = vpop.xlane.xlu1 %706 }
 0x2c1   :  { %2602 = vrsqrt.f32 %v778_v46  ;;  %v747_v44 = vmul.f32 0.0078125, %v707_v61 }
 0x2c3   :  { %v2599_v24 = vpop.eup %2598  ;;  %v779_v49 = vadd.f32 1e-05, %v747_v44 }
 0x2c4   :  { %v709_v54 = vpop.xlane.xlu0 %708  ;;  %v840_v21 = vmul.f32 %v2599_v24, %v3230_v47 }
 0x2c5   :  { %2604 = vrsqrt.f32 %v779_v49  ;;  %v748_v38 = vmul.f32 0.0078125, %v709_v54 }
 0x2c6   :  { %v879_v22 = vmul.f32 %v3246_v4, %v840_v21 }
 0x2c7   :  { %v2601_v60 = vpop.eup %2600  ;;  %v780_v28 = vadd.f32 1e-05, %v748_v38 }
 0x2c8   :  { %v711_v27 = vpop.xlane.xlu1 %710  ;;  %v841_v48 = vmul.f32 %v2601_v60, %v3235_v62  ;;  %v3482_v40 = vadd.f32 %v3260_v18, %v879_v22 }
 0x2c9   :  { %2606 = vrsqrt.f32 %v780_v28  ;;  %v749_v17 = vmul.f32 0.0078125, %v711_v27 }
 0x2ca   :  { %v880_v16 = vmul.f32 %v3246_v4, %v841_v48 }
 0x2cb   :  { %v2603_v29 = vpop.eup %2602  ;;  %v781_v63 = vadd.f32 1e-05, %v749_v17 }
 0x2cc   :  { %v713_v34 = vpop.xlane.xlu0 %712  ;;  %v3485_v47 = vadd.f32 %v3260_v18, %v880_v16  ;;  %v842_v36 = vmul.f32 %v2603_v29, %v3240_v30 }
 0x2cd   :  { %2608 = vrsqrt.f32 %v781_v63  ;;  %v750_v1 = vmul.f32 0.0078125, %v713_v34 }
 0x2ce   :  { %v940_v62 = vpack.c.bf16 %v3485_v47, %v3482_v40  ;;  %v881_v26 = vmul.f32 %v3246_v4, %v842_v36 }
 0x2cf   :  { %v2605_v13 = vpop.eup %2604  ;;  %v782_v55 = vadd.f32 1e-05, %v750_v1 }
 0x2d0   :  { %v715_v56 = vpop.xlane.xlu1 %714  ;;  %1187 = vmatmul.mubr.bf16.gmra.mrb[56].mxu1 %v940_v62  ;;  %v843_v23 = vmul.f32 %v2605_v13, %v3251_v12  ;;  %v3495_v61 = vadd.f32 %v3260_v18, %v881_v26 }
 0x2d1   :  { %2610 = vrsqrt.f32 %v782_v55  ;;  %v751_v3 = vmul.f32 0.0078125, %v715_v56  ;;  %1196 = vmatprep.mubr.bf16.mxu1 %v2710_v59 }
 0x2d2   :  { %v882_v5 = vmul.f32 %v3246_v4, %v843_v23 }
 0x2d3   :  { %v2607_v30 = vpop.eup %2606  ;;  %v783_v8 = vadd.f32 1e-05, %v751_v3 }
 0x2d4   :  { %v717_v46 = vpop.xlane.xlu0 %716  ;;  %v3498_v44 = vadd.f32 %v3260_v18, %v882_v5  ;;  %v844_v24 = vmul.f32 %v2607_v30, %v3264_v0 }
 0x2d5   :  { %2612 = vrsqrt.f32 %v783_v8  ;;  %v752_v12 = vmul.f32 0.0078125, %v717_v46 }
 0x2d6   :  { %v941_v49 = vpack.c.bf16 %v3498_v44, %v3495_v61  ;;  %v883_v28 = vmul.f32 %v3246_v4, %v844_v24 }
 0x2d7   :  { %v2609_v54 = vpop.eup %2608  ;;  %v784_v21 = vadd.f32 1e-05, %v752_v12 }
 0x2d8   :  { %v719_v38 = vpop.xlane.xlu1 %718  ;;  %1197 = vmatmul.mubr.bf16.gmra.mrb[60].mxu1 %v941_v49  ;;  %v845_v60 = vmul.f32 %v2609_v54, %v3278_v53  ;;  %v3508_v16 = vadd.f32 %v3260_v18, %v883_v28 }
 0x2d9   :  { %2614 = vrsqrt.f32 %v784_v21  ;;  %v753_v27 = vmul.f32 0.0078125, %v719_v38  ;;  %1206 = vmatprep.mubr.bf16.mxu1 %v2710_v59 }
 0x2da   :  { %v884_v48 = vmul.f32 %v3246_v4, %v845_v60 }
 0x2db   :  { %v2611_v0 = vpop.eup %2610  ;;  %v785_v22 = vadd.f32 1e-05, %v753_v27 }
 0x2dc   :  { %v721_v17 = vpop.xlane.xlu0 %720  ;;  %v3511_v29 = vadd.f32 %v3260_v18, %v884_v48  ;;  %v846_v63 = vmul.f32 %v2611_v0, %v3287_v2 }
 0x2dd   :  { %2616 = vrsqrt.f32 %v785_v22  ;;  %v754_v53 = vmul.f32 0.0078125, %v721_v17  ;;  %v964_v22 = vlaneseq }
 0x2de   :  { %v942_v34 = vpack.c.bf16 %v3511_v29, %v3508_v16  ;;  %v885_v55 = vmul.f32 %v3246_v4, %v846_v63 }
 0x2df   :  { %v2613_v36 = vpop.eup %2612  ;;  %v786_v1 = vadd.f32 1e-05, %v754_v53  ;;  %v965_v17 = vshrl.u32 %v964_v22, 7 }
 0x2e0   :  { %v723_v62 = vpop.xlane.xlu1 %722  ;;  %1207 = vmatmul.mubr.bf16.gmra.mrb[64].mxu1 %v942_v34  ;;  %v847_v13 = vmul.f32 %v2613_v36, %v3301_v42  ;;  %v3521_v3 = vadd.f32 %v3260_v18, %v885_v55 }
 0x2e1   :  { %2618 = vrsqrt.f32 %v786_v1  ;;  %v755_v56 = vmul.f32 0.0078125, %v723_v62  ;;  %1216 = vmatprep.mubr.bf16.mxu1 %v2710_v59  ;;  %v966_v63 = vsub.s32 0, %v965_v17 }
 0x2e2   :  { %v886_v23 = vmul.f32 %v3246_v4, %v847_v13 }
 0x2e3   :  { %v2615_v2 = vpop.eup %2614  ;;  %v787_v26 = vadd.f32 1e-05, %v755_v56 }
 0x2e4   :  { %v3524_v5 = vadd.f32 %v3260_v18, %v886_v23  ;;  %v848_v30 = vmul.f32 %v2615_v2, %v3310_v10 }
 0x2e5   :  { %2620 = vrsqrt.f32 %v787_v26 }
 0x2e6   :  { %v943_v42 = vpack.c.bf16 %v3524_v5, %v3521_v3  ;;  %v887_v24 = vmul.f32 %v3246_v4, %v848_v30 }
 0x2e7   :  { %v2617_v8 = vpop.eup %2616 }
 0x2e8   :  { %1217 = vmatmul.mubr.bf16.gmra.mrb[68].mxu1 %v943_v42  ;;  %v849_v46 = vmul.f32 %v2617_v8, %v3324_v33  ;;  %v3534_v54 = vadd.f32 %v3260_v18, %v887_v24 }
 0x2e9   :  { %1226 = vmatprep.mubr.bf16.mxu1 %v2710_v59 }
 0x2ea   :  { %v888_v12 = vmul.f32 %v3246_v4, %v849_v46 }
 0x2eb   :  { %v2619_v49 = vpop.eup %2618 }
 0x2ec   :  { %v3537_v10 = vadd.f32 %v3260_v18, %v888_v12  ;;  %v850_v21 = vmul.f32 %v2619_v49, %v3333_v6 }
 0x2ee   :  { %v944_v38 = vpack.c.bf16 %v3537_v10, %v3534_v54  ;;  %v889_v28 = vmul.f32 %v3246_v4, %v850_v21 }
 0x2ef   :  { %v2621_v60 = vpop.eup %2620 }
 0x2f0   :  { %1227 = vmatmul.mubr.bf16.gmra.mrb[72].mxu1 %v944_v38  ;;  %v851_v33 = vmul.f32 %v2621_v60, %v3347_v31  ;;  %v3547_v48 = vadd.f32 %v3260_v18, %v889_v28  ;;  %v962_v31 = vld [vmem:[%s4075_s7] sm:$0x3] }
 0x2f1   :  { %1236 = vmatprep.mubr.bf16.mxu1 %v2710_v59  ;;  %v970_v59 = vsub.s32 1, %v965_v17  ;;  %v3557_v53 = vrot.slane %v962_v31, %v966_v63 }
 0x2f2   :  { %v890_v27 = vmul.f32 %v3246_v4, %v851_v33 }
 0x2f3   :  { %v3559_v4 = vrot.slane %v962_v31, %v970_v59 }
 0x2f4   :  { %v3550_v0 = vadd.f32 %v3260_v18, %v890_v27 }
 0x2f6   :  { %v945_v6 = vpack.c.bf16 %v3550_v0, %v3547_v48 }
 0x2f8   :  { %1237 = vmatmul.mubr.bf16.gmra.mrb[76].mxu1 %v945_v6 }
 0x30b   :  { %v1088_v34 = vpop.f32.mrb[16].mxu1 }
 0x30c   :  { %v1089_v18 = vadd.f32 %v1088_v34, %v3557_v53  ;;  %v1090_v36 = vpop.f32.mrb[17].mxu1 }
 0x30d   :  { %v1091_v1 = vadd.f32 %v1090_v36, %v3559_v4  ;;  %v1092_v62 = vpop.f32.mrb[18].mxu1 }
 0x30e   :  { %v1093_v13 = vadd.f32 %v1092_v62, %v3557_v53  ;;  %v1094_v55 = vpop.f32.mrb[19].mxu1  ;;  %v1247_v23 = vmax.f32 %v1089_v18, 0.0 }
 0x30f   :  { %v1095_v56 = vadd.f32 %v1094_v55, %v3559_v4  ;;  %v1248_v26 = vmax.f32 %v1091_v1, 0.0 }
 0x310   :  { %v1249_v2 = vmax.f32 %v1093_v13, 0.0 }
 0x311   :  { %v1250_v30 = vmax.f32 %v1095_v56, 0.0 }
 0x312   :  { %v1311_v42 = vpack.c.bf16 %v1249_v2, %v1247_v23 }
 0x313   :  { %v1312_v8 = vpack.c.bf16 %v1250_v30, %v1248_v26  ;;  %v1098_v46 = vpop.f32.mrb[20].mxu1 }
 0x314   :  { %v1099_v24 = vadd.f32 %v1098_v46, %v3557_v53  ;;  %v1100_v12 = vpop.f32.mrb[21].mxu1 }
 0x315   :  { %v1101_v49 = vadd.f32 %v1100_v12, %v3559_v4  ;;  %v1102_v21 = vpop.f32.mrb[22].mxu1  ;;  %1510 = vmatprep.mubr.bf16.mxu0 %v1312_v8 }
 0x316   :  { %v1103_v38 = vadd.f32 %v1102_v21, %v3557_v53  ;;  %v1104_v60 = vpop.f32.mrb[23].mxu1  ;;  %1511 = vmatmul.mubr.bf16.vlgmr.msra.gmra.mrb[16].mxu0 %v1311_v42  ;;  %v1251_v28 = vmax.f32 %v1099_v24, 0.0 }
 0x317   :  { %v1105_v33 = vadd.f32 %v1104_v60, %v3559_v4  ;;  %v1252_v6 = vmax.f32 %v1101_v49, 0.0 }
 0x318   :  { %v1253_v27 = vmax.f32 %v1103_v38, 0.0 }
 0x319   :  { %v1254_v22 = vmax.f32 %v1105_v33, 0.0 }
 0x31a   :  { %v1313_v17 = vpack.c.bf16 %v1253_v27, %v1251_v28 }
 0x31b   :  { %v1314_v63 = vpack.c.bf16 %v1254_v22, %v1252_v6  ;;  %v1108_v31 = vpop.f32.mrb[24].mxu1 }
 0x31c   :  { %v1109_v59 = vadd.f32 %v1108_v31, %v3557_v53  ;;  %v1110_v34 = vpop.f32.mrb[25].mxu1 }
 0x31d   :  { %v1111_v18 = vadd.f32 %v1110_v34, %v3559_v4  ;;  %v1112_v36 = vpop.f32.mrb[26].mxu1  ;;  %1518 = vmatprep.mubr.bf16.mxu0 %v1314_v63 }
 0x31e   :  { %v1113_v1 = vadd.f32 %v1112_v36, %v3557_v53  ;;  %v1114_v62 = vpop.f32.mrb[27].mxu1  ;;  %1519 = vmatmul.mubr.bf16.gmra.mrb[20].mxu0 %v1313_v17  ;;  %v1255_v55 = vmax.f32 %v1109_v59, 0.0 }
 0x31f   :  { %v1115_v13 = vadd.f32 %v1114_v62, %v3559_v4  ;;  %v1256_v23 = vmax.f32 %v1111_v18, 0.0 }
 0x320   :  { %v1257_v56 = vmax.f32 %v1113_v1, 0.0 }
 0x321   :  { %v1258_v2 = vmax.f32 %v1115_v13, 0.0 }
 0x322   :  { %v1315_v26 = vpack.c.bf16 %v1257_v56, %v1255_v55 }
 0x323   :  { %v1316_v30 = vpack.c.bf16 %v1258_v2, %v1256_v23  ;;  %v1118_v42 = vpop.f32.mrb[28].mxu1 }
 0x324   :  { %v1119_v8 = vadd.f32 %v1118_v42, %v3557_v53  ;;  %v1120_v46 = vpop.f32.mrb[29].mxu1 }
 0x325   :  { %v1121_v24 = vadd.f32 %v1120_v46, %v3559_v4  ;;  %v1122_v12 = vpop.f32.mrb[30].mxu1  ;;  %1526 = vmatprep.mubr.bf16.mxu0 %v1316_v30 }
 0x326   :  { %v1123_v49 = vadd.f32 %v1122_v12, %v3557_v53  ;;  %v1124_v21 = vpop.f32.mrb[31].mxu1  ;;  %1527 = vmatmul.mubr.bf16.gmra.mrb[24].mxu0 %v1315_v26  ;;  %v1259_v60 = vmax.f32 %v1119_v8, 0.0 }
 0x327   :  { %v1125_v38 = vadd.f32 %v1124_v21, %v3559_v4  ;;  %v1260_v28 = vmax.f32 %v1121_v24, 0.0 }
 0x328   :  { %v1261_v33 = vmax.f32 %v1123_v49, 0.0 }
 0x329   :  { %v1262_v27 = vmax.f32 %v1125_v38, 0.0 }
 0x32a   :  { %v1317_v6 = vpack.c.bf16 %v1261_v33, %v1259_v60 }
 0x32b   :  { %v1318_v22 = vpack.c.bf16 %v1262_v27, %v1260_v28  ;;  %v1128_v17 = vpop.f32.mrb[32].mxu1 }
 0x32c   :  { %v1129_v63 = vadd.f32 %v1128_v17, %v3557_v53  ;;  %v1130_v31 = vpop.f32.mrb[33].mxu1 }
 0x32d   :  { %v1131_v59 = vadd.f32 %v1130_v31, %v3559_v4  ;;  %v1132_v34 = vpop.f32.mrb[34].mxu1  ;;  %1534 = vmatprep.mubr.bf16.mxu0 %v1318_v22 }
 0x32e   :  { %v1133_v18 = vadd.f32 %v1132_v34, %v3557_v53  ;;  %v1134_v36 = vpop.f32.mrb[35].mxu1  ;;  %1535 = vmatmul.mubr.bf16.gmra.mrb[28].mxu0 %v1317_v6  ;;  %v1263_v62 = vmax.f32 %v1129_v63, 0.0 }
 0x32f   :  { %v1135_v1 = vadd.f32 %v1134_v36, %v3559_v4  ;;  %v1264_v55 = vmax.f32 %v1131_v59, 0.0 }
 0x330   :  { %v1265_v13 = vmax.f32 %v1133_v18, 0.0 }
 0x331   :  { %v1266_v56 = vmax.f32 %v1135_v1, 0.0 }
 0x332   :  { %v1319_v23 = vpack.c.bf16 %v1265_v13, %v1263_v62 }
 0x333   :  { %v1320_v2 = vpack.c.bf16 %v1266_v56, %v1264_v55  ;;  %v1138_v26 = vpop.f32.mrb[36].mxu1 }
 0x334   :  { %v1139_v30 = vadd.f32 %v1138_v26, %v3557_v53  ;;  %v1140_v42 = vpop.f32.mrb[37].mxu1 }
 0x335   :  { %v1141_v8 = vadd.f32 %v1140_v42, %v3559_v4  ;;  %v1142_v46 = vpop.f32.mrb[38].mxu1  ;;  %1542 = vmatprep.mubr.bf16.mxu0 %v1320_v2 }
 0x336   :  { %v1143_v24 = vadd.f32 %v1142_v46, %v3557_v53  ;;  %v1144_v12 = vpop.f32.mrb[39].mxu1  ;;  %1543 = vmatmul.mubr.bf16.gmra.mrb[32].mxu0 %v1319_v23  ;;  %v1267_v21 = vmax.f32 %v1139_v30, 0.0 }
 0x337   :  { %v1145_v49 = vadd.f32 %v1144_v12, %v3559_v4  ;;  %v1268_v60 = vmax.f32 %v1141_v8, 0.0 }
 0x338   :  { %v1269_v38 = vmax.f32 %v1143_v24, 0.0 }
 0x339   :  { %v1270_v33 = vmax.f32 %v1145_v49, 0.0 }
 0x33a   :  { %v1321_v28 = vpack.c.bf16 %v1269_v38, %v1267_v21 }
 0x33b   :  { %v1322_v27 = vpack.c.bf16 %v1270_v33, %v1268_v60  ;;  %v1148_v6 = vpop.f32.mrb[40].mxu1 }
 0x33c   :  { %v1149_v22 = vadd.f32 %v1148_v6, %v3557_v53  ;;  %v1150_v17 = vpop.f32.mrb[41].mxu1 }
 0x33d   :  { %v1151_v63 = vadd.f32 %v1150_v17, %v3559_v4  ;;  %v1152_v31 = vpop.f32.mrb[42].mxu1  ;;  %1550 = vmatprep.mubr.bf16.mxu0 %v1322_v27 }
 0x33e   :  { %v1153_v59 = vadd.f32 %v1152_v31, %v3557_v53  ;;  %v1154_v34 = vpop.f32.mrb[43].mxu1  ;;  %1551 = vmatmul.mubr.bf16.gmra.mrb[36].mxu0 %v1321_v28  ;;  %v1271_v36 = vmax.f32 %v1149_v22, 0.0 }
 0x33f   :  { %v1155_v18 = vadd.f32 %v1154_v34, %v3559_v4  ;;  %v1272_v62 = vmax.f32 %v1151_v63, 0.0 }
 0x340   :  { %v1273_v1 = vmax.f32 %v1153_v59, 0.0 }
 0x341   :  { %v1274_v13 = vmax.f32 %v1155_v18, 0.0 }
 0x342   :  { %v1323_v55 = vpack.c.bf16 %v1273_v1, %v1271_v36 }
 0x343   :  { %v1324_v56 = vpack.c.bf16 %v1274_v13, %v1272_v62  ;;  %v1158_v23 = vpop.f32.mrb[44].mxu1 }
 0x344   :  { %v1159_v2 = vadd.f32 %v1158_v23, %v3557_v53  ;;  %v1160_v26 = vpop.f32.mrb[45].mxu1 }
 0x345   :  { %v1161_v30 = vadd.f32 %v1160_v26, %v3559_v4  ;;  %v1162_v42 = vpop.f32.mrb[46].mxu1  ;;  %1558 = vmatprep.mubr.bf16.mxu0 %v1324_v56 }
 0x346   :  { %v1163_v8 = vadd.f32 %v1162_v42, %v3557_v53  ;;  %v1164_v46 = vpop.f32.mrb[47].mxu1  ;;  %1559 = vmatmul.mubr.bf16.gmra.mrb[40].mxu0 %v1323_v55  ;;  %v1275_v12 = vmax.f32 %v1159_v2, 0.0 }
 0x347   :  { %v1165_v24 = vadd.f32 %v1164_v46, %v3559_v4  ;;  %v1276_v21 = vmax.f32 %v1161_v30, 0.0 }
 0x348   :  { %v1277_v49 = vmax.f32 %v1163_v8, 0.0 }
 0x349   :  { %v1278_v38 = vmax.f32 %v1165_v24, 0.0 }
 0x34a   :  { %v1325_v60 = vpack.c.bf16 %v1277_v49, %v1275_v12 }
 0x34b   :  { %v1326_v33 = vpack.c.bf16 %v1278_v38, %v1276_v21  ;;  %v1168_v28 = vpop.f32.mrb[48].mxu1 }
 0x34c   :  { %v1169_v27 = vadd.f32 %v1168_v28, %v3557_v53  ;;  %v1170_v6 = vpop.f32.mrb[49].mxu1 }
 0x34d   :  { %v1171_v22 = vadd.f32 %v1170_v6, %v3559_v4  ;;  %v1172_v17 = vpop.f32.mrb[50].mxu1  ;;  %1566 = vmatprep.mubr.bf16.mxu0 %v1326_v33 }
 0x34e   :  { %v1173_v63 = vadd.f32 %v1172_v17, %v3557_v53  ;;  %v1174_v31 = vpop.f32.mrb[51].mxu1  ;;  %1567 = vmatmul.mubr.bf16.gmra.mrb[44].mxu0 %v1325_v60  ;;  %v1279_v34 = vmax.f32 %v1169_v27, 0.0 }
 0x34f   :  { %v1175_v59 = vadd.f32 %v1174_v31, %v3559_v4  ;;  %v1280_v36 = vmax.f32 %v1171_v22, 0.0 }
 0x350   :  { %v1281_v18 = vmax.f32 %v1173_v63, 0.0 }
 0x351   :  { %v1282_v1 = vmax.f32 %v1175_v59, 0.0 }
 0x352   :  { %v1327_v62 = vpack.c.bf16 %v1281_v18, %v1279_v34 }
 0x353   :  { %v1328_v13 = vpack.c.bf16 %v1282_v1, %v1280_v36  ;;  %v1178_v55 = vpop.f32.mrb[52].mxu1 }
 0x354   :  { %v1179_v56 = vadd.f32 %v1178_v55, %v3557_v53  ;;  %v1180_v23 = vpop.f32.mrb[53].mxu1 }
 0x355   :  { %v1181_v2 = vadd.f32 %v1180_v23, %v3559_v4  ;;  %v1182_v26 = vpop.f32.mrb[54].mxu1  ;;  %1574 = vmatprep.mubr.bf16.mxu0 %v1328_v13 }
 0x356   :  { %v1183_v30 = vadd.f32 %v1182_v26, %v3557_v53  ;;  %v1184_v42 = vpop.f32.mrb[55].mxu1  ;;  %1575 = vmatmul.mubr.bf16.gmra.mrb[48].mxu0 %v1327_v62  ;;  %v1283_v46 = vmax.f32 %v1179_v56, 0.0 }
 0x357   :  { %v1185_v8 = vadd.f32 %v1184_v42, %v3559_v4  ;;  %v1284_v12 = vmax.f32 %v1181_v2, 0.0 }
 0x358   :  { %v1285_v24 = vmax.f32 %v1183_v30, 0.0 }
 0x359   :  { %v1286_v49 = vmax.f32 %v1185_v8, 0.0 }
 0x35a   :  { %v1329_v21 = vpack.c.bf16 %v1285_v24, %v1283_v46 }
 0x35b   :  { %v1330_v38 = vpack.c.bf16 %v1286_v49, %v1284_v12 }
 0x35d   :  { %1582 = vmatprep.mubr.bf16.mxu0 %v1330_v38 }
 0x35e   :  { %1583 = vmatmul.mubr.bf16.gmra.mrb[52].mxu0 %v1329_v21 }
 0x3a3   :  { %v1188_v60 = vpop.f32.mrb[56].mxu1 }
 0x3a4   :  { %v1189_v33 = vadd.f32 %v1188_v60, %v3557_v53  ;;  %v1190_v28 = vpop.f32.mrb[57].mxu1 }
 0x3a5   :  { %v1191_v27 = vadd.f32 %v1190_v28, %v3559_v4  ;;  %v1192_v6 = vpop.f32.mrb[58].mxu1 }
 0x3a6   :  { %v1193_v22 = vadd.f32 %v1192_v6, %v3557_v53  ;;  %v1194_v17 = vpop.f32.mrb[59].mxu1  ;;  %v1287_v31 = vmax.f32 %v1189_v33, 0.0 }
 0x3a7   :  { %v1195_v63 = vadd.f32 %v1194_v17, %v3559_v4  ;;  %v1288_v34 = vmax.f32 %v1191_v27, 0.0 }
 0x3a8   :  { %v1289_v59 = vmax.f32 %v1193_v22, 0.0 }
 0x3a9   :  { %v1290_v18 = vmax.f32 %v1195_v63, 0.0 }
 0x3aa   :  { %v1331_v36 = vpack.c.bf16 %v1289_v59, %v1287_v31 }
 0x3ab   :  { %v1332_v1 = vpack.c.bf16 %v1290_v18, %v1288_v34  ;;  %v1198_v62 = vpop.f32.mrb[60].mxu1 }
 0x3ac   :  { %v1199_v13 = vadd.f32 %v1198_v62, %v3557_v53  ;;  %v1200_v55 = vpop.f32.mrb[61].mxu1 }
 0x3ad   :  { %v1201_v56 = vadd.f32 %v1200_v55, %v3559_v4  ;;  %v1202_v23 = vpop.f32.mrb[62].mxu1  ;;  %1590 = vmatprep.mubr.bf16.mxu0 %v1332_v1 }
 0x3ae   :  { %v1203_v2 = vadd.f32 %v1202_v23, %v3557_v53  ;;  %v1204_v26 = vpop.f32.mrb[63].mxu1  ;;  %1591 = vmatmul.mubr.bf16.gmra.mrb[56].mxu0 %v1331_v36  ;;  %v1291_v42 = vmax.f32 %v1199_v13, 0.0 }
 0x3af   :  { %v1205_v30 = vadd.f32 %v1204_v26, %v3559_v4  ;;  %v1292_v46 = vmax.f32 %v1201_v56, 0.0 }
 0x3b0   :  { %v1293_v8 = vmax.f32 %v1203_v2, 0.0 }
 0x3b1   :  { %v1294_v24 = vmax.f32 %v1205_v30, 0.0 }
 0x3b2   :  { %v1333_v12 = vpack.c.bf16 %v1293_v8, %v1291_v42 }
 0x3b3   :  { %v1334_v49 = vpack.c.bf16 %v1294_v24, %v1292_v46  ;;  %v1208_v21 = vpop.f32.mrb[64].mxu1 }
 0x3b4   :  { %v1209_v38 = vadd.f32 %v1208_v21, %v3557_v53  ;;  %v1210_v60 = vpop.f32.mrb[65].mxu1 }
 0x3b5   :  { %v1211_v33 = vadd.f32 %v1210_v60, %v3559_v4  ;;  %v1212_v28 = vpop.f32.mrb[66].mxu1  ;;  %1598 = vmatprep.mubr.bf16.mxu0 %v1334_v49 }
 0x3b6   :  { %v1213_v27 = vadd.f32 %v1212_v28, %v3557_v53  ;;  %v1214_v6 = vpop.f32.mrb[67].mxu1  ;;  %1599 = vmatmul.mubr.bf16.gmra.mrb[60].mxu0 %v1333_v12  ;;  %v1295_v17 = vmax.f32 %v1209_v38, 0.0 }
 0x3b7   :  { %v1215_v22 = vadd.f32 %v1214_v6, %v3559_v4  ;;  %v1296_v31 = vmax.f32 %v1211_v33, 0.0 }
 0x3b8   :  { %v1297_v63 = vmax.f32 %v1213_v27, 0.0 }
 0x3b9   :  { %v1298_v59 = vmax.f32 %v1215_v22, 0.0 }
 0x3ba   :  { %v1335_v34 = vpack.c.bf16 %v1297_v63, %v1295_v17 }
 0x3bb   :  { %v1336_v18 = vpack.c.bf16 %v1298_v59, %v1296_v31  ;;  %v1218_v36 = vpop.f32.mrb[68].mxu1 }
 0x3bc   :  { %v1219_v1 = vadd.f32 %v1218_v36, %v3557_v53  ;;  %v1220_v62 = vpop.f32.mrb[69].mxu1 }
 0x3bd   :  { %v1221_v13 = vadd.f32 %v1220_v62, %v3559_v4  ;;  %v1222_v55 = vpop.f32.mrb[70].mxu1  ;;  %1606 = vmatprep.mubr.bf16.mxu0 %v1336_v18 }
 0x3be   :  { %v1223_v56 = vadd.f32 %v1222_v55, %v3557_v53  ;;  %v1224_v23 = vpop.f32.mrb[71].mxu1  ;;  %1607 = vmatmul.mubr.bf16.gmra.mrb[64].mxu0 %v1335_v34  ;;  %v1299_v26 = vmax.f32 %v1219_v1, 0.0 }
 0x3bf   :  { %v1225_v2 = vadd.f32 %v1224_v23, %v3559_v4  ;;  %v1300_v42 = vmax.f32 %v1221_v13, 0.0 }
 0x3c0   :  { %v1301_v30 = vmax.f32 %v1223_v56, 0.0 }
 0x3c1   :  { %v1302_v8 = vmax.f32 %v1225_v2, 0.0 }
 0x3c2   :  { %v1337_v46 = vpack.c.bf16 %v1301_v30, %v1299_v26 }
 0x3c3   :  { %v1338_v24 = vpack.c.bf16 %v1302_v8, %v1300_v42  ;;  %v1228_v12 = vpop.f32.mrb[72].mxu1 }
 0x3c4   :  { %v1229_v49 = vadd.f32 %v1228_v12, %v3557_v53  ;;  %v1230_v21 = vpop.f32.mrb[73].mxu1 }
 0x3c5   :  { %v1231_v38 = vadd.f32 %v1230_v21, %v3559_v4  ;;  %v1232_v60 = vpop.f32.mrb[74].mxu1  ;;  %1614 = vmatprep.mubr.bf16.mxu0 %v1338_v24  ;;  %v3628_v24 = vld [vmem:[%s4077_s9] ss:$0 sm:$0xff] }
 0x3c6   :  { %v1233_v33 = vadd.f32 %v1232_v60, %v3557_v53  ;;  %v1234_v28 = vpop.f32.mrb[75].mxu1  ;;  %1615 = vmatmul.mubr.bf16.gmra.mrb[68].mxu0 %v1337_v46  ;;  %v1303_v6 = vmax.f32 %v1229_v49, 0.0 }
 0x3c7   :  { %v1235_v27 = vadd.f32 %v1234_v28, %v3559_v4  ;;  %v1304_v17 = vmax.f32 %v1231_v38, 0.0 }
 0x3c8   :  { %v1305_v22 = vmax.f32 %v1233_v33, 0.0 }
 0x3c9   :  { %v1306_v63 = vmax.f32 %v1235_v27, 0.0 }
 0x3ca   :  { %v1339_v31 = vpack.c.bf16 %v1305_v22, %v1303_v6 }
 0x3cb   :  { %v1340_v59 = vpack.c.bf16 %v1306_v63, %v1304_v17  ;;  %v1238_v34 = vpop.f32.mrb[76].mxu1 }
 0x3cc   :  { %v1239_v18 = vadd.f32 %v1238_v34, %v3557_v53  ;;  %v1240_v36 = vpop.f32.mrb[77].mxu1 }
 0x3cd   :  { %v1241_v1 = vadd.f32 %v1240_v36, %v3559_v4  ;;  %v1242_v62 = vpop.f32.mrb[78].mxu1  ;;  %1622 = vmatprep.mubr.bf16.mxu0 %v1340_v59 }
 0x3ce   :  { %v1243_v13 = vadd.f32 %v1242_v62, %v3557_v53  ;;  %v1244_v55 = vpop.f32.mrb[79].mxu1  ;;  %1623 = vmatmul.mubr.bf16.gmra.mrb[72].mxu0 %v1339_v31  ;;  %v1307_v23 = vmax.f32 %v1239_v18, 0.0 }
 0x3cf   :  { %v1245_v56 = vadd.f32 %v1244_v55, %v3559_v4  ;;  %v1308_v26 = vmax.f32 %v1241_v1, 0.0 }
 0x3d0   :  { %v1309_v2 = vmax.f32 %v1243_v13, 0.0 }
 0x3d1   :  { %v1310_v30 = vmax.f32 %v1245_v56, 0.0 }
 0x3d2   :  { %v1341_v42 = vpack.c.bf16 %v1309_v2, %v1307_v23 }
 0x3d3   :  { %v1342_v8 = vpack.c.bf16 %v1310_v30, %v1308_v26 }
 0x3d5   :  { %1630 = vmatprep.mubr.bf16.mxu0 %v1342_v8 }
 0x3d6   :  { %1631 = vmatmul.mubr.bf16.gmra.mrb[76].mxu0 %v1341_v42 }
 0x3e9   :  { %v2330_v46 = vpop.f32.mrb[16].mxu0 }
 0x3ea   :  { %v2331_v12 = vpop.f32.mrb[17].mxu0 }
 0x3eb   :  { %v2332_v53 = vadd.f32 %v2331_v12, %v2330_v46  ;;  %v2333_v49 = vpop.f32.mrb[18].mxu0 }
 0x3ec   :  { %v2334_v21 = vpop.f32.mrb[19].mxu0 }
 0x3ed   :  { %v1513_v4 = vadd.f32 %v2332_v53, %v3628_v24  ;;  %v2335_v38 = vadd.f32 %v2334_v21, %v2333_v49 }
 0x3ef   :  { %v1516_v60 = vadd.f32 %v2335_v38, %v3628_v24  ;;  %v3633_v33 = vadd.f32 %v1513_v4, %v3267_v43 }
 0x3f1   :  { %v2336_v28 = vpop.f32.mrb[20].mxu0  ;;  %1671 = vadd.xlane.f32.xlu0 %v3633_v33  ;;  %v3637_v27 = vadd.f32 %v1516_v60, %v3270_v11 }
 0x3f2   :  { %v2337_v6 = vpop.f32.mrb[21].mxu0 }
 0x3f3   :  { %v2338_v22 = vadd.f32 %v2337_v6, %v2336_v28  ;;  %1673 = vadd.xlane.f32.xlu1 %v3637_v27  ;;  %v2339_v17 = vpop.f32.mrb[22].mxu0 }
 0x3f4   :  { %v2340_v63 = vpop.f32.mrb[23].mxu0 }
 0x3f5   :  { %v1521_v31 = vadd.f32 %v2338_v22, %v3628_v24  ;;  %v2341_v59 = vadd.f32 %v2340_v63, %v2339_v17 }
 0x3f7   :  { %v1524_v34 = vadd.f32 %v2341_v59, %v3628_v24  ;;  %v3643_v43 = vadd.f32 %v1521_v31, %v3290_v32 }
 0x3f9   :  { %v2342_v18 = vpop.f32.mrb[24].mxu0  ;;  %1675 = vadd.xlane.f32.xlu0 %v3643_v43  ;;  %v3647_v11 = vadd.f32 %v1524_v34, %v3293_v41 }
 0x3fa   :  { %v2343_v36 = vpop.f32.mrb[25].mxu0 }
 0x3fb   :  { %v2344_v1 = vadd.f32 %v2343_v36, %v2342_v18  ;;  %1677 = vadd.xlane.f32.xlu1 %v3647_v11  ;;  %v2345_v62 = vpop.f32.mrb[26].mxu0 }
 0x3fc   :  { %v2346_v13 = vpop.f32.mrb[27].mxu0 }
 0x3fd   :  { %v1529_v55 = vadd.f32 %v2344_v1, %v3628_v24  ;;  %v2347_v56 = vadd.f32 %v2346_v13, %v2345_v62 }
 0x3ff   :  { %v1532_v23 = vadd.f32 %v2347_v56, %v3628_v24  ;;  %v3653_v32 = vadd.f32 %v1529_v55, %v3313_v20 }
 0x401   :  { %v2348_v2 = vpop.f32.mrb[28].mxu0  ;;  %1679 = vadd.xlane.f32.xlu0 %v3653_v32  ;;  %v3657_v41 = vadd.f32 %v1532_v23, %v3316_v57 }
 0x402   :  { %v2349_v26 = vpop.f32.mrb[29].mxu0 }
 0x403   :  { %v2350_v30 = vadd.f32 %v2349_v26, %v2348_v2  ;;  %1681 = vadd.xlane.f32.xlu1 %v3657_v41  ;;  %v2351_v42 = vpop.f32.mrb[30].mxu0 }
 0x404   :  { %v2352_v8 = vpop.f32.mrb[31].mxu0 }
 0x405   :  { %v1537_v46 = vadd.f32 %v2350_v30, %v3628_v24  ;;  %v2353_v12 = vadd.f32 %v2352_v8, %v2351_v42 }
 0x407   :  { %v1540_v53 = vadd.f32 %v2353_v12, %v3628_v24  ;;  %v3663_v20 = vadd.f32 %v1537_v46, %v3336_v51 }
 0x409   :  { %v2354_v49 = vpop.f32.mrb[32].mxu0  ;;  %1683 = vadd.xlane.f32.xlu0 %v3663_v20  ;;  %v3667_v57 = vadd.f32 %v1540_v53, %v3339_v15 }
 0x40a   :  { %v2355_v21 = vpop.f32.mrb[33].mxu0 }
 0x40b   :  { %v2356_v4 = vadd.f32 %v2355_v21, %v2354_v49  ;;  %1685 = vadd.xlane.f32.xlu1 %v3667_v57  ;;  %v2357_v38 = vpop.f32.mrb[34].mxu0 }
 0x40c   :  { %v2358_v60 = vpop.f32.mrb[35].mxu0 }
 0x40d   :  { %v1545_v28 = vadd.f32 %v2356_v4, %v3628_v24  ;;  %v2359_v6 = vadd.f32 %v2358_v60, %v2357_v38 }
 0x40f   :  { %v1548_v22 = vadd.f32 %v2359_v6, %v3628_v24  ;;  %v3673_v51 = vadd.f32 %v1545_v28, %v3356_v19 }
 0x411   :  { %v2360_v17 = vpop.f32.mrb[36].mxu0  ;;  %1687 = vadd.xlane.f32.xlu0 %v3673_v51  ;;  %v3677_v15 = vadd.f32 %v1548_v22, %v3359_v35 }
 0x412   :  { %v2361_v63 = vpop.f32.mrb[37].mxu0 }
 0x413   :  { %v2362_v31 = vadd.f32 %v2361_v63, %v2360_v17  ;;  %1689 = vadd.xlane.f32.xlu1 %v3677_v15  ;;  %v2363_v59 = vpop.f32.mrb[38].mxu0 }
 0x414   :  { %v2364_v34 = vpop.f32.mrb[39].mxu0 }
 0x415   :  { %v1553_v18 = vadd.f32 %v2362_v31, %v3628_v24  ;;  %v2365_v36 = vadd.f32 %v2364_v34, %v2363_v59 }
 0x417   :  { %v1556_v1 = vadd.f32 %v2365_v36, %v3628_v24  ;;  %v3683_v19 = vadd.f32 %v1553_v18, %v3369_v50 }
 0x419   :  { %1691 = vadd.xlane.f32.xlu0 %v3683_v19  ;;  %v2366_v62 = vpop.f32.mrb[40].mxu0  ;;  %v3687_v35 = vadd.f32 %v1556_v1, %v3372_v45 }
 0x41a   :  { %v2367_v13 = vpop.f32.mrb[41].mxu0 }
 0x41b   :  { %v2368_v55 = vadd.f32 %v2367_v13, %v2366_v62  ;;  %1693 = vadd.xlane.f32.xlu1 %v3687_v35  ;;  %v2369_v56 = vpop.f32.mrb[42].mxu0 }
 0x41c   :  { %v2370_v23 = vpop.f32.mrb[43].mxu0 }
 0x41d   :  { %v1561_v2 = vadd.f32 %v2368_v55, %v3628_v24  ;;  %v2371_v26 = vadd.f32 %v2370_v23, %v2369_v56 }
 0x41f   :  { %v1564_v30 = vadd.f32 %v2371_v26, %v3628_v24  ;;  %v3693_v50 = vadd.f32 %v1561_v2, %v3382_v37 }
 0x421   :  { %1695 = vadd.xlane.f32.xlu0 %v3693_v50  ;;  %v2372_v42 = vpop.f32.mrb[44].mxu0  ;;  %v3697_v45 = vadd.f32 %v1564_v30, %v3385_v39 }
 0x422   :  { %v2373_v8 = vpop.f32.mrb[45].mxu0 }
 0x423   :  { %v2374_v46 = vadd.f32 %v2373_v8, %v2372_v42  ;;  %1697 = vadd.xlane.f32.xlu1 %v3697_v45  ;;  %v2375_v12 = vpop.f32.mrb[46].mxu0 }
 0x424   :  { %v2376_v53 = vpop.f32.mrb[47].mxu0 }
 0x425   :  { %v1569_v49 = vadd.f32 %v2374_v46, %v3628_v24  ;;  %v2377_v21 = vadd.f32 %v2376_v53, %v2375_v12 }
 0x427   :  { %v1572_v4 = vadd.f32 %v2377_v21, %v3628_v24  ;;  %v3703_v37 = vadd.f32 %v1569_v49, %v3399_v52 }
 0x429   :  { %1699 = vadd.xlane.f32.xlu0 %v3703_v37  ;;  %v2378_v38 = vpop.f32.mrb[48].mxu0  ;;  %v3707_v39 = vadd.f32 %v1572_v4, %v3395_v25 }
 0x42a   :  { %v2379_v60 = vpop.f32.mrb[49].mxu0 }
 0x42b   :  { %v2380_v28 = vadd.f32 %v2379_v60, %v2378_v38  ;;  %1701 = vadd.xlane.f32.xlu1 %v3707_v39  ;;  %v2381_v6 = vpop.f32.mrb[50].mxu0 }
 0x42c   :  { %v2382_v22 = vpop.f32.mrb[51].mxu0 }
 0x42d   :  { %v1577_v17 = vadd.f32 %v2380_v28, %v3628_v24  ;;  %v2383_v63 = vadd.f32 %v2382_v22, %v2381_v6 }
 0x42f   :  { %v1580_v31 = vadd.f32 %v2383_v63, %v3628_v24  ;;  %v3713_v52 = vadd.f32 %v1577_v17, %v3418_v14 }
 0x431   :  { %1703 = vadd.xlane.f32.xlu0 %v3713_v52  ;;  %v2384_v59 = vpop.f32.mrb[52].mxu0  ;;  %v3717_v25 = vadd.f32 %v1580_v31, %v3414_v58 }
 0x432   :  { %v2385_v34 = vpop.f32.mrb[53].mxu0 }
 0x433   :  { %v2386_v18 = vadd.f32 %v2385_v34, %v2384_v59  ;;  %1705 = vadd.xlane.f32.xlu1 %v3717_v25  ;;  %v2387_v36 = vpop.f32.mrb[54].mxu0 }
 0x434   :  { %v2388_v1 = vpop.f32.mrb[55].mxu0 }
 0x435   :  { %v1585_v62 = vadd.f32 %v2386_v18, %v3628_v24  ;;  %v2389_v13 = vadd.f32 %v2388_v1, %v2387_v36 }
 0x437   :  { %v1588_v55 = vadd.f32 %v2389_v13, %v3628_v24  ;;  %v3723_v14 = vadd.f32 %v1585_v62, %v3442_v7 }
 0x439   :  { %1707 = vadd.xlane.f32.xlu0 %v3723_v14  ;;  %v3727_v56 = vadd.f32 %v1588_v55, %v3436_v9 }
 0x43b   :  { %1709 = vadd.xlane.f32.xlu1 %v3727_v56 }
 0x481   :  { %v2390_v58 = vpop.f32.mrb[56].mxu0 }
 0x482   :  { %v2391_v23 = vpop.f32.mrb[57].mxu0 }
 0x483   :  { %v2392_v2 = vadd.f32 %v2391_v23, %v2390_v58  ;;  %v2393_v26 = vpop.f32.mrb[58].mxu0 }
 0x484   :  { %v2394_v30 = vpop.f32.mrb[59].mxu0 }
 0x485   :  { %v1593_v42 = vadd.f32 %v2392_v2, %v3628_v24  ;;  %v2395_v8 = vadd.f32 %v2394_v30, %v2393_v26 }
 0x487   :  { %v1596_v46 = vadd.f32 %v2395_v8, %v3628_v24  ;;  %v3733_v7 = vadd.f32 %v1593_v42, %v3482_v40 }
 0x489   :  { %1711 = vadd.xlane.f32.xlu0 %v3733_v7  ;;  %v2396_v12 = vpop.f32.mrb[60].mxu0  ;;  %v3737_v9 = vadd.f32 %v1596_v46, %v3485_v47 }
 0x48a   :  { %v2397_v53 = vpop.f32.mrb[61].mxu0 }
 0x48b   :  { %v2398_v49 = vadd.f32 %v2397_v53, %v2396_v12  ;;  %1713 = vadd.xlane.f32.xlu1 %v3737_v9  ;;  %v2399_v21 = vpop.f32.mrb[62].mxu0 }
 0x48c   :  { %v2400_v4 = vpop.f32.mrb[63].mxu0 }
 0x48d   :  { %v1601_v38 = vadd.f32 %v2398_v49, %v3628_v24  ;;  %v2401_v60 = vadd.f32 %v2400_v4, %v2399_v21  ;;  %v1672_v21 = vpop.xlane.xlu0 %1671 }
 0x48f   :  { %v1604_v28 = vadd.f32 %v2401_v60, %v3628_v24  ;;  %v3743_v40 = vadd.f32 %v1601_v38, %v3495_v61  ;;  %v1674_v38 = vpop.xlane.xlu1 %1673 }
 0x491   :  { %1715 = vadd.xlane.f32.xlu0 %v3743_v40  ;;  %v2402_v6 = vpop.f32.mrb[64].mxu0  ;;  %v3747_v47 = vadd.f32 %v1604_v28, %v3498_v44  ;;  %v1735_v28 = vmul.f32 0.0078125, %v1672_v21 }
 0x492   :  { %v2403_v22 = vpop.f32.mrb[65].mxu0 }
 0x493   :  { %v2404_v17 = vadd.f32 %v2403_v22, %v2402_v6  ;;  %1717 = vadd.xlane.f32.xlu1 %v3747_v47  ;;  %v2405_v63 = vpop.f32.mrb[66].mxu0 }
 0x494   :  { %v2406_v31 = vpop.f32.mrb[67].mxu0 }
 0x495   :  { %v1609_v59 = vadd.f32 %v2404_v17, %v3628_v24  ;;  %v2407_v34 = vadd.f32 %v2406_v31, %v2405_v63  ;;  %v1676_v17 = vpop.xlane.xlu0 %1675  ;;  %v1736_v31 = vmul.f32 0.0078125, %v1674_v38 }
 0x497   :  { %v1612_v18 = vadd.f32 %v2407_v34, %v3628_v24  ;;  %v3753_v61 = vadd.f32 %v1609_v59, %v3508_v16  ;;  %v1678_v34 = vpop.xlane.xlu1 %1677 }
 0x499   :  { %1719 = vadd.xlane.f32.xlu0 %v3753_v61  ;;  %v2408_v36 = vpop.f32.mrb[68].mxu0  ;;  %v3757_v44 = vadd.f32 %v1612_v18, %v3511_v29  ;;  %v3782_v18 = vsub.f32 %v3633_v33, %v1735_v28 }
 0x49a   :  { %v2409_v1 = vpop.f32.mrb[69].mxu0 }
 0x49b   :  { %v2410_v62 = vadd.f32 %v2409_v1, %v2408_v36  ;;  %1721 = vadd.xlane.f32.xlu1 %v3757_v44  ;;  %v2411_v13 = vpop.f32.mrb[70].mxu0  ;;  %v1737_v36 = vmul.f32 0.0078125, %v1676_v17 }
 0x49c   :  { %v2412_v55 = vpop.f32.mrb[71].mxu0 }
 0x49d   :  { %v1617_v58 = vadd.f32 %v2410_v62, %v3628_v24  ;;  %v2413_v23 = vadd.f32 %v2412_v55, %v2411_v13  ;;  %v1680_v62 = vpop.xlane.xlu0 %1679  ;;  %v3789_v13 = vsub.f32 %v3637_v27, %v1736_v31  ;;  %v1738_v55 = vmul.f32 0.0078125, %v1678_v34 }
 0x49e   :  { %v3796_v33 = vsub.f32 %v3643_v43, %v1737_v36 }
 0x49f   :  { %v1620_v2 = vadd.f32 %v2413_v23, %v3628_v24  ;;  %v3763_v16 = vadd.f32 %v1617_v58, %v3521_v3  ;;  %v1682_v23 = vpop.xlane.xlu1 %1681  ;;  %v3802_v27 = vsub.f32 %v3647_v11, %v1738_v55 }
 0x4a1   :  { %1723 = vadd.xlane.f32.xlu0 %v3763_v16  ;;  %v2414_v26 = vpop.f32.mrb[72].mxu0  ;;  %v3767_v29 = vadd.f32 %v1620_v2, %v3524_v5  ;;  %v1739_v2 = vmul.f32 0.0078125, %v1680_v62 }
 0x4a2   :  { %v2415_v30 = vpop.f32.mrb[73].mxu0 }
 0x4a3   :  { %v2416_v42 = vadd.f32 %v2415_v30, %v2414_v26  ;;  %1725 = vadd.xlane.f32.xlu1 %v3767_v29  ;;  %v2417_v8 = vpop.f32.mrb[74].mxu0  ;;  %v1740_v26 = vmul.f32 0.0078125, %v1682_v23  ;;  %v1686_v30 = vpop.xlane.xlu1 %1685 }
 0x4a4   :  { %v2418_v46 = vpop.f32.mrb[75].mxu0  ;;  %v1742_v11 = vmul.f32 0.0078125, %v1686_v30 }
 0x4a5   :  { %v1625_v12 = vadd.f32 %v2416_v42, %v3628_v24  ;;  %v2419_v53 = vadd.f32 %v2418_v46, %v2417_v8  ;;  %v3807_v42 = vsub.f32 %v3653_v32, %v1739_v2  ;;  %v1801_v8 = vmul.f32 %v3796_v33, %v3796_v33 }
 0x4a7   :  { %v1628_v49 = vadd.f32 %v2419_v53, %v3628_v24  ;;  %v3773_v3 = vadd.f32 %v1625_v12, %v3534_v54  ;;  %v3812_v12 = vsub.f32 %v3657_v41, %v1740_v26  ;;  %v1802_v53 = vmul.f32 %v3802_v27, %v3802_v27 }
 0x4a9   :  { %1727 = vadd.xlane.f32.xlu0 %v3773_v3  ;;  %v2420_v4 = vpop.f32.mrb[76].mxu0  ;;  %v3777_v5 = vadd.f32 %v1628_v49, %v3537_v10  ;;  %v1690_v49 = vpop.xlane.xlu1 %1689  ;;  %v1804_v28 = vmul.f32 %v3812_v12, %v3812_v12 }
 0x4aa   :  { %v2421_v60 = vpop.f32.mrb[77].mxu0  ;;  %v1744_v41 = vmul.f32 0.0078125, %v1690_v49 }
 0x4ab   :  { %v2422_v6 = vadd.f32 %v2421_v60, %v2420_v4  ;;  %1729 = vadd.xlane.f32.xlu1 %v3777_v5  ;;  %v2423_v22 = vpop.f32.mrb[78].mxu0  ;;  %v1803_v4 = vmul.f32 %v3807_v42, %v3807_v42  ;;  %v3822_v60 = vsub.f32 %v3667_v57, %v1742_v11 }
 0x4ac   :  { %v2424_v63 = vpop.f32.mrb[79].mxu0  ;;  %v3832_v31 = vsub.f32 %v3677_v15, %v1744_v41 }
 0x4ad   :  { %v1633_v54 = vadd.f32 %v2422_v6, %v3628_v24  ;;  %v2425_v59 = vadd.f32 %v2424_v63, %v2423_v22  ;;  %v1694_v6 = vpop.xlane.xlu1 %1693 }
 0x4ae   :  { %v1746_v57 = vmul.f32 0.0078125, %v1694_v6  ;;  %v1808_v55 = vmul.f32 %v3832_v31, %v3832_v31 }
 0x4af   :  { %v1636_v10 = vadd.f32 %v2425_v59, %v3628_v24  ;;  %v3786_v1 = vadd.f32 %v1633_v54, %v3547_v48  ;;  %v1799_v48 = vmul.f32 %v3782_v18, %v3782_v18  ;;  %v1684_v24 = vpop.xlane.xlu0 %1683  ;;  %v1806_v54 = vmul.f32 %v3822_v60, %v3822_v60 }
 0x4b0   :  { %v1741_v43 = vmul.f32 0.0078125, %v1684_v24  ;;  %v3842_v62 = vsub.f32 %v3687_v35, %v1746_v57 }
 0x4b1   :  { %1731 = vadd.xlane.f32.xlu0 %v3786_v1  ;;  %v3793_v58 = vadd.f32 %v1636_v10, %v3550_v0  ;;  %v1800_v0 = vmul.f32 %v3789_v13, %v3789_v13  ;;  %v1698_v59 = vpop.xlane.xlu1 %1697 }
 0x4b2   :  { %v3817_v21 = vsub.f32 %v3663_v20, %v1741_v43  ;;  %v1748_v15 = vmul.f32 0.0078125, %v1698_v59 }
 0x4b3   :  { %1733 = vadd.xlane.f32.xlu1 %v3793_v58  ;;  %v1688_v46 = vpop.xlane.xlu0 %1687 }
 0x4b4   :  { %v1743_v32 = vmul.f32 0.0078125, %v1688_v46  ;;  %v1805_v17 = vmul.f32 %v3817_v21, %v3817_v21  ;;  %v3852_v26 = vsub.f32 %v3697_v45, %v1748_v15 }
 0x4b5   :  { %1831 = vadd.xlane.f32.xlu0 %v1799_v48 }
 0x4b6   :  { %v3827_v22 = vsub.f32 %v3673_v51, %v1743_v32 }
 0x4b7   :  { %1833 = vadd.xlane.f32.xlu1 %v1800_v0  ;;  %v1692_v38 = vpop.xlane.xlu0 %1691  ;;  %v1810_v0 = vmul.f32 %v3842_v62, %v3842_v62 }
 0x4b8   :  { %v1745_v20 = vmul.f32 0.0078125, %v1692_v38  ;;  %v1807_v36 = vmul.f32 %v3827_v22, %v3827_v22  ;;  %v1702_v23 = vpop.xlane.xlu1 %1701 }
 0x4b9   :  { %1835 = vadd.xlane.f32.xlu0 %v1801_v8  ;;  %v1750_v35 = vmul.f32 0.0078125, %v1702_v23 }
 0x4ba   :  { %v3837_v34 = vsub.f32 %v3683_v19, %v1745_v20 }
 0x4bb   :  { %1837 = vadd.xlane.f32.xlu1 %v1802_v53  ;;  %v1696_v63 = vpop.xlane.xlu0 %1695  ;;  %v3862_v11 = vsub.f32 %v3707_v39, %v1750_v35  ;;  %v1812_v53 = vmul.f32 %v3852_v26, %v3852_v26 }
 0x4bc   :  { %v1747_v51 = vmul.f32 0.0078125, %v1696_v63  ;;  %v1809_v48 = vmul.f32 %v3837_v34, %v3837_v34 }
 0x4bd   :  { %1839 = vadd.xlane.f32.xlu0 %v1803_v4  ;;  %v1814_v39 = vmul.f32 %v3862_v11, %v3862_v11 }
 0x4be   :  { %v3847_v2 = vsub.f32 %v3693_v50, %v1747_v51 }
 0x4bf   :  { %1841 = vadd.xlane.f32.xlu1 %v1804_v28  ;;  %v1700_v10 = vpop.xlane.xlu0 %1699 }
 0x4c0   :  { %v1749_v19 = vmul.f32 0.0078125, %v1700_v10  ;;  %v1706_v30 = vpop.xlane.xlu1 %1705  ;;  %v1811_v8 = vmul.f32 %v3847_v2, %v3847_v2 }
 0x4c1   :  { %1843 = vadd.xlane.f32.xlu0 %v1805_v17  ;;  %v1752_v45 = vmul.f32 0.0078125, %v1706_v30 }
 0x4c2   :  { %v3857_v43 = vsub.f32 %v3703_v37, %v1749_v19 }
 0x4c3   :  { %1845 = vadd.xlane.f32.xlu1 %v1806_v54  ;;  %v1704_v24 = vpop.xlane.xlu0 %1703  ;;  %v3872_v38 = vsub.f32 %v3717_v25, %v1752_v45 }
 0x4c4   :  { %v1751_v50 = vmul.f32 0.0078125, %v1704_v24  ;;  %v1813_v4 = vmul.f32 %v3857_v43, %v3857_v43 }
 0x4c5   :  { %1847 = vadd.xlane.f32.xlu0 %v1807_v36  ;;  %v1816_v25 = vmul.f32 %v3872_v38, %v3872_v38 }
 0x4c6   :  { %v3867_v32 = vsub.f32 %v3713_v52, %v1751_v50 }
 0x4c7   :  { %1849 = vadd.xlane.f32.xlu1 %v1808_v55  ;;  %v1708_v46 = vpop.xlane.xlu0 %1707 }
 0x4c8   :  { %v1710_v49 = vpop.xlane.xlu1 %1709  ;;  %v1753_v37 = vmul.f32 0.0078125, %v1708_v46  ;;  %v1815_v52 = vmul.f32 %v3867_v32, %v3867_v32 }
 0x4c9   :  { %1851 = vadd.xlane.f32.xlu0 %v1809_v48  ;;  %v1754_v41 = vmul.f32 0.0078125, %v1710_v49 }
 0x4ca   :  { %v3877_v28 = vsub.f32 %v3723_v14, %v1753_v37 }
 0x4cb   :  { %1853 = vadd.xlane.f32.xlu1 %v1810_v0  ;;  %v3882_v6 = vsub.f32 %v3727_v56, %v1754_v41 }
 0x4cc   :  { %v1817_v20 = vmul.f32 %v3877_v28, %v3877_v28 }
 0x4cd   :  { %1855 = vadd.xlane.f32.xlu0 %v1811_v8  ;;  %v1818_v14 = vmul.f32 %v3882_v6, %v3882_v6 }
 0x4cf   :  { %1857 = vadd.xlane.f32.xlu1 %v1812_v53 }
 0x4d1   :  { %1859 = vadd.xlane.f32.xlu0 %v1813_v4 }
 0x4d3   :  { %1861 = vadd.xlane.f32.xlu1 %v1814_v39 }
 0x4d5   :  { %1863 = vadd.xlane.f32.xlu0 %v1815_v52 }
 0x4d7   :  { %1865 = vadd.xlane.f32.xlu1 %v1816_v25 }
 0x4d9   :  { %1867 = vadd.xlane.f32.xlu0 %v1817_v20 }
 0x4db   :  { %1869 = vadd.xlane.f32.xlu1 %v1818_v14 }
 0x516   :  { %v1712_v17 = vpop.xlane.xlu0 %1711 }
 0x517   :  { %v1755_v63 = vmul.f32 0.0078125, %v1712_v17 }
 0x518   :  { %v1714_v57 = vpop.xlane.xlu1 %1713 }
 0x519   :  { %v3891_v54 = vsub.f32 %v3733_v7, %v1755_v63  ;;  %v1756_v56 = vmul.f32 0.0078125, %v1714_v57 }
 0x51b   :  { %v3894_v59 = vsub.f32 %v3737_v9, %v1756_v56  ;;  %v1819_v51 = vmul.f32 %v3891_v54, %v3891_v54 }
 0x51d   :  { %1871 = vadd.xlane.f32.xlu0 %v1819_v51  ;;  %v1820_v36 = vmul.f32 %v3894_v59, %v3894_v59 }
 0x51e   :  { %v1716_v10 = vpop.xlane.xlu0 %1715 }
 0x51f   :  { %v1757_v15 = vmul.f32 0.0078125, %v1716_v10  ;;  %1873 = vadd.xlane.f32.xlu1 %v1820_v36 }
 0x520   :  { %v1718_v55 = vpop.xlane.xlu1 %1717 }
 0x521   :  { %v3901_v23 = vsub.f32 %v3743_v40, %v1757_v15  ;;  %v1758_v7 = vmul.f32 0.0078125, %v1718_v55 }
 0x523   :  { %v3904_v19 = vsub.f32 %v3747_v47, %v1758_v7  ;;  %v1821_v9 = vmul.f32 %v3901_v23, %v3901_v23 }
 0x525   :  { %1875 = vadd.xlane.f32.xlu0 %v1821_v9  ;;  %v1822_v48 = vmul.f32 %v3904_v19, %v3904_v19 }
 0x526   :  { %v1720_v24 = vpop.xlane.xlu0 %1719 }
 0x527   :  { %v1759_v35 = vmul.f32 0.0078125, %v1720_v24  ;;  %1877 = vadd.xlane.f32.xlu1 %v1822_v48 }
 0x528   :  { %v1722_v0 = vpop.xlane.xlu1 %1721 }
 0x529   :  { %v3911_v30 = vsub.f32 %v3753_v61, %v1759_v35  ;;  %v1760_v40 = vmul.f32 0.0078125, %v1722_v0 }
 0x52b   :  { %v3914_v50 = vsub.f32 %v3757_v44, %v1760_v40  ;;  %v1823_v47 = vmul.f32 %v3911_v30, %v3911_v30 }
 0x52d   :  { %1879 = vadd.xlane.f32.xlu0 %v1823_v47  ;;  %v1824_v8 = vmul.f32 %v3914_v50, %v3914_v50 }
 0x52e   :  { %v1724_v46 = vpop.xlane.xlu0 %1723 }
 0x52f   :  { %v1761_v45 = vmul.f32 0.0078125, %v1724_v46  ;;  %1881 = vadd.xlane.f32.xlu1 %v1824_v8 }
 0x530   :  { %v1726_v53 = vpop.xlane.xlu1 %1725 }
 0x531   :  { %v3921_v49 = vsub.f32 %v3763_v16, %v1761_v45  ;;  %v1762_v61 = vmul.f32 0.0078125, %v1726_v53 }
 0x533   :  { %v3924_v37 = vsub.f32 %v3767_v29, %v1762_v61  ;;  %v1825_v44 = vmul.f32 %v3921_v49, %v3921_v49 }
 0x535   :  { %1883 = vadd.xlane.f32.xlu0 %v1825_v44  ;;  %v1826_v4 = vmul.f32 %v3924_v37, %v3924_v37 }
 0x536   :  { %v1728_v41 = vpop.xlane.xlu0 %1727 }
 0x537   :  { %v1763_v39 = vmul.f32 0.0078125, %v1728_v41  ;;  %1885 = vadd.xlane.f32.xlu1 %v1826_v4 }
 0x538   :  { %v1730_v52 = vpop.xlane.xlu1 %1729 }
 0x539   :  { %v3931_v25 = vsub.f32 %v3773_v3, %v1763_v39  ;;  %v1764_v16 = vmul.f32 0.0078125, %v1730_v52  ;;  %v3953_v52 = vld [vmem:[%s4078_s10] ss:$0 sm:$0xff]  ;;  %s2711_s10 = smov [#allocation2]  }
 0x53b   :  { %v3934_v20 = vsub.f32 %v3777_v5, %v1764_v16  ;;  %v1827_v29 = vmul.f32 %v3931_v25, %v3931_v25 }
 0x53d   :  { %1887 = vadd.xlane.f32.xlu0 %v1827_v29  ;;  %v1828_v14 = vmul.f32 %v3934_v20, %v3934_v20 }
 0x53e   :  { %v1732_v17 = vpop.xlane.xlu0 %1731 }
 0x53f   :  { %v1765_v63 = vmul.f32 0.0078125, %v1732_v17  ;;  %1889 = vadd.xlane.f32.xlu1 %v1828_v14 }
 0x540   :  { %v1734_v57 = vpop.xlane.xlu1 %1733 }
 0x541   :  { %v3941_v56 = vsub.f32 %v3786_v1, %v1765_v63  ;;  %v1766_v3 = vmul.f32 0.0078125, %v1734_v57  ;;  %v3959_v57 = vld [vmem:[%s4079_s11] ss:$0 sm:$0xff]  ;;  %s2138_s11 = sshll.u32 %s2711_s10, 4  ;;  %s2139_s11 = int_to_ptr.vmem [resolvable:$true] %s2138_s11 }
 0x542   :  { %v1832_v51 = vpop.xlane.xlu0 %1831  ;;  %s2686_s26 = scalar_lea.vmem %s2139_s11, 4096  ;;  %p2691_p1 = scmp.lt.s32.totalorder %s2139_s11, %s2139_s11 }
 0x543   :  { %v3944_v36 = vsub.f32 %v3793_v58, %v1766_v3  ;;  %v1895_v5 = vmul.f32 0.0078125, %v1832_v51  ;;  %v1829_v10 = vmul.f32 %v3941_v56, %v3941_v56  ;;  %p2687_p0 = scmp.ne.s32.totalorder %s2139_s11, %s2686_s26  ;;  %p2692_p2 = scmp.lt.s32.totalorder %s2686_s26, %s2686_s26 }
 0x544   :  { %v1834_v15 = vpop.xlane.xlu1 %1833 }
 0x545   :  { %v1927_v55 = vadd.f32 1e-05, %v1895_v5  ;;  %v1896_v7 = vmul.f32 0.0078125, %v1834_v15  ;;  %1891 = vadd.xlane.f32.xlu0 %v1829_v10  ;;  %v1830_v9 = vmul.f32 %v3944_v36, %v3944_v36  ;;  %p2693_p3 = por %p2692_p2, %p2691_p1 }
 0x546   :  { %v1836_v48 = vpop.xlane.xlu0 %1835 }
 0x547   :  { %2622 = vrsqrt.f32 %v1927_v55  ;;  %v1928_v1 = vadd.f32 1e-05, %v1896_v7  ;;  %v1897_v24 = vmul.f32 0.0078125, %v1836_v48  ;;  %1893 = vadd.xlane.f32.xlu1 %v1830_v9  ;;  %p2694_p4 = pnand %p2693_p3, %p2687_p0 }
 0x548   :  { %v1838_v35 = vpop.xlane.xlu1 %1837 }
 0x549   :  { %2624 = vrsqrt.f32 %v1928_v1  ;;  %v1929_v58 = vadd.f32 1e-05, %v1897_v24  ;;  %v1898_v0 = vmul.f32 0.0078125, %v1838_v35 }
 0x54a   :  { %v1840_v40 = vpop.xlane.xlu0 %1839 }
 0x54b   :  { %2626 = vrsqrt.f32 %v1929_v58  ;;  %v1930_v47 = vadd.f32 1e-05, %v1898_v0  ;;  %v1899_v8 = vmul.f32 0.0078125, %v1840_v40 }
 0x54c   :  { %v1842_v46 = vpop.xlane.xlu1 %1841 }
 0x54d   :  { %2628 = vrsqrt.f32 %v1930_v47  ;;  %v1931_v45 = vadd.f32 1e-05, %v1899_v8  ;;  %v1900_v53 = vmul.f32 0.0078125, %v1842_v46 }
 0x54e   :  { %v1844_v61 = vpop.xlane.xlu0 %1843 }
 0x54f   :  { %2630 = vrsqrt.f32 %v1931_v45  ;;  %v1932_v44 = vadd.f32 1e-05, %v1900_v53  ;;  %v1901_v4 = vmul.f32 0.0078125, %v1844_v61 }
 0x550   :  { %v1846_v41 = vpop.xlane.xlu1 %1845 }
 0x551   :  { %v2623_v39 = vpop.eup %2622  ;;  %2632 = vrsqrt.f32 %v1932_v44  ;;  %v1933_v16 = vadd.f32 1e-05, %v1901_v4  ;;  %v1902_v29 = vmul.f32 0.0078125, %v1846_v41 }
 0x552   :  { %v1991_v14 = vmul.f32 %v2623_v39, %v3782_v18  ;;  %v1848_v17 = vpop.xlane.xlu0 %1847 }
 0x553   :  { %v2625_v63 = vpop.eup %2624  ;;  %2634 = vrsqrt.f32 %v1933_v16  ;;  %v1934_v3 = vadd.f32 1e-05, %v1902_v29  ;;  %v1903_v51 = vmul.f32 0.0078125, %v1848_v17 }
 0x554   :  { %v2030_v5 = vmul.f32 %v3953_v52, %v1991_v14  ;;  %v1992_v10 = vmul.f32 %v2625_v63, %v3789_v13  ;;  %v1850_v15 = vpop.xlane.xlu1 %1849 }
 0x555   :  { %v2627_v55 = vpop.eup %2626  ;;  %2636 = vrsqrt.f32 %v1934_v3  ;;  %v1935_v7 = vadd.f32 1e-05, %v1903_v51  ;;  %v1904_v9 = vmul.f32 0.0078125, %v1850_v15 }
 0x556   :  { %v2069_v18 = vadd.f32 %v3959_v57, %v2030_v5  ;;  %v2031_v48 = vmul.f32 %v3953_v52, %v1992_v10  ;;  %v1993_v1 = vmul.f32 %v2627_v55, %v3796_v33  ;;  %v1852_v24 = vpop.xlane.xlu0 %1851 }
 0x557   :  { %v2629_v35 = vpop.eup %2628  ;;  %2638 = vrsqrt.f32 %v1935_v7  ;;  %v1936_v58 = vadd.f32 1e-05, %v1904_v9  ;;  %v1905_v0 = vmul.f32 0.0078125, %v1852_v24 }
 0x558   :  { %2101 = vst [vmem:[#allocation2] sm:$0xff] %v2069_v18  ;;  %v2070_v40 = vadd.f32 %v3959_v57, %v2031_v48  ;;  %v2032_v13 = vmul.f32 %v3953_v52, %v1993_v1  ;;  %v1994_v47 = vmul.f32 %v2629_v35, %v3802_v27  ;;  %v1854_v8 = vpop.xlane.xlu1 %1853 }
 0x559   :  { %v2631_v46 = vpop.eup %2630  ;;  %2640 = vrsqrt.f32 %v1936_v58  ;;  %v1937_v45 = vadd.f32 1e-05, %v1905_v0  ;;  %v1906_v53 = vmul.f32 0.0078125, %v1854_v8 }
 0x55a   :  { %2102 = vst [vmem:[#allocation2 + $0x8] sm:$0xff] %v2070_v40  ;;  %v2071_v33 = vadd.f32 %v3959_v57, %v2032_v13  ;;  %v2033_v61 = vmul.f32 %v3953_v52, %v1994_v47  ;;  %v1995_v44 = vmul.f32 %v2631_v46, %v3807_v42  ;;  %v1856_v4 = vpop.xlane.xlu0 %1855 }
 0x55b   :  { %v2633_v41 = vpop.eup %2632  ;;  %2642 = vrsqrt.f32 %v1937_v45  ;;  %v1938_v39 = vadd.f32 1e-05, %v1906_v53  ;;  %v1907_v16 = vmul.f32 0.0078125, %v1856_v4 }
 0x55c   :  { %2103 = vst [vmem:[#allocation2 + $0x10] sm:$0xff] %v2071_v33  ;;  %v2072_v27 = vadd.f32 %v3959_v57, %v2033_v61  ;;  %v2034_v29 = vmul.f32 %v3953_v52, %v1995_v44  ;;  %v1996_v14 = vmul.f32 %v2633_v41, %v3812_v12  ;;  %v1858_v17 = vpop.xlane.xlu1 %1857 }
 0x55d   :  { %v2635_v63 = vpop.eup %2634  ;;  %2644 = vrsqrt.f32 %v1938_v39  ;;  %v1939_v3 = vadd.f32 1e-05, %v1907_v16  ;;  %v1908_v51 = vmul.f32 0.0078125, %v1858_v17 }
 0x55e   :  { %2104 = vst [vmem:[#allocation2 + $0x18] sm:$0xff] %v2072_v27  ;;  %v2073_v42 = vadd.f32 %v3959_v57, %v2034_v29  ;;  %v2035_v5 = vmul.f32 %v3953_v52, %v1996_v14  ;;  %v1997_v10 = vmul.f32 %v2635_v63, %v3817_v21  ;;  %v1860_v15 = vpop.xlane.xlu0 %1859 }
 0x55f   :  { %v2637_v55 = vpop.eup %2636  ;;  %2646 = vrsqrt.f32 %v1939_v3  ;;  %v1940_v7 = vadd.f32 1e-05, %v1908_v51  ;;  %v1909_v9 = vmul.f32 0.0078125, %v1860_v15 }
 0x560   :  { %2105 = vst [vmem:[#allocation2 + $0x20] sm:$0xff] %v2073_v42  ;;  %v2074_v12 = vadd.f32 %v3959_v57, %v2035_v5  ;;  %v2036_v18 = vmul.f32 %v3953_v52, %v1997_v10  ;;  %v1998_v48 = vmul.f32 %v2637_v55, %v3822_v60  ;;  %v1862_v1 = vpop.xlane.xlu1 %1861 }
 0x561   :  { %v2639_v24 = vpop.eup %2638  ;;  %2648 = vrsqrt.f32 %v1940_v7  ;;  %v1941_v35 = vadd.f32 1e-05, %v1909_v9  ;;  %v1910_v58 = vmul.f32 0.0078125, %v1862_v1 }
 0x562   :  { %2106 = vst [vmem:[#allocation2 + $0x28] sm:$0xff] %v2074_v12  ;;  %v2075_v21 = vadd.f32 %v3959_v57, %v2036_v18  ;;  %v2037_v0 = vmul.f32 %v3953_v52, %v1998_v48  ;;  %v1999_v40 = vmul.f32 %v2639_v24, %v3827_v22  ;;  %v1864_v13 = vpop.xlane.xlu0 %1863 }
 0x563   :  { %v2641_v47 = vpop.eup %2640  ;;  %2650 = vrsqrt.f32 %v1941_v35  ;;  %v1942_v8 = vadd.f32 1e-05, %v1910_v58  ;;  %v1911_v46 = vmul.f32 0.0078125, %v1864_v13 }
 0x564   :  { %2107 = vst [vmem:[#allocation2 + $0x30] sm:$0xff] %v2075_v21  ;;  %v2076_v60 = vadd.f32 %v3959_v57, %v2037_v0  ;;  %v2038_v45 = vmul.f32 %v3953_v52, %v1999_v40  ;;  %v2000_v53 = vmul.f32 %v2641_v47, %v3832_v31  ;;  %v1866_v33 = vpop.xlane.xlu1 %1865 }
 0x565   :  { %v2643_v61 = vpop.eup %2642  ;;  %2652 = vrsqrt.f32 %v1942_v8  ;;  %v1943_v44 = vadd.f32 1e-05, %v1911_v46  ;;  %v1912_v4 = vmul.f32 0.0078125, %v1866_v33 }
 0x566   :  { %2108 = vst [vmem:[#allocation2 + $0x38] sm:$0xff] %v2076_v60  ;;  %v2077_v22 = vadd.f32 %v3959_v57, %v2038_v45  ;;  %v2039_v41 = vmul.f32 %v3953_v52, %v2000_v53  ;;  %v2001_v39 = vmul.f32 %v2643_v61, %v3837_v34  ;;  %v1868_v16 = vpop.xlane.xlu0 %1867 }
 0x567   :  { %v2645_v27 = vpop.eup %2644  ;;  %2654 = vrsqrt.f32 %v1943_v44  ;;  %v1944_v29 = vadd.f32 1e-05, %v1912_v4  ;;  %v1913_v14 = vmul.f32 0.0078125, %v1868_v16 }
 0x568   :  { %2109 = vst [vmem:[#allocation2 + $0x40] sm:$0xff] %v2077_v22  ;;  %v2078_v31 = vadd.f32 %v3959_v57, %v2039_v41  ;;  %v2040_v17 = vmul.f32 %v3953_v52, %v2001_v39  ;;  %v2002_v63 = vmul.f32 %v2645_v27, %v3842_v62  ;;  %v1870_v3 = vpop.xlane.xlu1 %1869 }
 0x569   :  { %v2647_v51 = vpop.eup %2646  ;;  %2656 = vrsqrt.f32 %v1944_v29  ;;  %v1945_v42 = vadd.f32 1e-05, %v1913_v14  ;;  %v1914_v5 = vmul.f32 0.0078125, %v1870_v3 }
 0x56a   :  { %2110 = vst [vmem:[#allocation2 + $0x48] sm:$0xff] %v2078_v31  ;;  %v2079_v34 = vadd.f32 %v3959_v57, %v2040_v17  ;;  %v2041_v10 = vmul.f32 %v3953_v52, %v2002_v63  ;;  %v2003_v15 = vmul.f32 %v2647_v51, %v3847_v2 }
 0x56b   :  { %v2649_v55 = vpop.eup %2648  ;;  %2658 = vrsqrt.f32 %v1945_v42  ;;  %v1946_v7 = vadd.f32 1e-05, %v1914_v5 }
 0x56c   :  { %2111 = vst [vmem:[#allocation2 + $0x50] sm:$0xff] %v2079_v34  ;;  %v2080_v9 = vadd.f32 %v3959_v57, %v2041_v10  ;;  %v2042_v62 = vmul.f32 %v3953_v52, %v2003_v15  ;;  %v2004_v12 = vmul.f32 %v2649_v55, %v3852_v26 }
 0x56d   :  { %v2651_v18 = vpop.eup %2650  ;;  %2660 = vrsqrt.f32 %v1946_v7 }
 0x56e   :  { %2112 = vst [vmem:[#allocation2 + $0x58] sm:$0xff] %v2080_v9  ;;  %v2081_v48 = vadd.f32 %v3959_v57, %v2042_v62  ;;  %v2043_v1 = vmul.f32 %v3953_v52, %v2004_v12  ;;  %v2005_v24 = vmul.f32 %v2651_v18, %v3857_v43 }
 0x56f   :  { %v2653_v2 = vpop.eup %2652 }
 0x570   :  { %2113 = vst [vmem:[#allocation2 + $0x60] sm:$0xff] %v2081_v48  ;;  %v2082_v35 = vadd.f32 %v3959_v57, %v2043_v1  ;;  %v2044_v58 = vmul.f32 %v3953_v52, %v2005_v24  ;;  %v2006_v21 = vmul.f32 %v2653_v2, %v3862_v11 }
 0x571   :  { %v2655_v0 = vpop.eup %2654 }
 0x572   :  { %2114 = vst [vmem:[#allocation2 + $0x68] sm:$0xff] %v2082_v35  ;;  %v2083_v26 = vadd.f32 %v3959_v57, %v2044_v58  ;;  %v2045_v40 = vmul.f32 %v3953_v52, %v2006_v21  ;;  %v2007_v13 = vmul.f32 %v2655_v0, %v3867_v32 }
 0x573   :  { %v2657_v47 = vpop.eup %2656 }
 0x574   :  { %2115 = vst [vmem:[#allocation2 + $0x70] sm:$0xff] %v2083_v26  ;;  %v2084_v43 = vadd.f32 %v3959_v57, %v2045_v40  ;;  %v2046_v8 = vmul.f32 %v3953_v52, %v2007_v13  ;;  %v2008_v46 = vmul.f32 %v2657_v47, %v3872_v38 }
 0x575   :  { %v2659_v60 = vpop.eup %2658 }
 0x576   :  { %2116 = vst [vmem:[#allocation2 + $0x78] sm:$0xff] %v2084_v43  ;;  %v2085_v11 = vadd.f32 %v3959_v57, %v2046_v8  ;;  %v2047_v45 = vmul.f32 %v3953_v52, %v2008_v46  ;;  %v2009_v53 = vmul.f32 %v2659_v60, %v3877_v28 }
 0x577   :  { %v2661_v33 = vpop.eup %2660 }
 0x578   :  { %2117 = vst [vmem:[#allocation2 + $0x80] sm:$0xff] %v2085_v11  ;;  %v2086_v32 = vadd.f32 %v3959_v57, %v2047_v45  ;;  %v2048_v61 = vmul.f32 %v3953_v52, %v2009_v53  ;;  %v2010_v44 = vmul.f32 %v2661_v33, %v3882_v6 }
 0x57a   :  { %2118 = vst [vmem:[#allocation2 + $0x88] sm:$0xff] %v2086_v32  ;;  %v2087_v4 = vadd.f32 %v3959_v57, %v2048_v61  ;;  %v2049_v38 = vmul.f32 %v3953_v52, %v2010_v44 }
 0x57c   :  { %2119 = vst [vmem:[#allocation2 + $0x90] sm:$0xff] %v2087_v4  ;;  %v2088_v22 = vadd.f32 %v3959_v57, %v2049_v38 }
 0x57e   :  { %2120 = vst [vmem:[#allocation2 + $0x98] sm:$0xff] %v2088_v22 }
 0x5aa   :  { %v1872_v41 = vpop.xlane.xlu0 %1871 }
 0x5ab   :  { %v1915_v39 = vmul.f32 0.0078125, %v1872_v41 }
 0x5ac   :  { %v1874_v28 = vpop.xlane.xlu1 %1873 }
 0x5ad   :  { %v1947_v16 = vadd.f32 1e-05, %v1915_v39  ;;  %v1916_v27 = vmul.f32 0.0078125, %v1874_v28 }
 0x5af   :  { %2662 = vrsqrt.f32 %v1947_v16  ;;  %v1948_v29 = vadd.f32 1e-05, %v1916_v27 }
 0x5b1   :  { %2664 = vrsqrt.f32 %v1948_v29 }
 0x5b2   :  { %v1876_v14 = vpop.xlane.xlu0 %1875 }
 0x5b3   :  { %v1917_v31 = vmul.f32 0.0078125, %v1876_v14 }
 0x5b4   :  { %v1878_v6 = vpop.xlane.xlu1 %1877 }
 0x5b5   :  { %v1949_v17 = vadd.f32 1e-05, %v1917_v31  ;;  %v1918_v63 = vmul.f32 0.0078125, %v1878_v6 }
 0x5b7   :  { %2666 = vrsqrt.f32 %v1949_v17  ;;  %v1950_v3 = vadd.f32 1e-05, %v1918_v63 }
 0x5b9   :  { %v2663_v51 = vpop.eup %2662  ;;  %2668 = vrsqrt.f32 %v1950_v3 }
 0x5ba   :  { %v2011_v42 = vmul.f32 %v2663_v51, %v3891_v54  ;;  %v1880_v5 = vpop.xlane.xlu0 %1879 }
 0x5bb   :  { %v2665_v34 = vpop.eup %2664  ;;  %v1919_v10 = vmul.f32 0.0078125, %v1880_v5 }
 0x5bc   :  { %v2050_v15 = vmul.f32 %v3953_v52, %v2011_v42  ;;  %v2012_v55 = vmul.f32 %v2665_v34, %v3894_v59  ;;  %v1882_v7 = vpop.xlane.xlu1 %1881 }
 0x5bd   :  { %v1951_v9 = vadd.f32 1e-05, %v1919_v10  ;;  %v1920_v62 = vmul.f32 0.0078125, %v1882_v7 }
 0x5be   :  { %v2089_v12 = vadd.f32 %v3959_v57, %v2050_v15  ;;  %v2051_v18 = vmul.f32 %v3953_v52, %v2012_v55 }
 0x5bf   :  { %2670 = vrsqrt.f32 %v1951_v9  ;;  %v1952_v48 = vadd.f32 1e-05, %v1920_v62 }
 0x5c0   :  { %2121 = vst [vmem:[#allocation2 + $0xa0] sm:$0xff] %v2089_v12  ;;  %v2090_v1 = vadd.f32 %v3959_v57, %v2051_v18 }
 0x5c1   :  { %v2667_v54 = vpop.eup %2666  ;;  %2672 = vrsqrt.f32 %v1952_v48 }
 0x5c2   :  { %2122 = vst [vmem:[#allocation2 + $0xa8] sm:$0xff] %v2090_v1  ;;  %v2013_v24 = vmul.f32 %v2667_v54, %v3901_v23  ;;  %v1884_v2 = vpop.xlane.xlu0 %1883 }
 0x5c3   :  { %v2669_v35 = vpop.eup %2668  ;;  %v1921_v59 = vmul.f32 0.0078125, %v1884_v2 }
 0x5c4   :  { %v2052_v58 = vmul.f32 %v3953_v52, %v2013_v24  ;;  %v2014_v21 = vmul.f32 %v2669_v35, %v3904_v19  ;;  %v1886_v0 = vpop.xlane.xlu1 %1885 }
 0x5c5   :  { %v1953_v26 = vadd.f32 1e-05, %v1921_v59  ;;  %v1922_v40 = vmul.f32 0.0078125, %v1886_v0 }
 0x5c6   :  { %v2091_v13 = vadd.f32 %v3959_v57, %v2052_v58  ;;  %v2053_v47 = vmul.f32 %v3953_v52, %v2014_v21 }
 0x5c7   :  { %2674 = vrsqrt.f32 %v1953_v26  ;;  %v1954_v43 = vadd.f32 1e-05, %v1922_v40 }
 0x5c8   :  { %2123 = vst [vmem:[#allocation2 + $0xb0] sm:$0xff] %v2091_v13  ;;  %v2092_v8 = vadd.f32 %v3959_v57, %v2053_v47 }
 0x5c9   :  { %v2671_v23 = vpop.eup %2670  ;;  %2676 = vrsqrt.f32 %v1954_v43 }
 0x5ca   :  { %2124 = vst [vmem:[#allocation2 + $0xb8] sm:$0xff] %v2092_v8  ;;  %v2015_v46 = vmul.f32 %v2671_v23, %v3911_v30  ;;  %v1888_v60 = vpop.xlane.xlu0 %1887 }
 0x5cb   :  { %v2673_v11 = vpop.eup %2672  ;;  %v1923_v19 = vmul.f32 0.0078125, %v1888_v60 }
 0x5cc   :  { %v2054_v45 = vmul.f32 %v3953_v52, %v2015_v46  ;;  %v2016_v53 = vmul.f32 %v2673_v11, %v3914_v50  ;;  %v1890_v33 = vpop.xlane.xlu1 %1889 }
 0x5cd   :  { %v1955_v32 = vadd.f32 1e-05, %v1923_v19  ;;  %v1924_v61 = vmul.f32 0.0078125, %v1890_v33 }
 0x5ce   :  { %v2093_v44 = vadd.f32 %v3959_v57, %v2054_v45  ;;  %v2055_v4 = vmul.f32 %v3953_v52, %v2016_v53 }
 0x5cf   :  { %2678 = vrsqrt.f32 %v1955_v32  ;;  %v1956_v38 = vadd.f32 1e-05, %v1924_v61 }
 0x5d0   :  { %2125 = vst [vmem:[#allocation2 + $0xc0] sm:$0xff] %v2093_v44  ;;  %v2094_v22 = vadd.f32 %v3959_v57, %v2055_v4 }
 0x5d1   :  { %v2675_v30 = vpop.eup %2674  ;;  %2680 = vrsqrt.f32 %v1956_v38 }
 0x5d2   :  { %2126 = vst [vmem:[#allocation2 + $0xc8] sm:$0xff] %v2094_v22  ;;  %v2017_v41 = vmul.f32 %v2675_v30, %v3921_v49  ;;  %v1892_v39 = vpop.xlane.xlu0 %1891 }
 0x5d3   :  { %v2677_v28 = vpop.eup %2676  ;;  %v1925_v50 = vmul.f32 0.0078125, %v1892_v39 }
 0x5d4   :  { %v2056_v16 = vmul.f32 %v3953_v52, %v2017_v41  ;;  %v2018_v27 = vmul.f32 %v2677_v28, %v3924_v37  ;;  %v1894_v29 = vpop.xlane.xlu1 %1893 }
 0x5d5   :  { %v1957_v14 = vadd.f32 1e-05, %v1925_v50  ;;  %v1926_v31 = vmul.f32 0.0078125, %v1894_v29 }
 0x5d6   :  { %v2095_v6 = vadd.f32 %v3959_v57, %v2056_v16  ;;  %v2057_v17 = vmul.f32 %v3953_v52, %v2018_v27 }
 0x5d7   :  { %2682 = vrsqrt.f32 %v1957_v14  ;;  %v1958_v63 = vadd.f32 1e-05, %v1926_v31 }
 0x5d8   :  { %2127 = vst [vmem:[#allocation2 + $0xd0] sm:$0xff] %v2095_v6  ;;  %v2096_v3 = vadd.f32 %v3959_v57, %v2057_v17 }
 0x5d9   :  { %v2679_v49 = vpop.eup %2678  ;;  %2684 = vrsqrt.f32 %v1958_v63 }
 0x5da   :  { %2128 = vst [vmem:[#allocation2 + $0xd8] sm:$0xff] %v2096_v3  ;;  %v2019_v51 = vmul.f32 %v2679_v49, %v3931_v25 }
 0x5db   :  { %v2681_v42 = vpop.eup %2680 }
 0x5dc   :  { %v2058_v37 = vmul.f32 %v3953_v52, %v2019_v51  ;;  %v2020_v5 = vmul.f32 %v2681_v42, %v3934_v20 }
 0x5de   :  { %v2097_v34 = vadd.f32 %v3959_v57, %v2058_v37  ;;  %v2059_v10 = vmul.f32 %v3953_v52, %v2020_v5 }
 0x5e0   :  { %2129 = vst [vmem:[#allocation2 + $0xe0] sm:$0xff] %v2097_v34  ;;  %v2098_v15 = vadd.f32 %v3959_v57, %v2059_v10 }
 0x5e1   :  { %v2683_v55 = vpop.eup %2682 }
 0x5e2   :  { %2130 = vst [vmem:[#allocation2 + $0xe8] sm:$0xff] %v2098_v15  ;;  %v2021_v7 = vmul.f32 %v2683_v55, %v3941_v56 }
 0x5e3   :  { %v2685_v9 = vpop.eup %2684 }
 0x5e4   :  { %v2060_v62 = vmul.f32 %v3953_v52, %v2021_v7  ;;  %v2022_v25 = vmul.f32 %v2685_v9, %v3944_v36 }
 0x5e6   :  { %v2099_v20 = vadd.f32 %v3959_v57, %v2060_v62  ;;  %v2061_v12 = vmul.f32 %v3953_v52, %v2022_v25 }
 0x5e8   :  { %2131 = vst [vmem:[#allocation2 + $0xf0] sm:$0xff] %v2099_v20  ;;  %v2100_v18 = vadd.f32 %v3959_v57, %v2061_v12 }
 0x5ea   :  { %2132 = vst [vmem:[#allocation2 + $0xf8] sm:$0xff] %v2100_v18 }
 0x5eb   :  { %2697 = shalt.err (!%p2694_p4)
}
 0x5ec   :  { %s2698_s2 = scalar_lea.hbm %s4080_s12, 4096 }
 0x5ed   :  { %p2699_p5 = scmp.ne.s32.totalorder %s4080_s12, %s2698_s2  ;;  %p2702_p6 = scmp.lt.u32.totalorder %s2698_s2, %s4080_s12 }
 0x5ef   :  { %p2704_p7 = pnand %p2702_p6, %p2699_p5 }
 0x5f1   :  { %2707 = shalt.err (!%p2704_p7)
}
 0x5f2   :  { %s2712_s15 = smov 128   ;;  %s2713_s1 = smov 8  }
 0x5f3   :  { %2144 = dma.vmem_to_hbm [thread:$0]  %s2139_s11, 4096, %s4080_s12, [#allocation3], %s2712_s15, %s2712_s15, %s2713_s1  }
 0x5f4   :  { %2708 = dma.done.wait [#allocation3], 4096  }
 0x5f5   :  { %2709 = vsyncadd [#allocation3], 4294963200 }
 0x5f6   :  { %2148 = vsyncpa [#allocation3], 1 }

</bundles_post_ra>
